<compile_context>
chip_gen: v7x
topology: tpu7x:2x2x1
jax: 0.10.0
libtpu: 0.0.40
codegen_flags: <defaults>
</compile_context>

<pallas_src>
import functools

import jax
import jax.numpy as jnp
from jax.experimental import pallas as pl
from jax.experimental.pallas import tpu as pltpu


_EPS = 1e-5


# --------------------------------------------------------------------------
# In-kernel helpers
# --------------------------------------------------------------------------

def _channel_fold_matrices(n_lanes, cout):
    """0/1 matrices to fold per-lane sums into per-channel sums and spread
    them back, for a lane layout of `n_lanes // cout` groups of `cout` lanes."""
    p = jax.lax.broadcasted_iota(jnp.int32, (n_lanes, cout), 0)
    c = jax.lax.broadcasted_iota(jnp.int32, (n_lanes, cout), 1)
    fold = jnp.where((p % cout) == c, 1.0, 0.0)            # (n_lanes, cout)
    c2 = jax.lax.broadcasted_iota(jnp.int32, (cout, n_lanes), 0)
    p2 = jax.lax.broadcasted_iota(jnp.int32, (cout, n_lanes), 1)
    spread = jnp.where((p2 % cout) == c2, 1.0, 0.0)         # (cout, n_lanes)
    return fold, spread


def _batchnorm_affine(parts, cout, count, gamma, beta):
    """Two-pass BatchNorm (biased batch stats) over f32 parts sharing the
    lane layout (groups of `cout` channels).  Returns (scale, shift)."""
    n_lanes = parts[0].shape[1]
    fold, spread = _channel_fold_matrices(n_lanes, cout)

    col_sum = jnp.sum(parts[0], axis=0, keepdims=True)
    for p in parts[1:]:
        col_sum = col_sum + jnp.sum(p, axis=0, keepdims=True)
    mean_c = jnp.dot(col_sum, fold, preferred_element_type=jnp.float32) / count
    mean = jnp.dot(mean_c, spread, preferred_element_type=jnp.float32)   # (1, L)

    sq = jnp.sum((parts[0] - mean) * (parts[0] - mean), axis=0, keepdims=True)
    for p in parts[1:]:
        sq = sq + jnp.sum((p - mean) * (p - mean), axis=0, keepdims=True)
    var_c = jnp.dot(sq, fold, preferred_element_type=jnp.float32) / count
    var = jnp.dot(var_c, spread, preferred_element_type=jnp.float32)

    scale = gamma * jax.lax.rsqrt(var + _EPS)
    shift = beta - mean * scale
    return scale, shift


def _deconv_pair(x, w, hin, lp):
    """Fused ConvTranspose2d(k=4, s=2, p=1) on one whole activation.

    x: (R=N*hin, K=win*cin) bf16, rows = (n, h).
    w: (K, 4*lp) bf16, four kh segments, columns (w-parity, j, cout).
    Returns f32 (even_rows, odd_rows), each (R, lp): rows oh=2h / oh=2h+1,
    lanes already in the stored (w-parity, j, cout) output layout."""
    r = x.shape[0]

    # H-direction neighbour rows via tiny 0/1 shift matmuls (the boundary and
    # cross-image masking is built into the shift matrix).
    rr = jax.lax.broadcasted_iota(jnp.int32, (r, r), 0)
    cc = jax.lax.broadcasted_iota(jnp.int32, (r, r), 1)
    h_of_row = rr % hin
    s_dn = jnp.where((rr == cc + 1) & (h_of_row != 0), 1.0, 0.0).astype(x.dtype)
    s_up = jnp.where((cc == rr + 1) & (h_of_row != hin - 1), 1.0, 0.0).astype(x.dtype)
    x_dn = jnp.dot(s_dn, x, preferred_element_type=jnp.float32).astype(x.dtype)
    x_up = jnp.dot(s_up, x, preferred_element_type=jnp.float32).astype(x.dtype)

    w_kh0 = w[:, 0 * lp:1 * lp]
    w_kh1 = w[:, 1 * lp:2 * lp]
    w_kh2 = w[:, 2 * lp:3 * lp]
    w_kh3 = w[:, 3 * lp:4 * lp]

    even = (jnp.dot(x, w_kh1, preferred_element_type=jnp.float32) +
            jnp.dot(x_dn, w_kh3, preferred_element_type=jnp.float32))
    odd = (jnp.dot(x, w_kh2, preferred_element_type=jnp.float32) +
           jnp.dot(x_up, w_kh0, preferred_element_type=jnp.float32))
    return even, odd


# --------------------------------------------------------------------------
# Kernels
# --------------------------------------------------------------------------

def _proj_bn_relu_kernel(x_ref, w_ref, g_ref, b_ref, o_ref, *, cout, count):
    # Layer 0: ConvTranspose2d(s=1, p=0) on a 1x1 input == plain matmul;
    # columns are already (kh, kw, c), i.e. the final spatial layout.
    p = jnp.dot(x_ref[...], w_ref[...], preferred_element_type=jnp.float32)
    scale, shift = _batchnorm_affine([p], cout, count, g_ref[...], b_ref[...])
    o_ref[...] = jnp.maximum(p * scale + shift, 0.0).astype(o_ref.dtype)


def _deconv_bn_relu_kernel(x_ref, w_ref, g_ref, b_ref, o_ref, *, hin, cout, count):
    lp = o_ref.shape[1] // 2
    even, odd = _deconv_pair(x_ref[...], w_ref[...], hin, lp)
    scale, shift = _batchnorm_affine([even, odd], cout, count,
                                     g_ref[...], b_ref[...])
    o_ref[:, :lp] = jnp.maximum(even * scale + shift, 0.0).astype(o_ref.dtype)
    o_ref[:, lp:] = jnp.maximum(odd * scale + shift, 0.0).astype(o_ref.dtype)


def _deconv_tanh_kernel(x_ref, w_ref, o_ref, *, hin):
    lp = o_ref.shape[1] // 2
    even, odd = _deconv_pair(x_ref[...], w_ref[...], hin, lp)
    o_ref[:, :lp] = jnp.tanh(even).astype(o_ref.dtype)
    o_ref[:, lp:] = jnp.tanh(odd).astype(o_ref.dtype)


# --------------------------------------------------------------------------
# pallas_call wrappers (single full-extent block, grid=(1,))
# --------------------------------------------------------------------------

def _full_spec(shape):
    nd = len(shape)
    return pl.BlockSpec(shape, lambda i, _nd=nd: (0,) * _nd)


_PARAMS = pltpu.CompilerParams(dimension_semantics=("arbitrary",))


def fused_proj_bn_relu(x, wmat, gamma_t, beta_t, cout):
    n, k = x.shape
    lcols = wmat.shape[1]
    count = float(n * (lcols // cout))
    kern = functools.partial(_proj_bn_relu_kernel, cout=cout, count=count)
    return pl.pallas_call(
        kern,
        out_shape=jax.ShapeDtypeStruct((n, lcols), jnp.bfloat16),
        grid=(1,),
        in_specs=[_full_spec((n, k)), _full_spec(wmat.shape),
                  _full_spec((1, lcols)), _full_spec((1, lcols))],
        out_specs=_full_spec((n, lcols)),
        compiler_params=_PARAMS,
    )(x, wmat, gamma_t, beta_t)


def fused_deconv_bn_relu(x, wmat, gamma_t, beta_t, *, hin, cout):
    r, k = x.shape
    lp = wmat.shape[1] // 4
    count = float(2 * r * (lp // cout))          # = N * (2*hin) * (2*win)
    kern = functools.partial(_deconv_bn_relu_kernel, hin=hin, cout=cout,
                             count=count)
    return pl.pallas_call(
        kern,
        out_shape=jax.ShapeDtypeStruct((r, 2 * lp), jnp.bfloat16),
        grid=(1,),
        in_specs=[_full_spec((r, k)), _full_spec(wmat.shape),
                  _full_spec((1, lp)), _full_spec((1, lp))],
        out_specs=_full_spec((r, 2 * lp)),
        compiler_params=_PARAMS,
    )(x, wmat, gamma_t, beta_t)


def fused_deconv_tanh(x, wmat, *, hin):
    r, k = x.shape
    lp = wmat.shape[1] // 4
    kern = functools.partial(_deconv_tanh_kernel, hin=hin)
    return pl.pallas_call(
        kern,
        out_shape=jax.ShapeDtypeStruct((r, 2 * lp), jnp.float32),
        grid=(1,),
        in_specs=[_full_spec((r, k)), _full_spec(wmat.shape)],
        out_specs=_full_spec((r, 2 * lp)),
        compiler_params=_PARAMS,
    )(x, wmat)


# --------------------------------------------------------------------------
# Init: weights_init semantics + packing of deconvs into matmul form
# --------------------------------------------------------------------------

def _build_deconv_matrix(w, win, cin, cout, parity_input):
    """Dense matrix for ConvTranspose2d(k=4, s=2, p=1) applied to one whole
    input row.  Rows: input lanes (natural (w_in, cin), or parity-separated
    (dw, j, cin) if the producing layer stored that layout).  Columns:
    [kh=0 | kh=1 | kh=2 | kh=3] segments, each ordered (dw_out, j_out, cout)
    so the matmul output is already the stored (w-parity separated) layout."""
    i0 = jnp.eye(win, dtype=w.dtype)
    ip1 = jnp.eye(win, k=1, dtype=w.dtype)     # w_in == j_out - 1
    im1 = jnp.eye(win, k=-1, dtype=w.dtype)    # w_in == j_out + 1
    segs = []
    for kh in range(4):
        w0 = w[:, :, kh, 0]
        w1 = w[:, :, kh, 1]
        w2 = w[:, :, kh, 2]
        w3 = w[:, :, kh, 3]
        # even output columns (ow = 2*j): kw=1 @ w_in=j, kw=3 @ w_in=j-1
        b_even = (i0[:, None, :, None] * w1[None, :, None, :] +
                  ip1[:, None, :, None] * w3[None, :, None, :])
        # odd output columns (ow = 2*j+1): kw=0 @ w_in=j+1, kw=2 @ w_in=j
        b_odd = (im1[:, None, :, None] * w0[None, :, None, :] +
                 i0[:, None, :, None] * w2[None, :, None, :])
        seg = jnp.stack([b_even, b_odd], axis=2)   # (w_in, cin, dw, j, cout)
        segs.append(seg.reshape(win * cin, 2 * win * cout))
    mat = jnp.concatenate(segs, axis=1)
    if parity_input:
        # reorder rows from conceptual (w_in, cin) to the stored
        # (dw, j, cin) order (w_in = 2*j + dw) of the previous layer's output.
        mat = mat.reshape(win, cin, -1)
        mat = jnp.concatenate([mat[0::2], mat[1::2]], axis=0)
        mat = mat.reshape(win * cin, -1)
    return mat


def init_generator_params(key, latent_channels, gen_maps, photo_channels):
    chans = [latent_channels, gen_maps * 8, gen_maps * 4,
             gen_maps * 2, gen_maps, photo_channels]
    widths = [1, 4, 8, 16, 32]             # input spatial width of each layer
    params = {"w": [], "bn": []}
    for li in range(5):
        key, wk = jax.random.split(key)
        cin, cout = chans[li], chans[li + 1]
        w = 0.02 * jax.random.normal(wk, (cin, cout, 4, 4), jnp.float32)
        if li == 0:
            wm = jnp.transpose(w, (0, 2, 3, 1)).reshape(cin, 16 * cout)
        else:
            if li == 4:
                cpad = max(8, -(-cout // 8) * 8)   # keep output lanes 128-aligned
                w = jnp.pad(w, ((0, 0), (0, cpad - cout), (0, 0), (0, 0)))
                cout = cpad
            wm = _build_deconv_matrix(w, widths[li], cin, cout,
                                      parity_input=(li >= 2))
        params["w"].append(wm.astype(jnp.bfloat16))
        if li < 4:
            key, gk = jax.random.split(key)
            gamma = 1.0 + 0.02 * jax.random.normal(gk, (cout,), jnp.float32)
            beta = jnp.zeros((cout,), jnp.float32)
            groups = 16 if li == 0 else 2 * widths[li]
            params["bn"].append((jnp.tile(gamma, groups).reshape(1, -1),
                                 jnp.tile(beta, groups).reshape(1, -1)))
    return params


# --------------------------------------------------------------------------
# Forward
# --------------------------------------------------------------------------

def generator_forward(z_nchw, params, photo_channels):
    n = z_nchw.shape[0]
    x = z_nchw.reshape(n, -1).astype(jnp.bfloat16)

    # layer 0: 1x1 -> 4x4, matmul + BN + ReLU fused.
    w0 = params["w"][0]
    c0 = w0.shape[1] // 16
    g, b = params["bn"][0]
    y = fused_proj_bn_relu(x, w0, g, b, c0)          # (N, 16*c0) bf16
    x = y.reshape(n * 4, 4 * c0)                     # rows (n,h), lanes (w,c): free

    # layers 1..3: fused deconv(k=4,s=2,p=1) + BN + ReLU, one kernel each.
    hw = 4
    for li in range(1, 4):
        wmat = params["w"][li]
        cout = wmat.shape[1] // (8 * hw)
        g, b = params["bn"][li]
        y = fused_deconv_bn_relu(x, wmat, g, b, hin=hw, cout=cout)
        lp = y.shape[1] // 2
        x = y.reshape(n * 2 * hw, lp)                # free row-major refold
        hw *= 2

    # layer 4: fused deconv + tanh, f32 output.
    w4 = params["w"][4]
    cpad = w4.shape[1] // (8 * hw)
    y = fused_deconv_tanh(x, w4, hin=hw)             # (N*hw, 2*Lp) f32

    # Single XLA epilogue: de-interleave parities, drop padded channels, NCHW.
    hout = 2 * hw
    y = y.reshape(n, hw, 2, 2, hw, cpad)             # (n, i, dh, dw, j, c)
    y = jnp.transpose(y, (0, 5, 1, 2, 4, 3)).reshape(n, cpad, hout, hout)
    return y[:, :photo_channels]


# --------------------------------------------------------------------------
# Main
# --------------------------------------------------------------------------

if __name__ == "__main__":
    latent_channels, gen_maps, photo_channels = 16, 8, 3
    batch = 2

    key = jax.random.PRNGKey(0)
    params = init_generator_params(key, latent_channels, gen_maps,
                                   photo_channels)
    z = jax.random.normal(jax.random.fold_in(key, 999),
                          (batch, latent_channels, 1, 1), jnp.float32)

    fwd = jax.jit(functools.partial(generator_forward,
                                    photo_channels=photo_channels))
    out = jax.block_until_ready(fwd(z, params))

    assert out.shape == (batch, photo_channels, 64, 64), out.shape
    assert bool(jnp.all(jnp.isfinite(out)))
    assert bool(jnp.all(jnp.abs(out) <= 1.0 + 1e-6))   # tanh range
    print("KERNEL_OK")
</pallas_src>

<mosaic_0001>
module attributes {stable_mosaic.version = 11 : i64} {
  func.func @_proj_bn_relu_kernel(%arg0: i32, %arg1: memref<2x16xbf16, #tpu.memory_space<vmem>>, %arg2: memref<16x1024xbf16, #tpu.memory_space<vmem>>, %arg3: memref<1x1024xf32, #tpu.memory_space<vmem>>, %arg4: memref<1x1024xf32, #tpu.memory_space<vmem>>, %arg5: memref<2x1024xbf16, #tpu.memory_space<vmem>>) attributes {dimension_semantics = [#tpu.dimension_semantics<arbitrary>], iteration_bounds = array<i64: 1>, scalar_prefetch = 0 : i64, scratch_operands = 0 : i64, tpu.core_type = #tpu.core_type<tc>, window_params = [{pipeline_mode = #tpu.pipeline_mode<synchronous>, transform_indices = @transform_0, window_bounds = array<i64: 2, 16>}, {pipeline_mode = #tpu.pipeline_mode<synchronous>, transform_indices = @transform_1, window_bounds = array<i64: 16, 1024>}, {pipeline_mode = #tpu.pipeline_mode<synchronous>, transform_indices = @transform_2, window_bounds = array<i64: 1, 1024>}, {pipeline_mode = #tpu.pipeline_mode<synchronous>, transform_indices = @transform_3, window_bounds = array<i64: 1, 1024>}, {pipeline_mode = #tpu.pipeline_mode<synchronous>, transform_indices = @transform_4, window_bounds = array<i64: 2, 1024>}]} {
    %c0 = arith.constant 0 : index
    %c0_0 = arith.constant 0 : index
    %0 = vector.load %arg1[%c0, %c0_0] : memref<2x16xbf16, #tpu.memory_space<vmem>>, vector<2x16xbf16>
    %c0_1 = arith.constant 0 : index
    %c0_2 = arith.constant 0 : index
    %1 = vector.load %arg2[%c0_1, %c0_2] : memref<16x1024xbf16, #tpu.memory_space<vmem>>, vector<16x1024xbf16>
    %cst = arith.constant dense<0.000000e+00> : vector<2x1024xf32>
    %2 = tpu.matmul %0, %1, %cst {dimension_numbers = #tpu.dot_dimension_numbers<[1], [0], [0], [1], [0, 0, 1, 1], [], []>} : vector<2x16xbf16>, vector<16x1024xbf16>, vector<2x1024xf32> -> vector<2x1024xf32>
    %c0_3 = arith.constant 0 : index
    %c0_4 = arith.constant 0 : index
    %3 = vector.load %arg3[%c0_3, %c0_4] : memref<1x1024xf32, #tpu.memory_space<vmem>>, vector<1x1024xf32>
    %c0_5 = arith.constant 0 : index
    %c0_6 = arith.constant 0 : index
    %4 = vector.load %arg4[%c0_5, %c0_6] : memref<1x1024xf32, #tpu.memory_space<vmem>>, vector<1x1024xf32>
    %5 = tpu.iota {dimensions = array<i32: 0>} : vector<1024x64xi32>
    %6 = tpu.iota {dimensions = array<i32: 1>} : vector<1024x64xi32>
    %c64_i32 = arith.constant 64 : i32
    %c0_i32 = arith.constant 0 : i32
    %7 = arith.cmpi eq, %c64_i32, %c0_i32 : i32
    %c1_i32 = arith.constant 1 : i32
    %8 = arith.select %7, %c1_i32, %c64_i32 : i32
    %9 = vector.broadcast %8 : i32 to vector<1024x64xi32>
    %10 = arith.remsi %5, %9 : vector<1024x64xi32>
    %c0_i32_7 = arith.constant 0 : i32
    %11 = vector.broadcast %c0_i32_7 : i32 to vector<1024x64xi32>
    %12 = arith.cmpi ne, %10, %11 : vector<1024x64xi32>
    %c0_i32_8 = arith.constant 0 : i32
    %13 = vector.broadcast %c0_i32_8 : i32 to vector<1024x64xi32>
    %14 = arith.cmpi slt, %10, %13 : vector<1024x64xi32>
    %c0_i32_9 = arith.constant 0 : i32
    %15 = arith.cmpi slt, %8, %c0_i32_9 : i32
    %16 = vector.broadcast %15 : i1 to vector<1024x64xi1>
    %17 = vector.broadcast %16 : vector<1024x64xi1> to vector<1024x64xi1>
    %18 = arith.xori %14, %17 : vector<1024x64xi1>
    %19 = arith.andi %18, %12 : vector<1024x64xi1>
    %20 = vector.broadcast %8 : i32 to vector<1024x64xi32>
    %21 = arith.addi %10, %20 : vector<1024x64xi32>
    %22 = arith.select %19, %21, %10 : vector<1024x64xi1>, vector<1024x64xi32>
    %23 = arith.cmpi eq, %22, %6 : vector<1024x64xi32>
    %cst_10 = arith.constant 1.000000e+00 : f32
    %cst_11 = arith.constant 0.000000e+00 : f32
    %24 = vector.broadcast %cst_10 : f32 to vector<1024x64xf32>
    %25 = vector.broadcast %cst_11 : f32 to vector<1024x64xf32>
    %26 = arith.select %23, %24, %25 : vector<1024x64xi1>, vector<1024x64xf32>
    %27 = tpu.iota {dimensions = array<i32: 0>} : vector<64x1024xi32>
    %28 = tpu.iota {dimensions = array<i32: 1>} : vector<64x1024xi32>
    %c64_i32_12 = arith.constant 64 : i32
    %c0_i32_13 = arith.constant 0 : i32
    %29 = arith.cmpi eq, %c64_i32_12, %c0_i32_13 : i32
    %c1_i32_14 = arith.constant 1 : i32
    %30 = arith.select %29, %c1_i32_14, %c64_i32_12 : i32
    %31 = vector.broadcast %30 : i32 to vector<64x1024xi32>
    %32 = arith.remsi %28, %31 : vector<64x1024xi32>
    %c0_i32_15 = arith.constant 0 : i32
    %33 = vector.broadcast %c0_i32_15 : i32 to vector<64x1024xi32>
    %34 = arith.cmpi ne, %32, %33 : vector<64x1024xi32>
    %c0_i32_16 = arith.constant 0 : i32
    %35 = vector.broadcast %c0_i32_16 : i32 to vector<64x1024xi32>
    %36 = arith.cmpi slt, %32, %35 : vector<64x1024xi32>
    %c0_i32_17 = arith.constant 0 : i32
    %37 = arith.cmpi slt, %30, %c0_i32_17 : i32
    %38 = vector.broadcast %37 : i1 to vector<64x1024xi1>
    %39 = vector.broadcast %38 : vector<64x1024xi1> to vector<64x1024xi1>
    %40 = arith.xori %36, %39 : vector<64x1024xi1>
    %41 = arith.andi %40, %34 : vector<64x1024xi1>
    %42 = vector.broadcast %30 : i32 to vector<64x1024xi32>
    %43 = arith.addi %32, %42 : vector<64x1024xi32>
    %44 = arith.select %41, %43, %32 : vector<64x1024xi1>, vector<64x1024xi32>
    %45 = arith.cmpi eq, %44, %27 : vector<64x1024xi32>
    %cst_18 = arith.constant 1.000000e+00 : f32
    %cst_19 = arith.constant 0.000000e+00 : f32
    %46 = vector.broadcast %cst_18 : f32 to vector<64x1024xf32>
    %47 = vector.broadcast %cst_19 : f32 to vector<64x1024xf32>
    %48 = arith.select %45, %46, %47 : vector<64x1024xi1>, vector<64x1024xf32>
    %cst_20 = arith.constant dense<0.000000e+00> : vector<1024xf32>
    %49 = vector.multi_reduction <add>, %2, %cst_20 [0] : vector<2x1024xf32> to vector<1024xf32>
    %50 = vector.shape_cast %49 : vector<1024xf32> to vector<1x1024xf32>
    %cst_21 = arith.constant dense<0.000000e+00> : vector<1x64xf32>
    %51 = tpu.matmul %50, %26, %cst_21 {dimension_numbers = #tpu.dot_dimension_numbers<[1], [0], [0], [1], [0, 0, 1, 1], [], []>} : vector<1x1024xf32>, vector<1024x64xf32>, vector<1x64xf32> -> vector<1x64xf32>
    %cst_22 = arith.constant 3.200000e+01 : f32
    %52 = vector.broadcast %cst_22 : f32 to vector<1x64xf32>
    %53 = arith.divf %51, %52 : vector<1x64xf32>
    %cst_23 = arith.constant dense<0.000000e+00> : vector<1x1024xf32>
    %54 = tpu.matmul %53, %48, %cst_23 {dimension_numbers = #tpu.dot_dimension_numbers<[1], [0], [0], [1], [0, 0, 1, 1], [], []>} : vector<1x64xf32>, vector<64x1024xf32>, vector<1x1024xf32> -> vector<1x1024xf32>
    %55 = vector.broadcast %54 : vector<1x1024xf32> to vector<2x1024xf32>
    %56 = arith.subf %2, %55 : vector<2x1024xf32>
    %57 = vector.broadcast %54 : vector<1x1024xf32> to vector<2x1024xf32>
    %58 = arith.subf %2, %57 : vector<2x1024xf32>
    %59 = arith.mulf %56, %58 : vector<2x1024xf32>
    %cst_24 = arith.constant dense<0.000000e+00> : vector<1024xf32>
    %60 = vector.multi_reduction <add>, %59, %cst_24 [0] : vector<2x1024xf32> to vector<1024xf32>
    %61 = vector.shape_cast %60 : vector<1024xf32> to vector<1x1024xf32>
    %cst_25 = arith.constant dense<0.000000e+00> : vector<1x64xf32>
    %62 = tpu.matmul %61, %26, %cst_25 {dimension_numbers = #tpu.dot_dimension_numbers<[1], [0], [0], [1], [0, 0, 1, 1], [], []>} : vector<1x1024xf32>, vector<1024x64xf32>, vector<1x64xf32> -> vector<1x64xf32>
    %cst_26 = arith.constant 3.200000e+01 : f32
    %63 = vector.broadcast %cst_26 : f32 to vector<1x64xf32>
    %64 = arith.divf %62, %63 : vector<1x64xf32>
    %cst_27 = arith.constant dense<0.000000e+00> : vector<1x1024xf32>
    %65 = tpu.matmul %64, %48, %cst_27 {dimension_numbers = #tpu.dot_dimension_numbers<[1], [0], [0], [1], [0, 0, 1, 1], [], []>} : vector<1x64xf32>, vector<64x1024xf32>, vector<1x1024xf32> -> vector<1x1024xf32>
    %cst_28 = arith.constant 9.99999974E-6 : f32
    %66 = vector.broadcast %cst_28 : f32 to vector<1x1024xf32>
    %67 = arith.addf %65, %66 : vector<1x1024xf32>
    %68 = math.rsqrt %67 : vector<1x1024xf32>
    %69 = arith.mulf %3, %68 : vector<1x1024xf32>
    %70 = arith.mulf %54, %69 : vector<1x1024xf32>
    %71 = arith.subf %4, %70 : vector<1x1024xf32>
    %72 = vector.broadcast %69 : vector<1x1024xf32> to vector<2x1024xf32>
    %73 = arith.mulf %2, %72 : vector<2x1024xf32>
    %74 = vector.broadcast %71 : vector<1x1024xf32> to vector<2x1024xf32>
    %75 = arith.addf %73, %74 : vector<2x1024xf32>
    %cst_29 = arith.constant 0.000000e+00 : f32
    %76 = vector.broadcast %cst_29 : f32 to vector<2x1024xf32>
    %77 = arith.maximumf %75, %76 : vector<2x1024xf32>
    %78 = arith.truncf %77 : vector<2x1024xf32> to vector<2x1024xbf16>
    %c0_30 = arith.constant 0 : index
    %c0_31 = arith.constant 0 : index
    %79 = vector.load %arg5[%c0_30, %c0_31] : memref<2x1024xbf16, #tpu.memory_space<vmem>>, vector<2x1024xbf16>
    tpu.vector_store %arg5[%c0_30, %c0_31], %78 {strides = array<i32>} : memref<2x1024xbf16, #tpu.memory_space<vmem>>, vector<2x1024xbf16>,
    return
  }
  func.func @transform_0(%arg0: i32) -> (i32, i32) {
    %c0_i32 = arith.constant 0 : i32
    %c0_i32_0 = arith.constant 0 : i32
    %c0_i32_1 = arith.constant 0 : i32
    return %c0_i32, %c0_i32_0 : i32, i32
  }
  func.func @transform_1(%arg0: i32) -> (i32, i32) {
    %c0_i32 = arith.constant 0 : i32
    %c0_i32_0 = arith.constant 0 : i32
    %c0_i32_1 = arith.constant 0 : i32
    return %c0_i32, %c0_i32_0 : i32, i32
  }
  func.func @transform_2(%arg0: i32) -> (i32, i32) {
    %c0_i32 = arith.constant 0 : i32
    %c0_i32_0 = arith.constant 0 : i32
    %c0_i32_1 = arith.constant 0 : i32
    return %c0_i32, %c0_i32_0 : i32, i32
  }
  func.func @transform_3(%arg0: i32) -> (i32, i32) {
    %c0_i32 = arith.constant 0 : i32
    %c0_i32_0 = arith.constant 0 : i32
    %c0_i32_1 = arith.constant 0 : i32
    return %c0_i32, %c0_i32_0 : i32, i32
  }
  func.func @transform_4(%arg0: i32) -> (i32, i32) {
    %c0_i32 = arith.constant 0 : i32
    %c0_i32_0 = arith.constant 0 : i32
    %c0_i32_1 = arith.constant 0 : i32
    return %c0_i32, %c0_i32_0 : i32, i32
  }
}

module attributes {stable_mosaic.version = 11 : i64} {
  func.func @_deconv_bn_relu_kernel(%arg0: i32, %arg1: memref<32x256xbf16, #tpu.memory_space<vmem>>, %arg2: memref<256x1024xbf16, #tpu.memory_space<vmem>>, %arg3: memref<1x256xf32, #tpu.memory_space<vmem>>, %arg4: memref<1x256xf32, #tpu.memory_space<vmem>>, %arg5: memref<32x512xbf16, #tpu.memory_space<vmem>>) attributes {dimension_semantics = [#tpu.dimension_semantics<arbitrary>], iteration_bounds = array<i64: 1>, scalar_prefetch = 0 : i64, scratch_operands = 0 : i64, tpu.core_type = #tpu.core_type<tc>, window_params = [{pipeline_mode = #tpu.pipeline_mode<synchronous>, transform_indices = @transform_0, window_bounds = array<i64: 32, 256>}, {pipeline_mode = #tpu.pipeline_mode<synchronous>, transform_indices = @transform_1, window_bounds = array<i64: 256, 1024>}, {pipeline_mode = #tpu.pipeline_mode<synchronous>, transform_indices = @transform_2, window_bounds = array<i64: 1, 256>}, {pipeline_mode = #tpu.pipeline_mode<synchronous>, transform_indices = @transform_3, window_bounds = array<i64: 1, 256>}, {pipeline_mode = #tpu.pipeline_mode<synchronous>, transform_indices = @transform_4, window_bounds = array<i64: 32, 512>}]} {
    %c0 = arith.constant 0 : index
    %c0_0 = arith.constant 0 : index
    %0 = vector.load %arg1[%c0, %c0_0] : memref<32x256xbf16, #tpu.memory_space<vmem>>, vector<32x256xbf16>
    %c0_1 = arith.constant 0 : index
    %c0_2 = arith.constant 0 : index
    %1 = vector.load %arg2[%c0_1, %c0_2] : memref<256x1024xbf16, #tpu.memory_space<vmem>>, vector<256x1024xbf16>
    %2 = tpu.iota {dimensions = array<i32: 0>} : vector<32x32xi32>
    %3 = tpu.iota {dimensions = array<i32: 1>} : vector<32x32xi32>
    %c16_i32 = arith.constant 16 : i32
    %c0_i32 = arith.constant 0 : i32
    %4 = arith.cmpi eq, %c16_i32, %c0_i32 : i32
    %c1_i32 = arith.constant 1 : i32
    %5 = arith.select %4, %c1_i32, %c16_i32 : i32
    %6 = vector.broadcast %5 : i32 to vector<32x32xi32>
    %7 = arith.remsi %2, %6 : vector<32x32xi32>
    %c0_i32_3 = arith.constant 0 : i32
    %8 = vector.broadcast %c0_i32_3 : i32 to vector<32x32xi32>
    %9 = arith.cmpi ne, %7, %8 : vector<32x32xi32>
    %c0_i32_4 = arith.constant 0 : i32
    %10 = vector.broadcast %c0_i32_4 : i32 to vector<32x32xi32>
    %11 = arith.cmpi slt, %7, %10 : vector<32x32xi32>
    %c0_i32_5 = arith.constant 0 : i32
    %12 = arith.cmpi slt, %5, %c0_i32_5 : i32
    %13 = vector.broadcast %12 : i1 to vector<32x32xi1>
    %14 = vector.broadcast %13 : vector<32x32xi1> to vector<32x32xi1>
    %15 = arith.xori %11, %14 : vector<32x32xi1>
    %16 = arith.andi %15, %9 : vector<32x32xi1>
    %17 = vector.broadcast %5 : i32 to vector<32x32xi32>
    %18 = arith.addi %7, %17 : vector<32x32xi32>
    %19 = arith.select %16, %18, %7 : vector<32x32xi1>, vector<32x32xi32>
    %c1_i32_6 = arith.constant 1 : i32
    %20 = vector.broadcast %c1_i32_6 : i32 to vector<32x32xi32>
    %21 = arith.addi %3, %20 : vector<32x32xi32>
    %22 = arith.cmpi eq, %2, %21 : vector<32x32xi32>
    %c0_i32_7 = arith.constant 0 : i32
    %23 = vector.broadcast %c0_i32_7 : i32 to vector<32x32xi32>
    %24 = arith.cmpi ne, %19, %23 : vector<32x32xi32>
    %25 = arith.andi %22, %24 : vector<32x32xi1>
    %cst = arith.constant 1.000000e+00 : f32
    %cst_8 = arith.constant 0.000000e+00 : f32
    %26 = vector.broadcast %cst : f32 to vector<32x32xf32>
    %27 = vector.broadcast %cst_8 : f32 to vector<32x32xf32>
    %28 = arith.select %25, %26, %27 : vector<32x32xi1>, vector<32x32xf32>
    %29 = arith.truncf %28 : vector<32x32xf32> to vector<32x32xbf16>
    %c1_i32_9 = arith.constant 1 : i32
    %30 = vector.broadcast %c1_i32_9 : i32 to vector<32x32xi32>
    %31 = arith.addi %2, %30 : vector<32x32xi32>
    %32 = arith.cmpi eq, %3, %31 : vector<32x32xi32>
    %c15_i32 = arith.constant 15 : i32
    %33 = vector.broadcast %c15_i32 : i32 to vector<32x32xi32>
    %34 = arith.cmpi ne, %19, %33 : vector<32x32xi32>
    %35 = arith.andi %32, %34 : vector<32x32xi1>
    %cst_10 = arith.constant 1.000000e+00 : f32
    %cst_11 = arith.constant 0.000000e+00 : f32
    %36 = vector.broadcast %cst_10 : f32 to vector<32x32xf32>
    %37 = vector.broadcast %cst_11 : f32 to vector<32x32xf32>
    %38 = arith.select %35, %36, %37 : vector<32x32xi1>, vector<32x32xf32>
    %39 = arith.truncf %38 : vector<32x32xf32> to vector<32x32xbf16>
    %cst_12 = arith.constant dense<0.000000e+00> : vector<32x256xf32>
    %40 = tpu.matmul %29, %0, %cst_12 {dimension_numbers = #tpu.dot_dimension_numbers<[1], [0], [0], [1], [0, 0, 1, 1], [], []>} : vector<32x32xbf16>, vector<32x256xbf16>, vector<32x256xf32> -> vector<32x256xf32>
    %41 = arith.truncf %40 : vector<32x256xf32> to vector<32x256xbf16>
    %cst_13 = arith.constant dense<0.000000e+00> : vector<32x256xf32>
    %42 = tpu.matmul %39, %0, %cst_13 {dimension_numbers = #tpu.dot_dimension_numbers<[1], [0], [0], [1], [0, 0, 1, 1], [], []>} : vector<32x32xbf16>, vector<32x256xbf16>, vector<32x256xf32> -> vector<32x256xf32>
    %43 = arith.truncf %42 : vector<32x256xf32> to vector<32x256xbf16>
    %44 = vector.extract_strided_slice %1 {offsets = [0, 0], sizes = [256, 256], strides = [1, 1]} : vector<256x1024xbf16> to vector<256x256xbf16>
    %45 = vector.extract_strided_slice %1 {offsets = [0, 256], sizes = [256, 256], strides = [1, 1]} : vector<256x1024xbf16> to vector<256x256xbf16>
    %46 = vector.extract_strided_slice %1 {offsets = [0, 512], sizes = [256, 256], strides = [1, 1]} : vector<256x1024xbf16> to vector<256x256xbf16>
    %47 = vector.extract_strided_slice %1 {offsets = [0, 768], sizes = [256, 256], strides = [1, 1]} : vector<256x1024xbf16> to vector<256x256xbf16>
    %cst_14 = arith.constant dense<0.000000e+00> : vector<32x256xf32>
    %48 = tpu.matmul %0, %45, %cst_14 {dimension_numbers = #tpu.dot_dimension_numbers<[1], [0], [0], [1], [0, 0, 1, 1], [], []>} : vector<32x256xbf16>, vector<256x256xbf16>, vector<32x256xf32> -> vector<32x256xf32>
    %cst_15 = arith.constant dense<0.000000e+00> : vector<32x256xf32>
    %49 = tpu.matmul %41, %47, %cst_15 {dimension_numbers = #tpu.dot_dimension_numbers<[1], [0], [0], [1], [0, 0, 1, 1], [], []>} : vector<32x256xbf16>, vector<256x256xbf16>, vector<32x256xf32> -> vector<32x256xf32>
    %50 = arith.addf %48, %49 : vector<32x256xf32>
    %cst_16 = arith.constant dense<0.000000e+00> : vector<32x256xf32>
    %51 = tpu.matmul %0, %46, %cst_16 {dimension_numbers = #tpu.dot_dimension_numbers<[1], [0], [0], [1], [0, 0, 1, 1], [], []>} : vector<32x256xbf16>, vector<256x256xbf16>, vector<32x256xf32> -> vector<32x256xf32>
    %cst_17 = arith.constant dense<0.000000e+00> : vector<32x256xf32>
    %52 = tpu.matmul %43, %44, %cst_17 {dimension_numbers = #tpu.dot_dimension_numbers<[1], [0], [0], [1], [0, 0, 1, 1], [], []>} : vector<32x256xbf16>, vector<256x256xbf16>, vector<32x256xf32> -> vector<32x256xf32>
    %53 = arith.addf %51, %52 : vector<32x256xf32>
    %c0_18 = arith.constant 0 : index
    %c0_19 = arith.constant 0 : index
    %54 = vector.load %arg3[%c0_18, %c0_19] : memref<1x256xf32, #tpu.memory_space<vmem>>, vector<1x256xf32>
    %c0_20 = arith.constant 0 : index
    %c0_21 = arith.constant 0 : index
    %55 = vector.load %arg4[%c0_20, %c0_21] : memref<1x256xf32, #tpu.memory_space<vmem>>, vector<1x256xf32>
    %56 = tpu.iota {dimensions = array<i32: 0>} : vector<256x8xi32>
    %57 = tpu.iota {dimensions = array<i32: 1>} : vector<256x8xi32>
    %c8_i32 = arith.constant 8 : i32
    %c0_i32_22 = arith.constant 0 : i32
    %58 = arith.cmpi eq, %c8_i32, %c0_i32_22 : i32
    %c1_i32_23 = arith.constant 1 : i32
    %59 = arith.select %58, %c1_i32_23, %c8_i32 : i32
    %60 = vector.broadcast %59 : i32 to vector<256x8xi32>
    %61 = arith.remsi %56, %60 : vector<256x8xi32>
    %c0_i32_24 = arith.constant 0 : i32
    %62 = vector.broadcast %c0_i32_24 : i32 to vector<256x8xi32>
    %63 = arith.cmpi ne, %61, %62 : vector<256x8xi32>
    %c0_i32_25 = arith.constant 0 : i32
    %64 = vector.broadcast %c0_i32_25 : i32 to vector<256x8xi32>
    %65 = arith.cmpi slt, %61, %64 : vector<256x8xi32>
    %c0_i32_26 = arith.constant 0 : i32
    %66 = arith.cmpi slt, %59, %c0_i32_26 : i32
    %67 = vector.broadcast %66 : i1 to vector<256x8xi1>
    %68 = vector.broadcast %67 : vector<256x8xi1> to vector<256x8xi1>
    %69 = arith.xori %65, %68 : vector<256x8xi1>
    %70 = arith.andi %69, %63 : vector<256x8xi1>
    %71 = vector.broadcast %59 : i32 to vector<256x8xi32>
    %72 = arith.addi %61, %71 : vector<256x8xi32>
    %73 = arith.select %70, %72, %61 : vector<256x8xi1>, vector<256x8xi32>
    %74 = arith.cmpi eq, %73, %57 : vector<256x8xi32>
    %cst_27 = arith.constant 1.000000e+00 : f32
    %cst_28 = arith.constant 0.000000e+00 : f32
    %75 = vector.broadcast %cst_27 : f32 to vector<256x8xf32>
    %76 = vector.broadcast %cst_28 : f32 to vector<256x8xf32>
    %77 = arith.select %74, %75, %76 : vector<256x8xi1>, vector<256x8xf32>
    %78 = tpu.iota {dimensions = array<i32: 0>} : vector<8x256xi32>
    %79 = tpu.iota {dimensions = array<i32: 1>} : vector<8x256xi32>
    %c8_i32_29 = arith.constant 8 : i32
    %c0_i32_30 = arith.constant 0 : i32
    %80 = arith.cmpi eq, %c8_i32_29, %c0_i32_30 : i32
    %c1_i32_31 = arith.constant 1 : i32
    %81 = arith.select %80, %c1_i32_31, %c8_i32_29 : i32
    %82 = vector.broadcast %81 : i32 to vector<8x256xi32>
    %83 = arith.remsi %79, %82 : vector<8x256xi32>
    %c0_i32_32 = arith.constant 0 : i32
    %84 = vector.broadcast %c0_i32_32 : i32 to vector<8x256xi32>
    %85 = arith.cmpi ne, %83, %84 : vector<8x256xi32>
    %c0_i32_33 = arith.constant 0 : i32
    %86 = vector.broadcast %c0_i32_33 : i32 to vector<8x256xi32>
    %87 = arith.cmpi slt, %83, %86 : vector<8x256xi32>
    %c0_i32_34 = arith.constant 0 : i32
    %88 = arith.cmpi slt, %81, %c0_i32_34 : i32
    %89 = vector.broadcast %88 : i1 to vector<8x256xi1>
    %90 = vector.broadcast %89 : vector<8x256xi1> to vector<8x256xi1>
    %91 = arith.xori %87, %90 : vector<8x256xi1>
    %92 = arith.andi %91, %85 : vector<8x256xi1>
    %93 = vector.broadcast %81 : i32 to vector<8x256xi32>
    %94 = arith.addi %83, %93 : vector<8x256xi32>
    %95 = arith.select %92, %94, %83 : vector<8x256xi1>, vector<8x256xi32>
    %96 = arith.cmpi eq, %95, %78 : vector<8x256xi32>
    %cst_35 = arith.constant 1.000000e+00 : f32
    %cst_36 = arith.constant 0.000000e+00 : f32
    %97 = vector.broadcast %cst_35 : f32 to vector<8x256xf32>
    %98 = vector.broadcast %cst_36 : f32 to vector<8x256xf32>
    %99 = arith.select %96, %97, %98 : vector<8x256xi1>, vector<8x256xf32>
    %cst_37 = arith.constant dense<0.000000e+00> : vector<256xf32>
    %100 = vector.multi_reduction <add>, %50, %cst_37 [0] : vector<32x256xf32> to vector<256xf32>
    %101 = vector.shape_cast %100 : vector<256xf32> to vector<1x256xf32>
    %cst_38 = arith.constant dense<0.000000e+00> : vector<256xf32>
    %102 = vector.multi_reduction <add>, %53, %cst_38 [0] : vector<32x256xf32> to vector<256xf32>
    %103 = vector.shape_cast %102 : vector<256xf32> to vector<1x256xf32>
    %104 = arith.addf %101, %103 : vector<1x256xf32>
    %cst_39 = arith.constant dense<0.000000e+00> : vector<1x8xf32>
    %105 = tpu.matmul %104, %77, %cst_39 {dimension_numbers = #tpu.dot_dimension_numbers<[1], [0], [0], [1], [0, 0, 1, 1], [], []>} : vector<1x256xf32>, vector<256x8xf32>, vector<1x8xf32> -> vector<1x8xf32>
    %cst_40 = arith.constant 2.048000e+03 : f32
    %106 = vector.broadcast %cst_40 : f32 to vector<1x8xf32>
    %107 = arith.divf %105, %106 : vector<1x8xf32>
    %cst_41 = arith.constant dense<0.000000e+00> : vector<1x256xf32>
    %108 = tpu.matmul %107, %99, %cst_41 {dimension_numbers = #tpu.dot_dimension_numbers<[1], [0], [0], [1], [0, 0, 1, 1], [], []>} : vector<1x8xf32>, vector<8x256xf32>, vector<1x256xf32> -> vector<1x256xf32>
    %109 = vector.broadcast %108 : vector<1x256xf32> to vector<32x256xf32>
    %110 = arith.subf %50, %109 : vector<32x256xf32>
    %111 = vector.broadcast %108 : vector<1x256xf32> to vector<32x256xf32>
    %112 = arith.subf %50, %111 : vector<32x256xf32>
    %113 = arith.mulf %110, %112 : vector<32x256xf32>
    %cst_42 = arith.constant dense<0.000000e+00> : vector<256xf32>
    %114 = vector.multi_reduction <add>, %113, %cst_42 [0] : vector<32x256xf32> to vector<256xf32>
    %115 = vector.shape_cast %114 : vector<256xf32> to vector<1x256xf32>
    %116 = vector.broadcast %108 : vector<1x256xf32> to vector<32x256xf32>
    %117 = arith.subf %53, %116 : vector<32x256xf32>
    %118 = vector.broadcast %108 : vector<1x256xf32> to vector<32x256xf32>
    %119 = arith.subf %53, %118 : vector<32x256xf32>
    %120 = arith.mulf %117, %119 : vector<32x256xf32>
    %cst_43 = arith.constant dense<0.000000e+00> : vector<256xf32>
    %121 = vector.multi_reduction <add>, %120, %cst_43 [0] : vector<32x256xf32> to vector<256xf32>
    %122 = vector.shape_cast %121 : vector<256xf32> to vector<1x256xf32>
    %123 = arith.addf %115, %122 : vector<1x256xf32>
    %cst_44 = arith.constant dense<0.000000e+00> : vector<1x8xf32>
    %124 = tpu.matmul %123, %77, %cst_44 {dimension_numbers = #tpu.dot_dimension_numbers<[1], [0], [0], [1], [0, 0, 1, 1], [], []>} : vector<1x256xf32>, vector<256x8xf32>, vector<1x8xf32> -> vector<1x8xf32>
    %cst_45 = arith.constant 2.048000e+03 : f32
    %125 = vector.broadcast %cst_45 : f32 to vector<1x8xf32>
    %126 = arith.divf %124, %125 : vector<1x8xf32>
    %cst_46 = arith.constant dense<0.000000e+00> : vector<1x256xf32>
    %127 = tpu.matmul %126, %99, %cst_46 {dimension_numbers = #tpu.dot_dimension_numbers<[1], [0], [0], [1], [0, 0, 1, 1], [], []>} : vector<1x8xf32>, vector<8x256xf32>, vector<1x256xf32> -> vector<1x256xf32>
    %cst_47 = arith.constant 9.99999974E-6 : f32
    %128 = vector.broadcast %cst_47 : f32 to vector<1x256xf32>
    %129 = arith.addf %127, %128 : vector<1x256xf32>
    %130 = math.rsqrt %129 : vector<1x256xf32>
    %131 = arith.mulf %54, %130 : vector<1x256xf32>
    %132 = arith.mulf %108, %131 : vector<1x256xf32>
    %133 = arith.subf %55, %132 : vector<1x256xf32>
    %134 = vector.broadcast %131 : vector<1x256xf32> to vector<32x256xf32>
    %135 = arith.mulf %50, %134 : vector<32x256xf32>
    %136 = vector.broadcast %133 : vector<1x256xf32> to vector<32x256xf32>
    %137 = arith.addf %135, %136 : vector<32x256xf32>
    %cst_48 = arith.constant 0.000000e+00 : f32
    %138 = vector.broadcast %cst_48 : f32 to vector<32x256xf32>
    %139 = arith.maximumf %137, %138 : vector<32x256xf32>
    %140 = arith.truncf %139 : vector<32x256xf32> to vector<32x256xbf16>
    %c0_49 = arith.constant 0 : index
    %c0_50 = arith.constant 0 : index
    %141 = vector.load %arg5[%c0_49, %c0_50] : memref<32x512xbf16, #tpu.memory_space<vmem>>, vector<32x256xbf16>
    tpu.vector_store %arg5[%c0_49, %c0_50], %140 {strides = array<i32>} : memref<32x512xbf16, #tpu.memory_space<vmem>>, vector<32x256xbf16>,
    %142 = vector.broadcast %131 : vector<1x256xf32> to vector<32x256xf32>
    %143 = arith.mulf %53, %142 : vector<32x256xf32>
    %144 = vector.broadcast %133 : vector<1x256xf32> to vector<32x256xf32>
    %145 = arith.addf %143, %144 : vector<32x256xf32>
    %cst_51 = arith.constant 0.000000e+00 : f32
    %146 = vector.broadcast %cst_51 : f32 to vector<32x256xf32>
    %147 = arith.maximumf %145, %146 : vector<32x256xf32>
    %148 = arith.truncf %147 : vector<32x256xf32> to vector<32x256xbf16>
    %c0_52 = arith.constant 0 : index
    %c256 = arith.constant 256 : index
    %149 = vector.load %arg5[%c0_52, %c256] : memref<32x512xbf16, #tpu.memory_space<vmem>>, vector<32x256xbf16>
    tpu.vector_store %arg5[%c0_52, %c256], %148 {strides = array<i32>} : memref<32x512xbf16, #tpu.memory_space<vmem>>, vector<32x256xbf16>,
    return
  }
  func.func @transform_0(%arg0: i32) -> (i32, i32) {
    %c0_i32 = arith.constant 0 : i32
    %c0_i32_0 = arith.constant 0 : i32
    %c0_i32_1 = arith.constant 0 : i32
    return %c0_i32, %c0_i32_0 : i32, i32
  }
  func.func @transform_1(%arg0: i32) -> (i32, i32) {
    %c0_i32 = arith.constant 0 : i32
    %c0_i32_0 = arith.constant 0 : i32
    %c0_i32_1 = arith.constant 0 : i32
    return %c0_i32, %c0_i32_0 : i32, i32
  }
  func.func @transform_2(%arg0: i32) -> (i32, i32) {
    %c0_i32 = arith.constant 0 : i32
    %c0_i32_0 = arith.constant 0 : i32
    %c0_i32_1 = arith.constant 0 : i32
    return %c0_i32, %c0_i32_0 : i32, i32
  }
  func.func @transform_3(%arg0: i32) -> (i32, i32) {
    %c0_i32 = arith.constant 0 : i32
    %c0_i32_0 = arith.constant 0 : i32
    %c0_i32_1 = arith.constant 0 : i32
    return %c0_i32, %c0_i32_0 : i32, i32
  }
  func.func @transform_4(%arg0: i32) -> (i32, i32) {
    %c0_i32 = arith.constant 0 : i32
    %c0_i32_0 = arith.constant 0 : i32
    %c0_i32_1 = arith.constant 0 : i32
    return %c0_i32, %c0_i32_0 : i32, i32
  }
}

module attributes {stable_mosaic.version = 11 : i64} {
  func.func @_deconv_bn_relu_kernel(%arg0: i32, %arg1: memref<16x256xbf16, #tpu.memory_space<vmem>>, %arg2: memref<256x1024xbf16, #tpu.memory_space<vmem>>, %arg3: memref<1x256xf32, #tpu.memory_space<vmem>>, %arg4: memref<1x256xf32, #tpu.memory_space<vmem>>, %arg5: memref<16x512xbf16, #tpu.memory_space<vmem>>) attributes {dimension_semantics = [#tpu.dimension_semantics<arbitrary>], iteration_bounds = array<i64: 1>, scalar_prefetch = 0 : i64, scratch_operands = 0 : i64, tpu.core_type = #tpu.core_type<tc>, window_params = [{pipeline_mode = #tpu.pipeline_mode<synchronous>, transform_indices = @transform_0, window_bounds = array<i64: 16, 256>}, {pipeline_mode = #tpu.pipeline_mode<synchronous>, transform_indices = @transform_1, window_bounds = array<i64: 256, 1024>}, {pipeline_mode = #tpu.pipeline_mode<synchronous>, transform_indices = @transform_2, window_bounds = array<i64: 1, 256>}, {pipeline_mode = #tpu.pipeline_mode<synchronous>, transform_indices = @transform_3, window_bounds = array<i64: 1, 256>}, {pipeline_mode = #tpu.pipeline_mode<synchronous>, transform_indices = @transform_4, window_bounds = array<i64: 16, 512>}]} {
    %c0 = arith.constant 0 : index
    %c0_0 = arith.constant 0 : index
    %0 = vector.load %arg1[%c0, %c0_0] : memref<16x256xbf16, #tpu.memory_space<vmem>>, vector<16x256xbf16>
    %c0_1 = arith.constant 0 : index
    %c0_2 = arith.constant 0 : index
    %1 = vector.load %arg2[%c0_1, %c0_2] : memref<256x1024xbf16, #tpu.memory_space<vmem>>, vector<256x1024xbf16>
    %2 = tpu.iota {dimensions = array<i32: 0>} : vector<16x16xi32>
    %3 = tpu.iota {dimensions = array<i32: 1>} : vector<16x16xi32>
    %c8_i32 = arith.constant 8 : i32
    %c0_i32 = arith.constant 0 : i32
    %4 = arith.cmpi eq, %c8_i32, %c0_i32 : i32
    %c1_i32 = arith.constant 1 : i32
    %5 = arith.select %4, %c1_i32, %c8_i32 : i32
    %6 = vector.broadcast %5 : i32 to vector<16x16xi32>
    %7 = arith.remsi %2, %6 : vector<16x16xi32>
    %c0_i32_3 = arith.constant 0 : i32
    %8 = vector.broadcast %c0_i32_3 : i32 to vector<16x16xi32>
    %9 = arith.cmpi ne, %7, %8 : vector<16x16xi32>
    %c0_i32_4 = arith.constant 0 : i32
    %10 = vector.broadcast %c0_i32_4 : i32 to vector<16x16xi32>
    %11 = arith.cmpi slt, %7, %10 : vector<16x16xi32>
    %c0_i32_5 = arith.constant 0 : i32
    %12 = arith.cmpi slt, %5, %c0_i32_5 : i32
    %13 = vector.broadcast %12 : i1 to vector<16x16xi1>
    %14 = vector.broadcast %13 : vector<16x16xi1> to vector<16x16xi1>
    %15 = arith.xori %11, %14 : vector<16x16xi1>
    %16 = arith.andi %15, %9 : vector<16x16xi1>
    %17 = vector.broadcast %5 : i32 to vector<16x16xi32>
    %18 = arith.addi %7, %17 : vector<16x16xi32>
    %19 = arith.select %16, %18, %7 : vector<16x16xi1>, vector<16x16xi32>
    %c1_i32_6 = arith.constant 1 : i32
    %20 = vector.broadcast %c1_i32_6 : i32 to vector<16x16xi32>
    %21 = arith.addi %3, %20 : vector<16x16xi32>
    %22 = arith.cmpi eq, %2, %21 : vector<16x16xi32>
    %c0_i32_7 = arith.constant 0 : i32
    %23 = vector.broadcast %c0_i32_7 : i32 to vector<16x16xi32>
    %24 = arith.cmpi ne, %19, %23 : vector<16x16xi32>
    %25 = arith.andi %22, %24 : vector<16x16xi1>
    %cst = arith.constant 1.000000e+00 : f32
    %cst_8 = arith.constant 0.000000e+00 : f32
    %26 = vector.broadcast %cst : f32 to vector<16x16xf32>
    %27 = vector.broadcast %cst_8 : f32 to vector<16x16xf32>
    %28 = arith.select %25, %26, %27 : vector<16x16xi1>, vector<16x16xf32>
    %29 = arith.truncf %28 : vector<16x16xf32> to vector<16x16xbf16>
    %c1_i32_9 = arith.constant 1 : i32
    %30 = vector.broadcast %c1_i32_9 : i32 to vector<16x16xi32>
    %31 = arith.addi %2, %30 : vector<16x16xi32>
    %32 = arith.cmpi eq, %3, %31 : vector<16x16xi32>
    %c7_i32 = arith.constant 7 : i32
    %33 = vector.broadcast %c7_i32 : i32 to vector<16x16xi32>
    %34 = arith.cmpi ne, %19, %33 : vector<16x16xi32>
    %35 = arith.andi %32, %34 : vector<16x16xi1>
    %cst_10 = arith.constant 1.000000e+00 : f32
    %cst_11 = arith.constant 0.000000e+00 : f32
    %36 = vector.broadcast %cst_10 : f32 to vector<16x16xf32>
    %37 = vector.broadcast %cst_11 : f32 to vector<16x16xf32>
    %38 = arith.select %35, %36, %37 : vector<16x16xi1>, vector<16x16xf32>
    %39 = arith.truncf %38 : vector<16x16xf32> to vector<16x16xbf16>
    %cst_12 = arith.constant dense<0.000000e+00> : vector<16x256xf32>
    %40 = tpu.matmul %29, %0, %cst_12 {dimension_numbers = #tpu.dot_dimension_numbers<[1], [0], [0], [1], [0, 0, 1, 1], [], []>} : vector<16x16xbf16>, vector<16x256xbf16>, vector<16x256xf32> -> vector<16x256xf32>
    %41 = arith.truncf %40 : vector<16x256xf32> to vector<16x256xbf16>
    %cst_13 = arith.constant dense<0.000000e+00> : vector<16x256xf32>
    %42 = tpu.matmul %39, %0, %cst_13 {dimension_numbers = #tpu.dot_dimension_numbers<[1], [0], [0], [1], [0, 0, 1, 1], [], []>} : vector<16x16xbf16>, vector<16x256xbf16>, vector<16x256xf32> -> vector<16x256xf32>
    %43 = arith.truncf %42 : vector<16x256xf32> to vector<16x256xbf16>
    %44 = vector.extract_strided_slice %1 {offsets = [0, 0], sizes = [256, 256], strides = [1, 1]} : vector<256x1024xbf16> to vector<256x256xbf16>
    %45 = vector.extract_strided_slice %1 {offsets = [0, 256], sizes = [256, 256], strides = [1, 1]} : vector<256x1024xbf16> to vector<256x256xbf16>
    %46 = vector.extract_strided_slice %1 {offsets = [0, 512], sizes = [256, 256], strides = [1, 1]} : vector<256x1024xbf16> to vector<256x256xbf16>
    %47 = vector.extract_strided_slice %1 {offsets = [0, 768], sizes = [256, 256], strides = [1, 1]} : vector<256x1024xbf16> to vector<256x256xbf16>
    %cst_14 = arith.constant dense<0.000000e+00> : vector<16x256xf32>
    %48 = tpu.matmul %0, %45, %cst_14 {dimension_numbers = #tpu.dot_dimension_numbers<[1], [0], [0], [1], [0, 0, 1, 1], [], []>} : vector<16x256xbf16>, vector<256x256xbf16>, vector<16x256xf32> -> vector<16x256xf32>
    %cst_15 = arith.constant dense<0.000000e+00> : vector<16x256xf32>
    %49 = tpu.matmul %41, %47, %cst_15 {dimension_numbers = #tpu.dot_dimension_numbers<[1], [0], [0], [1], [0, 0, 1, 1], [], []>} : vector<16x256xbf16>, vector<256x256xbf16>, vector<16x256xf32> -> vector<16x256xf32>
    %50 = arith.addf %48, %49 : vector<16x256xf32>
    %cst_16 = arith.constant dense<0.000000e+00> : vector<16x256xf32>
    %51 = tpu.matmul %0, %46, %cst_16 {dimension_numbers = #tpu.dot_dimension_numbers<[1], [0], [0], [1], [0, 0, 1, 1], [], []>} : vector<16x256xbf16>, vector<256x256xbf16>, vector<16x256xf32> -> vector<16x256xf32>
    %cst_17 = arith.constant dense<0.000000e+00> : vector<16x256xf32>
    %52 = tpu.matmul %43, %44, %cst_17 {dimension_numbers = #tpu.dot_dimension_numbers<[1], [0], [0], [1], [0, 0, 1, 1], [], []>} : vector<16x256xbf16>, vector<256x256xbf16>, vector<16x256xf32> -> vector<16x256xf32>
    %53 = arith.addf %51, %52 : vector<16x256xf32>
    %c0_18 = arith.constant 0 : index
    %c0_19 = arith.constant 0 : index
    %54 = vector.load %arg3[%c0_18, %c0_19] : memref<1x256xf32, #tpu.memory_space<vmem>>, vector<1x256xf32>
    %c0_20 = arith.constant 0 : index
    %c0_21 = arith.constant 0 : index
    %55 = vector.load %arg4[%c0_20, %c0_21] : memref<1x256xf32, #tpu.memory_space<vmem>>, vector<1x256xf32>
    %56 = tpu.iota {dimensions = array<i32: 0>} : vector<256x16xi32>
    %57 = tpu.iota {dimensions = array<i32: 1>} : vector<256x16xi32>
    %c16_i32 = arith.constant 16 : i32
    %c0_i32_22 = arith.constant 0 : i32
    %58 = arith.cmpi eq, %c16_i32, %c0_i32_22 : i32
    %c1_i32_23 = arith.constant 1 : i32
    %59 = arith.select %58, %c1_i32_23, %c16_i32 : i32
    %60 = vector.broadcast %59 : i32 to vector<256x16xi32>
    %61 = arith.remsi %56, %60 : vector<256x16xi32>
    %c0_i32_24 = arith.constant 0 : i32
    %62 = vector.broadcast %c0_i32_24 : i32 to vector<256x16xi32>
    %63 = arith.cmpi ne, %61, %62 : vector<256x16xi32>
    %c0_i32_25 = arith.constant 0 : i32
    %64 = vector.broadcast %c0_i32_25 : i32 to vector<256x16xi32>
    %65 = arith.cmpi slt, %61, %64 : vector<256x16xi32>
    %c0_i32_26 = arith.constant 0 : i32
    %66 = arith.cmpi slt, %59, %c0_i32_26 : i32
    %67 = vector.broadcast %66 : i1 to vector<256x16xi1>
    %68 = vector.broadcast %67 : vector<256x16xi1> to vector<256x16xi1>
    %69 = arith.xori %65, %68 : vector<256x16xi1>
    %70 = arith.andi %69, %63 : vector<256x16xi1>
    %71 = vector.broadcast %59 : i32 to vector<256x16xi32>
    %72 = arith.addi %61, %71 : vector<256x16xi32>
    %73 = arith.select %70, %72, %61 : vector<256x16xi1>, vector<256x16xi32>
    %74 = arith.cmpi eq, %73, %57 : vector<256x16xi32>
    %cst_27 = arith.constant 1.000000e+00 : f32
    %cst_28 = arith.constant 0.000000e+00 : f32
    %75 = vector.broadcast %cst_27 : f32 to vector<256x16xf32>
    %76 = vector.broadcast %cst_28 : f32 to vector<256x16xf32>
    %77 = arith.select %74, %75, %76 : vector<256x16xi1>, vector<256x16xf32>
    %78 = tpu.iota {dimensions = array<i32: 0>} : vector<16x256xi32>
    %79 = tpu.iota {dimensions = array<i32: 1>} : vector<16x256xi32>
    %c16_i32_29 = arith.constant 16 : i32
    %c0_i32_30 = arith.constant 0 : i32
    %80 = arith.cmpi eq, %c16_i32_29, %c0_i32_30 : i32
    %c1_i32_31 = arith.constant 1 : i32
    %81 = arith.select %80, %c1_i32_31, %c16_i32_29 : i32
    %82 = vector.broadcast %81 : i32 to vector<16x256xi32>
    %83 = arith.remsi %79, %82 : vector<16x256xi32>
    %c0_i32_32 = arith.constant 0 : i32
    %84 = vector.broadcast %c0_i32_32 : i32 to vector<16x256xi32>
    %85 = arith.cmpi ne, %83, %84 : vector<16x256xi32>
    %c0_i32_33 = arith.constant 0 : i32
    %86 = vector.broadcast %c0_i32_33 : i32 to vector<16x256xi32>
    %87 = arith.cmpi slt, %83, %86 : vector<16x256xi32>
    %c0_i32_34 = arith.constant 0 : i32
    %88 = arith.cmpi slt, %81, %c0_i32_34 : i32
    %89 = vector.broadcast %88 : i1 to vector<16x256xi1>
    %90 = vector.broadcast %89 : vector<16x256xi1> to vector<16x256xi1>
    %91 = arith.xori %87, %90 : vector<16x256xi1>
    %92 = arith.andi %91, %85 : vector<16x256xi1>
    %93 = vector.broadcast %81 : i32 to vector<16x256xi32>
    %94 = arith.addi %83, %93 : vector<16x256xi32>
    %95 = arith.select %92, %94, %83 : vector<16x256xi1>, vector<16x256xi32>
    %96 = arith.cmpi eq, %95, %78 : vector<16x256xi32>
    %cst_35 = arith.constant 1.000000e+00 : f32
    %cst_36 = arith.constant 0.000000e+00 : f32
    %97 = vector.broadcast %cst_35 : f32 to vector<16x256xf32>
    %98 = vector.broadcast %cst_36 : f32 to vector<16x256xf32>
    %99 = arith.select %96, %97, %98 : vector<16x256xi1>, vector<16x256xf32>
    %cst_37 = arith.constant dense<0.000000e+00> : vector<256xf32>
    %100 = vector.multi_reduction <add>, %50, %cst_37 [0] : vector<16x256xf32> to vector<256xf32>
    %101 = vector.shape_cast %100 : vector<256xf32> to vector<1x256xf32>
    %cst_38 = arith.constant dense<0.000000e+00> : vector<256xf32>
    %102 = vector.multi_reduction <add>, %53, %cst_38 [0] : vector<16x256xf32> to vector<256xf32>
    %103 = vector.shape_cast %102 : vector<256xf32> to vector<1x256xf32>
    %104 = arith.addf %101, %103 : vector<1x256xf32>
    %cst_39 = arith.constant dense<0.000000e+00> : vector<1x16xf32>
    %105 = tpu.matmul %104, %77, %cst_39 {dimension_numbers = #tpu.dot_dimension_numbers<[1], [0], [0], [1], [0, 0, 1, 1], [], []>} : vector<1x256xf32>, vector<256x16xf32>, vector<1x16xf32> -> vector<1x16xf32>
    %cst_40 = arith.constant 5.120000e+02 : f32
    %106 = vector.broadcast %cst_40 : f32 to vector<1x16xf32>
    %107 = arith.divf %105, %106 : vector<1x16xf32>
    %cst_41 = arith.constant dense<0.000000e+00> : vector<1x256xf32>
    %108 = tpu.matmul %107, %99, %cst_41 {dimension_numbers = #tpu.dot_dimension_numbers<[1], [0], [0], [1], [0, 0, 1, 1], [], []>} : vector<1x16xf32>, vector<16x256xf32>, vector<1x256xf32> -> vector<1x256xf32>
    %109 = vector.broadcast %108 : vector<1x256xf32> to vector<16x256xf32>
    %110 = arith.subf %50, %109 : vector<16x256xf32>
    %111 = vector.broadcast %108 : vector<1x256xf32> to vector<16x256xf32>
    %112 = arith.subf %50, %111 : vector<16x256xf32>
    %113 = arith.mulf %110, %112 : vector<16x256xf32>
    %cst_42 = arith.constant dense<0.000000e+00> : vector<256xf32>
    %114 = vector.multi_reduction <add>, %113, %cst_42 [0] : vector<16x256xf32> to vector<256xf32>
    %115 = vector.shape_cast %114 : vector<256xf32> to vector<1x256xf32>
    %116 = vector.broadcast %108 : vector<1x256xf32> to vector<16x256xf32>
    %117 = arith.subf %53, %116 : vector<16x256xf32>
    %118 = vector.broadcast %108 : vector<1x256xf32> to vector<16x256xf32>
    %119 = arith.subf %53, %118 : vector<16x256xf32>
    %120 = arith.mulf %117, %119 : vector<16x256xf32>
    %cst_43 = arith.constant dense<0.000000e+00> : vector<256xf32>
    %121 = vector.multi_reduction <add>, %120, %cst_43 [0] : vector<16x256xf32> to vector<256xf32>
    %122 = vector.shape_cast %121 : vector<256xf32> to vector<1x256xf32>
    %123 = arith.addf %115, %122 : vector<1x256xf32>
    %cst_44 = arith.constant dense<0.000000e+00> : vector<1x16xf32>
    %124 = tpu.matmul %123, %77, %cst_44 {dimension_numbers = #tpu.dot_dimension_numbers<[1], [0], [0], [1], [0, 0, 1, 1], [], []>} : vector<1x256xf32>, vector<256x16xf32>, vector<1x16xf32> -> vector<1x16xf32>
    %cst_45 = arith.constant 5.120000e+02 : f32
    %125 = vector.broadcast %cst_45 : f32 to vector<1x16xf32>
    %126 = arith.divf %124, %125 : vector<1x16xf32>
    %cst_46 = arith.constant dense<0.000000e+00> : vector<1x256xf32>
    %127 = tpu.matmul %126, %99, %cst_46 {dimension_numbers = #tpu.dot_dimension_numbers<[1], [0], [0], [1], [0, 0, 1, 1], [], []>} : vector<1x16xf32>, vector<16x256xf32>, vector<1x256xf32> -> vector<1x256xf32>
    %cst_47 = arith.constant 9.99999974E-6 : f32
    %128 = vector.broadcast %cst_47 : f32 to vector<1x256xf32>
    %129 = arith.addf %127, %128 : vector<1x256xf32>
    %130 = math.rsqrt %129 : vector<1x256xf32>
    %131 = arith.mulf %54, %130 : vector<1x256xf32>
    %132 = arith.mulf %108, %131 : vector<1x256xf32>
    %133 = arith.subf %55, %132 : vector<1x256xf32>
    %134 = vector.broadcast %131 : vector<1x256xf32> to vector<16x256xf32>
    %135 = arith.mulf %50, %134 : vector<16x256xf32>
    %136 = vector.broadcast %133 : vector<1x256xf32> to vector<16x256xf32>
    %137 = arith.addf %135, %136 : vector<16x256xf32>
    %cst_48 = arith.constant 0.000000e+00 : f32
    %138 = vector.broadcast %cst_48 : f32 to vector<16x256xf32>
    %139 = arith.maximumf %137, %138 : vector<16x256xf32>
    %140 = arith.truncf %139 : vector<16x256xf32> to vector<16x256xbf16>
    %c0_49 = arith.constant 0 : index
    %c0_50 = arith.constant 0 : index
    %141 = vector.load %arg5[%c0_49, %c0_50] : memref<16x512xbf16, #tpu.memory_space<vmem>>, vector<16x256xbf16>
    tpu.vector_store %arg5[%c0_49, %c0_50], %140 {strides = array<i32>} : memref<16x512xbf16, #tpu.memory_space<vmem>>, vector<16x256xbf16>,
    %142 = vector.broadcast %131 : vector<1x256xf32> to vector<16x256xf32>
    %143 = arith.mulf %53, %142 : vector<16x256xf32>
    %144 = vector.broadcast %133 : vector<1x256xf32> to vector<16x256xf32>
    %145 = arith.addf %143, %144 : vector<16x256xf32>
    %cst_51 = arith.constant 0.000000e+00 : f32
    %146 = vector.broadcast %cst_51 : f32 to vector<16x256xf32>
    %147 = arith.maximumf %145, %146 : vector<16x256xf32>
    %148 = arith.truncf %147 : vector<16x256xf32> to vector<16x256xbf16>
    %c0_52 = arith.constant 0 : index
    %c256 = arith.constant 256 : index
    %149 = vector.load %arg5[%c0_52, %c256] : memref<16x512xbf16, #tpu.memory_space<vmem>>, vector<16x256xbf16>
    tpu.vector_store %arg5[%c0_52, %c256], %148 {strides = array<i32>} : memref<16x512xbf16, #tpu.memory_space<vmem>>, vector<16x256xbf16>,
    return
  }
  func.func @transform_0(%arg0: i32) -> (i32, i32) {
    %c0_i32 = arith.constant 0 : i32
    %c0_i32_0 = arith.constant 0 : i32
    %c0_i32_1 = arith.constant 0 : i32
    return %c0_i32, %c0_i32_0 : i32, i32
  }
  func.func @transform_1(%arg0: i32) -> (i32, i32) {
    %c0_i32 = arith.constant 0 : i32
    %c0_i32_0 = arith.constant 0 : i32
    %c0_i32_1 = arith.constant 0 : i32
    return %c0_i32, %c0_i32_0 : i32, i32
  }
  func.func @transform_2(%arg0: i32) -> (i32, i32) {
    %c0_i32 = arith.constant 0 : i32
    %c0_i32_0 = arith.constant 0 : i32
    %c0_i32_1 = arith.constant 0 : i32
    return %c0_i32, %c0_i32_0 : i32, i32
  }
  func.func @transform_3(%arg0: i32) -> (i32, i32) {
    %c0_i32 = arith.constant 0 : i32
    %c0_i32_0 = arith.constant 0 : i32
    %c0_i32_1 = arith.constant 0 : i32
    return %c0_i32, %c0_i32_0 : i32, i32
  }
  func.func @transform_4(%arg0: i32) -> (i32, i32) {
    %c0_i32 = arith.constant 0 : i32
    %c0_i32_0 = arith.constant 0 : i32
    %c0_i32_1 = arith.constant 0 : i32
    return %c0_i32, %c0_i32_0 : i32, i32
  }
}

module attributes {stable_mosaic.version = 11 : i64} {
  func.func @_deconv_bn_relu_kernel(%arg0: i32, %arg1: memref<8x256xbf16, #tpu.memory_space<vmem>>, %arg2: memref<256x1024xbf16, #tpu.memory_space<vmem>>, %arg3: memref<1x256xf32, #tpu.memory_space<vmem>>, %arg4: memref<1x256xf32, #tpu.memory_space<vmem>>, %arg5: memref<8x512xbf16, #tpu.memory_space<vmem>>) attributes {dimension_semantics = [#tpu.dimension_semantics<arbitrary>], iteration_bounds = array<i64: 1>, scalar_prefetch = 0 : i64, scratch_operands = 0 : i64, tpu.core_type = #tpu.core_type<tc>, window_params = [{pipeline_mode = #tpu.pipeline_mode<synchronous>, transform_indices = @transform_0, window_bounds = array<i64: 8, 256>}, {pipeline_mode = #tpu.pipeline_mode<synchronous>, transform_indices = @transform_1, window_bounds = array<i64: 256, 1024>}, {pipeline_mode = #tpu.pipeline_mode<synchronous>, transform_indices = @transform_2, window_bounds = array<i64: 1, 256>}, {pipeline_mode = #tpu.pipeline_mode<synchronous>, transform_indices = @transform_3, window_bounds = array<i64: 1, 256>}, {pipeline_mode = #tpu.pipeline_mode<synchronous>, transform_indices = @transform_4, window_bounds = array<i64: 8, 512>}]} {
    %c0 = arith.constant 0 : index
    %c0_0 = arith.constant 0 : index
    %0 = vector.load %arg1[%c0, %c0_0] : memref<8x256xbf16, #tpu.memory_space<vmem>>, vector<8x256xbf16>
    %c0_1 = arith.constant 0 : index
    %c0_2 = arith.constant 0 : index
    %1 = vector.load %arg2[%c0_1, %c0_2] : memref<256x1024xbf16, #tpu.memory_space<vmem>>, vector<256x1024xbf16>
    %2 = tpu.iota {dimensions = array<i32: 0>} : vector<8x8xi32>
    %3 = tpu.iota {dimensions = array<i32: 1>} : vector<8x8xi32>
    %c4_i32 = arith.constant 4 : i32
    %c0_i32 = arith.constant 0 : i32
    %4 = arith.cmpi eq, %c4_i32, %c0_i32 : i32
    %c1_i32 = arith.constant 1 : i32
    %5 = arith.select %4, %c1_i32, %c4_i32 : i32
    %6 = vector.broadcast %5 : i32 to vector<8x8xi32>
    %7 = arith.remsi %2, %6 : vector<8x8xi32>
    %c0_i32_3 = arith.constant 0 : i32
    %8 = vector.broadcast %c0_i32_3 : i32 to vector<8x8xi32>
    %9 = arith.cmpi ne, %7, %8 : vector<8x8xi32>
    %c0_i32_4 = arith.constant 0 : i32
    %10 = vector.broadcast %c0_i32_4 : i32 to vector<8x8xi32>
    %11 = arith.cmpi slt, %7, %10 : vector<8x8xi32>
    %c0_i32_5 = arith.constant 0 : i32
    %12 = arith.cmpi slt, %5, %c0_i32_5 : i32
    %13 = vector.broadcast %12 : i1 to vector<8x8xi1>
    %14 = vector.broadcast %13 : vector<8x8xi1> to vector<8x8xi1>
    %15 = arith.xori %11, %14 : vector<8x8xi1>
    %16 = arith.andi %15, %9 : vector<8x8xi1>
    %17 = vector.broadcast %5 : i32 to vector<8x8xi32>
    %18 = arith.addi %7, %17 : vector<8x8xi32>
    %19 = arith.select %16, %18, %7 : vector<8x8xi1>, vector<8x8xi32>
    %c1_i32_6 = arith.constant 1 : i32
    %20 = vector.broadcast %c1_i32_6 : i32 to vector<8x8xi32>
    %21 = arith.addi %3, %20 : vector<8x8xi32>
    %22 = arith.cmpi eq, %2, %21 : vector<8x8xi32>
    %c0_i32_7 = arith.constant 0 : i32
    %23 = vector.broadcast %c0_i32_7 : i32 to vector<8x8xi32>
    %24 = arith.cmpi ne, %19, %23 : vector<8x8xi32>
    %25 = arith.andi %22, %24 : vector<8x8xi1>
    %cst = arith.constant 1.000000e+00 : f32
    %cst_8 = arith.constant 0.000000e+00 : f32
    %26 = vector.broadcast %cst : f32 to vector<8x8xf32>
    %27 = vector.broadcast %cst_8 : f32 to vector<8x8xf32>
    %28 = arith.select %25, %26, %27 : vector<8x8xi1>, vector<8x8xf32>
    %29 = arith.truncf %28 : vector<8x8xf32> to vector<8x8xbf16>
    %c1_i32_9 = arith.constant 1 : i32
    %30 = vector.broadcast %c1_i32_9 : i32 to vector<8x8xi32>
    %31 = arith.addi %2, %30 : vector<8x8xi32>
    %32 = arith.cmpi eq, %3, %31 : vector<8x8xi32>
    %c3_i32 = arith.constant 3 : i32
    %33 = vector.broadcast %c3_i32 : i32 to vector<8x8xi32>
    %34 = arith.cmpi ne, %19, %33 : vector<8x8xi32>
    %35 = arith.andi %32, %34 : vector<8x8xi1>
    %cst_10 = arith.constant 1.000000e+00 : f32
    %cst_11 = arith.constant 0.000000e+00 : f32
    %36 = vector.broadcast %cst_10 : f32 to vector<8x8xf32>
    %37 = vector.broadcast %cst_11 : f32 to vector<8x8xf32>
    %38 = arith.select %35, %36, %37 : vector<8x8xi1>, vector<8x8xf32>
    %39 = arith.truncf %38 : vector<8x8xf32> to vector<8x8xbf16>
    %cst_12 = arith.constant dense<0.000000e+00> : vector<8x256xf32>
    %40 = tpu.matmul %29, %0, %cst_12 {dimension_numbers = #tpu.dot_dimension_numbers<[1], [0], [0], [1], [0, 0, 1, 1], [], []>} : vector<8x8xbf16>, vector<8x256xbf16>, vector<8x256xf32> -> vector<8x256xf32>
    %41 = arith.truncf %40 : vector<8x256xf32> to vector<8x256xbf16>
    %cst_13 = arith.constant dense<0.000000e+00> : vector<8x256xf32>
    %42 = tpu.matmul %39, %0, %cst_13 {dimension_numbers = #tpu.dot_dimension_numbers<[1], [0], [0], [1], [0, 0, 1, 1], [], []>} : vector<8x8xbf16>, vector<8x256xbf16>, vector<8x256xf32> -> vector<8x256xf32>
    %43 = arith.truncf %42 : vector<8x256xf32> to vector<8x256xbf16>
    %44 = vector.extract_strided_slice %1 {offsets = [0, 0], sizes = [256, 256], strides = [1, 1]} : vector<256x1024xbf16> to vector<256x256xbf16>
    %45 = vector.extract_strided_slice %1 {offsets = [0, 256], sizes = [256, 256], strides = [1, 1]} : vector<256x1024xbf16> to vector<256x256xbf16>
    %46 = vector.extract_strided_slice %1 {offsets = [0, 512], sizes = [256, 256], strides = [1, 1]} : vector<256x1024xbf16> to vector<256x256xbf16>
    %47 = vector.extract_strided_slice %1 {offsets = [0, 768], sizes = [256, 256], strides = [1, 1]} : vector<256x1024xbf16> to vector<256x256xbf16>
    %cst_14 = arith.constant dense<0.000000e+00> : vector<8x256xf32>
    %48 = tpu.matmul %0, %45, %cst_14 {dimension_numbers = #tpu.dot_dimension_numbers<[1], [0], [0], [1], [0, 0, 1, 1], [], []>} : vector<8x256xbf16>, vector<256x256xbf16>, vector<8x256xf32> -> vector<8x256xf32>
    %cst_15 = arith.constant dense<0.000000e+00> : vector<8x256xf32>
    %49 = tpu.matmul %41, %47, %cst_15 {dimension_numbers = #tpu.dot_dimension_numbers<[1], [0], [0], [1], [0, 0, 1, 1], [], []>} : vector<8x256xbf16>, vector<256x256xbf16>, vector<8x256xf32> -> vector<8x256xf32>
    %50 = arith.addf %48, %49 : vector<8x256xf32>
    %cst_16 = arith.constant dense<0.000000e+00> : vector<8x256xf32>
    %51 = tpu.matmul %0, %46, %cst_16 {dimension_numbers = #tpu.dot_dimension_numbers<[1], [0], [0], [1], [0, 0, 1, 1], [], []>} : vector<8x256xbf16>, vector<256x256xbf16>, vector<8x256xf32> -> vector<8x256xf32>
    %cst_17 = arith.constant dense<0.000000e+00> : vector<8x256xf32>
    %52 = tpu.matmul %43, %44, %cst_17 {dimension_numbers = #tpu.dot_dimension_numbers<[1], [0], [0], [1], [0, 0, 1, 1], [], []>} : vector<8x256xbf16>, vector<256x256xbf16>, vector<8x256xf32> -> vector<8x256xf32>
    %53 = arith.addf %51, %52 : vector<8x256xf32>
    %c0_18 = arith.constant 0 : index
    %c0_19 = arith.constant 0 : index
    %54 = vector.load %arg3[%c0_18, %c0_19] : memref<1x256xf32, #tpu.memory_space<vmem>>, vector<1x256xf32>
    %c0_20 = arith.constant 0 : index
    %c0_21 = arith.constant 0 : index
    %55 = vector.load %arg4[%c0_20, %c0_21] : memref<1x256xf32, #tpu.memory_space<vmem>>, vector<1x256xf32>
    %56 = tpu.iota {dimensions = array<i32: 0>} : vector<256x32xi32>
    %57 = tpu.iota {dimensions = array<i32: 1>} : vector<256x32xi32>
    %c32_i32 = arith.constant 32 : i32
    %c0_i32_22 = arith.constant 0 : i32
    %58 = arith.cmpi eq, %c32_i32, %c0_i32_22 : i32
    %c1_i32_23 = arith.constant 1 : i32
    %59 = arith.select %58, %c1_i32_23, %c32_i32 : i32
    %60 = vector.broadcast %59 : i32 to vector<256x32xi32>
    %61 = arith.remsi %56, %60 : vector<256x32xi32>
    %c0_i32_24 = arith.constant 0 : i32
    %62 = vector.broadcast %c0_i32_24 : i32 to vector<256x32xi32>
    %63 = arith.cmpi ne, %61, %62 : vector<256x32xi32>
    %c0_i32_25 = arith.constant 0 : i32
    %64 = vector.broadcast %c0_i32_25 : i32 to vector<256x32xi32>
    %65 = arith.cmpi slt, %61, %64 : vector<256x32xi32>
    %c0_i32_26 = arith.constant 0 : i32
    %66 = arith.cmpi slt, %59, %c0_i32_26 : i32
    %67 = vector.broadcast %66 : i1 to vector<256x32xi1>
    %68 = vector.broadcast %67 : vector<256x32xi1> to vector<256x32xi1>
    %69 = arith.xori %65, %68 : vector<256x32xi1>
    %70 = arith.andi %69, %63 : vector<256x32xi1>
    %71 = vector.broadcast %59 : i32 to vector<256x32xi32>
    %72 = arith.addi %61, %71 : vector<256x32xi32>
    %73 = arith.select %70, %72, %61 : vector<256x32xi1>, vector<256x32xi32>
    %74 = arith.cmpi eq, %73, %57 : vector<256x32xi32>
    %cst_27 = arith.constant 1.000000e+00 : f32
    %cst_28 = arith.constant 0.000000e+00 : f32
    %75 = vector.broadcast %cst_27 : f32 to vector<256x32xf32>
    %76 = vector.broadcast %cst_28 : f32 to vector<256x32xf32>
    %77 = arith.select %74, %75, %76 : vector<256x32xi1>, vector<256x32xf32>
    %78 = tpu.iota {dimensions = array<i32: 0>} : vector<32x256xi32>
    %79 = tpu.iota {dimensions = array<i32: 1>} : vector<32x256xi32>
    %c32_i32_29 = arith.constant 32 : i32
    %c0_i32_30 = arith.constant 0 : i32
    %80 = arith.cmpi eq, %c32_i32_29, %c0_i32_30 : i32
    %c1_i32_31 = arith.constant 1 : i32
    %81 = arith.select %80, %c1_i32_31, %c32_i32_29 : i32
    %82 = vector.broadcast %81 : i32 to vector<32x256xi32>
    %83 = arith.remsi %79, %82 : vector<32x256xi32>
    %c0_i32_32 = arith.constant 0 : i32
    %84 = vector.broadcast %c0_i32_32 : i32 to vector<32x256xi32>
    %85 = arith.cmpi ne, %83, %84 : vector<32x256xi32>
    %c0_i32_33 = arith.constant 0 : i32
    %86 = vector.broadcast %c0_i32_33 : i32 to vector<32x256xi32>
    %87 = arith.cmpi slt, %83, %86 : vector<32x256xi32>
    %c0_i32_34 = arith.constant 0 : i32
    %88 = arith.cmpi slt, %81, %c0_i32_34 : i32
    %89 = vector.broadcast %88 : i1 to vector<32x256xi1>
    %90 = vector.broadcast %89 : vector<32x256xi1> to vector<32x256xi1>
    %91 = arith.xori %87, %90 : vector<32x256xi1>
    %92 = arith.andi %91, %85 : vector<32x256xi1>
    %93 = vector.broadcast %81 : i32 to vector<32x256xi32>
    %94 = arith.addi %83, %93 : vector<32x256xi32>
    %95 = arith.select %92, %94, %83 : vector<32x256xi1>, vector<32x256xi32>
    %96 = arith.cmpi eq, %95, %78 : vector<32x256xi32>
    %cst_35 = arith.constant 1.000000e+00 : f32
    %cst_36 = arith.constant 0.000000e+00 : f32
    %97 = vector.broadcast %cst_35 : f32 to vector<32x256xf32>
    %98 = vector.broadcast %cst_36 : f32 to vector<32x256xf32>
    %99 = arith.select %96, %97, %98 : vector<32x256xi1>, vector<32x256xf32>
    %cst_37 = arith.constant dense<0.000000e+00> : vector<256xf32>
    %100 = vector.multi_reduction <add>, %50, %cst_37 [0] : vector<8x256xf32> to vector<256xf32>
    %101 = vector.shape_cast %100 : vector<256xf32> to vector<1x256xf32>
    %cst_38 = arith.constant dense<0.000000e+00> : vector<256xf32>
    %102 = vector.multi_reduction <add>, %53, %cst_38 [0] : vector<8x256xf32> to vector<256xf32>
    %103 = vector.shape_cast %102 : vector<256xf32> to vector<1x256xf32>
    %104 = arith.addf %101, %103 : vector<1x256xf32>
    %cst_39 = arith.constant dense<0.000000e+00> : vector<1x32xf32>
    %105 = tpu.matmul %104, %77, %cst_39 {dimension_numbers = #tpu.dot_dimension_numbers<[1], [0], [0], [1], [0, 0, 1, 1], [], []>} : vector<1x256xf32>, vector<256x32xf32>, vector<1x32xf32> -> vector<1x32xf32>
    %cst_40 = arith.constant 1.280000e+02 : f32
    %106 = vector.broadcast %cst_40 : f32 to vector<1x32xf32>
    %107 = arith.divf %105, %106 : vector<1x32xf32>
    %cst_41 = arith.constant dense<0.000000e+00> : vector<1x256xf32>
    %108 = tpu.matmul %107, %99, %cst_41 {dimension_numbers = #tpu.dot_dimension_numbers<[1], [0], [0], [1], [0, 0, 1, 1], [], []>} : vector<1x32xf32>, vector<32x256xf32>, vector<1x256xf32> -> vector<1x256xf32>
    %109 = vector.broadcast %108 : vector<1x256xf32> to vector<8x256xf32>
    %110 = arith.subf %50, %109 : vector<8x256xf32>
    %111 = vector.broadcast %108 : vector<1x256xf32> to vector<8x256xf32>
    %112 = arith.subf %50, %111 : vector<8x256xf32>
    %113 = arith.mulf %110, %112 : vector<8x256xf32>
    %cst_42 = arith.constant dense<0.000000e+00> : vector<256xf32>
    %114 = vector.multi_reduction <add>, %113, %cst_42 [0] : vector<8x256xf32> to vector<256xf32>
    %115 = vector.shape_cast %114 : vector<256xf32> to vector<1x256xf32>
    %116 = vector.broadcast %108 : vector<1x256xf32> to vector<8x256xf32>
    %117 = arith.subf %53, %116 : vector<8x256xf32>
    %118 = vector.broadcast %108 : vector<1x256xf32> to vector<8x256xf32>
    %119 = arith.subf %53, %118 : vector<8x256xf32>
    %120 = arith.mulf %117, %119 : vector<8x256xf32>
    %cst_43 = arith.constant dense<0.000000e+00> : vector<256xf32>
    %121 = vector.multi_reduction <add>, %120, %cst_43 [0] : vector<8x256xf32> to vector<256xf32>
    %122 = vector.shape_cast %121 : vector<256xf32> to vector<1x256xf32>
    %123 = arith.addf %115, %122 : vector<1x256xf32>
    %cst_44 = arith.constant dense<0.000000e+00> : vector<1x32xf32>
    %124 = tpu.matmul %123, %77, %cst_44 {dimension_numbers = #tpu.dot_dimension_numbers<[1], [0], [0], [1], [0, 0, 1, 1], [], []>} : vector<1x256xf32>, vector<256x32xf32>, vector<1x32xf32> -> vector<1x32xf32>
    %cst_45 = arith.constant 1.280000e+02 : f32
    %125 = vector.broadcast %cst_45 : f32 to vector<1x32xf32>
    %126 = arith.divf %124, %125 : vector<1x32xf32>
    %cst_46 = arith.constant dense<0.000000e+00> : vector<1x256xf32>
    %127 = tpu.matmul %126, %99, %cst_46 {dimension_numbers = #tpu.dot_dimension_numbers<[1], [0], [0], [1], [0, 0, 1, 1], [], []>} : vector<1x32xf32>, vector<32x256xf32>, vector<1x256xf32> -> vector<1x256xf32>
    %cst_47 = arith.constant 9.99999974E-6 : f32
    %128 = vector.broadcast %cst_47 : f32 to vector<1x256xf32>
    %129 = arith.addf %127, %128 : vector<1x256xf32>
    %130 = math.rsqrt %129 : vector<1x256xf32>
    %131 = arith.mulf %54, %130 : vector<1x256xf32>
    %132 = arith.mulf %108, %131 : vector<1x256xf32>
    %133 = arith.subf %55, %132 : vector<1x256xf32>
    %134 = vector.broadcast %131 : vector<1x256xf32> to vector<8x256xf32>
    %135 = arith.mulf %50, %134 : vector<8x256xf32>
    %136 = vector.broadcast %133 : vector<1x256xf32> to vector<8x256xf32>
    %137 = arith.addf %135, %136 : vector<8x256xf32>
    %cst_48 = arith.constant 0.000000e+00 : f32
    %138 = vector.broadcast %cst_48 : f32 to vector<8x256xf32>
    %139 = arith.maximumf %137, %138 : vector<8x256xf32>
    %140 = arith.truncf %139 : vector<8x256xf32> to vector<8x256xbf16>
    %c0_49 = arith.constant 0 : index
    %c0_50 = arith.constant 0 : index
    %141 = vector.load %arg5[%c0_49, %c0_50] : memref<8x512xbf16, #tpu.memory_space<vmem>>, vector<8x256xbf16>
    tpu.vector_store %arg5[%c0_49, %c0_50], %140 {strides = array<i32>} : memref<8x512xbf16, #tpu.memory_space<vmem>>, vector<8x256xbf16>,
    %142 = vector.broadcast %131 : vector<1x256xf32> to vector<8x256xf32>
    %143 = arith.mulf %53, %142 : vector<8x256xf32>
    %144 = vector.broadcast %133 : vector<1x256xf32> to vector<8x256xf32>
    %145 = arith.addf %143, %144 : vector<8x256xf32>
    %cst_51 = arith.constant 0.000000e+00 : f32
    %146 = vector.broadcast %cst_51 : f32 to vector<8x256xf32>
    %147 = arith.maximumf %145, %146 : vector<8x256xf32>
    %148 = arith.truncf %147 : vector<8x256xf32> to vector<8x256xbf16>
    %c0_52 = arith.constant 0 : index
    %c256 = arith.constant 256 : index
    %149 = vector.load %arg5[%c0_52, %c256] : memref<8x512xbf16, #tpu.memory_space<vmem>>, vector<8x256xbf16>
    tpu.vector_store %arg5[%c0_52, %c256], %148 {strides = array<i32>} : memref<8x512xbf16, #tpu.memory_space<vmem>>, vector<8x256xbf16>,
    return
  }
  func.func @transform_0(%arg0: i32) -> (i32, i32) {
    %c0_i32 = arith.constant 0 : i32
    %c0_i32_0 = arith.constant 0 : i32
    %c0_i32_1 = arith.constant 0 : i32
    return %c0_i32, %c0_i32_0 : i32, i32
  }
  func.func @transform_1(%arg0: i32) -> (i32, i32) {
    %c0_i32 = arith.constant 0 : i32
    %c0_i32_0 = arith.constant 0 : i32
    %c0_i32_1 = arith.constant 0 : i32
    return %c0_i32, %c0_i32_0 : i32, i32
  }
  func.func @transform_2(%arg0: i32) -> (i32, i32) {
    %c0_i32 = arith.constant 0 : i32
    %c0_i32_0 = arith.constant 0 : i32
    %c0_i32_1 = arith.constant 0 : i32
    return %c0_i32, %c0_i32_0 : i32, i32
  }
  func.func @transform_3(%arg0: i32) -> (i32, i32) {
    %c0_i32 = arith.constant 0 : i32
    %c0_i32_0 = arith.constant 0 : i32
    %c0_i32_1 = arith.constant 0 : i32
    return %c0_i32, %c0_i32_0 : i32, i32
  }
  func.func @transform_4(%arg0: i32) -> (i32, i32) {
    %c0_i32 = arith.constant 0 : i32
    %c0_i32_0 = arith.constant 0 : i32
    %c0_i32_1 = arith.constant 0 : i32
    return %c0_i32, %c0_i32_0 : i32, i32
  }
}

module attributes {stable_mosaic.version = 11 : i64} {
  func.func @_deconv_tanh_kernel(%arg0: i32, %arg1: memref<64x256xbf16, #tpu.memory_space<vmem>>, %arg2: memref<256x2048xbf16, #tpu.memory_space<vmem>>, %arg3: memref<64x1024xf32, #tpu.memory_space<vmem>>) attributes {dimension_semantics = [#tpu.dimension_semantics<arbitrary>], iteration_bounds = array<i64: 1>, scalar_prefetch = 0 : i64, scratch_operands = 0 : i64, tpu.core_type = #tpu.core_type<tc>, window_params = [{pipeline_mode = #tpu.pipeline_mode<synchronous>, transform_indices = @transform_0, window_bounds = array<i64: 64, 256>}, {pipeline_mode = #tpu.pipeline_mode<synchronous>, transform_indices = @transform_1, window_bounds = array<i64: 256, 2048>}, {pipeline_mode = #tpu.pipeline_mode<synchronous>, transform_indices = @transform_2, window_bounds = array<i64: 64, 1024>}]} {
    %c0 = arith.constant 0 : index
    %c0_0 = arith.constant 0 : index
    %0 = vector.load %arg1[%c0, %c0_0] : memref<64x256xbf16, #tpu.memory_space<vmem>>, vector<64x256xbf16>
    %c0_1 = arith.constant 0 : index
    %c0_2 = arith.constant 0 : index
    %1 = vector.load %arg2[%c0_1, %c0_2] : memref<256x2048xbf16, #tpu.memory_space<vmem>>, vector<256x2048xbf16>
    %2 = tpu.iota {dimensions = array<i32: 0>} : vector<64x64xi32>
    %3 = tpu.iota {dimensions = array<i32: 1>} : vector<64x64xi32>
    %c32_i32 = arith.constant 32 : i32
    %c0_i32 = arith.constant 0 : i32
    %4 = arith.cmpi eq, %c32_i32, %c0_i32 : i32
    %c1_i32 = arith.constant 1 : i32
    %5 = arith.select %4, %c1_i32, %c32_i32 : i32
    %6 = vector.broadcast %5 : i32 to vector<64x64xi32>
    %7 = arith.remsi %2, %6 : vector<64x64xi32>
    %c0_i32_3 = arith.constant 0 : i32
    %8 = vector.broadcast %c0_i32_3 : i32 to vector<64x64xi32>
    %9 = arith.cmpi ne, %7, %8 : vector<64x64xi32>
    %c0_i32_4 = arith.constant 0 : i32
    %10 = vector.broadcast %c0_i32_4 : i32 to vector<64x64xi32>
    %11 = arith.cmpi slt, %7, %10 : vector<64x64xi32>
    %c0_i32_5 = arith.constant 0 : i32
    %12 = arith.cmpi slt, %5, %c0_i32_5 : i32
    %13 = vector.broadcast %12 : i1 to vector<64x64xi1>
    %14 = vector.broadcast %13 : vector<64x64xi1> to vector<64x64xi1>
    %15 = arith.xori %11, %14 : vector<64x64xi1>
    %16 = arith.andi %15, %9 : vector<64x64xi1>
    %17 = vector.broadcast %5 : i32 to vector<64x64xi32>
    %18 = arith.addi %7, %17 : vector<64x64xi32>
    %19 = arith.select %16, %18, %7 : vector<64x64xi1>, vector<64x64xi32>
    %c1_i32_6 = arith.constant 1 : i32
    %20 = vector.broadcast %c1_i32_6 : i32 to vector<64x64xi32>
    %21 = arith.addi %3, %20 : vector<64x64xi32>
    %22 = arith.cmpi eq, %2, %21 : vector<64x64xi32>
    %c0_i32_7 = arith.constant 0 : i32
    %23 = vector.broadcast %c0_i32_7 : i32 to vector<64x64xi32>
    %24 = arith.cmpi ne, %19, %23 : vector<64x64xi32>
    %25 = arith.andi %22, %24 : vector<64x64xi1>
    %cst = arith.constant 1.000000e+00 : f32
    %cst_8 = arith.constant 0.000000e+00 : f32
    %26 = vector.broadcast %cst : f32 to vector<64x64xf32>
    %27 = vector.broadcast %cst_8 : f32 to vector<64x64xf32>
    %28 = arith.select %25, %26, %27 : vector<64x64xi1>, vector<64x64xf32>
    %29 = arith.truncf %28 : vector<64x64xf32> to vector<64x64xbf16>
    %c1_i32_9 = arith.constant 1 : i32
    %30 = vector.broadcast %c1_i32_9 : i32 to vector<64x64xi32>
    %31 = arith.addi %2, %30 : vector<64x64xi32>
    %32 = arith.cmpi eq, %3, %31 : vector<64x64xi32>
    %c31_i32 = arith.constant 31 : i32
    %33 = vector.broadcast %c31_i32 : i32 to vector<64x64xi32>
    %34 = arith.cmpi ne, %19, %33 : vector<64x64xi32>
    %35 = arith.andi %32, %34 : vector<64x64xi1>
    %cst_10 = arith.constant 1.000000e+00 : f32
    %cst_11 = arith.constant 0.000000e+00 : f32
    %36 = vector.broadcast %cst_10 : f32 to vector<64x64xf32>
    %37 = vector.broadcast %cst_11 : f32 to vector<64x64xf32>
    %38 = arith.select %35, %36, %37 : vector<64x64xi1>, vector<64x64xf32>
    %39 = arith.truncf %38 : vector<64x64xf32> to vector<64x64xbf16>
    %cst_12 = arith.constant dense<0.000000e+00> : vector<64x256xf32>
    %40 = tpu.matmul %29, %0, %cst_12 {dimension_numbers = #tpu.dot_dimension_numbers<[1], [0], [0], [1], [0, 0, 1, 1], [], []>} : vector<64x64xbf16>, vector<64x256xbf16>, vector<64x256xf32> -> vector<64x256xf32>
    %41 = arith.truncf %40 : vector<64x256xf32> to vector<64x256xbf16>
    %cst_13 = arith.constant dense<0.000000e+00> : vector<64x256xf32>
    %42 = tpu.matmul %39, %0, %cst_13 {dimension_numbers = #tpu.dot_dimension_numbers<[1], [0], [0], [1], [0, 0, 1, 1], [], []>} : vector<64x64xbf16>, vector<64x256xbf16>, vector<64x256xf32> -> vector<64x256xf32>
    %43 = arith.truncf %42 : vector<64x256xf32> to vector<64x256xbf16>
    %44 = vector.extract_strided_slice %1 {offsets = [0, 0], sizes = [256, 512], strides = [1, 1]} : vector<256x2048xbf16> to vector<256x512xbf16>
    %45 = vector.extract_strided_slice %1 {offsets = [0, 512], sizes = [256, 512], strides = [1, 1]} : vector<256x2048xbf16> to vector<256x512xbf16>
    %46 = vector.extract_strided_slice %1 {offsets = [0, 1024], sizes = [256, 512], strides = [1, 1]} : vector<256x2048xbf16> to vector<256x512xbf16>
    %47 = vector.extract_strided_slice %1 {offsets = [0, 1536], sizes = [256, 512], strides = [1, 1]} : vector<256x2048xbf16> to vector<256x512xbf16>
    %cst_14 = arith.constant dense<0.000000e+00> : vector<64x512xf32>
    %48 = tpu.matmul %0, %45, %cst_14 {dimension_numbers = #tpu.dot_dimension_numbers<[1], [0], [0], [1], [0, 0, 1, 1], [], []>} : vector<64x256xbf16>, vector<256x512xbf16>, vector<64x512xf32> -> vector<64x512xf32>
    %cst_15 = arith.constant dense<0.000000e+00> : vector<64x512xf32>
    %49 = tpu.matmul %41, %47, %cst_15 {dimension_numbers = #tpu.dot_dimension_numbers<[1], [0], [0], [1], [0, 0, 1, 1], [], []>} : vector<64x256xbf16>, vector<256x512xbf16>, vector<64x512xf32> -> vector<64x512xf32>
    %50 = arith.addf %48, %49 : vector<64x512xf32>
    %cst_16 = arith.constant dense<0.000000e+00> : vector<64x512xf32>
    %51 = tpu.matmul %0, %46, %cst_16 {dimension_numbers = #tpu.dot_dimension_numbers<[1], [0], [0], [1], [0, 0, 1, 1], [], []>} : vector<64x256xbf16>, vector<256x512xbf16>, vector<64x512xf32> -> vector<64x512xf32>
    %cst_17 = arith.constant dense<0.000000e+00> : vector<64x512xf32>
    %52 = tpu.matmul %43, %44, %cst_17 {dimension_numbers = #tpu.dot_dimension_numbers<[1], [0], [0], [1], [0, 0, 1, 1], [], []>} : vector<64x256xbf16>, vector<256x512xbf16>, vector<64x512xf32> -> vector<64x512xf32>
    %53 = arith.addf %51, %52 : vector<64x512xf32>
    %54 = math.tanh %50 : vector<64x512xf32>
    %c0_18 = arith.constant 0 : index
    %c0_19 = arith.constant 0 : index
    %55 = vector.load %arg3[%c0_18, %c0_19] : memref<64x1024xf32, #tpu.memory_space<vmem>>, vector<64x512xf32>
    tpu.vector_store %arg3[%c0_18, %c0_19], %54 {strides = array<i32>} : memref<64x1024xf32, #tpu.memory_space<vmem>>, vector<64x512xf32>,
    %56 = math.tanh %53 : vector<64x512xf32>
    %c0_20 = arith.constant 0 : index
    %c512 = arith.constant 512 : index
    %57 = vector.load %arg3[%c0_20, %c512] : memref<64x1024xf32, #tpu.memory_space<vmem>>, vector<64x512xf32>
    tpu.vector_store %arg3[%c0_20, %c512], %56 {strides = array<i32>} : memref<64x1024xf32, #tpu.memory_space<vmem>>, vector<64x512xf32>,
    return
  }
  func.func @transform_0(%arg0: i32) -> (i32, i32) {
    %c0_i32 = arith.constant 0 : i32
    %c0_i32_0 = arith.constant 0 : i32
    %c0_i32_1 = arith.constant 0 : i32
    return %c0_i32, %c0_i32_0 : i32, i32
  }
  func.func @transform_1(%arg0: i32) -> (i32, i32) {
    %c0_i32 = arith.constant 0 : i32
    %c0_i32_0 = arith.constant 0 : i32
    %c0_i32_1 = arith.constant 0 : i32
    return %c0_i32, %c0_i32_0 : i32, i32
  }
  func.func @transform_2(%arg0: i32) -> (i32, i32) {
    %c0_i32 = arith.constant 0 : i32
    %c0_i32_0 = arith.constant 0 : i32
    %c0_i32_1 = arith.constant 0 : i32
    return %c0_i32, %c0_i32_0 : i32, i32
  }
}

</mosaic_0001>

<bundles_post_ra>
// kernel: generator_forward.6
= control target key start
LH: loop header
LB: loop body
LE: loop exit
PB: predicated region body
PF: predicated region fallthrough
CT: control target
= control target key end

     0   :  { %9 = vsyncpa [#allocation3], 0  ;;  %s3207_s0 = inlined_call_operand.vmem [shape: bf16[8,256], index: 0, kind: input, shape index: {}]   ;;  %s3208_s1 = inlined_call_operand.hbm [shape: bf16[256,1024], index: 1, kind: input, shape index: {}]   ;;  %s3209_s2 = inlined_call_operand.hbm [shape: f32[1,256], index: 2, kind: input, shape index: {}]   ;;  %s3210_s3 = inlined_call_operand.hbm [shape: f32[1,256], index: 3, kind: input, shape index: {}]   ;;  %s3211_s4 = inlined_call_operand.vmem [shape: bf16[8,512], index: 4, kind: output, shape index: {}]  }
   0x1   :  { %10 = vsyncpa [#allocation5], 0  ;;  %s2568_s15 = smov [#allocation4]   ;;  %s2569_s17 = smov [#allocation2]  }
   0x2   :  { %s31_s16 = sshll.u32 %s2568_s15, 4  ;;  %s18_s18 = sshll.u32 %s2569_s17, 4  ;;  %s32_s16 = int_to_ptr.vmem [resolvable:$true] %s31_s16  ;;  %s2602_s18 = int_to_ptr.vmem [resolvable:$true] %s18_s18 }
   0x3   :  { %s2498_s21 = scalar_lea.hbm %s3209_s2, 32 }
   0x4   :  { %p2499_p0 = scmp.ne.s32.totalorder %s3209_s2, %s2498_s21  ;;  %p2502_p1 = scmp.lt.u32.totalorder %s2498_s21, %s3209_s2 }
   0x6   :  { %p2504_p2 = pnand %p2502_p1, %p2499_p0 }
   0x8   :  { %2507 = shalt.err (!%p2504_p2)
}
   0x9   :  { %s2508_s26 = scalar_lea.vmem %s32_s16, 32  ;;  %p2513_p4 = scmp.lt.s32.totalorder %s32_s16, %s32_s16 }
   0xa   :  { %p2509_p3 = scmp.ne.s32.totalorder %s32_s16, %s2508_s26  ;;  %p2514_p5 = scmp.lt.s32.totalorder %s2508_s26, %s2508_s26 }
   0xc   :  { %p2515_p6 = por %p2514_p5, %p2513_p4 }
   0xe   :  { %p2516_p7 = pnand %p2515_p6, %p2509_p3 }
  0x10   :  { %2519 = shalt.err (!%p2516_p7)
}
  0x11   :  { %34 = dma.hbm_to_vmem [thread:$0]  %s3209_s2, 32, %s32_s16, [#allocation5]  }
  0x12   :  { %s2520_s5 = scalar_lea.hbm %s3208_s1, 16384 }
  0x13   :  { %p2521_p8 = scmp.ne.s32.totalorder %s3208_s1, %s2520_s5  ;;  %p2524_p9 = scmp.lt.u32.totalorder %s2520_s5, %s3208_s1 }
  0x15   :  { %p2526_p10 = pnand %p2524_p9, %p2521_p8 }
  0x17   :  { %2529 = shalt.err (!%p2526_p10)
}
  0x18   :  { %s2530_s10 = scalar_lea.vmem %s2602_s18, 16384  ;;  %p2535_p12 = scmp.lt.s32.totalorder %s2602_s18, %s2602_s18 }
  0x19   :  { %p2531_p11 = scmp.ne.s32.totalorder %s2602_s18, %s2530_s10  ;;  %p2536_p13 = scmp.lt.s32.totalorder %s2530_s10, %s2530_s10 }
  0x1b   :  { %p2537_p0 = por %p2536_p13, %p2535_p12 }
  0x1d   :  { %p2538_p1 = pnand %p2537_p0, %p2531_p11 }
  0x1f   :  { %2541 = shalt.err (!%p2538_p1)
}
  0x20   :  { %s2570_s2 = smov 512   ;;  %s2571_s11 = smov 32  }
  0x21   :  { %24 = dma.hbm_to_vmem [thread:$0]  %s3208_s1, 16384, %s2602_s18, [#allocation3], %s2570_s2, %s2570_s2, %s2571_s11  }
  0x22   :  { %s2572_s14 = smov [#allocation6]   ;;  %s2542_s19 = scalar_lea.hbm %s3210_s3, 32 }
  0x23   :  { %s41_s15 = sshll.u32 %s2572_s14, 4  ;;  %p2543_p2 = scmp.ne.s32.totalorder %s3210_s3, %s2542_s19  ;;  %s42_s15 = int_to_ptr.vmem [resolvable:$true] %s41_s15 }
  0x24   :  { %p2546_p3 = scmp.lt.u32.totalorder %s2542_s19, %s3210_s3 }
  0x26   :  { %p2548_p4 = pnand %p2546_p3, %p2543_p2 }
  0x28   :  { %2551 = shalt.err (!%p2548_p4)
}
  0x29   :  { %s2552_s24 = scalar_lea.vmem %s42_s15, 32  ;;  %p2557_p6 = scmp.lt.s32.totalorder %s42_s15, %s42_s15 }
  0x2a   :  { %p2553_p5 = scmp.ne.s32.totalorder %s42_s15, %s2552_s24  ;;  %p2558_p7 = scmp.lt.s32.totalorder %s2552_s24, %s2552_s24 }
  0x2c   :  { %p2559_p8 = por %p2558_p7, %p2557_p6 }
  0x2e   :  { %p2560_p9 = pnand %p2559_p8, %p2553_p5 }
  0x30   :  { %2563 = shalt.err (!%p2560_p9)
}
  0x31   :  { %44 = dma.hbm_to_vmem [thread:$0]  %s3210_s3, 32, %s42_s15, [#allocation5]  }
  0x32   :  { %2564 = dma.done.wait [#allocation3], 16384  }
  0x33   :  { %2565 = vsyncadd [#allocation3], 4294950912 }
  0x34   :  { %2566 = dma.done.wait [#allocation5], 64  }
  0x35   :  { %2567 = vsyncadd [#allocation5], 4294967232  ;;  %v184_v0 = vlaneseq  ;;  %v2573_v1 = vmov 0   ;;  %v55_v7 = vld [vmem:[%s3207_s0] sm:$0xff]  ;;  %vm221_vm4 = vcmask 1043456   ;;  %v59_v8 = vld [vmem:[#allocation2 + $0x18] sm:$0xff] }
  0x36   :  { %260 = vmatprep.mubr.bf16.mxu0 %v2573_v1  ;;  %306 = vmatprep.mubr.bf16.mxu1 %v2573_v1  ;;  %v2657_v9 = vcombine.high %v55_v7, %v55_v7  ;;  %v2659_v10 = vcombine.low %v55_v7, %v55_v7  ;;  %v3250_v11 = vmov 0.0   ;;  %v63_v13 = vld [vmem:[#allocation2 + $0x38] sm:$0xff]  ;;  %v56_v14 = vld [vmem:[#allocation2] sm:$0xff]  ;;  %vm217_vm7 = vcmask 64512  }
  0x37   :  { %v2645_v2 = vshrl.u32 %v184_v0, 7  ;;  %v2647_v3 = vand.u32 127, %v184_v0  ;;  %v2112_v16 = vcombine.high %v59_v8, %v63_v13  ;;  %v60_v17 = vld [vmem:[#allocation2 + $0x20] sm:$0xff]  ;;  %v67_v18 = vld [vmem:[#allocation2 + $0x58] sm:$0xff]  ;;  %v2111_v26 = vcombine.low %v59_v8, %v63_v13 }
  0x38   :  { %v71_v19 = vld [vmem:[#allocation2 + $0x78] sm:$0xff]  ;;  %2107 = vmatprep.subr.msk.bf16.mxu0 %vm221_vm4, %v2657_v9  ;;  %2109 = vmatprep.subr.msk.bf16.mxu1 %vm221_vm4, %v2657_v9  ;;  %v223_v20 = vsel %vm221_vm4, %v2659_v10, 0  ;;  %v2176_v23 = vcombine.high %v56_v14, %v60_v17  ;;  %v64_v24 = vld [vmem:[#allocation2 + $0x40] sm:$0xff]  ;;  %v2175_v27 = vcombine.low %v56_v14, %v60_v17 }
  0x39   :  { %v192_v4 = vand.u32 3, %v2645_v2  ;;  %v200_v5 = vadd.s32 1, %v2647_v3  ;;  %v206_v6 = vadd.s32 1, %v2645_v2  ;;  %v68_v25 = vld [vmem:[#allocation2 + $0x60] sm:$0xff]  ;;  %229 = vmatpush1.bf16.msra.mxu0 %v223_v20  ;;  %275 = vmatpush1.bf16.msra.mxu1 %v223_v20  ;;  %v2114_v28 = vcombine.high %v67_v18, %v71_v19  ;;  %v75_v30 = vld [vmem:[#allocation2 + $0x98] sm:$0xff] }
  0x3a   :  { %477 = vmatprep.subr.bf16.mxu0 %v2112_v16  ;;  %881 = vmatprep.subr.bf16.mxu1 %v2176_v23  ;;  %v2178_v29 = vcombine.high %v64_v24, %v68_v25  ;;  %v79_v31 = vld [vmem:[#allocation2 + $0xb8] sm:$0xff]  ;;  %v72_v32 = vld [vmem:[#allocation2 + $0x80] sm:$0xff]  ;;  %v2113_v34 = vcombine.low %v67_v18, %v71_v19  ;;  %v2177_v35 = vcombine.low %v64_v24, %v68_v25 }
  0x3b   :  { %vm201_vm0 = vcmp.eq.s32.totalorder %v2645_v2, %v200_v5  ;;  %vm202_vm1 = vcmp.ne.s32.totalorder %v192_v4, 0  ;;  %vm207_vm2 = vcmp.eq.s32.totalorder %v2647_v3, %v206_v6  ;;  %vm208_vm3 = vcmp.ne.s32.totalorder %v192_v4, 3  ;;  %v76_v33 = vld [vmem:[#allocation2 + $0xa0] sm:$0xff]  ;;  %v83_v38 = vld [vmem:[#allocation2 + $0xd8] sm:$0xff] }
  0x3c   :  { %vm203_vm5 = vmand %vm201_vm0, %vm202_vm1  ;;  %v2116_v36 = vcombine.high %v75_v30, %v79_v31  ;;  %v2180_v37 = vcombine.high %v72_v32, %v76_v33  ;;  %v87_v39 = vld [vmem:[#allocation2 + $0xf8] sm:$0xff]  ;;  %v80_v40 = vld [vmem:[#allocation2 + $0xc0] sm:$0xff]  ;;  %v2115_v42 = vcombine.low %v75_v30, %v79_v31  ;;  %v2179_v43 = vcombine.low %v72_v32, %v76_v33 }
  0x3d   :  { %v204_v12 = vsel %vm203_vm5, 1.0, %v3250_v11  ;;  %vm209_vm6 = vmand %vm207_vm2, %vm208_vm3  ;;  %v84_v41 = vld [vmem:[#allocation2 + $0xe0] sm:$0xff]  ;;  %v2118_v44 = vcombine.high %v83_v38, %v87_v39  ;;  %v91_v46 = vld [vmem:[#allocation2 + $0x118] sm:$0xff]  ;;  %v2117_v50 = vcombine.low %v83_v38, %v87_v39 }
  0x3e   :  { %v210_v15 = vsel %vm209_vm6, 1.0, %v3250_v11  ;;  %v205_v21 = vpack.c.bf16 %v204_v12, %v204_v12  ;;  %v2182_v45 = vcombine.high %v80_v40, %v84_v41  ;;  %v95_v47 = vld [vmem:[#allocation2 + $0x138] sm:$0xff]  ;;  %v88_v48 = vld [vmem:[#allocation2 + $0x100] sm:$0xff]  ;;  %v2181_v51 = vcombine.low %v80_v40, %v84_v41 }
  0x3f   :  { %v211_v22 = vpack.c.bf16 %v210_v15, %v210_v15  ;;  %v92_v49 = vld [vmem:[#allocation2 + $0x120] sm:$0xff]  ;;  %v2120_v52 = vcombine.high %v91_v46, %v95_v47  ;;  %v99_v54 = vld [vmem:[#allocation2 + $0x158] sm:$0xff]  ;;  %v2119_v58 = vcombine.low %v91_v46, %v95_v47 }
  0x40   :  { %2108 = vmatmul.mubr.msk.bf16.vlgmr.msra.gmra.mrb[0].mxu0 %vm217_vm7, %v205_v21  ;;  %v2184_v53 = vcombine.high %v88_v48, %v92_v49  ;;  %v103_v55 = vld [vmem:[#allocation2 + $0x178] sm:$0xff]  ;;  %v96_v56 = vld [vmem:[#allocation2 + $0x140] sm:$0xff]  ;;  %v2183_v59 = vcombine.low %v88_v48, %v92_v49 }
  0x41   :  { %2110 = vmatmul.mubr.msk.bf16.vlgmr.msra.gmra.mrb[0].mxu1 %vm217_vm7, %v211_v22  ;;  %478 = vmatpush1.bf16.msra.mxu0 %v2111_v26  ;;  %v100_v57 = vld [vmem:[#allocation2 + $0x160] sm:$0xff]  ;;  %v2122_v60 = vcombine.high %v99_v54, %v103_v55  ;;  %v107_v62 = vld [vmem:[#allocation2 + $0x198] sm:$0xff]  ;;  %v2121_v4 = vcombine.low %v99_v54, %v103_v55 }
  0x42   :  { %882 = vmatpush1.bf16.msra.mxu1 %v2175_v27  ;;  %479 = vmatprep.subr.bf16.mxu0 %v2114_v28  ;;  %v2186_v61 = vcombine.high %v96_v56, %v100_v57  ;;  %v111_v63 = vld [vmem:[#allocation2 + $0x1b8] sm:$0xff]  ;;  %v104_v0 = vld [vmem:[#allocation2 + $0x180] sm:$0xff]  ;;  %v2185_v5 = vcombine.low %v96_v56, %v100_v57 }
  0x43   :  { %883 = vmatprep.subr.bf16.mxu1 %v2178_v29  ;;  %v108_v1 = vld [vmem:[#allocation2 + $0x1a0] sm:$0xff]  ;;  %v2124_v6 = vcombine.high %v107_v62, %v111_v63  ;;  %v115_v8 = vld [vmem:[#allocation2 + $0x1d8] sm:$0xff]  ;;  %v2123_v15 = vcombine.low %v107_v62, %v111_v63 }
  0x44   :  { %v2188_v7 = vcombine.high %v104_v0, %v108_v1  ;;  %v119_v12 = vld [vmem:[#allocation2 + $0x1f8] sm:$0xff]  ;;  %v112_v13 = vld [vmem:[#allocation2 + $0x1c0] sm:$0xff]  ;;  %v2187_v16 = vcombine.low %v104_v0, %v108_v1 }
  0x45   :  { %480 = vmatpush1.bf16.msra.mxu0 %v2113_v34  ;;  %v116_v14 = vld [vmem:[#allocation2 + $0x1e0] sm:$0xff]  ;;  %v2126_v17 = vcombine.high %v115_v8, %v119_v12  ;;  %v123_v19 = vld [vmem:[#allocation2 + $0x218] sm:$0xff]  ;;  %v2125_v23 = vcombine.low %v115_v8, %v119_v12 }
  0x46   :  { %884 = vmatpush1.bf16.msra.mxu1 %v2177_v35  ;;  %481 = vmatprep.subr.bf16.mxu0 %v2116_v36  ;;  %v2190_v18 = vcombine.high %v112_v13, %v116_v14  ;;  %v127_v20 = vld [vmem:[#allocation2 + $0x238] sm:$0xff]  ;;  %v120_v21 = vld [vmem:[#allocation2 + $0x200] sm:$0xff]  ;;  %v2189_v24 = vcombine.low %v112_v13, %v116_v14 }
  0x47   :  { %885 = vmatprep.subr.bf16.mxu1 %v2180_v37  ;;  %v124_v22 = vld [vmem:[#allocation2 + $0x220] sm:$0xff]  ;;  %v2128_v25 = vcombine.high %v123_v19, %v127_v20  ;;  %v131_v27 = vld [vmem:[#allocation2 + $0x258] sm:$0xff]  ;;  %v2127_v31 = vcombine.low %v123_v19, %v127_v20 }
  0x48   :  { %v2192_v26 = vcombine.high %v120_v21, %v124_v22  ;;  %v135_v28 = vld [vmem:[#allocation2 + $0x278] sm:$0xff]  ;;  %v128_v29 = vld [vmem:[#allocation2 + $0x240] sm:$0xff]  ;;  %v2191_v32 = vcombine.low %v120_v21, %v124_v22 }
  0x49   :  { %482 = vmatpush1.bf16.msra.mxu0 %v2115_v42  ;;  %v132_v30 = vld [vmem:[#allocation2 + $0x260] sm:$0xff]  ;;  %v2130_v33 = vcombine.high %v131_v27, %v135_v28  ;;  %v139_v35 = vld [vmem:[#allocation2 + $0x298] sm:$0xff]  ;;  %v2129_v39 = vcombine.low %v131_v27, %v135_v28  ;;  %v61_v27 = vld [vmem:[#allocation2 + $0x28] sm:$0xff] }
  0x4a   :  { %886 = vmatpush1.bf16.msra.mxu1 %v2179_v43  ;;  %483 = vmatprep.subr.bf16.mxu0 %v2118_v44  ;;  %v2194_v34 = vcombine.high %v128_v29, %v132_v30  ;;  %v143_v36 = vld [vmem:[#allocation2 + $0x2b8] sm:$0xff]  ;;  %v136_v37 = vld [vmem:[#allocation2 + $0x280] sm:$0xff]  ;;  %v2193_v40 = vcombine.low %v128_v29, %v132_v30  ;;  %v58_v28 = vld [vmem:[#allocation2 + $0x10] sm:$0xff] }
  0x4b   :  { %887 = vmatprep.subr.bf16.mxu1 %v2182_v45  ;;  %v140_v38 = vld [vmem:[#allocation2 + $0x2a0] sm:$0xff]  ;;  %v2132_v41 = vcombine.high %v139_v35, %v143_v36  ;;  %v147_v43 = vld [vmem:[#allocation2 + $0x2d8] sm:$0xff]  ;;  %v2131_v47 = vcombine.low %v139_v35, %v143_v36  ;;  %v62_v30 = vld [vmem:[#allocation2 + $0x30] sm:$0xff] }
  0x4c   :  { %v2196_v42 = vcombine.high %v136_v37, %v140_v38  ;;  %v151_v44 = vld [vmem:[#allocation2 + $0x2f8] sm:$0xff]  ;;  %v144_v45 = vld [vmem:[#allocation2 + $0x2c0] sm:$0xff]  ;;  %v2195_v48 = vcombine.low %v136_v37, %v140_v38  ;;  %v69_v37 = vld [vmem:[#allocation2 + $0x68] sm:$0xff] }
  0x4d   :  { %484 = vmatpush1.bf16.msra.mxu0 %v2117_v50  ;;  %v148_v46 = vld [vmem:[#allocation2 + $0x2e0] sm:$0xff]  ;;  %v2134_v49 = vcombine.high %v147_v43, %v151_v44  ;;  %v2133_v55 = vcombine.low %v147_v43, %v151_v44  ;;  %v183_v19 = vld [vmem:[#allocation2 + $0x3f8] sm:$0xff]  ;;  %v66_v38 = vld [vmem:[#allocation2 + $0x50] sm:$0xff] }
  0x4e   :  { %888 = vmatpush1.bf16.msra.mxu1 %v2181_v51  ;;  %485 = vmatprep.subr.bf16.mxu0 %v2120_v52  ;;  %v2198_v50 = vcombine.high %v144_v45, %v148_v46  ;;  %v155_v51 = vld [vmem:[#allocation2 + $0x318] sm:$0xff]  ;;  %v156_v54 = vld [vmem:[#allocation2 + $0x320] sm:$0xff]  ;;  %v2197_v56 = vcombine.low %v144_v45, %v148_v46 }
  0x4f   :  { %889 = vmatprep.subr.bf16.mxu1 %v2184_v53  ;;  %v159_v52 = vld [vmem:[#allocation2 + $0x338] sm:$0xff]  ;;  %v152_v53 = vld [vmem:[#allocation2 + $0x300] sm:$0xff] }
  0x50   :  { %v2136_v57 = vcombine.high %v155_v51, %v159_v52  ;;  %v164_v62 = vld [vmem:[#allocation2 + $0x360] sm:$0xff]  ;;  %v2135_v63 = vcombine.low %v155_v51, %v159_v52  ;;  %v2199_v0 = vcombine.low %v152_v53, %v156_v54  ;;  %v73_v52 = vld [vmem:[#allocation2 + $0x88] sm:$0xff] }
  0x51   :  { %486 = vmatpush1.bf16.msra.mxu0 %v2119_v58  ;;  %v2200_v58 = vcombine.high %v152_v53, %v156_v54  ;;  %v172_v8 = vld [vmem:[#allocation2 + $0x3a0] sm:$0xff]  ;;  %v77_v53 = vld [vmem:[#allocation2 + $0xa8] sm:$0xff]  ;;  %v74_v54 = vld [vmem:[#allocation2 + $0x90] sm:$0xff] }
  0x52   :  { %890 = vmatpush1.bf16.msra.mxu1 %v2183_v59  ;;  %487 = vmatprep.subr.bf16.mxu0 %v2122_v60  ;;  %v163_v59 = vld [vmem:[#allocation2 + $0x358] sm:$0xff]  ;;  %v176_v20 = vld [vmem:[#allocation2 + $0x3c0] sm:$0xff] }
  0x53   :  { %891 = vmatprep.subr.bf16.mxu1 %v2186_v61  ;;  %v167_v60 = vld [vmem:[#allocation2 + $0x378] sm:$0xff]  ;;  %v160_v61 = vld [vmem:[#allocation2 + $0x340] sm:$0xff] }
  0x54   :  { %v2138_v1 = vcombine.high %v163_v59, %v167_v60  ;;  %v2137_v12 = vcombine.low %v163_v59, %v167_v60  ;;  %v2201_v13 = vcombine.low %v160_v61, %v164_v62  ;;  %v180_v22 = vld [vmem:[#allocation2 + $0x3e0] sm:$0xff]  ;;  %v81_v60 = vld [vmem:[#allocation2 + $0xc8] sm:$0xff] }
  0x55   :  { %488 = vmatpush1.bf16.msra.mxu0 %v2121_v4  ;;  %v2202_v4 = vcombine.high %v160_v61, %v164_v62  ;;  %v85_v61 = vld [vmem:[#allocation2 + $0xe8] sm:$0xff]  ;;  %v82_v62 = vld [vmem:[#allocation2 + $0xd0] sm:$0xff] }
  0x56   :  { %892 = vmatpush1.bf16.msra.mxu1 %v2185_v5  ;;  %489 = vmatprep.subr.bf16.mxu0 %v2124_v6  ;;  %v171_v5 = vld [vmem:[#allocation2 + $0x398] sm:$0xff] }
  0x57   :  { %893 = vmatprep.subr.bf16.mxu1 %v2188_v7  ;;  %v175_v6 = vld [vmem:[#allocation2 + $0x3b8] sm:$0xff]  ;;  %v168_v7 = vld [vmem:[#allocation2 + $0x380] sm:$0xff] }
  0x58   :  { %v2140_v14 = vcombine.high %v171_v5, %v175_v6 }
  0x59   :  { %490 = vmatpush1.bf16.msra.mxu0 %v2123_v15  ;;  %v2204_v15 = vcombine.high %v168_v7, %v172_v8 }
  0x5a   :  { %894 = vmatpush1.bf16.msra.mxu1 %v2187_v16  ;;  %491 = vmatprep.subr.bf16.mxu0 %v2126_v17  ;;  %v2139_v16 = vcombine.low %v171_v5, %v175_v6  ;;  %v2203_v17 = vcombine.low %v168_v7, %v172_v8  ;;  %v89_v6 = vld [vmem:[#allocation2 + $0x108] sm:$0xff]  ;;  %v90_v8 = vld [vmem:[#allocation2 + $0x110] sm:$0xff] }
  0x5b   :  { %895 = vmatprep.subr.bf16.mxu1 %v2190_v18  ;;  %v179_v18 = vld [vmem:[#allocation2 + $0x3d8] sm:$0xff]  ;;  %v93_v7 = vld [vmem:[#allocation2 + $0x128] sm:$0xff] }
  0x5c   :  { %v2142_v21 = vcombine.high %v179_v18, %v183_v19 }
  0x5d   :  { %492 = vmatpush1.bf16.msra.mxu0 %v2125_v23  ;;  %v2141_v23 = vcombine.low %v179_v18, %v183_v19  ;;  %v98_v18 = vld [vmem:[#allocation2 + $0x150] sm:$0xff] }
  0x5e   :  { %896 = vmatpush1.bf16.msra.mxu1 %v2189_v24  ;;  %493 = vmatprep.subr.bf16.mxu0 %v2128_v25  ;;  %v2205_v24 = vcombine.low %v176_v20, %v180_v22  ;;  %v2206_v25 = vcombine.high %v176_v20, %v180_v22  ;;  %v102_v19 = vld [vmem:[#allocation2 + $0x170] sm:$0xff]  ;;  %v2151_v20 = vcombine.low %v89_v6, %v93_v7 }
  0x5f   :  { %897 = vmatprep.subr.bf16.mxu1 %v2192_v26  ;;  %v57_v26 = vld [vmem:[#allocation2 + $0x8] sm:$0xff] }
  0x60   :  { %v2144_v29 = vcombine.high %v57_v26, %v61_v27 }
  0x61   :  { %494 = vmatpush1.bf16.msra.mxu0 %v2127_v31  ;;  %v2143_v31 = vcombine.low %v57_v26, %v61_v27  ;;  %v106_v26 = vld [vmem:[#allocation2 + $0x190] sm:$0xff] }
  0x62   :  { %898 = vmatpush1.bf16.msra.mxu1 %v2191_v32  ;;  %495 = vmatprep.subr.bf16.mxu0 %v2130_v33  ;;  %v2207_v32 = vcombine.low %v58_v28, %v62_v30  ;;  %v2208_v33 = vcombine.high %v58_v28, %v62_v30  ;;  %v110_v27 = vld [vmem:[#allocation2 + $0x1b0] sm:$0xff] }
  0x63   :  { %899 = vmatprep.subr.bf16.mxu1 %v2194_v34  ;;  %v65_v34 = vld [vmem:[#allocation2 + $0x48] sm:$0xff] }
  0x65   :  { %496 = vmatpush1.bf16.msra.mxu0 %v2129_v39  ;;  %v70_v39 = vld [vmem:[#allocation2 + $0x70] sm:$0xff] }
  0x66   :  { %900 = vmatpush1.bf16.msra.mxu1 %v2193_v40  ;;  %497 = vmatprep.subr.bf16.mxu0 %v2132_v41  ;;  %v2210_v51 = vcombine.high %v66_v38, %v70_v39 }
  0x67   :  { %901 = vmatprep.subr.bf16.mxu1 %v2196_v42 }
  0x69   :  { %498 = vmatpush1.bf16.msra.mxu0 %v2131_v47 }
  0x6a   :  { %902 = vmatpush1.bf16.msra.mxu1 %v2195_v48  ;;  %499 = vmatprep.subr.bf16.mxu0 %v2134_v49 }
  0x6b   :  { %903 = vmatprep.subr.bf16.mxu1 %v2198_v50  ;;  %v2146_v50 = vcombine.high %v65_v34, %v69_v37 }
  0x6d   :  { %500 = vmatpush1.bf16.msra.mxu0 %v2133_v55  ;;  %v78_v55 = vld [vmem:[#allocation2 + $0xb0] sm:$0xff] }
  0x6e   :  { %904 = vmatpush1.bf16.msra.mxu1 %v2197_v56  ;;  %501 = vmatprep.subr.bf16.mxu0 %v2136_v57  ;;  %v2145_v56 = vcombine.low %v65_v34, %v69_v37  ;;  %v2209_v57 = vcombine.low %v66_v38, %v70_v39  ;;  %v2212_v59 = vcombine.high %v74_v54, %v78_v55  ;;  %v114_v34 = vld [vmem:[#allocation2 + $0x1d0] sm:$0xff] }
  0x6f   :  { %905 = vmatprep.subr.bf16.mxu1 %v2200_v58  ;;  %v2148_v58 = vcombine.high %v73_v52, %v77_v53  ;;  %v2219_v37 = vcombine.low %v106_v26, %v110_v27 }
  0x71   :  { %502 = vmatpush1.bf16.msra.mxu0 %v2135_v63  ;;  %v86_v63 = vld [vmem:[#allocation2 + $0xf0] sm:$0xff] }
  0x72   :  { %906 = vmatpush1.bf16.msra.mxu1 %v2199_v0  ;;  %503 = vmatprep.subr.bf16.mxu0 %v2138_v1  ;;  %v2147_v0 = vcombine.low %v73_v52, %v77_v53  ;;  %v2211_v1 = vcombine.low %v74_v54, %v78_v55  ;;  %v2214_v5 = vcombine.high %v82_v62, %v86_v63 }
  0x73   :  { %907 = vmatprep.subr.bf16.mxu1 %v2202_v4  ;;  %v2150_v4 = vcombine.high %v81_v60, %v85_v61 }
  0x75   :  { %504 = vmatpush1.bf16.msra.mxu0 %v2137_v12  ;;  %v94_v12 = vld [vmem:[#allocation2 + $0x130] sm:$0xff] }
  0x76   :  { %908 = vmatpush1.bf16.msra.mxu1 %v2201_v13  ;;  %505 = vmatprep.subr.bf16.mxu0 %v2140_v14  ;;  %v2149_v13 = vcombine.low %v81_v60, %v85_v61  ;;  %v2213_v14 = vcombine.low %v82_v62, %v86_v63 }
  0x77   :  { %909 = vmatprep.subr.bf16.mxu1 %v2204_v15  ;;  %v2152_v15 = vcombine.high %v89_v6, %v93_v7 }
  0x79   :  { %506 = vmatpush1.bf16.msra.mxu0 %v2139_v16  ;;  %v97_v16 = vld [vmem:[#allocation2 + $0x148] sm:$0xff] }
  0x7a   :  { %910 = vmatpush1.bf16.msra.mxu1 %v2203_v17  ;;  %507 = vmatprep.subr.bf16.mxu0 %v2142_v21  ;;  %v101_v17 = vld [vmem:[#allocation2 + $0x168] sm:$0xff]  ;;  %v2215_v21 = vcombine.low %v90_v8, %v94_v12 }
  0x7b   :  { %911 = vmatprep.subr.bf16.mxu1 %v2206_v25  ;;  %v2154_v22 = vcombine.high %v97_v16, %v101_v17  ;;  %v109_v25 = vld [vmem:[#allocation2 + $0x1a8] sm:$0xff]  ;;  %v2153_v28 = vcombine.low %v97_v16, %v101_v17 }
  0x7d   :  { %508 = vmatpush1.bf16.msra.mxu0 %v2141_v23  ;;  %v2218_v23 = vcombine.high %v98_v18, %v102_v19 }
  0x7e   :  { %912 = vmatpush1.bf16.msra.mxu1 %v2205_v24  ;;  %680 = vmatprep.subr.bf16.mxu0 %v2144_v29  ;;  %v105_v24 = vld [vmem:[#allocation2 + $0x188] sm:$0xff]  ;;  %v2217_v29 = vcombine.low %v98_v18, %v102_v19 }
  0x7f   :  { %1082 = vmatprep.subr.bf16.mxu1 %v2208_v33  ;;  %v2156_v30 = vcombine.high %v105_v24, %v109_v25  ;;  %v117_v33 = vld [vmem:[#allocation2 + $0x1e8] sm:$0xff] }
 0x113   :  { %v262_v35 = vpop.f32.mrb[0].mxu0 }
 0x114   :  { %v308_v36 = vpop.f32.mrb[0].mxu1  ;;  %v264_v40 = vpop.f32.mrb[1].mxu0  ;;  %v269_v46 = vpack.c.bf16 %v262_v35, %v262_v35  ;;  %v118_v35 = vld [vmem:[#allocation2 + $0x1f0] sm:$0xff] }
 0x115   :  { %v310_v41 = vpop.f32.mrb[1].mxu1  ;;  %v270_v42 = vpack.c.bf16 %v264_v40, %v264_v40  ;;  %v266_v44 = vpop.f32.mrb[2].mxu0  ;;  %v315_v47 = vpack.c.bf16 %v308_v36, %v308_v36  ;;  %v2155_v36 = vcombine.low %v105_v24, %v109_v25  ;;  %v2222_v39 = vcombine.high %v114_v34, %v118_v35  ;;  %v121_v40 = vld [vmem:[#allocation2 + $0x208] sm:$0xff] }
 0x116   :  { %v316_v43 = vpack.c.bf16 %v310_v41, %v310_v41  ;;  %v312_v45 = vpop.f32.mrb[2].mxu1  ;;  %v267_v48 = vpop.f32.mrb[3].mxu0  ;;  %v125_v41 = vld [vmem:[#allocation2 + $0x228] sm:$0xff] }
 0x117   :  { %v313_v49 = vpop.f32.mrb[3].mxu1  ;;  %509 = vmatprep.mubr.bf16.mxu0 %v270_v42  ;;  %v122_v42 = vld [vmem:[#allocation2 + $0x210] sm:$0xff]  ;;  %v2221_v45 = vcombine.low %v114_v34, %v118_v35  ;;  %v129_v48 = vld [vmem:[#allocation2 + $0x248] sm:$0xff]  ;;  %v2159_v52 = vcombine.low %v121_v40, %v125_v41 }
 0x118   :  { %913 = vmatprep.mubr.bf16.mxu1 %v316_v43  ;;  %510 = vmatmul.mubr.bf16.vlgmr.msra.gmra.mrb[4].mxu0 %v269_v46  ;;  %v126_v43 = vld [vmem:[#allocation2 + $0x230] sm:$0xff]  ;;  %v2160_v46 = vcombine.high %v121_v40, %v125_v41  ;;  %v133_v49 = vld [vmem:[#allocation2 + $0x268] sm:$0xff] }
 0x119   :  { %914 = vmatmul.mubr.bf16.vlgmr.msra.gmra.mrb[4].mxu1 %v315_v47  ;;  %681 = vmatpush1.bf16.msra.mxu0 %v2143_v31  ;;  %v2220_v31 = vcombine.high %v106_v26, %v110_v27  ;;  %v2224_v47 = vcombine.high %v122_v42, %v126_v43  ;;  %v2223_v53 = vcombine.low %v122_v42, %v126_v43  ;;  %v178_v40 = vld [vmem:[#allocation2 + $0x3d0] sm:$0xff]  ;;  %v2674_v42 = vadd.s32 8, %v2645_v2 }
 0x11a   :  { %1083 = vmatpush1.bf16.msra.mxu1 %v2207_v32  ;;  %682 = vmatprep.subr.bf16.mxu0 %v2146_v50  ;;  %v113_v32 = vld [vmem:[#allocation2 + $0x1c8] sm:$0xff]  ;;  %v130_v50 = vld [vmem:[#allocation2 + $0x250] sm:$0xff]  ;;  %v2162_v54 = vcombine.high %v129_v48, %v133_v49  ;;  %v2161_v60 = vcombine.low %v129_v48, %v133_v49  ;;  %v1142_v43 = vadd.s32 144, %v2645_v2 }
 0x11b   :  { %1084 = vmatprep.subr.bf16.mxu1 %v2210_v51  ;;  %712 = vmatprep.mubr.bf16.mxu0 %v2657_v9  ;;  %v2158_v38 = vcombine.high %v113_v32, %v117_v33  ;;  %v2157_v44 = vcombine.low %v113_v32, %v117_v33  ;;  %v134_v51 = vld [vmem:[#allocation2 + $0x270] sm:$0xff]  ;;  %v1140_v32 = vadd.s32 128, %v2645_v2  ;;  %v1141_v33 = vadd.s32 136, %v2645_v2 }
 0x11c   :  { %1114 = vmatprep.mubr.bf16.mxu1 %v2657_v9  ;;  %v2216_v9 = vcombine.high %v90_v8, %v94_v12  ;;  %v2226_v55 = vcombine.high %v130_v50, %v134_v51  ;;  %v2225_v61 = vcombine.low %v130_v50, %v134_v51  ;;  %v182_v41 = vld [vmem:[#allocation2 + $0x3f0] sm:$0xff]  ;;  %v1160_v51 = vand.u32 31, %v2645_v2 }
 0x11d   :  { %683 = vmatpush1.bf16.msra.mxu0 %v2145_v56  ;;  %v137_v56 = vld [vmem:[#allocation2 + $0x288] sm:$0xff]  ;;  %v2238_v50 = vcombine.high %v178_v40, %v182_v41 }
 0x11e   :  { %1085 = vmatpush1.bf16.msra.mxu1 %v2209_v57  ;;  %684 = vmatprep.subr.bf16.mxu0 %v2148_v58  ;;  %v141_v57 = vld [vmem:[#allocation2 + $0x2a8] sm:$0xff]  ;;  %v138_v58 = vld [vmem:[#allocation2 + $0x290] sm:$0xff]  ;;  %vm2699_vm10 = vcmp.eq.s32.totalorder %v1160_v51, %v2647_v3 }
 0x11f   :  { %1086 = vmatprep.subr.bf16.mxu1 %v2212_v59  ;;  %v142_v59 = vld [vmem:[#allocation2 + $0x2b0] sm:$0xff]  ;;  %v2164_v62 = vcombine.high %v137_v56, %v141_v57  ;;  %v2163_v6 = vcombine.low %v137_v56, %v141_v57  ;;  %v3176_v57 = vsub.s32 0, %v2645_v2 }
 0x120   :  { %v2228_v63 = vcombine.high %v138_v58, %v142_v59  ;;  %v2227_v7 = vcombine.low %v138_v58, %v142_v59  ;;  %v1144_v59 = vadd.s32 160, %v2645_v2 }
 0x121   :  { %685 = vmatpush1.bf16.msra.mxu0 %v2147_v0  ;;  %v145_v0 = vld [vmem:[#allocation2 + $0x2c8] sm:$0xff] }
 0x122   :  { %1087 = vmatpush1.bf16.msra.mxu1 %v2211_v1  ;;  %686 = vmatprep.subr.bf16.mxu0 %v2150_v4  ;;  %v149_v1 = vld [vmem:[#allocation2 + $0x2e8] sm:$0xff]  ;;  %v146_v4 = vld [vmem:[#allocation2 + $0x2d0] sm:$0xff] }
 0x123   :  { %1088 = vmatprep.subr.bf16.mxu1 %v2214_v5  ;;  %v150_v5 = vld [vmem:[#allocation2 + $0x2f0] sm:$0xff]  ;;  %v2166_v8 = vcombine.high %v145_v0, %v149_v1  ;;  %v2165_v16 = vcombine.low %v145_v0, %v149_v1 }
 0x124   :  { %v2230_v12 = vcombine.high %v146_v4, %v150_v5  ;;  %v2229_v17 = vcombine.low %v146_v4, %v150_v5  ;;  %v3264_v5 = vmov 0 }
 0x125   :  { %687 = vmatpush1.bf16.msra.mxu0 %v2149_v13  ;;  %v153_v13 = vld [vmem:[#allocation2 + $0x308] sm:$0xff] }
 0x126   :  { %1089 = vmatpush1.bf16.msra.mxu1 %v2213_v14  ;;  %688 = vmatprep.subr.bf16.mxu0 %v2152_v15  ;;  %v157_v14 = vld [vmem:[#allocation2 + $0x328] sm:$0xff]  ;;  %v154_v15 = vld [vmem:[#allocation2 + $0x310] sm:$0xff] }
 0x127   :  { %1090 = vmatprep.subr.bf16.mxu1 %v2216_v9  ;;  %v158_v9 = vld [vmem:[#allocation2 + $0x330] sm:$0xff]  ;;  %v2168_v18 = vcombine.high %v153_v13, %v157_v14  ;;  %v2167_v24 = vcombine.low %v153_v13, %v157_v14  ;;  %v1146_v14 = vadd.s32 176, %v2645_v2 }
 0x128   :  { %v2232_v19 = vcombine.high %v154_v15, %v158_v9  ;;  %v2231_v25 = vcombine.low %v154_v15, %v158_v9  ;;  %v1147_v15 = vadd.s32 184, %v2645_v2  ;;  %v3251_v9 = vmov 1.0|1.0  }
 0x129   :  { %689 = vmatpush1.bf16.msra.mxu0 %v2151_v20  ;;  %v161_v20 = vld [vmem:[#allocation2 + $0x348] sm:$0xff] }
 0x12a   :  { %1091 = vmatpush1.bf16.msra.mxu1 %v2215_v21  ;;  %690 = vmatprep.subr.bf16.mxu0 %v2154_v22  ;;  %v165_v21 = vld [vmem:[#allocation2 + $0x368] sm:$0xff]  ;;  %v162_v22 = vld [vmem:[#allocation2 + $0x350] sm:$0xff] }
 0x12b   :  { %1092 = vmatprep.subr.bf16.mxu1 %v2218_v23  ;;  %v166_v23 = vld [vmem:[#allocation2 + $0x370] sm:$0xff]  ;;  %v2170_v26 = vcombine.high %v161_v20, %v165_v21  ;;  %v2169_v34 = vcombine.low %v161_v20, %v165_v21  ;;  %v1130_v20 = vadd.s32 48, %v2645_v2  ;;  %v1131_v21 = vadd.s32 56, %v2645_v2 }
 0x12c   :  { %v2234_v27 = vcombine.high %v162_v22, %v166_v23  ;;  %v2233_v35 = vcombine.low %v162_v22, %v166_v23 }
 0x12d   :  { %691 = vmatpush1.bf16.msra.mxu0 %v2153_v28  ;;  %v169_v28 = vld [vmem:[#allocation2 + $0x388] sm:$0xff] }
 0x12e   :  { %1093 = vmatpush1.bf16.msra.mxu1 %v2217_v29  ;;  %692 = vmatprep.subr.bf16.mxu0 %v2156_v30  ;;  %v173_v29 = vld [vmem:[#allocation2 + $0x3a8] sm:$0xff]  ;;  %v170_v30 = vld [vmem:[#allocation2 + $0x390] sm:$0xff] }
 0x12f   :  { %1094 = vmatprep.subr.bf16.mxu1 %v2220_v31  ;;  %v174_v31 = vld [vmem:[#allocation2 + $0x3b0] sm:$0xff] }
 0x130   :  { %v2235_v48 = vcombine.low %v170_v30, %v174_v31 }
 0x131   :  { %693 = vmatpush1.bf16.msra.mxu0 %v2155_v36  ;;  %v177_v36 = vld [vmem:[#allocation2 + $0x3c8] sm:$0xff] }
 0x132   :  { %1095 = vmatpush1.bf16.msra.mxu1 %v2219_v37  ;;  %694 = vmatprep.subr.bf16.mxu0 %v2158_v38  ;;  %v2172_v37 = vcombine.high %v169_v28, %v173_v29  ;;  %v2236_v38 = vcombine.high %v170_v30, %v174_v31  ;;  %v3282_v30 = vmov 0  ;;  %v3284_v31 = vmov 0 }
 0x133   :  { %1096 = vmatprep.subr.bf16.mxu1 %v2222_v39  ;;  %v181_v39 = vld [vmem:[#allocation2 + $0x3e8] sm:$0xff] }
 0x134   :  { %v2174_v49 = vcombine.high %v177_v36, %v181_v39 }
 0x135   :  { %695 = vmatpush1.bf16.msra.mxu0 %v2157_v44  ;;  %v1143_v44 = vadd.s32 152, %v2645_v2 }
 0x136   :  { %1097 = vmatpush1.bf16.msra.mxu1 %v2221_v45  ;;  %696 = vmatprep.subr.bf16.mxu0 %v2160_v46  ;;  %v2171_v45 = vcombine.low %v169_v28, %v173_v29  ;;  %v1272_v46 = vand.u32 31, %v1140_v32  ;;  %v1209_v28 = vand.u32 31, %v1131_v21  ;;  %v3280_v29 = vmov 0 }
 0x137   :  { %1098 = vmatprep.subr.bf16.mxu1 %v2224_v47  ;;  %v1279_v47 = vand.u32 31, %v1141_v33  ;;  %v1293_v56 = vand.u32 31, %v1143_v44  ;;  %v3286_v32 = vmov 0  ;;  %v1148_v33 = vadd.s32 192, %v2645_v2 }
 0x138   :  { %vm2687_vm8 = vcmp.eq.s32.totalorder %v1272_v46, %v2647_v3  ;;  %v1150_v44 = vadd.s32 208, %v2645_v2  ;;  %v3292_v46 = vmov 0  ;;  %v3308_v21 = vmov 0 }
 0x139   :  { %697 = vmatpush1.bf16.msra.mxu0 %v2159_v52  ;;  %v1167_v52 = vand.u32 31, %v2674_v42  ;;  %vm2692_vm9 = vcmp.eq.s32.totalorder %v1279_v47, %v2647_v3  ;;  %vm2720_vm14 = vcmp.eq.s32.totalorder %v1293_v56, %v2647_v3  ;;  %v3294_v47 = vmov 0 }
 0x13a   :  { %1099 = vmatpush1.bf16.msra.mxu1 %v2223_v53  ;;  %698 = vmatprep.subr.bf16.mxu0 %v2162_v54  ;;  %v2681_v53 = vadd.s32 16, %v2645_v2  ;;  %v2684_v54 = vadd.s32 24, %v2645_v2  ;;  %vm3214_vm12 = vmpackc.low %vm2692_vm9, %vm2687_vm8  ;;  %v3296_v56 = vmov 0 }
 0x13b   :  { %1100 = vmatprep.subr.bf16.mxu1 %v2226_v55  ;;  %v1286_v55 = vand.u32 31, %v1142_v43  ;;  %vm2704_vm11 = vcmp.eq.s32.totalorder %v1167_v52, %v2647_v3  ;;  %v3290_v43 = vmov 0 }
 0x13c   :  { %v1174_v1 = vand.u32 31, %v2681_v53  ;;  %v1181_v4 = vand.u32 31, %v2684_v54  ;;  %vm3212_vm15 = vmpackc.low %vm2704_vm11, %vm2699_vm10 }
 0x13d   :  { %699 = vmatpush1.bf16.msra.mxu0 %v2161_v60  ;;  %v1145_v60 = vadd.s32 168, %v2645_v2  ;;  %vm2715_vm13 = vcmp.eq.s32.totalorder %v1286_v55, %v2647_v3 }
 0x13e   :  { %1101 = vmatpush1.bf16.msra.mxu1 %v2225_v61  ;;  %700 = vmatprep.subr.bf16.mxu0 %v2164_v62  ;;  %v2173_v61 = vcombine.low %v177_v36, %v181_v39  ;;  %v2237_v62 = vcombine.low %v178_v40, %v182_v41  ;;  %v3265_v5 = vsel %vm2715_vm13, 4294967295, %v3264_v5  ;;  %vm2739_vm0 = vcmp.eq.s32.totalorder %v1174_v1, %v2647_v3  ;;  %vm3213_vm2 = vmpackc.low %vm2720_vm14, %vm2715_vm13 }
 0x13f   :  { %1102 = vmatprep.subr.bf16.mxu1 %v2228_v63  ;;  %v1307_v13 = vand.u32 31, %v1145_v60  ;;  %vm2744_vm1 = vcmp.eq.s32.totalorder %v1181_v4, %v2647_v3  ;;  %v1133_v36 = vadd.s32 72, %v2645_v2  ;;  %v3288_v41 = vmov 0 }
 0x140   :  { %vm3218_vm5 = vmpackc.low %vm2744_vm1, %vm2739_vm0  ;;  %v1152_v60 = vadd.s32 224, %v2645_v2  ;;  %v3302_v1 = vmov 0  ;;  %v1136_v4 = vadd.s32 96, %v2645_v2 }
 0x141   :  { %701 = vmatpush1.bf16.msra.mxu0 %v2163_v6  ;;  %v3266_v6 = vmov 0  ;;  %vm2762_vm4 = vcmp.eq.s32.totalorder %v1307_v13, %v2647_v3  ;;  %v1223_v40 = vand.u32 31, %v1133_v36  ;;  %v3312_v36 = vmov 0 }
 0x142   :  { %1103 = vmatpush1.bf16.msra.mxu1 %v2227_v7  ;;  %702 = vmatprep.subr.bf16.mxu0 %v2166_v8  ;;  %v3267_v6 = vsel %vm2720_vm14, 4294967295, %v3266_v6  ;;  %v1128_v7 = vadd.s32 32, %v2645_v2  ;;  %v1129_v8 = vadd.s32 40, %v2645_v2  ;;  %v1244_v13 = vand.u32 31, %v1136_v4 }
 0x143   :  { %1104 = vmatprep.subr.bf16.mxu1 %v2230_v12  ;;  %v1300_v12 = vand.u32 31, %v1144_v59  ;;  %v3298_v59 = vmov 0 }
 0x145   :  { %703 = vmatpush1.bf16.msra.mxu0 %v2165_v16  ;;  %v3268_v16 = vmov 0  ;;  %vm2757_vm3 = vcmp.eq.s32.totalorder %v1300_v12, %v2647_v3 }
 0x146   :  { %1105 = vmatpush1.bf16.msra.mxu1 %v2229_v17  ;;  %704 = vmatprep.subr.bf16.mxu0 %v2168_v18  ;;  %v3269_v16 = vsel %vm2739_vm0, 4294967295, %v3268_v16  ;;  %v1188_v18 = vand.u32 31, %v1128_v7  ;;  %vm3219_vm6 = vmpackc.low %vm2762_vm4, %vm2757_vm3  ;;  %v1137_v7 = vadd.s32 104, %v2645_v2 }
 0x147   :  { %1106 = vmatprep.subr.bf16.mxu1 %v2232_v19  ;;  %v1195_v19 = vand.u32 31, %v1129_v8  ;;  %v1356_v8 = vand.u32 31, %v1152_v60 }
 0x148   :  { %vm2788_vm7 = vcmp.eq.s32.totalorder %v1188_v18, %v2647_v3  ;;  %v3306_v18 = vmov 0 }
 0x149   :  { %705 = vmatpush1.bf16.msra.mxu0 %v2167_v24  ;;  %v1314_v24 = vand.u32 31, %v1146_v14  ;;  %v1251_v14 = vand.u32 31, %v1137_v7 }
 0x14a   :  { %1107 = vmatpush1.bf16.msra.mxu1 %v2231_v25  ;;  %706 = vmatprep.subr.bf16.mxu0 %v2170_v26  ;;  %v1321_v25 = vand.u32 31, %v1147_v15  ;;  %v3278_v26 = vmov 0  ;;  %v3304_v15 = vmov 0 }
 0x14b   :  { %1108 = vmatprep.subr.bf16.mxu1 %v2234_v27  ;;  %v1202_v27 = vand.u32 31, %v1130_v20  ;;  %v1155_v20 = vadd.s32 248, %v2645_v2 }
 0x14d   :  { %707 = vmatpush1.bf16.msra.mxu0 %v2169_v34  ;;  %vm2828_vm0 = vcmp.eq.s32.totalorder %v1202_v27, %v2647_v3  ;;  %v1149_v34 = vadd.s32 200, %v2645_v2  ;;  %v1139_v27 = vadd.s32 120, %v2645_v2 }
 0x14e   :  { %1109 = vmatpush1.bf16.msra.mxu1 %v2233_v35  ;;  %708 = vmatprep.subr.bf16.mxu0 %v2172_v37  ;;  %v3285_v31 = vsel %vm2828_vm0, 4294967295, %v3284_v31  ;;  %v1132_v35 = vadd.s32 64, %v2645_v2  ;;  %v1328_v37 = vand.u32 31, %v1148_v33  ;;  %v1377_v33 = vand.u32 31, %v1155_v20 }
 0x14f   :  { %1110 = vmatprep.subr.bf16.mxu1 %v2236_v38  ;;  %v1335_v38 = vand.u32 31, %v1149_v34 }
 0x150   :  { %v1216_v39 = vand.u32 31, %v1132_v35  ;;  %v1265_v35 = vand.u32 31, %v1139_v27 }
 0x151   :  { %709 = vmatpush1.bf16.msra.mxu0 %v2171_v45  ;;  %v1151_v45 = vadd.s32 216, %v2645_v2 }
 0x152   :  { %1111 = vmatpush1.bf16.msra.mxu1 %v2235_v48  ;;  %710 = vmatprep.subr.bf16.mxu0 %v2174_v49  ;;  %v1134_v48 = vadd.s32 80, %v2645_v2  ;;  %v1135_v49 = vadd.s32 88, %v2645_v2 }
 0x153   :  { %1112 = vmatprep.subr.bf16.mxu1 %v2238_v50  ;;  %v1342_v50 = vand.u32 31, %v1150_v44  ;;  %v1349_v51 = vand.u32 31, %v1151_v45  ;;  %v1609_v44 = vand.u32 31, %v2647_v3 }
 0x154   :  { %v1230_v52 = vand.u32 31, %v1134_v48  ;;  %v1237_v55 = vand.u32 31, %v1135_v49 }
 0x155   :  { %711 = vmatpush1.bf16.msra.mxu0 %v2173_v61  ;;  %v1153_v61 = vadd.s32 232, %v2645_v2 }
 0x156   :  { %1113 = vmatpush1.bf16.msra.mxu1 %v2237_v62  ;;  %2396 = vmatprep.subr.msk.bf16.mxu0 %vm3214_vm12, %v3251_v9  ;;  %vm2803_vm12 = vcmp.eq.s32.totalorder %v1321_v25, %v2647_v3  ;;  %v3300_v62 = vmov 0  ;;  %v1138_v25 = vadd.s32 112, %v2645_v2 }
 0x157   :  { %v3283_v30 = vsel %vm2803_vm12, 4294967295, %v3282_v30  ;;  %v1363_v12 = vand.u32 31, %v1153_v61 }
 0x158   :  { %713 = vmatmul.mubr.bf16.vlgmr.msra.gmra.mrb[4].mxu0 %v2659_v10  ;;  %v1258_v34 = vand.u32 31, %v1138_v25 }
 0x159   :  { %1115 = vmatmul.mubr.bf16.vlgmr.msra.gmra.mrb[4].mxu1 %v2659_v10  ;;  %2398 = vmatpush3.bf16.msk.msra.mxu0 %vm3212_vm15, %v3251_v9  ;;  %v3276_v10 = vmov 0  ;;  %vm2793_vm15 = vcmp.eq.s32.totalorder %v1195_v19, %v2647_v3  ;;  %v1154_v19 = vadd.s32 240, %v2645_v2 }
 0x15a   :  { %1811 = vmatprep.mubr.f32.mxu1 %v3250_v11  ;;  %2400 = vmatprep.subr.msk.bf16.mxu0 %vm3213_vm2, %v3251_v9  ;;  %v3277_v10 = vsel %vm2788_vm7, 4294967295, %v3276_v10  ;;  %v3279_v26 = vsel %vm2793_vm15, 4294967295, %v3278_v26  ;;  %vm2798_vm2 = vcmp.eq.s32.totalorder %v1314_v24, %v2647_v3  ;;  %vm3221_vm13 = vmpackc.low %vm2793_vm15, %vm2788_vm7  ;;  %v3310_v24 = vmov 0 }
 0x15b   :  { %v3281_v29 = vsel %vm2798_vm2, 4294967295, %v3280_v29  ;;  %vm3220_vm14 = vmpackc.low %vm2803_vm12, %vm2798_vm2  ;;  %vm2908_vm12 = vcmp.eq.s32.totalorder %v1342_v50, %v2647_v3 }
 0x15c   :  { %v3297_v56 = vsel %vm2908_vm12, 4294967295, %v3296_v56 }
 0x15d   :  { %2402 = vmatpush3.bf16.msk.msra.mxu0 %vm3218_vm5, %v3251_v9  ;;  %vm2833_vm5 = vcmp.eq.s32.totalorder %v1209_v28, %v2647_v3  ;;  %v1370_v28 = vand.u32 31, %v1154_v19 }
 0x15e   :  { %2404 = vmatprep.subr.msk.bf16.mxu0 %vm3219_vm6, %v3251_v9  ;;  %v3287_v32 = vsel %vm2833_vm5, 4294967295, %v3286_v32  ;;  %vm3222_vm6 = vmpackc.low %vm2833_vm5, %vm2828_vm0  ;;  %vm2880_vm0 = vcmp.eq.s32.totalorder %v1216_v39, %v2647_v3  ;;  %vm2885_vm5 = vcmp.eq.s32.totalorder %v1223_v40, %v2647_v3  ;;  %v1604_v40 = vadd.s32 128, %v2647_v3 }
 0x15f   :  { %v3293_v46 = vsel %vm2880_vm0, 4294967295, %v3292_v46  ;;  %v3295_v47 = vsel %vm2885_vm5, 4294967295, %v3294_v47  ;;  %vm3228_vm2 = vmpackc.low %vm2885_vm5, %vm2880_vm0  ;;  %vm2924_vm0 = vcmp.eq.s32.totalorder %v1230_v52, %v2647_v3  ;;  %vm2929_vm5 = vcmp.eq.s32.totalorder %v1237_v55, %v2647_v3 }
 0x160   :  { %v3301_v62 = vsel %vm2924_vm0, 4294967295, %v3300_v62  ;;  %v3303_v1 = vsel %vm2929_vm5, 4294967295, %v3302_v1  ;;  %v1616_v45 = vand.u32 31, %v1604_v40 }
 0x161   :  { %2406 = vmatpush3.bf16.msk.msra.mxu0 %vm3221_vm13, %v3251_v9  ;;  %vm2869_vm13 = vcmp.eq.s32.totalorder %v1335_v38, %v2647_v3 }
 0x162   :  { %2408 = vmatprep.subr.msk.bf16.mxu0 %vm3220_vm14, %v3251_v9  ;;  %vm2864_vm14 = vcmp.eq.s32.totalorder %v1328_v37, %v2647_v3  ;;  %v3291_v43 = vsel %vm2869_vm13, 4294967295, %v3290_v43  ;;  %v3314_v37 = vmov 0 }
 0x163   :  { %v3289_v41 = vsel %vm2864_vm14, 4294967295, %v3288_v41 }
 0x165   :  { %2410 = vmatpush3.bf16.msk.msra.mxu0 %vm3222_vm6, %v3251_v9  ;;  %vm3227_vm6 = vmpackc.low %vm2869_vm13, %vm2864_vm14  ;;  %vm2952_vm13 = vcmp.eq.s32.totalorder %v1356_v8, %v2647_v3 }
 0x166   :  { %2412 = vmatprep.subr.msk.bf16.mxu0 %vm3227_vm6, %v3251_v9  ;;  %vm2913_vm6 = vcmp.eq.s32.totalorder %v1349_v51, %v2647_v3  ;;  %vm3234_vm14 = vmpackc.low %vm2929_vm5, %vm2924_vm0  ;;  %v3305_v15 = vsel %vm2952_vm13, 4294967295, %v3304_v15  ;;  %vm2968_vm0 = vcmp.eq.s32.totalorder %v1244_v13, %v2647_v3  ;;  %vm2973_vm5 = vcmp.eq.s32.totalorder %v1251_v14, %v2647_v3 }
 0x167   :  { %v3299_v59 = vsel %vm2913_vm6, 4294967295, %v3298_v59  ;;  %v3309_v21 = vsel %vm2968_vm0, 4294967295, %v3308_v21  ;;  %v3311_v24 = vsel %vm2973_vm5, 4294967295, %v3310_v24 }
 0x169   :  { %2414 = vmatpush3.bf16.msk.msra.mxu0 %vm3228_vm2, %v3251_v9  ;;  %vm3233_vm2 = vmpackc.low %vm2913_vm6, %vm2908_vm12  ;;  %vm2996_vm6 = vcmp.eq.s32.totalorder %v1370_v28, %v2647_v3 }
 0x16a   :  { %2416 = vmatprep.subr.msk.bf16.mxu0 %vm3233_vm2, %v3251_v9  ;;  %vm2957_vm2 = vcmp.eq.s32.totalorder %v1363_v12, %v2647_v3  ;;  %vm3242_vm12 = vmpackc.low %vm2973_vm5, %vm2968_vm0  ;;  %v3313_v36 = vsel %vm2996_vm6, 4294967295, %v3312_v36  ;;  %vm3010_vm0 = vcmp.eq.s32.totalorder %v1258_v34, %v2647_v3 }
 0x16b   :  { %v3307_v18 = vsel %vm2957_vm2, 4294967295, %v3306_v18 }
 0x16d   :  { %2418 = vmatpush3.bf16.msk.msra.mxu0 %vm3234_vm14, %v3251_v9  ;;  %vm3239_vm14 = vmpackc.low %vm2957_vm2, %vm2952_vm13  ;;  %vm1632_vm2 = vcmp.eq.s32.totalorder %v1616_v45, %v2674_v42 }
 0x16e   :  { %2420 = vmatprep.subr.msk.bf16.mxu0 %vm3239_vm14, %v3251_v9  ;;  %vm3001_vm14 = vcmp.eq.s32.totalorder %v1377_v33, %v2647_v3 }
 0x16f   :  { %v3315_v37 = vsel %vm3001_vm14, 4294967295, %v3314_v37  ;;  %vm3245_vm13 = vmpackc.low %vm3001_vm14, %vm2996_vm6  ;;  %vm1629_vm6 = vcmp.eq.s32.totalorder %v1609_v44, %v2645_v2  ;;  %vm1630_vm14 = vcmp.eq.s32.totalorder %v1616_v45, %v2645_v2 }
 0x170   :  { %vm2427_vm15 = vmpackc.low %vm1632_vm2, %vm1630_vm14  ;;  %vm1636_vm14 = vcmp.eq.s32.totalorder %v1616_v45, %v2684_v54  ;;  %vm1633_vm2 = vcmp.eq.s32.totalorder %v1609_v44, %v2681_v53 }
 0x171   :  { %2422 = vmatpush3.bf16.msk.msra.mxu0 %vm3242_vm12, %v3251_v9  ;;  %vm3015_vm12 = vcmp.eq.s32.totalorder %v1265_v35, %v2647_v3  ;;  %2428 = vmatprep.subr.msk.bf16.mxu1 %vm2427_vm15, %v3251_v9 }
 0x172   :  { %2424 = vmatprep.subr.msk.bf16.mxu0 %vm3245_vm13, %v3251_v9  ;;  %vm3255_vm5 = vmpackc.low %vm3015_vm12, %vm3010_vm0  ;;  %vm1631_vm13 = vcmp.eq.s32.totalorder %v1609_v44, %v2674_v42 }
 0x173   :  { %vm3041_vm7 = vmpackc.low %vm1631_vm13, %vm1629_vm6  ;;  %vm1634_vm13 = vcmp.eq.s32.totalorder %v1616_v45, %v2681_v53  ;;  %vm1635_vm6 = vcmp.eq.s32.totalorder %v1609_v44, %v2684_v54 }
 0x174   :  { %2430 = vmatpush1.bf16.msk.msra.mxu1 %vm3041_vm7, %v3251_v9 }
 0x175   :  { %2426 = vmatpush3.bf16.msk.msra.mxu0 %vm3255_vm5, %v3251_v9  ;;  %vm2433_vm5 = vmpackc.low %vm1635_vm6, %vm1633_vm2  ;;  %vm3334_vm6 = vnez %v3277_v10 }
 0x176   :  { %2468 = vmatprep.subr.msk.bf16.mxu0 %vm2427_vm15, %v3251_v9  ;;  %vm2431_vm15 = vmpackc.low %vm1636_vm14, %vm1634_vm13  ;;  %vm1743_vm13 = vcmask 261120   ;;  %vm3327_vm14 = vnez %v3267_v6 }
 0x22b   :  { %v3050_v3 = vpop.f32.mrb[4].mxu0 }
 0x22c   :  { %v3052_v49 = vpop.f32.mrb[4].mxu1  ;;  %v1645_v50 = vrot.slane %v3050_v3, 4  ;;  %v3056_v51 = vpop.f32.mrb[5].mxu0 }
 0x22d   :  { %3322 = vst [vmem:[#allocation9_spill] sm:$0xff] %v3052_v49  ;;  %v1657_v42 = vrot.slane %v3052_v49, 4  ;;  %v3058_v52 = vpop.f32.mrb[5].mxu1  ;;  %v1651_v55 = vrot.slane %v3056_v51, 4  ;;  %v718_v61 = vpop.f32.mrb[6].mxu0 }
 0x22e   :  { %v1663_v60 = vrot.slane %v3058_v52, 4  ;;  %v1120_v4 = vpop.f32.mrb[6].mxu1  ;;  %v1646_v7 = vadd.f32 %v1645_v50, %v3050_v3  ;;  %v719_v12 = vpop.f32.mrb[7].mxu0 }
 0x22f   :  { %v1658_v8 = vadd.f32 %v1657_v42, %v3052_v49  ;;  %v1121_v13 = vpop.f32.mrb[7].mxu1  ;;  %v1652_v14 = vadd.f32 %v1651_v55, %v3056_v51 }
 0x230   :  { %v1664_v19 = vadd.f32 %v1663_v60, %v3058_v52  ;;  %v1647_v20 = vrot.slane %v1646_v7, 2  ;;  %v3323_v60 = vmov 1.0|1.0  }
 0x231   :  { %v1659_v25 = vrot.slane %v1658_v8, 2  ;;  %v1653_v27 = vrot.slane %v1652_v14, 2  ;;  %2432 = vmatprep.subr.msk.bf16.mxu1 %vm2431_vm15, %v3323_v60 }
 0x232   :  { %v1665_v28 = vrot.slane %v1664_v19, 2  ;;  %v1648_v33 = vadd.f32 %v1647_v20, %v1646_v7  ;;  %v3324_v7 = vmov 0.0   ;;  %2434 = vmatpush1.bf16.msk.msra.mxu1 %vm2433_vm5, %v3323_v60 }
 0x233   :  { %v1660_v34 = vadd.f32 %v1659_v25, %v1658_v8  ;;  %v1654_v35 = vadd.f32 %v1653_v27, %v1652_v14 }
 0x234   :  { %v1666_v40 = vadd.f32 %v1665_v28, %v1664_v19  ;;  %v1649_v61 = vrot.slane %v1648_v33, 1 }
 0x235   :  { %v1661_v4 = vrot.slane %v1660_v34, 1  ;;  %v1655_v11 = vrot.slane %v1654_v35, 1 }
 0x236   :  { %v1667_v50 = vrot.slane %v1666_v40, 1  ;;  %v1650_v9 = vadd.f32 %v1649_v61, %v1648_v33 }
 0x237   :  { %v1662_v42 = vadd.f32 %v1661_v4, %v1660_v34  ;;  %v1656_v12 = vadd.f32 %v1655_v11, %v1654_v35  ;;  %v2576_v4 = vmov 1966171168  }
 0x238   :  { %v1668_v13 = vadd.f32 %v1667_v50, %v1666_v40  ;;  %v2011_v50 = vunpack.c.l.s4 %v2576_v4 }
 0x239   :  { %v1669_v49 = vadd.f32 %v1662_v42, %v1650_v9 }
 0x23a   :  { %v1670_v55 = vadd.f32 %v1668_v13, %v1656_v12  ;;  %v2012_v42 = vunpack.c.0.s8 %v2011_v50 }
 0x23c   :  { %1735 = vmatprep.mubr.f32.mxu0 %v1670_v55  ;;  %v2015_v13 = vsub.s32 %v2012_v42, %v2645_v2 }
 0x23d   :  { %1736 = vmatmul.mubr.f32.vlgmr.msra.gmra.mrb[8].mxu0 %v1669_v49 }
 0x23e   :  { %2470 = vmatpush1.bf16.msk.msra.mxu0 %vm3041_vm7, %v3323_v60  ;;  %1998 = vmatprep.mubr.f32.mxu0 %v3324_v7  ;;  %vm3325_vm7 = vmpackc.low %vm2692_vm9, %vm2687_vm8  ;;  %vm3328_vm8 = vnez %v3265_v5 }
 0x23f   :  { %2472 = vmatprep.subr.msk.bf16.mxu0 %vm2431_vm15, %v3323_v60  ;;  %2436 = vmatprep.subr.msk.bf16.mxu1 %vm3325_vm7, %v3323_v60  ;;  %vm3329_vm9 = vmpackc.low %vm3327_vm14, %vm3328_vm8  ;;  %vm3330_vm15 = vnez %v3269_v16  ;;  %vm3339_vm8 = vnez %v3287_v32  ;;  %v3364_v16 = vld [vmem:[#allocation9_spill] sm:$0xff] }
 0x240   :  { %vm3331_vm2 = vmpackc.low %vm2744_vm1, %vm3330_vm15  ;;  %vm3337_vm1 = vnez %v3281_v29  ;;  %vm3343_vm15 = vnez %v3289_v41 }
 0x242   :  { %2474 = vmatpush1.bf16.msk.msra.mxu0 %vm2433_vm5, %v3323_v60  ;;  %vm3326_vm5 = vmpackc.low %vm2704_vm11, %vm2699_vm10  ;;  %vm3333_vm11 = vnez %v3279_v26 }
 0x243   :  { %vm3332_vm10 = vmpackc.low %vm2762_vm4, %vm2757_vm3  ;;  %vm3340_vm3 = vnez %v3285_v31 }
 0x244   :  { %vm3335_vm7 = vmpackc.low %vm3333_vm11, %vm3334_vm6  ;;  %vm3346_vm11 = vnez %v3293_v46 }
 0x245   :  { %vm3341_vm4 = vmpackc.low %vm3339_vm8, %vm3340_vm3  ;;  %vm3352_vm8 = vnez %v3301_v62 }
 0x310   :  { %v2357_v11 = vpop.f32.mrb[8].mxu0 }
 0x311   :  { %v2358_v53 = vpop.f32.mrb[9].mxu0 }
 0x312   :  { %v2359_v9 = vadd.f32 %v2358_v53, %v2357_v11  ;;  %v1123_v11 = vld [vmem:[#allocation4] sm:$0x3] }
 0x314   :  { %v1742_v54 = vmul.f32 0.0078125, %v2359_v9  ;;  %v2033_v9 = vsub.s32 1, %v2645_v2 }
 0x316   :  { %2279 = vmatmul.mubr.msk.f32.vlgmr.msra.gmra.mrb[8].mxu1 %vm1743_vm13, %v1742_v54 }
 0x317   :  { %2438 = vmatpush3.bf16.msk.msra.mxu1 %vm3326_vm5, %v3323_v60  ;;  %vm3336_vm5 = vnez %v3283_v30 }
 0x318   :  { %2440 = vmatprep.subr.msk.bf16.mxu1 %vm3329_vm9, %v3323_v60  ;;  %vm3338_vm14 = vmpackc.low %vm3336_vm5, %vm3337_vm1  ;;  %vm3342_vm9 = vnez %v3291_v43  ;;  %vm3349_vm5 = vnez %v3297_v56 }
 0x31b   :  { %2442 = vmatpush3.bf16.msk.msra.mxu1 %vm3331_vm2, %v3323_v60  ;;  %vm3344_vm2 = vmpackc.low %vm3342_vm9, %vm3343_vm15  ;;  %vm3355_vm9 = vnez %v3305_v15 }
 0x31c   :  { %2444 = vmatprep.subr.msk.bf16.mxu1 %vm3332_vm10, %v3323_v60  ;;  %vm3345_vm10 = vnez %v3295_v47 }
 0x31d   :  { %vm3347_vm6 = vmpackc.low %vm3345_vm10, %vm3346_vm11  ;;  %vm3358_vm10 = vnez %v3309_v21 }
 0x31f   :  { %2446 = vmatpush3.bf16.msk.msra.mxu1 %vm3335_vm7, %v3323_v60  ;;  %vm3348_vm7 = vnez %v3299_v59 }
 0x320   :  { %2448 = vmatprep.subr.msk.bf16.mxu1 %vm3338_vm14, %v3323_v60  ;;  %vm3350_vm1 = vmpackc.low %vm3348_vm7, %vm3349_vm5  ;;  %vm3351_vm14 = vnez %v3303_v1  ;;  %vm3361_vm7 = vnez %v3313_v36 }
 0x321   :  { %vm3353_vm3 = vmpackc.low %vm3351_vm14, %vm3352_vm8 }
 0x323   :  { %2450 = vmatpush3.bf16.msk.msra.mxu1 %vm3341_vm4, %v3323_v60  ;;  %vm3354_vm4 = vnez %v3307_v18 }
 0x324   :  { %2452 = vmatprep.subr.msk.bf16.mxu1 %vm3344_vm2, %v3323_v60  ;;  %vm3356_vm15 = vmpackc.low %vm3354_vm4, %vm3355_vm9  ;;  %vm3357_vm2 = vnez %v3311_v24 }
 0x325   :  { %vm3359_vm11 = vmpackc.low %vm3357_vm2, %vm3358_vm10 }
 0x327   :  { %2454 = vmatpush3.bf16.msk.msra.mxu1 %vm3347_vm6, %v3323_v60  ;;  %vm3360_vm6 = vnez %v3315_v37 }
 0x328   :  { %2456 = vmatprep.subr.msk.bf16.mxu1 %vm3350_vm1, %v3323_v60  ;;  %vm3362_vm5 = vmpackc.low %vm3360_vm6, %vm3361_vm7 }
 0x329   :  { %vm3363_vm1 = vmpackc.low %vm3015_vm12, %vm3010_vm0 }
 0x32b   :  { %2458 = vmatpush3.bf16.msk.msra.mxu1 %vm3353_vm3, %v3323_v60 }
 0x32c   :  { %2460 = vmatprep.subr.msk.bf16.mxu1 %vm3356_vm15, %v3323_v60 }
 0x32f   :  { %2462 = vmatpush3.bf16.msk.msra.mxu1 %vm3359_vm11, %v3323_v60 }
 0x330   :  { %2464 = vmatprep.subr.msk.bf16.mxu1 %vm3362_vm5, %v3323_v60 }
 0x333   :  { %2466 = vmatpush3.bf16.msk.msra.mxu1 %vm3363_vm1, %v3323_v60 }
 0x3e9   :  { %v3178_v58 = vpop.f32.mrb[8].mxu1 }
 0x3ea   :  { %v1821_v63 = vrot.slane %v3178_v58, %v3176_v57  ;;  %v3182_v0 = vpop.f32.mrb[9].mxu1 }
 0x3eb   :  { %v1825_v5 = vrot.slane %v3182_v0, %v3176_v57 }
 0x3ec   :  { %v1826_v6 = vsub.f32 %v3050_v3, %v1821_v63  ;;  %v1842_v17 = vsub.f32 %v3364_v16, %v1821_v63 }
 0x3ed   :  { %v1827_v22 = vsub.f32 %v3056_v51, %v1825_v5  ;;  %v1843_v23 = vsub.f32 %v3058_v52, %v1825_v5 }
 0x3ee   :  { %v1828_v10 = vmul.f32 %v1826_v6, %v1826_v6  ;;  %v1844_v26 = vmul.f32 %v1842_v17, %v1842_v17 }
 0x3ef   :  { %v1829_v29 = vmul.f32 %v1827_v22, %v1827_v22  ;;  %v1845_v30 = vmul.f32 %v1843_v23, %v1843_v23 }
 0x3f0   :  { %v1830_v31 = vrot.slane %v1828_v10, 4  ;;  %v1846_v32 = vrot.slane %v1844_v26, 4 }
 0x3f1   :  { %v1836_v41 = vrot.slane %v1829_v29, 4  ;;  %v1852_v43 = vrot.slane %v1845_v30, 4 }
 0x3f2   :  { %v1831_v46 = vadd.f32 %v1830_v31, %v1828_v10  ;;  %v1847_v47 = vadd.f32 %v1846_v32, %v1844_v26  ;;  %v1124_v31 = vld [vmem:[#allocation6] sm:$0x3] }
 0x3f3   :  { %v1837_v56 = vadd.f32 %v1836_v41, %v1829_v29  ;;  %v1853_v59 = vadd.f32 %v1852_v43, %v1845_v30 }
 0x3f4   :  { %v1832_v62 = vrot.slane %v1831_v46, 2  ;;  %v1848_v1 = vrot.slane %v1847_v47, 2 }
 0x3f5   :  { %v1838_v15 = vrot.slane %v1837_v56, 2  ;;  %v1854_v18 = vrot.slane %v1853_v59, 2 }
 0x3f6   :  { %v1833_v21 = vadd.f32 %v1832_v62, %v1831_v46  ;;  %v1849_v24 = vadd.f32 %v1848_v1, %v1847_v47 }
 0x3f7   :  { %v1839_v36 = vadd.f32 %v1838_v15, %v1837_v56  ;;  %v1855_v37 = vadd.f32 %v1854_v18, %v1853_v59 }
 0x3f8   :  { %v1834_v38 = vrot.slane %v1833_v21, 1  ;;  %v1850_v39 = vrot.slane %v1849_v24, 1 }
 0x3f9   :  { %v1840_v44 = vrot.slane %v1839_v36, 1  ;;  %v1856_v45 = vrot.slane %v1855_v37, 1 }
 0x3fa   :  { %v1835_v48 = vadd.f32 %v1834_v38, %v1833_v21  ;;  %v1851_v49 = vadd.f32 %v1850_v39, %v1849_v24 }
 0x3fb   :  { %v1841_v8 = vadd.f32 %v1840_v44, %v1839_v36  ;;  %v1857_v14 = vadd.f32 %v1856_v45, %v1855_v37 }
 0x3fc   :  { %v1858_v19 = vadd.f32 %v1851_v49, %v1835_v48 }
 0x3fd   :  { %v1859_v20 = vadd.f32 %v1857_v14, %v1841_v8 }
 0x3ff   :  { %1924 = vmatprep.mubr.f32.mxu1 %v1859_v20 }
 0x400   :  { %1925 = vmatmul.mubr.f32.vlgmr.msra.gmra.mrb[10].mxu1 %v1858_v19 }
 0x4d3   :  { %v2392_v25 = vpop.f32.mrb[10].mxu1 }
 0x4d4   :  { %v2393_v27 = vpop.f32.mrb[11].mxu1 }
 0x4d5   :  { %v2394_v28 = vadd.f32 %v2393_v27, %v2392_v25 }
 0x4d7   :  { %v1930_v33 = vmul.f32 0.0078125, %v2394_v28 }
 0x4d9   :  { %2320 = vmatmul.mubr.msk.f32.vlgmr.msra.gmra.mrb[10].mxu0 %vm1743_vm13, %v1930_v33 }
 0x5ac   :  { %v2000_v34 = vpop.f32.mrb[10].mxu0 }
 0x5ad   :  { %v2001_v35 = vadd.f32 1e-05, %v2000_v34  ;;  %v2002_v40 = vpop.f32.mrb[11].mxu0 }
 0x5ae   :  { %v2003_v61 = vadd.f32 1e-05, %v2002_v40 }
 0x5af   :  { %2494 = vrsqrt.f32 %v2001_v35 }
 0x5b0   :  { %2496 = vrsqrt.f32 %v2003_v61 }
 0x5b9   :  { %v2495_v12 = vpop.eup %2494 }
 0x5ba   :  { %v2497_v55 = vpop.eup %2496 }
 0x5bb   :  { %v2009_v60 = vcombine.low %v2495_v12, %v2497_v55 }
 0x5bd   :  { %v2016_v7 = vrot.slane %v2009_v60, %v2015_v13 }
 0x5bf   :  { %v2023_v53 = vrot.slane %v2016_v7, %v2015_v13 }
 0x5c1   :  { %v2025_v54 = vmul.f32 %v2023_v53, %v1123_v11 }
 0x5c3   :  { %v2030_v63 = vrot.slane %v2025_v54, %v3176_v57  ;;  %v2034_v5 = vrot.slane %v2025_v54, %v2033_v9 }
 0x5c5   :  { %v2037_v6 = vmul.f32 %v2030_v63, %v3178_v58  ;;  %v2038_v17 = vmul.f32 %v2034_v5, %v3182_v0  ;;  %v2058_v22 = vmul.f32 %v2030_v63, %v3050_v3  ;;  %v2059_v23 = vmul.f32 %v2034_v5, %v3056_v51 }
 0x5c6   :  { %v2084_v10 = vmul.f32 %v2030_v63, %v3364_v16  ;;  %v2085_v26 = vmul.f32 %v2034_v5, %v3058_v52 }
 0x5c7   :  { %v2041_v29 = vcombine.low %v2037_v6, %v2038_v17 }
 0x5c9   :  { %v2048_v30 = vrot.slane %v2041_v29, %v2015_v13 }
 0x5cb   :  { %v2055_v2 = vrot.slane %v2048_v30, %v2015_v13 }
 0x5cd   :  { %v2057_v32 = vsub.f32 %v1124_v31, %v2055_v2 }
 0x5cf   :  { %v2064_v41 = vrot.slane %v2057_v32, %v3176_v57  ;;  %v2068_v43 = vrot.slane %v2057_v32, %v2033_v9 }
 0x5d1   :  { %v2071_v46 = vadd.f32 %v2064_v41, %v2058_v22  ;;  %v2072_v58 = vadd.f32 %v2068_v43, %v2059_v23  ;;  %v2086_v47 = vadd.f32 %v2084_v10, %v2064_v41  ;;  %v2087_v0 = vadd.f32 %v2085_v26, %v2068_v43 }
 0x5d3   :  { %v2073_v56 = vmax.f32 %v2071_v46, 0.0  ;;  %v2074_v3 = vmax.f32 %v2072_v58, 0.0  ;;  %v2088_v59 = vmax.f32 %v2086_v47, 0.0  ;;  %v2089_v51 = vmax.f32 %v2087_v0, 0.0 }
 0x5d5   :  { %v2323_v62 = vpack.c.bf16 %v2074_v3, %v2073_v56  ;;  %v2324_v16 = vpack.c.bf16 %v2089_v51, %v2088_v59 }
 0x5d7   :  { %2083 = vst [vmem:[%s3211_s4] sm:$0xff] %v2323_v62  ;;  %2098 = vst [vmem:[%s3211_s4 + $0x8] sm:$0xff] %v2324_v16 }
 0x5d8   :  { %2103 = vsyncpa [#allocation3], 1 }
 0x5d9   :  { %2104 = vsyncpa [#allocation5], 1 }

// kernel: generator_forward.8
= control target key start
LH: loop header
LB: loop body
LE: loop exit
PB: predicated region body
PF: predicated region fallthrough
CT: control target
= control target key end

     0   :  { %9 = vsyncpa [#allocation3], 0  ;;  %s3284_s0 = inlined_call_operand.vmem [shape: bf16[32,256], index: 0, kind: input, shape index: {}]   ;;  %s3285_s1 = inlined_call_operand.hbm [shape: bf16[256,1024], index: 1, kind: input, shape index: {}]   ;;  %s3286_s2 = inlined_call_operand.hbm [shape: f32[1,256], index: 2, kind: input, shape index: {}]   ;;  %s3287_s3 = inlined_call_operand.hbm [shape: f32[1,256], index: 3, kind: input, shape index: {}]   ;;  %s3288_s4 = inlined_call_operand.vmem [shape: bf16[32,512], index: 4, kind: output, shape index: {}]  }
   0x1   :  { %10 = vsyncpa [#allocation5], 0  ;;  %s2833_s15 = smov [#allocation4]   ;;  %s2834_s17 = smov [#allocation2]  }
   0x2   :  { %s31_s16 = sshll.u32 %s2833_s15, 4  ;;  %s18_s18 = sshll.u32 %s2834_s17, 4  ;;  %s32_s16 = int_to_ptr.vmem [resolvable:$true] %s31_s16  ;;  %s2868_s18 = int_to_ptr.vmem [resolvable:$true] %s18_s18 }
   0x3   :  { %s2763_s21 = scalar_lea.hbm %s3286_s2, 32 }
   0x4   :  { %p2764_p0 = scmp.ne.s32.totalorder %s3286_s2, %s2763_s21  ;;  %p2767_p1 = scmp.lt.u32.totalorder %s2763_s21, %s3286_s2 }
   0x6   :  { %p2769_p2 = pnand %p2767_p1, %p2764_p0 }
   0x8   :  { %2772 = shalt.err (!%p2769_p2)
}
   0x9   :  { %s2773_s26 = scalar_lea.vmem %s32_s16, 32  ;;  %p2778_p4 = scmp.lt.s32.totalorder %s32_s16, %s32_s16 }
   0xa   :  { %p2774_p3 = scmp.ne.s32.totalorder %s32_s16, %s2773_s26  ;;  %p2779_p5 = scmp.lt.s32.totalorder %s2773_s26, %s2773_s26 }
   0xc   :  { %p2780_p6 = por %p2779_p5, %p2778_p4 }
   0xe   :  { %p2781_p7 = pnand %p2780_p6, %p2774_p3 }
  0x10   :  { %2784 = shalt.err (!%p2781_p7)
}
  0x11   :  { %34 = dma.hbm_to_vmem [thread:$0]  %s3286_s2, 32, %s32_s16, [#allocation5]  }
  0x12   :  { %s2785_s5 = scalar_lea.hbm %s3285_s1, 16384 }
  0x13   :  { %p2786_p8 = scmp.ne.s32.totalorder %s3285_s1, %s2785_s5  ;;  %p2789_p9 = scmp.lt.u32.totalorder %s2785_s5, %s3285_s1 }
  0x15   :  { %p2791_p10 = pnand %p2789_p9, %p2786_p8 }
  0x17   :  { %2794 = shalt.err (!%p2791_p10)
}
  0x18   :  { %s2795_s10 = scalar_lea.vmem %s2868_s18, 16384  ;;  %p2800_p12 = scmp.lt.s32.totalorder %s2868_s18, %s2868_s18 }
  0x19   :  { %p2796_p11 = scmp.ne.s32.totalorder %s2868_s18, %s2795_s10  ;;  %p2801_p13 = scmp.lt.s32.totalorder %s2795_s10, %s2795_s10 }
  0x1b   :  { %p2802_p0 = por %p2801_p13, %p2800_p12 }
  0x1d   :  { %p2803_p1 = pnand %p2802_p0, %p2796_p11 }
  0x1f   :  { %2806 = shalt.err (!%p2803_p1)
}
  0x20   :  { %s2835_s2 = smov 512   ;;  %s2836_s11 = smov 32  }
  0x21   :  { %24 = dma.hbm_to_vmem [thread:$0]  %s3285_s1, 16384, %s2868_s18, [#allocation3], %s2835_s2, %s2835_s2, %s2836_s11  }
  0x22   :  { %s2837_s14 = smov [#allocation6]   ;;  %s2807_s19 = scalar_lea.hbm %s3287_s3, 32 }
  0x23   :  { %s41_s15 = sshll.u32 %s2837_s14, 4  ;;  %p2808_p2 = scmp.ne.s32.totalorder %s3287_s3, %s2807_s19  ;;  %s42_s15 = int_to_ptr.vmem [resolvable:$true] %s41_s15 }
  0x24   :  { %p2811_p3 = scmp.lt.u32.totalorder %s2807_s19, %s3287_s3 }
  0x26   :  { %p2813_p4 = pnand %p2811_p3, %p2808_p2 }
  0x28   :  { %2816 = shalt.err (!%p2813_p4)
}
  0x29   :  { %s2817_s24 = scalar_lea.vmem %s42_s15, 32  ;;  %p2822_p6 = scmp.lt.s32.totalorder %s42_s15, %s42_s15 }
  0x2a   :  { %p2818_p5 = scmp.ne.s32.totalorder %s42_s15, %s2817_s24  ;;  %p2823_p7 = scmp.lt.s32.totalorder %s2817_s24, %s2817_s24 }
  0x2c   :  { %p2824_p8 = por %p2823_p7, %p2822_p6 }
  0x2e   :  { %p2825_p9 = pnand %p2824_p8, %p2818_p5 }
  0x30   :  { %2828 = shalt.err (!%p2825_p9)
}
  0x31   :  { %44 = dma.hbm_to_vmem [thread:$0]  %s3287_s3, 32, %s42_s15, [#allocation5]  }
  0x32   :  { %2829 = dma.done.wait [#allocation3], 16384  }
  0x33   :  { %2830 = vsyncadd [#allocation3], 4294950912 }
  0x34   :  { %2831 = dma.done.wait [#allocation5], 64  }
  0x35   :  { %2832 = vsyncadd [#allocation5], 4294967232  ;;  %v187_v0 = vlaneseq  ;;  %v2838_v1 = vmov 0   ;;  %v2939_v11 = vld [vmem:[%s3284_s0 + $0x4] ss:$8 sps:$4 sm:$0xff]   ;;  %v2839_v16 = vmov 0.0  }
  0x36   :  { %342 = vmatprep.mubr.bf16.mxu0 %v2838_v1  ;;  %405 = vmatprep.mubr.bf16.mxu1 %v2838_v1  ;;  %v2946_v13 = vld [vmem:[%s3284_s0] ss:$8 sps:$4 sm:$0xff]   ;;  %v2953_v14 = vld [vmem:[%s3284_s0 + $0x14] ss:$8 sps:$4 sm:$0xff]   ;;  %v2958_v15 = vld [vmem:[%s3284_s0 + $0x10] ss:$8 sps:$4 sm:$0xff]  }
  0x37   :  { %v2913_v2 = vshrl.u32 %v187_v0, 7  ;;  %v2915_v3 = vand.u32 127, %v187_v0  ;;  %310 = vmatprep.subr.bf16.mxu0 %v2939_v11  ;;  %373 = vmatprep.subr.bf16.mxu1 %v2939_v11  ;;  %v62_v23 = vld [vmem:[#allocation2 + $0x18] sm:$0xff]  ;;  %v59_v28 = vld [vmem:[#allocation2] sm:$0xff]  ;;  %vm303_vm12 = vcmask 261120  }
  0x38   :  { %311 = vmatpush1.bf16.msra.mxu0 %v2946_v13  ;;  %374 = vmatpush1.bf16.msra.mxu1 %v2946_v13  ;;  %v66_v24 = vld [vmem:[#allocation2 + $0x38] sm:$0xff]  ;;  %v63_v29 = vld [vmem:[#allocation2 + $0x20] sm:$0xff] }
  0x39   :  { %v2918_v4 = vadd.s32 8, %v2913_v2  ;;  %v198_v5 = vand.u32 15, %v2913_v2  ;;  %v2922_v6 = vadd.s32 1, %v2915_v3  ;;  %v261_v7 = vadd.s32 1, %v2913_v2  ;;  %312 = vmatprep.subr.bf16.mxu0 %v2953_v14  ;;  %375 = vmatprep.subr.bf16.mxu1 %v2953_v14  ;;  %v70_v31 = vld [vmem:[#allocation2 + $0x58] sm:$0xff]  ;;  %v67_v36 = vld [vmem:[#allocation2 + $0x40] sm:$0xff] }
  0x3a   :  { %v2926_v8 = vadd.s32 16, %v2913_v2  ;;  %v2929_v9 = vadd.s32 24, %v2913_v2  ;;  %v2380_v34 = vcombine.high %v62_v23, %v66_v24  ;;  %v74_v35 = vld [vmem:[#allocation2 + $0x78] sm:$0xff]  ;;  %v71_v37 = vld [vmem:[#allocation2 + $0x60] sm:$0xff]  ;;  %v2444_v39 = vcombine.high %v59_v28, %v63_v29 }
  0x3b   :  { %vm243_vm0 = vcmp.eq.s32.totalorder %v2913_v2, %v2922_v6  ;;  %vm244_vm1 = vcmp.eq.s32.totalorder %v2918_v4, %v2922_v6  ;;  %vm247_vm2 = vcmp.ne.s32.totalorder %v198_v5, 0  ;;  %v205_v10 = vand.u32 15, %v2918_v4  ;;  %v78_v45 = vld [vmem:[#allocation2 + $0x98] sm:$0xff]  ;;  %v75_v47 = vld [vmem:[#allocation2 + $0x80] sm:$0xff] }
  0x3c   :  { %v262_v12 = vadd.s32 1, %v2918_v4  ;;  %vm265_vm3 = vcmp.eq.s32.totalorder %v2915_v3, %v261_v7  ;;  %vm251_vm5 = vmand %vm243_vm0, %vm247_vm2  ;;  %v256_v17 = vsel %vm244_vm1, 1.0, %v2839_v16  ;;  %v212_v18 = vand.u32 15, %v2926_v8  ;;  %313 = vmatpush1.bf16.msra.mxu0 %v2958_v15  ;;  %376 = vmatpush1.bf16.msra.mxu1 %v2958_v15  ;;  %v82_v46 = vld [vmem:[#allocation2 + $0xb8] sm:$0xff]  ;;  %v79_v48 = vld [vmem:[#allocation2 + $0xa0] sm:$0xff] }
  0x3d   :  { %vm270_vm4 = vcmp.ne.s32.totalorder %v205_v10, 15  ;;  %v255_v19 = vsel %vm251_vm5, 1.0, %v2839_v16  ;;  %v277_v20 = vsel %vm265_vm3, 1.0, %v2839_v16  ;;  %v219_v21 = vand.u32 15, %v2929_v9  ;;  %590 = vmatprep.subr.bf16.mxu0 %v2380_v34  ;;  %1016 = vmatprep.subr.bf16.mxu1 %v2444_v39  ;;  %v86_v57 = vld [vmem:[#allocation2 + $0xd8] sm:$0xff]  ;;  %v83_v61 = vld [vmem:[#allocation2 + $0xc0] sm:$0xff] }
  0x3e   :  { %vm266_vm6 = vcmp.eq.s32.totalorder %v2915_v3, %v262_v12  ;;  %v264_v22 = vadd.s32 1, %v2929_v9  ;;  %vm245_vm8 = vcmp.eq.s32.totalorder %v2926_v8, %v2922_v6  ;;  %vm2976_vm9 = vcmp.ne.s32.totalorder %v212_v18, 0  ;;  %v90_v60 = vld [vmem:[#allocation2 + $0xf8] sm:$0xff]  ;;  %v87_v62 = vld [vmem:[#allocation2 + $0xe0] sm:$0xff] }
  0x3f   :  { %vm274_vm7 = vmand %vm266_vm6, %vm270_vm4  ;;  %v263_v27 = vadd.s32 1, %v2926_v8  ;;  %vm2982_vm11 = vcmp.ne.s32.totalorder %v219_v21, 15  ;;  %v259_v32 = vpack.c.bf16 %v256_v17, %v255_v19  ;;  %vm246_vm14 = vcmp.eq.s32.totalorder %v2929_v9, %v2922_v6  ;;  %v94_v6 = vld [vmem:[#allocation2 + $0x118] sm:$0xff]  ;;  %v91_v10 = vld [vmem:[#allocation2 + $0x100] sm:$0xff] }
  0x40   :  { %v278_v25 = vsel %vm274_vm7, 1.0, %v2839_v16  ;;  %vm268_vm10 = vcmp.eq.s32.totalorder %v2915_v3, %v264_v22  ;;  %vm2993_vm13 = vmand %vm245_vm8, %vm2976_vm9  ;;  %v2379_v41 = vcombine.low %v62_v23, %v66_v24  ;;  %v2443_v42 = vcombine.low %v59_v28, %v63_v29  ;;  %v98_v7 = vld [vmem:[#allocation2 + $0x138] sm:$0xff]  ;;  %v95_v12 = vld [vmem:[#allocation2 + $0x120] sm:$0xff] }
  0x41   :  { %v281_v33 = vpack.c.bf16 %v278_v25, %v277_v20  ;;  %vm267_vm15 = vcmp.eq.s32.totalorder %v2915_v3, %v263_v27  ;;  %vm3004_vm0 = vmand %vm268_vm10, %vm2982_vm11  ;;  %v2382_v43 = vcombine.high %v70_v31, %v74_v35  ;;  %v2446_v44 = vcombine.high %v67_v36, %v71_v37  ;;  %2375 = vmatmul.mubr.msk.bf16.vlgmr.msra.gmra.mrb[0].mxu0 %vm303_vm12, %v259_v32  ;;  %v102_v21 = vld [vmem:[#allocation2 + $0x158] sm:$0xff]  ;;  %v99_v23 = vld [vmem:[#allocation2 + $0x140] sm:$0xff] }
  0x42   :  { %352 = vmatprep.mubr.bf16.mxu0 %v2838_v1  ;;  %v257_v49 = vsel %vm2993_vm13, 1.0, %v2839_v16  ;;  %v258_v50 = vsel %vm246_vm14, 1.0, %v2839_v16  ;;  %v279_v51 = vsel %vm267_vm15, 1.0, %v2839_v16  ;;  %v280_v52 = vsel %vm3004_vm0, 1.0, %v2839_v16  ;;  %591 = vmatpush1.bf16.msra.mxu0 %v2379_v41  ;;  %v106_v22 = vld [vmem:[#allocation2 + $0x178] sm:$0xff]  ;;  %v103_v24 = vld [vmem:[#allocation2 + $0x160] sm:$0xff] }
  0x43   :  { %2377 = vmatmul.mubr.msk.bf16.vlgmr.msra.gmra.mrb[0].mxu1 %vm303_vm12, %v281_v33  ;;  %v2381_v53 = vcombine.low %v70_v31, %v74_v35  ;;  %v2445_v54 = vcombine.low %v67_v36, %v71_v37  ;;  %592 = vmatprep.subr.bf16.mxu0 %v2382_v43  ;;  %v2384_v55 = vcombine.high %v78_v45, %v82_v46  ;;  %v110_v29 = vld [vmem:[#allocation2 + $0x198] sm:$0xff]  ;;  %v107_v31 = vld [vmem:[#allocation2 + $0x180] sm:$0xff] }
  0x44   :  { %415 = vmatprep.mubr.bf16.mxu1 %v2838_v1  ;;  %1017 = vmatpush1.bf16.msra.mxu1 %v2443_v42  ;;  %v2448_v56 = vcombine.high %v75_v47, %v79_v48  ;;  %v260_v58 = vpack.c.bf16 %v258_v50, %v257_v49  ;;  %v282_v59 = vpack.c.bf16 %v280_v52, %v279_v51  ;;  %v114_v30 = vld [vmem:[#allocation2 + $0x1b8] sm:$0xff]  ;;  %v111_v32 = vld [vmem:[#allocation2 + $0x1a0] sm:$0xff] }
  0x45   :  { %1018 = vmatprep.subr.bf16.mxu1 %v2446_v44  ;;  %v2383_v63 = vcombine.low %v78_v45, %v82_v46  ;;  %v2447_v0 = vcombine.low %v75_v47, %v79_v48  ;;  %v2386_v1 = vcombine.high %v86_v57, %v90_v60  ;;  %v2450_v5 = vcombine.high %v83_v61, %v87_v62  ;;  %v118_v37 = vld [vmem:[#allocation2 + $0x1d8] sm:$0xff]  ;;  %v115_v39 = vld [vmem:[#allocation2 + $0x1c0] sm:$0xff] }
  0x46   :  { %593 = vmatpush1.bf16.msra.mxu0 %v2381_v53  ;;  %v2385_v17 = vcombine.low %v86_v57, %v90_v60  ;;  %v2449_v18 = vcombine.low %v83_v61, %v87_v62  ;;  %v2388_v19 = vcombine.high %v94_v6, %v98_v7  ;;  %v2452_v20 = vcombine.high %v91_v10, %v95_v12  ;;  %v122_v38 = vld [vmem:[#allocation2 + $0x1f8] sm:$0xff]  ;;  %v119_v40 = vld [vmem:[#allocation2 + $0x1e0] sm:$0xff] }
  0x47   :  { %594 = vmatprep.subr.bf16.mxu0 %v2384_v55  ;;  %v2387_v25 = vcombine.low %v94_v6, %v98_v7  ;;  %v2451_v26 = vcombine.low %v91_v10, %v95_v12  ;;  %v2390_v27 = vcombine.high %v102_v21, %v106_v22  ;;  %v2454_v28 = vcombine.high %v99_v23, %v103_v24  ;;  %v126_v45 = vld [vmem:[#allocation2 + $0x218] sm:$0xff]  ;;  %v123_v47 = vld [vmem:[#allocation2 + $0x200] sm:$0xff] }
  0x48   :  { %1019 = vmatpush1.bf16.msra.mxu1 %v2445_v54  ;;  %v2389_v33 = vcombine.low %v102_v21, %v106_v22  ;;  %v2453_v34 = vcombine.low %v99_v23, %v103_v24  ;;  %v2392_v35 = vcombine.high %v110_v29, %v114_v30  ;;  %v2456_v36 = vcombine.high %v107_v31, %v111_v32  ;;  %v130_v46 = vld [vmem:[#allocation2 + $0x238] sm:$0xff]  ;;  %v127_v48 = vld [vmem:[#allocation2 + $0x220] sm:$0xff] }
  0x49   :  { %1020 = vmatprep.subr.bf16.mxu1 %v2448_v56  ;;  %2376 = vmatmul.mubr.msk.bf16.gmra.mrb[4].mxu0 %vm303_vm12, %v260_v58  ;;  %v2391_v41 = vcombine.low %v110_v29, %v114_v30  ;;  %v2455_v42 = vcombine.low %v107_v31, %v111_v32  ;;  %v2394_v43 = vcombine.high %v118_v37, %v122_v38  ;;  %v134_v53 = vld [vmem:[#allocation2 + $0x258] sm:$0xff]  ;;  %v131_v55 = vld [vmem:[#allocation2 + $0x240] sm:$0xff] }
  0x4a   :  { %595 = vmatpush1.bf16.msra.mxu0 %v2383_v63  ;;  %v2458_v44 = vcombine.high %v115_v39, %v119_v40  ;;  %v2393_v49 = vcombine.low %v118_v37, %v122_v38  ;;  %v2457_v50 = vcombine.low %v115_v39, %v119_v40  ;;  %v2396_v51 = vcombine.high %v126_v45, %v130_v46  ;;  %v138_v54 = vld [vmem:[#allocation2 + $0x278] sm:$0xff]  ;;  %v135_v56 = vld [vmem:[#allocation2 + $0x260] sm:$0xff] }
  0x4b   :  { %2378 = vmatmul.mubr.msk.bf16.gmra.mrb[4].mxu1 %vm303_vm12, %v282_v59  ;;  %596 = vmatprep.subr.bf16.mxu0 %v2386_v1  ;;  %v2460_v52 = vcombine.high %v123_v47, %v127_v48  ;;  %v2395_v57 = vcombine.low %v126_v45, %v130_v46  ;;  %v2459_v58 = vcombine.low %v123_v47, %v127_v48  ;;  %v142_v61 = vld [vmem:[#allocation2 + $0x298] sm:$0xff]  ;;  %v139_v63 = vld [vmem:[#allocation2 + $0x280] sm:$0xff] }
  0x4c   :  { %1021 = vmatpush1.bf16.msra.mxu1 %v2447_v0  ;;  %v2398_v59 = vcombine.high %v134_v53, %v138_v54  ;;  %v2462_v60 = vcombine.high %v131_v55, %v135_v56  ;;  %v146_v62 = vld [vmem:[#allocation2 + $0x2b8] sm:$0xff]  ;;  %v143_v0 = vld [vmem:[#allocation2 + $0x2a0] sm:$0xff]  ;;  %v2397_v1 = vcombine.low %v134_v53, %v138_v54 }
  0x4d   :  { %1022 = vmatprep.subr.bf16.mxu1 %v2450_v5  ;;  %v2461_v5 = vcombine.low %v131_v55, %v135_v56  ;;  %v2400_v6 = vcombine.high %v142_v61, %v146_v62  ;;  %v2464_v7 = vcombine.high %v139_v63, %v143_v0  ;;  %v150_v10 = vld [vmem:[#allocation2 + $0x2d8] sm:$0xff]  ;;  %v183_v53 = vld [vmem:[#allocation2 + $0x3e0] sm:$0xff] }
  0x4e   :  { %597 = vmatpush1.bf16.msra.mxu0 %v2385_v17  ;;  %v154_v12 = vld [vmem:[#allocation2 + $0x2f8] sm:$0xff]  ;;  %v147_v17 = vld [vmem:[#allocation2 + $0x2c0] sm:$0xff] }
  0x4f   :  { %598 = vmatprep.subr.bf16.mxu0 %v2388_v19  ;;  %v2399_v19 = vcombine.low %v142_v61, %v146_v62  ;;  %v2402_v21 = vcombine.high %v150_v10, %v154_v12  ;;  %v158_v23 = vld [vmem:[#allocation2 + $0x318] sm:$0xff]  ;;  %v65_v61 = vld [vmem:[#allocation2 + $0x30] sm:$0xff] }
  0x50   :  { %1023 = vmatpush1.bf16.msra.mxu1 %v2449_v18  ;;  %v151_v18 = vld [vmem:[#allocation2 + $0x2e0] sm:$0xff]  ;;  %v162_v24 = vld [vmem:[#allocation2 + $0x338] sm:$0xff] }
  0x51   :  { %1024 = vmatprep.subr.bf16.mxu1 %v2452_v20  ;;  %v2463_v20 = vcombine.low %v139_v63, %v143_v0  ;;  %v2466_v22 = vcombine.high %v147_v17, %v151_v18  ;;  %v2404_v29 = vcombine.high %v158_v23, %v162_v24  ;;  %v166_v31 = vld [vmem:[#allocation2 + $0x358] sm:$0xff] }
  0x52   :  { %599 = vmatpush1.bf16.msra.mxu0 %v2387_v25  ;;  %v155_v25 = vld [vmem:[#allocation2 + $0x300] sm:$0xff]  ;;  %v170_v32 = vld [vmem:[#allocation2 + $0x378] sm:$0xff] }
  0x53   :  { %600 = vmatprep.subr.bf16.mxu0 %v2390_v27  ;;  %v2401_v27 = vcombine.low %v150_v10, %v154_v12  ;;  %v2406_v37 = vcombine.high %v166_v31, %v170_v32  ;;  %v174_v39 = vld [vmem:[#allocation2 + $0x398] sm:$0xff]  ;;  %v68_v10 = vld [vmem:[#allocation2 + $0x48] sm:$0xff] }
  0x54   :  { %1025 = vmatpush1.bf16.msra.mxu1 %v2451_v26  ;;  %v159_v26 = vld [vmem:[#allocation2 + $0x320] sm:$0xff]  ;;  %v178_v40 = vld [vmem:[#allocation2 + $0x3b8] sm:$0xff] }
  0x55   :  { %1026 = vmatprep.subr.bf16.mxu1 %v2454_v28  ;;  %v2465_v28 = vcombine.low %v147_v17, %v151_v18  ;;  %v2468_v30 = vcombine.high %v155_v25, %v159_v26  ;;  %v2408_v45 = vcombine.high %v174_v39, %v178_v40  ;;  %v2407_v47 = vcombine.low %v174_v39, %v178_v40  ;;  %v72_v18 = vld [vmem:[#allocation2 + $0x68] sm:$0xff] }
  0x56   :  { %601 = vmatpush1.bf16.msra.mxu0 %v2389_v33  ;;  %v163_v33 = vld [vmem:[#allocation2 + $0x340] sm:$0xff]  ;;  %v84_v39 = vld [vmem:[#allocation2 + $0xc8] sm:$0xff] }
  0x57   :  { %602 = vmatprep.subr.bf16.mxu0 %v2392_v35  ;;  %v2403_v35 = vcombine.low %v158_v23, %v162_v24 }
  0x58   :  { %1027 = vmatpush1.bf16.msra.mxu1 %v2453_v34  ;;  %v167_v34 = vld [vmem:[#allocation2 + $0x360] sm:$0xff] }
  0x59   :  { %1028 = vmatprep.subr.bf16.mxu1 %v2456_v36  ;;  %v2467_v36 = vcombine.low %v155_v25, %v159_v26  ;;  %v2470_v38 = vcombine.high %v163_v33, %v167_v34 }
  0x5a   :  { %603 = vmatpush1.bf16.msra.mxu0 %v2391_v41  ;;  %v171_v41 = vld [vmem:[#allocation2 + $0x380] sm:$0xff] }
  0x5b   :  { %604 = vmatprep.subr.bf16.mxu0 %v2394_v43  ;;  %v2405_v43 = vcombine.low %v166_v31, %v170_v32  ;;  %v77_v31 = vld [vmem:[#allocation2 + $0x90] sm:$0xff] }
  0x5c   :  { %1029 = vmatpush1.bf16.msra.mxu1 %v2455_v42  ;;  %v175_v42 = vld [vmem:[#allocation2 + $0x3a0] sm:$0xff]  ;;  %v81_v32 = vld [vmem:[#allocation2 + $0xb0] sm:$0xff] }
  0x5d   :  { %1030 = vmatprep.subr.bf16.mxu1 %v2458_v44  ;;  %v2469_v44 = vcombine.low %v163_v33, %v167_v34  ;;  %v2472_v46 = vcombine.high %v171_v41, %v175_v42  ;;  %v2471_v48 = vcombine.low %v171_v41, %v175_v42  ;;  %v2413_v33 = vcombine.low %v68_v10, %v72_v18  ;;  %v88_v42 = vld [vmem:[#allocation2 + $0xe8] sm:$0xff] }
  0x5e   :  { %605 = vmatpush1.bf16.msra.mxu0 %v2393_v49  ;;  %v182_v49 = vld [vmem:[#allocation2 + $0x3d8] sm:$0xff] }
  0x5f   :  { %606 = vmatprep.subr.bf16.mxu0 %v2396_v51  ;;  %v179_v51 = vld [vmem:[#allocation2 + $0x3c0] sm:$0xff] }
  0x60   :  { %1031 = vmatpush1.bf16.msra.mxu1 %v2457_v50  ;;  %v186_v50 = vld [vmem:[#allocation2 + $0x3f8] sm:$0xff]  ;;  %v2473_v55 = vcombine.low %v179_v51, %v183_v53  ;;  %v2474_v56 = vcombine.high %v179_v51, %v183_v53 }
  0x61   :  { %1032 = vmatprep.subr.bf16.mxu1 %v2460_v52  ;;  %v2410_v52 = vcombine.high %v182_v49, %v186_v50  ;;  %v2409_v54 = vcombine.low %v182_v49, %v186_v50 }
  0x62   :  { %607 = vmatpush1.bf16.msra.mxu0 %v2395_v57  ;;  %v60_v57 = vld [vmem:[#allocation2 + $0x8] sm:$0xff] }
  0x63   :  { %608 = vmatprep.subr.bf16.mxu0 %v2398_v59  ;;  %v61_v59 = vld [vmem:[#allocation2 + $0x10] sm:$0xff] }
  0x64   :  { %1033 = vmatpush1.bf16.msra.mxu1 %v2459_v58  ;;  %v64_v58 = vld [vmem:[#allocation2 + $0x28] sm:$0xff]  ;;  %v2475_v63 = vcombine.low %v61_v59, %v65_v61  ;;  %v2476_v0 = vcombine.high %v61_v59, %v65_v61  ;;  %v93_v59 = vld [vmem:[#allocation2 + $0x110] sm:$0xff]  ;;  %v2417_v61 = vcombine.low %v84_v39, %v88_v42 }
  0x65   :  { %1034 = vmatprep.subr.bf16.mxu1 %v2462_v60  ;;  %v2412_v60 = vcombine.high %v60_v57, %v64_v58  ;;  %v2411_v62 = vcombine.low %v60_v57, %v64_v58  ;;  %v92_v57 = vld [vmem:[#allocation2 + $0x108] sm:$0xff] }
  0x66   :  { %609 = vmatpush1.bf16.msra.mxu0 %v2397_v1  ;;  %v96_v58 = vld [vmem:[#allocation2 + $0x128] sm:$0xff] }
  0x67   :  { %610 = vmatprep.subr.bf16.mxu0 %v2400_v6 }
  0x68   :  { %1035 = vmatpush1.bf16.msra.mxu1 %v2461_v5 }
  0x69   :  { %1036 = vmatprep.subr.bf16.mxu1 %v2464_v7 }
  0x6a   :  { %611 = vmatpush1.bf16.msra.mxu0 %v2399_v19  ;;  %v69_v19 = vld [vmem:[#allocation2 + $0x50] sm:$0xff] }
  0x6b   :  { %612 = vmatprep.subr.bf16.mxu0 %v2402_v21 }
  0x6c   :  { %1037 = vmatpush1.bf16.msra.mxu1 %v2463_v20  ;;  %v73_v20 = vld [vmem:[#allocation2 + $0x70] sm:$0xff] }
  0x6d   :  { %1038 = vmatprep.subr.bf16.mxu1 %v2466_v22  ;;  %v2477_v34 = vcombine.low %v69_v19, %v73_v20 }
  0x6e   :  { %613 = vmatpush1.bf16.msra.mxu0 %v2401_v27  ;;  %v2414_v27 = vcombine.high %v68_v10, %v72_v18  ;;  %v2419_v10 = vcombine.low %v92_v57, %v96_v58 }
  0x6f   :  { %614 = vmatprep.subr.bf16.mxu0 %v2404_v29  ;;  %v76_v29 = vld [vmem:[#allocation2 + $0x88] sm:$0xff] }
  0x70   :  { %1039 = vmatpush1.bf16.msra.mxu1 %v2465_v28  ;;  %v2478_v28 = vcombine.high %v69_v19, %v73_v20  ;;  %v108_v19 = vld [vmem:[#allocation2 + $0x188] sm:$0xff] }
  0x71   :  { %1040 = vmatprep.subr.bf16.mxu1 %v2468_v30  ;;  %v80_v30 = vld [vmem:[#allocation2 + $0xa8] sm:$0xff] }
  0x72   :  { %615 = vmatpush1.bf16.msra.mxu0 %v2403_v35  ;;  %v112_v20 = vld [vmem:[#allocation2 + $0x1a8] sm:$0xff] }
  0x73   :  { %616 = vmatprep.subr.bf16.mxu0 %v2406_v37  ;;  %v2416_v37 = vcombine.high %v76_v29, %v80_v30 }
  0x74   :  { %1041 = vmatpush1.bf16.msra.mxu1 %v2467_v36 }
  0x75   :  { %1042 = vmatprep.subr.bf16.mxu1 %v2470_v38  ;;  %v2480_v38 = vcombine.high %v77_v31, %v81_v32 }
  0x76   :  { %617 = vmatpush1.bf16.msra.mxu0 %v2405_v43  ;;  %v85_v43 = vld [vmem:[#allocation2 + $0xd0] sm:$0xff] }
  0x77   :  { %618 = vmatprep.subr.bf16.mxu0 %v2408_v45 }
  0x78   :  { %1043 = vmatpush1.bf16.msra.mxu1 %v2469_v44  ;;  %v89_v44 = vld [vmem:[#allocation2 + $0xf0] sm:$0xff] }
  0x79   :  { %1044 = vmatprep.subr.bf16.mxu1 %v2472_v46 }
  0x7a   :  { %619 = vmatpush1.bf16.msra.mxu0 %v2407_v47  ;;  %v2415_v47 = vcombine.low %v76_v29, %v80_v30  ;;  %v121_v29 = vld [vmem:[#allocation2 + $0x1f0] sm:$0xff]  ;;  %v2423_v30 = vcombine.low %v108_v19, %v112_v20 }
  0x7b   :  { %620 = vmatprep.subr.bf16.mxu0 %v2410_v52  ;;  %v2479_v52 = vcombine.low %v77_v31, %v81_v32 }
  0x7c   :  { %1045 = vmatpush1.bf16.msra.mxu1 %v2471_v48 }
  0x7d   :  { %1046 = vmatprep.subr.bf16.mxu1 %v2474_v56  ;;  %v2482_v56 = vcombine.high %v85_v43, %v89_v44 }
  0x7e   :  { %621 = vmatpush1.bf16.msra.mxu0 %v2409_v54 }
  0x7f   :  { %803 = vmatprep.subr.bf16.mxu0 %v2412_v60  ;;  %v97_v60 = vld [vmem:[#allocation2 + $0x130] sm:$0xff] }
  0x80   :  { %1047 = vmatpush1.bf16.msra.mxu1 %v2473_v55  ;;  %v2418_v55 = vcombine.high %v84_v39, %v88_v42  ;;  %v132_v42 = vld [vmem:[#allocation2 + $0x248] sm:$0xff] }
  0x81   :  { %1229 = vmatprep.subr.bf16.mxu1 %v2476_v0  ;;  %v2484_v0 = vcombine.high %v93_v59, %v97_v60 }
 0x114   :  { %v344_v1 = vpop.f32.mrb[0].mxu0 }
 0x115   :  { %v346_v6 = vpop.f32.mrb[1].mxu0 }
 0x116   :  { %v407_v5 = vpop.f32.mrb[0].mxu1  ;;  %v348_v12 = vpop.f32.mrb[2].mxu0 }
 0x117   :  { %v409_v7 = vpop.f32.mrb[1].mxu1  ;;  %v363_v21 = vpack.c.bf16 %v348_v12, %v344_v1  ;;  %v350_v23 = vpop.f32.mrb[3].mxu0  ;;  %v100_v1 = vld [vmem:[#allocation2 + $0x148] sm:$0xff]  ;;  %v2483_v12 = vcombine.low %v93_v59, %v97_v60  ;;  %v149_v60 = vld [vmem:[#allocation2 + $0x2d0] sm:$0xff] }
 0x118   :  { %v411_v17 = vpop.f32.mrb[2].mxu1  ;;  %v364_v25 = vpack.c.bf16 %v350_v23, %v346_v6  ;;  %v101_v6 = vld [vmem:[#allocation2 + $0x150] sm:$0xff]  ;;  %v152_v59 = vld [vmem:[#allocation2 + $0x2e8] sm:$0xff] }
 0x119   :  { %v426_v22 = vpack.c.bf16 %v411_v17, %v407_v5  ;;  %v413_v24 = vpop.f32.mrb[3].mxu1  ;;  %v104_v5 = vld [vmem:[#allocation2 + $0x168] sm:$0xff] }
 0x11a   :  { %v427_v26 = vpack.c.bf16 %v413_v24, %v409_v7  ;;  %622 = vmatprep.mubr.bf16.mxu0 %v364_v25  ;;  %v105_v7 = vld [vmem:[#allocation2 + $0x170] sm:$0xff]  ;;  %v2422_v17 = vcombine.high %v100_v1, %v104_v5  ;;  %v2421_v23 = vcombine.low %v100_v1, %v104_v5  ;;  %v2424_v25 = vcombine.high %v108_v19, %v112_v20  ;;  %v156_v5 = vld [vmem:[#allocation2 + $0x308] sm:$0xff] }
 0x11b   :  { %623 = vmatmul.mubr.bf16.vlgmr.msra.gmra.mrb[8].mxu0 %v363_v21  ;;  %v2486_v18 = vcombine.high %v101_v6, %v105_v7  ;;  %v109_v21 = vld [vmem:[#allocation2 + $0x190] sm:$0xff]  ;;  %v2485_v24 = vcombine.low %v101_v6, %v105_v7  ;;  %v160_v6 = vld [vmem:[#allocation2 + $0x328] sm:$0xff] }
 0x11c   :  { %1048 = vmatprep.mubr.bf16.mxu1 %v427_v26  ;;  %804 = vmatpush1.bf16.msra.mxu0 %v2411_v62  ;;  %v354_v35 = vpop.f32.mrb[4].mxu0  ;;  %v2481_v62 = vcombine.low %v85_v43, %v89_v44  ;;  %v116_v26 = vld [vmem:[#allocation2 + $0x1c8] sm:$0xff]  ;;  %v133_v44 = vld [vmem:[#allocation2 + $0x250] sm:$0xff] }
 0x11d   :  { %1049 = vmatmul.mubr.bf16.vlgmr.msra.gmra.mrb[8].mxu1 %v426_v22  ;;  %805 = vmatprep.subr.bf16.mxu0 %v2414_v27  ;;  %v356_v40 = vpop.f32.mrb[5].mxu0  ;;  %v113_v22 = vld [vmem:[#allocation2 + $0x1b0] sm:$0xff]  ;;  %v120_v27 = vld [vmem:[#allocation2 + $0x1e8] sm:$0xff] }
 0x11e   :  { %1230 = vmatpush1.bf16.msra.mxu1 %v2475_v63  ;;  %v417_v36 = vpop.f32.mrb[4].mxu1  ;;  %v358_v45 = vpop.f32.mrb[6].mxu0  ;;  %v2420_v63 = vcombine.high %v92_v57, %v96_v58  ;;  %v2487_v31 = vcombine.low %v109_v21, %v113_v22  ;;  %v2426_v32 = vcombine.high %v116_v26, %v120_v27  ;;  %v136_v43 = vld [vmem:[#allocation2 + $0x268] sm:$0xff]  ;;  %v157_v7 = vld [vmem:[#allocation2 + $0x310] sm:$0xff] }
 0x11f   :  { %1231 = vmatprep.subr.bf16.mxu1 %v2478_v28  ;;  %v419_v41 = vpop.f32.mrb[5].mxu1  ;;  %v365_v48 = vpack.c.bf16 %v358_v45, %v354_v35  ;;  %v360_v50 = vpop.f32.mrb[7].mxu0  ;;  %v117_v28 = vld [vmem:[#allocation2 + $0x1d0] sm:$0xff]  ;;  %v128_v35 = vld [vmem:[#allocation2 + $0x228] sm:$0xff] }
 0x120   :  { %v421_v46 = vpop.f32.mrb[6].mxu1  ;;  %806 = vmatpush1.bf16.msra.mxu0 %v2413_v33  ;;  %v366_v53 = vpack.c.bf16 %v360_v50, %v356_v40  ;;  %v2490_v33 = vcombine.high %v117_v28, %v121_v29  ;;  %v2489_v39 = vcombine.low %v117_v28, %v121_v29  ;;  %v137_v45 = vld [vmem:[#allocation2 + $0x270] sm:$0xff]  ;;  %v140_v50 = vld [vmem:[#allocation2 + $0x288] sm:$0xff] }
 0x121   :  { %v428_v49 = vpack.c.bf16 %v421_v46, %v417_v36  ;;  %v423_v51 = vpop.f32.mrb[7].mxu1  ;;  %807 = vmatprep.subr.bf16.mxu0 %v2416_v37  ;;  %v125_v36 = vld [vmem:[#allocation2 + $0x210] sm:$0xff]  ;;  %v148_v58 = vld [vmem:[#allocation2 + $0x2c8] sm:$0xff] }
 0x122   :  { %1232 = vmatpush1.bf16.msra.mxu1 %v2477_v34  ;;  %v429_v54 = vpack.c.bf16 %v423_v51, %v419_v41  ;;  %632 = vmatprep.mubr.bf16.mxu0 %v366_v53  ;;  %v124_v34 = vld [vmem:[#allocation2 + $0x208] sm:$0xff]  ;;  %v129_v37 = vld [vmem:[#allocation2 + $0x230] sm:$0xff] }
 0x123   :  { %1233 = vmatprep.subr.bf16.mxu1 %v2480_v38  ;;  %633 = vmatmul.mubr.bf16.gmra.mrb[12].mxu0 %v365_v48  ;;  %v2425_v38 = vcombine.low %v116_v26, %v120_v27  ;;  %v2428_v40 = vcombine.high %v124_v34, %v128_v35  ;;  %v2492_v41 = vcombine.high %v125_v36, %v129_v37  ;;  %v144_v51 = vld [vmem:[#allocation2 + $0x2a8] sm:$0xff]  ;;  %v145_v53 = vld [vmem:[#allocation2 + $0x2b0] sm:$0xff] }
 0x124   :  { %1058 = vmatprep.mubr.bf16.mxu1 %v429_v54  ;;  %808 = vmatpush1.bf16.msra.mxu0 %v2415_v47  ;;  %v2427_v46 = vcombine.low %v124_v34, %v128_v35  ;;  %v2491_v47 = vcombine.low %v125_v36, %v129_v37  ;;  %v2430_v48 = vcombine.high %v132_v42, %v136_v43  ;;  %v164_v20 = vld [vmem:[#allocation2 + $0x348] sm:$0xff]  ;;  %v173_v29 = vld [vmem:[#allocation2 + $0x390] sm:$0xff] }
 0x125   :  { %1059 = vmatmul.mubr.bf16.gmra.mrb[12].mxu1 %v428_v49  ;;  %809 = vmatprep.subr.bf16.mxu0 %v2418_v55  ;;  %v2494_v49 = vcombine.high %v133_v44, %v137_v45  ;;  %v2429_v54 = vcombine.low %v132_v42, %v136_v43  ;;  %v2493_v55 = vcombine.low %v133_v44, %v137_v45  ;;  %v172_v27 = vld [vmem:[#allocation2 + $0x388] sm:$0xff] }
 0x126   :  { %1234 = vmatpush1.bf16.msra.mxu1 %v2479_v52  ;;  %835 = vmatprep.mubr.bf16.mxu0 %v2939_v11  ;;  %v141_v52 = vld [vmem:[#allocation2 + $0x290] sm:$0xff]  ;;  %v176_v28 = vld [vmem:[#allocation2 + $0x3a8] sm:$0xff] }
 0x127   :  { %1235 = vmatprep.subr.bf16.mxu1 %v2482_v56  ;;  %1261 = vmatprep.mubr.bf16.mxu1 %v2939_v11  ;;  %v2488_v11 = vcombine.high %v109_v21, %v113_v22  ;;  %v2432_v56 = vcombine.high %v140_v50, %v144_v51  ;;  %v2496_v57 = vcombine.high %v141_v52, %v145_v53  ;;  %v168_v21 = vld [vmem:[#allocation2 + $0x368] sm:$0xff]  ;;  %v165_v22 = vld [vmem:[#allocation2 + $0x350] sm:$0xff] }
 0x128   :  { %810 = vmatpush1.bf16.msra.mxu0 %v2417_v61  ;;  %v153_v61 = vld [vmem:[#allocation2 + $0x2f0] sm:$0xff]  ;;  %v2440_v35 = vcombine.high %v172_v27, %v176_v28  ;;  %v180_v37 = vld [vmem:[#allocation2 + $0x3c8] sm:$0xff]  ;;  %v2439_v43 = vcombine.low %v172_v27, %v176_v28 }
 0x129   :  { %811 = vmatprep.subr.bf16.mxu0 %v2420_v63  ;;  %v2495_v63 = vcombine.low %v141_v52, %v145_v53  ;;  %v2498_v1 = vcombine.high %v149_v60, %v153_v61  ;;  %v2840_v53 = vmov 1.0|1.0  }
 0x12a   :  { %1236 = vmatpush1.bf16.msra.mxu1 %v2481_v62  ;;  %v2431_v62 = vcombine.low %v140_v50, %v144_v51  ;;  %v1323_v50 = vand.u32 7, %v2918_v4  ;;  %v1298_v4 = vadd.s32 144, %v2913_v2 }
 0x12b   :  { %1237 = vmatprep.subr.bf16.mxu1 %v2484_v0  ;;  %v2434_v0 = vcombine.high %v148_v58, %v152_v59 }
 0x12c   :  { %812 = vmatpush1.bf16.msra.mxu0 %v2419_v10  ;;  %v161_v10 = vld [vmem:[#allocation2 + $0x330] sm:$0xff]  ;;  %vm1697_vm5 = vcmp.eq.s32.totalorder %v1323_v50, %v2915_v3 }
 0x12d   :  { %813 = vmatprep.subr.bf16.mxu0 %v2422_v17  ;;  %v2497_v17 = vcombine.low %v149_v60, %v153_v61  ;;  %v2500_v19 = vcombine.high %v157_v7, %v161_v10 }
 0x12e   :  { %1238 = vmatpush1.bf16.msra.mxu1 %v2483_v12  ;;  %v2433_v12 = vcombine.low %v148_v58, %v152_v59  ;;  %v1301_v58 = vadd.s32 168, %v2913_v2  ;;  %v1285_v59 = vadd.s32 40, %v2913_v2 }
 0x12f   :  { %1239 = vmatprep.subr.bf16.mxu1 %v2486_v18  ;;  %v2436_v18 = vcombine.high %v156_v5, %v160_v6 }
 0x130   :  { %814 = vmatpush1.bf16.msra.mxu0 %v2421_v23  ;;  %v169_v23 = vld [vmem:[#allocation2 + $0x370] sm:$0xff]  ;;  %v1351_v61 = vand.u32 7, %v1285_v59 }
 0x131   :  { %815 = vmatprep.subr.bf16.mxu0 %v2424_v25  ;;  %v2499_v25 = vcombine.low %v157_v7, %v161_v10  ;;  %v2502_v26 = vcombine.high %v165_v22, %v169_v23  ;;  %v2501_v34 = vcombine.low %v165_v22, %v169_v23 }
 0x132   :  { %1240 = vmatpush1.bf16.msra.mxu1 %v2485_v24  ;;  %v2435_v24 = vcombine.low %v156_v5, %v160_v6 }
 0x133   :  { %1241 = vmatprep.subr.bf16.mxu1 %v2488_v11  ;;  %v2438_v11 = vcombine.high %v164_v20, %v168_v21 }
 0x134   :  { %816 = vmatpush1.bf16.msra.mxu0 %v2423_v30  ;;  %v177_v30 = vld [vmem:[#allocation2 + $0x3b0] sm:$0xff] }
 0x135   :  { %817 = vmatprep.subr.bf16.mxu0 %v2426_v32  ;;  %v1297_v32 = vadd.s32 136, %v2913_v2  ;;  %v2504_v36 = vcombine.high %v173_v29, %v177_v30  ;;  %v2503_v44 = vcombine.low %v173_v29, %v177_v30 }
 0x136   :  { %1242 = vmatpush1.bf16.msra.mxu1 %v2487_v31  ;;  %v1296_v31 = vadd.s32 128, %v2913_v2 }
 0x137   :  { %1243 = vmatprep.subr.bf16.mxu1 %v2490_v33  ;;  %v2437_v33 = vcombine.low %v164_v20, %v168_v21  ;;  %v1435_v42 = vand.u32 7, %v1297_v32  ;;  %v1309_v32 = vadd.s32 232, %v2913_v2 }
 0x138   :  { %818 = vmatpush1.bf16.msra.mxu0 %v2425_v38  ;;  %v184_v38 = vld [vmem:[#allocation2 + $0x3e8] sm:$0xff] }
 0x139   :  { %819 = vmatprep.subr.bf16.mxu0 %v2428_v40  ;;  %v185_v40 = vld [vmem:[#allocation2 + $0x3f0] sm:$0xff]  ;;  %v2442_v45 = vcombine.high %v180_v37, %v184_v38  ;;  %vm3037_vm2 = vcmp.eq.s32.totalorder %v1435_v42, %v2915_v3  ;;  %v2441_v51 = vcombine.low %v180_v37, %v184_v38  ;;  %v1295_v42 = vadd.s32 120, %v2913_v2 }
 0x13a   :  { %1244 = vmatpush1.bf16.msra.mxu1 %v2489_v39  ;;  %v181_v39 = vld [vmem:[#allocation2 + $0x3d0] sm:$0xff] }
 0x13b   :  { %1245 = vmatprep.subr.bf16.mxu1 %v2492_v41  ;;  %v1428_v41 = vand.u32 7, %v1296_v31  ;;  %v2505_v52 = vcombine.low %v181_v39, %v185_v40  ;;  %v1308_v31 = vadd.s32 224, %v2913_v2 }
 0x13c   :  { %820 = vmatpush1.bf16.msra.mxu0 %v2427_v46  ;;  %v2506_v46 = vcombine.high %v181_v39, %v185_v40  ;;  %v1310_v39 = vadd.s32 240, %v2913_v2  ;;  %v1311_v40 = vadd.s32 248, %v2913_v2 }
 0x13d   :  { %821 = vmatprep.subr.bf16.mxu0 %v2430_v48  ;;  %vm3032_vm1 = vcmp.eq.s32.totalorder %v1428_v41, %v2915_v3  ;;  %v1294_v41 = vadd.s32 112, %v2913_v2 }
 0x13e   :  { %1246 = vmatpush1.bf16.msra.mxu1 %v2491_v47  ;;  %vm2663_vm3 = vmpackc.low %vm3037_vm2, %vm3032_vm1  ;;  %vm1701_vm1 = vcmp.eq.s32.totalorder %v1351_v61, %v2915_v3 }
 0x13f   :  { %1247 = vmatprep.subr.bf16.mxu1 %v2494_v49  ;;  %v1316_v49 = vand.u32 7, %v2913_v2 }
 0x140   :  { %822 = vmatpush1.bf16.msra.mxu0 %v2429_v54  ;;  %v1299_v54 = vadd.s32 152, %v2913_v2 }
 0x141   :  { %823 = vmatprep.subr.bf16.mxu0 %v2432_v56  ;;  %vm1696_vm4 = vcmp.eq.s32.totalorder %v1316_v49, %v2915_v3 }
 0x142   :  { %1248 = vmatpush1.bf16.msra.mxu1 %v2493_v55  ;;  %vm2665_vm6 = vmpackc.low %vm1697_vm5, %vm1696_vm4  ;;  %v1442_v55 = vand.u32 7, %v1298_v4  ;;  %v1449_v56 = vand.u32 7, %v1299_v54 }
 0x143   :  { %1249 = vmatprep.subr.bf16.mxu1 %v2496_v57  ;;  %v1337_v57 = vand.u32 7, %v2929_v9  ;;  %v1463_v9 = vand.u32 7, %v1301_v58 }
 0x144   :  { %824 = vmatpush1.bf16.msra.mxu0 %v2431_v62  ;;  %vm1714_vm7 = vcmp.eq.s32.totalorder %v1442_v55, %v2915_v3  ;;  %vm1715_vm8 = vcmp.eq.s32.totalorder %v1449_v56, %v2915_v3  ;;  %v1302_v62 = vadd.s32 176, %v2913_v2 }
 0x145   :  { %825 = vmatprep.subr.bf16.mxu0 %v2434_v0  ;;  %vm2667_vm9 = vmpackc.low %vm1715_vm8, %vm1714_vm7  ;;  %vm1699_vm11 = vcmp.eq.s32.totalorder %v1337_v57, %v2915_v3  ;;  %vm1717_vm14 = vcmp.eq.s32.totalorder %v1463_v9, %v2915_v3  ;;  %v1286_v0 = vadd.s32 48, %v2913_v2 }
 0x146   :  { %1250 = vmatpush1.bf16.msra.mxu1 %v2495_v63  ;;  %v1303_v63 = vadd.s32 184, %v2913_v2  ;;  %v1470_v5 = vand.u32 7, %v1302_v62 }
 0x147   :  { %1251 = vmatprep.subr.bf16.mxu1 %v2498_v1  ;;  %v1287_v1 = vadd.s32 56, %v2913_v2  ;;  %v1358_v7 = vand.u32 7, %v1286_v0 }
 0x148   :  { %826 = vmatpush1.bf16.msra.mxu0 %v2433_v12  ;;  %v1477_v6 = vand.u32 7, %v1303_v63  ;;  %v1304_v12 = vadd.s32 192, %v2913_v2 }
 0x149   :  { %827 = vmatprep.subr.bf16.mxu0 %v2436_v18  ;;  %v1365_v10 = vand.u32 7, %v1287_v1  ;;  %v1288_v18 = vadd.s32 64, %v2913_v2 }
 0x14a   :  { %1252 = vmatpush1.bf16.msra.mxu1 %v2497_v17  ;;  %vm1719_vm4 = vcmp.eq.s32.totalorder %v1477_v6, %v2915_v3  ;;  %v1305_v17 = vadd.s32 200, %v2913_v2  ;;  %v1484_v20 = vand.u32 7, %v1304_v12 }
 0x14b   :  { %1253 = vmatprep.subr.bf16.mxu1 %v2500_v19  ;;  %vm1703_vm7 = vcmp.eq.s32.totalorder %v1365_v10, %v2915_v3  ;;  %v1289_v19 = vadd.s32 72, %v2913_v2  ;;  %v1372_v22 = vand.u32 7, %v1288_v18 }
 0x14c   :  { %828 = vmatpush1.bf16.msra.mxu0 %v2435_v24  ;;  %v1491_v21 = vand.u32 7, %v1305_v17  ;;  %v1306_v24 = vadd.s32 208, %v2913_v2 }
 0x14d   :  { %829 = vmatprep.subr.bf16.mxu0 %v2438_v11  ;;  %v1379_v23 = vand.u32 7, %v1289_v19  ;;  %v1290_v11 = vadd.s32 80, %v2913_v2 }
 0x14e   :  { %1254 = vmatpush1.bf16.msra.mxu1 %v2499_v25  ;;  %v1307_v25 = vadd.s32 216, %v2913_v2  ;;  %v1498_v27 = vand.u32 7, %v1306_v24 }
 0x14f   :  { %1255 = vmatprep.subr.bf16.mxu1 %v2502_v26  ;;  %v1291_v26 = vadd.s32 88, %v2913_v2  ;;  %v1386_v29 = vand.u32 7, %v1290_v11 }
 0x150   :  { %830 = vmatpush1.bf16.msra.mxu0 %v2437_v33  ;;  %v1505_v28 = vand.u32 7, %v1307_v25  ;;  %v1292_v33 = vadd.s32 96, %v2913_v2 }
 0x151   :  { %831 = vmatprep.subr.bf16.mxu0 %v2440_v35  ;;  %v1393_v30 = vand.u32 7, %v1291_v26  ;;  %v1512_v35 = vand.u32 7, %v1308_v31 }
 0x152   :  { %1256 = vmatpush1.bf16.msra.mxu1 %v2501_v34  ;;  %v1293_v34 = vadd.s32 104, %v2913_v2  ;;  %v1400_v37 = vand.u32 7, %v1292_v33 }
 0x153   :  { %1257 = vmatprep.subr.bf16.mxu1 %v2504_v36  ;;  %v1519_v36 = vand.u32 7, %v1309_v32 }
 0x154   :  { %832 = vmatpush1.bf16.msra.mxu0 %v2439_v43  ;;  %v1407_v38 = vand.u32 7, %v1293_v34  ;;  %v1526_v43 = vand.u32 7, %v1310_v39 }
 0x155   :  { %833 = vmatprep.subr.bf16.mxu0 %v2442_v45  ;;  %v1414_v45 = vand.u32 7, %v1294_v41 }
 0x156   :  { %1258 = vmatpush1.bf16.msra.mxu1 %v2503_v44  ;;  %v1533_v44 = vand.u32 7, %v1311_v40  ;;  %v1760_v40 = vadd.s32 128, %v2915_v3 }
 0x157   :  { %1259 = vmatprep.subr.bf16.mxu1 %v2506_v46  ;;  %v1421_v46 = vand.u32 7, %v1295_v42  ;;  %v1765_v42 = vand.u32 7, %v2915_v3 }
 0x158   :  { %834 = vmatpush1.bf16.msra.mxu0 %v2441_v51  ;;  %v1772_v41 = vand.u32 7, %v1760_v40 }
 0x159   :  { %2664 = vmatprep.subr.msk.bf16.mxu0 %vm2663_vm3, %v2840_v53 }
 0x15a   :  { %1260 = vmatpush1.bf16.msra.mxu1 %v2505_v52 }
 0x15b   :  { %2696 = vmatprep.subr.msk.bf16.mxu1 %vm2663_vm3, %v2840_v53  ;;  %836 = vmatmul.mubr.bf16.vlgmr.msra.gmra.mrb[8].mxu0 %v2946_v13  ;;  %vm1718_vm3 = vcmp.eq.s32.totalorder %v1470_v5, %v2915_v3 }
 0x15c   :  { %845 = vmatprep.mubr.bf16.mxu0 %v2953_v14  ;;  %2666 = vmatpush3.bf16.msk.msra.mxu0 %vm2665_vm6, %v2840_v53  ;;  %vm2675_vm5 = vmpackc.low %vm1719_vm4, %vm1718_vm3  ;;  %vm1707_vm3 = vcmp.eq.s32.totalorder %v1393_v30, %v2915_v3 }
 0x15d   :  { %1262 = vmatmul.mubr.bf16.vlgmr.msra.gmra.mrb[8].mxu1 %v2946_v13  ;;  %v1330_v13 = vand.u32 7, %v2926_v8  ;;  %2668 = vmatprep.subr.msk.bf16.mxu0 %vm2667_vm9, %v2840_v53 }
 0x15e   :  { %1271 = vmatprep.mubr.bf16.mxu1 %v2953_v14  ;;  %2698 = vmatpush3.bf16.msk.msra.mxu1 %vm2665_vm6, %v2840_v53  ;;  %v1300_v14 = vadd.s32 160, %v2913_v2  ;;  %vm1702_vm6 = vcmp.eq.s32.totalorder %v1358_v7, %v2915_v3 }
 0x15f   :  { %vm1698_vm10 = vcmp.eq.s32.totalorder %v1330_v13, %v2915_v3  ;;  %2700 = vmatprep.subr.msk.bf16.mxu1 %vm2667_vm9, %v2840_v53  ;;  %vm2677_vm8 = vmpackc.low %vm1703_vm7, %vm1702_vm6  ;;  %vm1720_vm9 = vcmp.eq.s32.totalorder %v1484_v20, %v2915_v3  ;;  %vm1725_vm6 = vcmp.eq.s32.totalorder %v1519_v36, %v2915_v3 }
 0x160   :  { %vm2669_vm12 = vmpackc.low %vm1699_vm11, %vm1698_vm10  ;;  %v1456_v8 = vand.u32 7, %v1300_v14  ;;  %vm1721_vm10 = vcmp.eq.s32.totalorder %v1491_v21, %v2915_v3 }
 0x161   :  { %2670 = vmatpush3.bf16.msk.msra.mxu0 %vm2669_vm12, %v2840_v53  ;;  %vm2679_vm11 = vmpackc.low %vm1721_vm10, %vm1720_vm9  ;;  %vm1709_vm9 = vcmp.eq.s32.totalorder %v1407_v38, %v2915_v3 }
 0x162   :  { %2702 = vmatpush3.bf16.msk.msra.mxu1 %vm2669_vm12, %v2840_v53  ;;  %vm1716_vm13 = vcmp.eq.s32.totalorder %v1456_v8, %v2915_v3  ;;  %vm1704_vm12 = vcmp.eq.s32.totalorder %v1372_v22, %v2915_v3 }
 0x163   :  { %846 = vmatmul.mubr.bf16.gmra.mrb[12].mxu0 %v2958_v15  ;;  %vm2671_vm15 = vmpackc.low %vm1717_vm14, %vm1716_vm13  ;;  %vm1705_vm13 = vcmp.eq.s32.totalorder %v1379_v23, %v2915_v3 }
 0x164   :  { %2672 = vmatprep.subr.msk.bf16.mxu0 %vm2671_vm15, %v2840_v53  ;;  %2704 = vmatprep.subr.msk.bf16.mxu1 %vm2671_vm15, %v2840_v53  ;;  %vm2681_vm14 = vmpackc.low %vm1705_vm13, %vm1704_vm12  ;;  %vm1722_vm15 = vcmp.eq.s32.totalorder %v1498_v27, %v2915_v3  ;;  %vm1727_vm12 = vcmp.eq.s32.totalorder %v1533_v44, %v2915_v3 }
 0x165   :  { %1272 = vmatmul.mubr.bf16.gmra.mrb[12].mxu1 %v2958_v15  ;;  %v1284_v15 = vadd.s32 32, %v2913_v2 }
 0x167   :  { %v1344_v60 = vand.u32 7, %v1284_v15 }
 0x169   :  { %vm1700_vm0 = vcmp.eq.s32.totalorder %v1344_v60, %v2915_v3 }
 0x16a   :  { %vm2673_vm2 = vmpackc.low %vm1701_vm1, %vm1700_vm0  ;;  %vm1723_vm0 = vcmp.eq.s32.totalorder %v1505_v28, %v2915_v3 }
 0x16b   :  { %2674 = vmatpush3.bf16.msk.msra.mxu0 %vm2673_vm2, %v2840_v53  ;;  %2706 = vmatpush3.bf16.msk.msra.mxu1 %vm2673_vm2, %v2840_v53  ;;  %vm2683_vm1 = vmpackc.low %vm1723_vm0, %vm1722_vm15  ;;  %vm1706_vm2 = vcmp.eq.s32.totalorder %v1386_v29, %v2915_v3  ;;  %vm1711_vm15 = vcmp.eq.s32.totalorder %v1421_v46, %v2915_v3 }
 0x16c   :  { %2676 = vmatprep.subr.msk.bf16.mxu0 %vm2675_vm5, %v2840_v53  ;;  %2708 = vmatprep.subr.msk.bf16.mxu1 %vm2675_vm5, %v2840_v53  ;;  %vm2685_vm4 = vmpackc.low %vm1707_vm3, %vm1706_vm2  ;;  %vm1724_vm5 = vcmp.eq.s32.totalorder %v1512_v35, %v2915_v3  ;;  %vm3197_vm2 = vcmp.eq.s32.totalorder %v1765_v42, %v2913_v2  ;;  %vm1899_vm3 = vcmask 64512  }
 0x16d   :  { %vm2687_vm7 = vmpackc.low %vm1725_vm6, %vm1724_vm5 }
 0x16f   :  { %2678 = vmatpush3.bf16.msk.msra.mxu0 %vm2677_vm8, %v2840_v53  ;;  %2710 = vmatpush3.bf16.msk.msra.mxu1 %vm2677_vm8, %v2840_v53  ;;  %vm1708_vm8 = vcmp.eq.s32.totalorder %v1400_v37, %v2915_v3 }
 0x170   :  { %2680 = vmatprep.subr.msk.bf16.mxu0 %vm2679_vm11, %v2840_v53  ;;  %2712 = vmatprep.subr.msk.bf16.mxu1 %vm2679_vm11, %v2840_v53  ;;  %vm2689_vm10 = vmpackc.low %vm1709_vm9, %vm1708_vm8  ;;  %vm1726_vm11 = vcmp.eq.s32.totalorder %v1526_v43, %v2915_v3  ;;  %v2841_v43 = vmov 1.0  }
 0x171   :  { %vm2691_vm13 = vmpackc.low %vm1727_vm12, %vm1726_vm11 }
 0x173   :  { %2682 = vmatpush3.bf16.msk.msra.mxu0 %vm2681_vm14, %v2840_v53  ;;  %2714 = vmatpush3.bf16.msk.msra.mxu1 %vm2681_vm14, %v2840_v53  ;;  %vm1710_vm14 = vcmp.eq.s32.totalorder %v1414_v45, %v2915_v3 }
 0x174   :  { %2684 = vmatprep.subr.msk.bf16.mxu0 %vm2683_vm1, %v2840_v53  ;;  %2716 = vmatprep.subr.msk.bf16.mxu1 %vm2683_vm1, %v2840_v53  ;;  %vm2693_vm0 = vmpackc.low %vm1711_vm15, %vm1710_vm14  ;;  %vm1786_vm1 = vcmp.eq.s32.totalorder %v1772_v41, %v2913_v2 }
 0x177   :  { %2686 = vmatpush3.bf16.msk.msra.mxu0 %vm2685_vm4, %v2840_v53  ;;  %2718 = vmatpush3.bf16.msk.msra.mxu1 %vm2685_vm4, %v2840_v53 }
 0x178   :  { %2688 = vmatprep.subr.msk.bf16.mxu0 %vm2687_vm7, %v2840_v53  ;;  %2720 = vmatprep.subr.msk.bf16.mxu1 %vm2687_vm7, %v2840_v53 }
 0x17b   :  { %2690 = vmatpush3.bf16.msk.msra.mxu0 %vm2689_vm10, %v2840_v53  ;;  %2722 = vmatpush3.bf16.msk.msra.mxu1 %vm2689_vm10, %v2840_v53 }
 0x17c   :  { %2692 = vmatprep.subr.msk.bf16.mxu0 %vm2691_vm13, %v2840_v53  ;;  %2724 = vmatprep.subr.msk.bf16.mxu1 %vm2691_vm13, %v2840_v53 }
 0x17f   :  { %2694 = vmatpush3.bf16.msk.msra.mxu0 %vm2693_vm0, %v2840_v53  ;;  %2726 = vmatpush3.bf16.msk.msra.mxu1 %vm2693_vm0, %v2840_v53 }
 0x180   :  { %2539 = vmatprep.subr.msk.mxu0 %vm1786_vm1, %v2841_v43  ;;  %2574 = vmatprep.subr.msk.mxu1 %vm1786_vm1, %v2841_v43 }
 0x22e   :  { %v3143_v47 = vpop.f32.mrb[8].mxu0 }
 0x22f   :  { %v3147_v49 = vpop.f32.mrb[9].mxu0 }
 0x230   :  { %v3145_v48 = vpop.f32.mrb[8].mxu1  ;;  %v3151_v51 = vpop.f32.mrb[10].mxu0 }
 0x231   :  { %v3149_v50 = vpop.f32.mrb[9].mxu1  ;;  %v1789_v4 = vadd.f32 %v3151_v51, %v3143_v47  ;;  %v3159_v55 = vpop.f32.mrb[11].mxu0 }
 0x232   :  { %v3153_v52 = vpop.f32.mrb[10].mxu1  ;;  %v1798_v56 = vadd.f32 %v3159_v55, %v3147_v49 }
 0x233   :  { %v1807_v54 = vadd.f32 %v3153_v52, %v3145_v48  ;;  %v3161_v53 = vpop.f32.mrb[11].mxu1 }
 0x234   :  { %v1816_v13 = vadd.f32 %v3161_v53, %v3149_v50 }
 0x236   :  { %v3167_v57 = vpop.f32.mrb[12].mxu0 }
 0x237   :  { %v1790_v58 = vadd.f32 %v1789_v4, %v3167_v57  ;;  %v3173_v59 = vpop.f32.mrb[13].mxu0 }
 0x238   :  { %v3169_v14 = vpop.f32.mrb[12].mxu1  ;;  %v1799_v9 = vadd.f32 %v1798_v56, %v3173_v59  ;;  %v3179_v61 = vpop.f32.mrb[14].mxu0 }
 0x239   :  { %v1808_v15 = vadd.f32 %v1807_v54, %v3169_v14  ;;  %v3175_v8 = vpop.f32.mrb[13].mxu1  ;;  %v1791_v63 = vadd.f32 %v1790_v58, %v3179_v61  ;;  %v3185_v1 = vpop.f32.mrb[15].mxu0  ;;  %v3207_v54 = vsub.s32 0, %v2913_v2 }
 0x23a   :  { %v1817_v60 = vadd.f32 %v1816_v13, %v3175_v8  ;;  %v3181_v62 = vpop.f32.mrb[14].mxu1  ;;  %v1800_v6 = vadd.f32 %v1799_v9, %v3185_v1 }
 0x23b   :  { %v1809_v0 = vadd.f32 %v1808_v15, %v3181_v62  ;;  %v3187_v5 = vpop.f32.mrb[15].mxu1  ;;  %v1792_v10 = vrot.slane %v1791_v63, 4 }
 0x23c   :  { %v1818_v7 = vadd.f32 %v1817_v60, %v3187_v5  ;;  %v1801_v17 = vrot.slane %v1800_v6, 4 }
 0x23d   :  { %v1810_v12 = vrot.slane %v1809_v0, 4  ;;  %v1793_v19 = vadd.f32 %v1792_v10, %v1791_v63 }
 0x23e   :  { %v1819_v18 = vrot.slane %v1818_v7, 4  ;;  %v1802_v21 = vadd.f32 %v1801_v17, %v1800_v6 }
 0x23f   :  { %v1811_v20 = vadd.f32 %v1810_v12, %v1809_v0  ;;  %v1794_v23 = vrot.slane %v1793_v19, 2 }
 0x240   :  { %v1820_v22 = vadd.f32 %v1819_v18, %v1818_v7  ;;  %v1803_v25 = vrot.slane %v1802_v21, 2 }
 0x241   :  { %v1812_v24 = vrot.slane %v1811_v20, 2  ;;  %v1795_v26 = vadd.f32 %v1794_v23, %v1793_v19 }
 0x242   :  { %v1821_v11 = vrot.slane %v1820_v22, 2  ;;  %v1804_v28 = vadd.f32 %v1803_v25, %v1802_v21 }
 0x243   :  { %v1813_v27 = vadd.f32 %v1812_v24, %v1811_v20  ;;  %v1796_v30 = vrot.slane %v1795_v26, 1 }
 0x244   :  { %v1822_v29 = vadd.f32 %v1821_v11, %v1820_v22  ;;  %v1805_v32 = vrot.slane %v1804_v28, 1 }
 0x245   :  { %v1814_v31 = vrot.slane %v1813_v27, 1  ;;  %v1797_v34 = vadd.f32 %v1796_v30, %v1795_v26 }
 0x246   :  { %v1823_v33 = vrot.slane %v1822_v29, 1  ;;  %v1806_v36 = vadd.f32 %v1805_v32, %v1804_v28 }
 0x247   :  { %v1815_v35 = vadd.f32 %v1814_v31, %v1813_v27 }
 0x248   :  { %v1824_v37 = vadd.f32 %v1823_v33, %v1822_v29 }
 0x249   :  { %v1825_v38 = vadd.f32 %v1815_v35, %v1797_v34 }
 0x24a   :  { %v1826_v39 = vadd.f32 %v1824_v37, %v1806_v36 }
 0x24c   :  { %1891 = vmatprep.mubr.f32.mxu0 %v1826_v39 }
 0x24d   :  { %1892 = vmatmul.mubr.f32.vlgmr.msra.gmra.mrb[16].mxu0 %v1825_v38 }
 0x24e   :  { %1967 = vmatprep.mubr.f32.mxu0 %v2839_v16  ;;  %2540 = vmatpush1.msk.msra.mxu0 %vm3197_vm2, %v2841_v43 }
 0x320   :  { %v2625_v45 = vpop.f32.mrb[16].mxu0 }
 0x321   :  { %v2626_v46 = vpop.f32.mrb[17].mxu0 }
 0x322   :  { %v2627_v4 = vadd.f32 %v2626_v46, %v2625_v45 }
 0x324   :  { %v1898_v3 = vmul.f32 0.00048828125, %v2627_v4 }
 0x326   :  { %2541 = vmatmul.mubr.msk.f32.vlgmr.msra.gmra.mrb[18].mxu0 %vm1899_vm3, %v1898_v3 }
 0x3f9   :  { %v3209_v56 = vpop.f32.mrb[18].mxu0 }
 0x3fa   :  { %v1977_v13 = vrot.slane %v3209_v56, %v3207_v54  ;;  %v3213_v58 = vpop.f32.mrb[19].mxu0 }
 0x3fb   :  { %v1981_v15 = vrot.slane %v3213_v58, %v3207_v54 }
 0x3fc   :  { %v1982_v9 = vsub.f32 %v3143_v47, %v1977_v13  ;;  %v1984_v60 = vsub.f32 %v3151_v51, %v1977_v13  ;;  %v1986_v63 = vsub.f32 %v3167_v57, %v1977_v13  ;;  %v1988_v0 = vsub.f32 %v3179_v61, %v1977_v13 }
 0x3fd   :  { %v1983_v6 = vsub.f32 %v3147_v49, %v1981_v15  ;;  %v1985_v7 = vsub.f32 %v3159_v55, %v1981_v15  ;;  %v1987_v10 = vsub.f32 %v3173_v59, %v1981_v15  ;;  %v1989_v12 = vsub.f32 %v3185_v1, %v1981_v15 }
 0x3fe   :  { %v2017_v17 = vsub.f32 %v3149_v50, %v1981_v15  ;;  %v2019_v18 = vsub.f32 %v3161_v53, %v1981_v15  ;;  %v2021_v19 = vsub.f32 %v3175_v8, %v1981_v15  ;;  %v2023_v20 = vsub.f32 %v3187_v5, %v1981_v15 }
 0x3ff   :  { %v1991_v21 = vmul.f32 %v1983_v6, %v1983_v6  ;;  %v1993_v22 = vmul.f32 %v1985_v7, %v1985_v7  ;;  %v1995_v23 = vmul.f32 %v1987_v10, %v1987_v10  ;;  %v1997_v24 = vmul.f32 %v1989_v12, %v1989_v12 }
 0x400   :  { %v2025_v25 = vmul.f32 %v2017_v17, %v2017_v17  ;;  %v2027_v11 = vmul.f32 %v2019_v18, %v2019_v18  ;;  %v2029_v27 = vmul.f32 %v2021_v19, %v2021_v19  ;;  %v1990_v28 = vmul.f32 %v1982_v9, %v1982_v9 }
 0x401   :  { %v2007_v26 = vadd.f32 %v1993_v22, %v1991_v21  ;;  %v1992_v29 = vmul.f32 %v1984_v60, %v1984_v60  ;;  %v1994_v31 = vmul.f32 %v1986_v63, %v1986_v63  ;;  %v2016_v32 = vsub.f32 %v3145_v48, %v1977_v13 }
 0x402   :  { %v2041_v30 = vadd.f32 %v2027_v11, %v2025_v25  ;;  %v2018_v33 = vsub.f32 %v3153_v52, %v1977_v13  ;;  %v2020_v36 = vsub.f32 %v3169_v14, %v1977_v13  ;;  %v2022_v37 = vsub.f32 %v3181_v62, %v1977_v13 }
 0x403   :  { %v2008_v34 = vadd.f32 %v2007_v26, %v1995_v23  ;;  %v1998_v35 = vadd.f32 %v1992_v29, %v1990_v28  ;;  %v2031_v38 = vmul.f32 %v2023_v20, %v2023_v20  ;;  %v2024_v40 = vmul.f32 %v2016_v32, %v2016_v32 }
 0x404   :  { %v2042_v39 = vadd.f32 %v2041_v30, %v2029_v27  ;;  %v2026_v41 = vmul.f32 %v2018_v33, %v2018_v33  ;;  %v1996_v45 = vmul.f32 %v1988_v0, %v1988_v0  ;;  %v2028_v3 = vmul.f32 %v2020_v36, %v2020_v36 }
 0x405   :  { %v2009_v42 = vadd.f32 %v2008_v34, %v1997_v24  ;;  %v1999_v46 = vadd.f32 %v1998_v35, %v1994_v31  ;;  %v2030_v6 = vmul.f32 %v2022_v37, %v2022_v37 }
 0x406   :  { %v2043_v4 = vadd.f32 %v2042_v39, %v2031_v38  ;;  %v2032_v15 = vadd.f32 %v2026_v41, %v2024_v40 }
 0x407   :  { %v2010_v9 = vrot.slane %v2009_v42, 4  ;;  %v2000_v60 = vadd.f32 %v1999_v46, %v1996_v45 }
 0x408   :  { %v2044_v63 = vrot.slane %v2043_v4, 4  ;;  %v2033_v7 = vadd.f32 %v2032_v15, %v2028_v3 }
 0x409   :  { %v2011_v10 = vadd.f32 %v2010_v9, %v2009_v42  ;;  %v2001_v12 = vrot.slane %v2000_v60, 4 }
 0x40a   :  { %v2045_v17 = vadd.f32 %v2044_v63, %v2043_v4  ;;  %v2034_v18 = vadd.f32 %v2033_v7, %v2030_v6  ;;  %v2842_v4 = vmov 1966171168   ;;  %v1282_v63 = vld [vmem:[#allocation4] sm:$0x3]  ;;  %v2225_v7 = vsub.s32 1, %v2913_v2 }
 0x40b   :  { %v2012_v13 = vrot.slane %v2011_v10, 2  ;;  %v2002_v19 = vadd.f32 %v2001_v12, %v2000_v60  ;;  %v2203_v3 = vunpack.c.l.s4 %v2842_v4 }
 0x40c   :  { %v2046_v20 = vrot.slane %v2045_v17, 2  ;;  %v2035_v21 = vrot.slane %v2034_v18, 4 }
 0x40d   :  { %v2013_v22 = vadd.f32 %v2012_v13, %v2011_v10  ;;  %v2003_v23 = vrot.slane %v2002_v19, 2  ;;  %v2204_v15 = vunpack.c.0.s8 %v2203_v3 }
 0x40e   :  { %v2047_v0 = vadd.f32 %v2046_v20, %v2045_v17  ;;  %v2036_v24 = vadd.f32 %v2035_v21, %v2034_v18 }
 0x40f   :  { %v2014_v25 = vrot.slane %v2013_v22, 1  ;;  %v2004_v11 = vadd.f32 %v2003_v23, %v2002_v19 }
 0x410   :  { %v2048_v26 = vrot.slane %v2047_v0, 1  ;;  %v2037_v27 = vrot.slane %v2036_v24, 2 }
 0x411   :  { %v2015_v28 = vadd.f32 %v2014_v25, %v2013_v22  ;;  %v2005_v29 = vrot.slane %v2004_v11, 1 }
 0x412   :  { %v2049_v30 = vadd.f32 %v2048_v26, %v2047_v0  ;;  %v2038_v31 = vadd.f32 %v2037_v27, %v2036_v24 }
 0x413   :  { %v2006_v33 = vadd.f32 %v2005_v29, %v2004_v11 }
 0x414   :  { %v2051_v32 = vadd.f32 %v2049_v30, %v2015_v28  ;;  %v2039_v34 = vrot.slane %v2038_v31, 1 }
 0x416   :  { %2116 = vmatprep.mubr.f32.mxu1 %v2051_v32  ;;  %v2040_v35 = vadd.f32 %v2039_v34, %v2038_v31 }
 0x418   :  { %v2050_v36 = vadd.f32 %v2040_v35, %v2006_v33 }
 0x41a   :  { %2117 = vmatmul.mubr.f32.vlgmr.msra.gmra.mrb[16].mxu1 %v2050_v36 }
 0x41b   :  { %2575 = vmatpush1.msk.msra.mxu1 %vm3197_vm2, %v2841_v43  ;;  %2190 = vmatprep.mubr.f32.mxu1 %v2839_v16  ;;  %v2207_v43 = vsub.s32 %v2204_v15, %v2913_v2 }
 0x4ed   :  { %v2660_v37 = vpop.f32.mrb[16].mxu1 }
 0x4ee   :  { %v2661_v38 = vpop.f32.mrb[17].mxu1 }
 0x4ef   :  { %v2662_v39 = vadd.f32 %v2661_v38, %v2660_v37 }
 0x4f1   :  { %v2122_v40 = vmul.f32 0.00048828125, %v2662_v39 }
 0x4f3   :  { %2576 = vmatmul.mubr.msk.f32.vlgmr.msra.gmra.mrb[18].mxu1 %vm1899_vm3, %v2122_v40 }
 0x5c6   :  { %v2192_v41 = vpop.f32.mrb[18].mxu1 }
 0x5c7   :  { %v2193_v42 = vadd.f32 1e-05, %v2192_v41  ;;  %v2194_v45 = vpop.f32.mrb[19].mxu1 }
 0x5c8   :  { %v2195_v46 = vadd.f32 1e-05, %v2194_v45 }
 0x5c9   :  { %2759 = vrsqrt.f32 %v2193_v42 }
 0x5ca   :  { %2761 = vrsqrt.f32 %v2195_v46 }
 0x5d3   :  { %v2760_v9 = vpop.eup %2759 }
 0x5d4   :  { %v2762_v44 = vpop.eup %2761 }
 0x5d5   :  { %v2201_v16 = vcombine.low %v2760_v9, %v2762_v44 }
 0x5d7   :  { %v2208_v60 = vrot.slane %v2201_v16, %v2207_v43 }
 0x5d9   :  { %v2215_v6 = vrot.slane %v2208_v60, %v2207_v43 }
 0x5db   :  { %v2217_v10 = vmul.f32 %v2215_v6, %v1282_v63 }
 0x5dd   :  { %v2222_v12 = vrot.slane %v2217_v10, %v3207_v54  ;;  %v2226_v17 = vrot.slane %v2217_v10, %v2225_v7 }
 0x5df   :  { %v2229_v18 = vmul.f32 %v2222_v12, %v3209_v56  ;;  %v2230_v13 = vmul.f32 %v2226_v17, %v3213_v58  ;;  %v2250_v19 = vmul.f32 %v2222_v12, %v3143_v47  ;;  %v2251_v20 = vmul.f32 %v2226_v17, %v3147_v49 }
 0x5e0   :  { %v2252_v21 = vmul.f32 %v2222_v12, %v3151_v51  ;;  %v2253_v22 = vmul.f32 %v2226_v17, %v3159_v55  ;;  %v2254_v23 = vmul.f32 %v2222_v12, %v3167_v57  ;;  %v2255_v2 = vmul.f32 %v2226_v17, %v3173_v59 }
 0x5e1   :  { %v2233_v0 = vcombine.low %v2229_v18, %v2230_v13  ;;  %v2256_v24 = vmul.f32 %v2222_v12, %v3179_v61  ;;  %v2257_v25 = vmul.f32 %v2226_v17, %v3185_v1  ;;  %v2313_v56 = vmul.f32 %v2222_v12, %v3145_v48  ;;  %v1283_v61 = vld [vmem:[#allocation6] sm:$0x3] }
 0x5e2   :  { %v2314_v58 = vmul.f32 %v2226_v17, %v3149_v50  ;;  %v2315_v47 = vmul.f32 %v2222_v12, %v3153_v52  ;;  %v2316_v49 = vmul.f32 %v2226_v17, %v3161_v53  ;;  %v2317_v51 = vmul.f32 %v2222_v12, %v3169_v14 }
 0x5e3   :  { %v2240_v55 = vrot.slane %v2233_v0, %v2207_v43  ;;  %v2318_v57 = vmul.f32 %v2226_v17, %v3175_v8  ;;  %v2319_v59 = vmul.f32 %v2222_v12, %v3181_v62  ;;  %v2320_v11 = vmul.f32 %v2226_v17, %v3187_v5 }
 0x5e5   :  { %v2247_v26 = vrot.slane %v2240_v55, %v2207_v43 }
 0x5e7   :  { %v2249_v1 = vsub.f32 %v1283_v61, %v2247_v26 }
 0x5e9   :  { %v2262_v48 = vrot.slane %v2249_v1, %v3207_v54  ;;  %v2266_v27 = vrot.slane %v2249_v1, %v2225_v7 }
 0x5eb   :  { %v2269_v50 = vadd.f32 %v2262_v48, %v2250_v19  ;;  %v2270_v28 = vadd.f32 %v2266_v27, %v2251_v20  ;;  %v2271_v52 = vadd.f32 %v2262_v48, %v2252_v21  ;;  %v2272_v29 = vadd.f32 %v2266_v27, %v2253_v22 }
 0x5ec   :  { %v2273_v53 = vadd.f32 %v2262_v48, %v2254_v23  ;;  %v2274_v30 = vadd.f32 %v2266_v27, %v2255_v2  ;;  %v2275_v14 = vadd.f32 %v2262_v48, %v2256_v24  ;;  %v2276_v31 = vadd.f32 %v2266_v27, %v2257_v25 }
 0x5ed   :  { %v2277_v32 = vmax.f32 %v2269_v50, 0.0  ;;  %v2278_v8 = vmax.f32 %v2270_v28, 0.0  ;;  %v2279_v33 = vmax.f32 %v2271_v52, 0.0  ;;  %v2280_v62 = vmax.f32 %v2272_v29, 0.0 }
 0x5ee   :  { %v2281_v34 = vmax.f32 %v2273_v53, 0.0  ;;  %v2282_v5 = vmax.f32 %v2274_v30, 0.0  ;;  %v2283_v35 = vmax.f32 %v2275_v14, 0.0  ;;  %v2284_v36 = vmax.f32 %v2276_v31, 0.0 }
 0x5ef   :  { %v2585_v37 = vpack.c.bf16 %v2278_v8, %v2277_v32  ;;  %v2586_v38 = vpack.c.bf16 %v2280_v62, %v2279_v33  ;;  %v2321_v54 = vadd.f32 %v2313_v56, %v2262_v48  ;;  %v2322_v39 = vadd.f32 %v2314_v58, %v2266_v27 }
 0x5f0   :  { %v2587_v40 = vpack.c.bf16 %v2282_v5, %v2281_v34  ;;  %v2588_v41 = vpack.c.bf16 %v2284_v36, %v2283_v35  ;;  %v2323_v42 = vadd.f32 %v2315_v47, %v2262_v48  ;;  %v2324_v45 = vadd.f32 %v2316_v49, %v2266_v27 }
 0x5f1   :  { %2309 = vst [vmem:[%s3288_s4] sm:$0xff] %v2585_v37  ;;  %2310 = vst [vmem:[%s3288_s4 + $0x10] sm:$0xff] %v2586_v38  ;;  %v2325_v46 = vadd.f32 %v2317_v51, %v2262_v48  ;;  %v2326_v4 = vadd.f32 %v2318_v57, %v2266_v27  ;;  %v2327_v3 = vadd.f32 %v2319_v59, %v2262_v48  ;;  %v2329_v9 = vmax.f32 %v2321_v54, 0.0 }
 0x5f2   :  { %v2328_v15 = vadd.f32 %v2320_v11, %v2266_v27  ;;  %2311 = vst [vmem:[%s3288_s4 + $0x20] sm:$0xff] %v2587_v40  ;;  %2312 = vst [vmem:[%s3288_s4 + $0x30] sm:$0xff] %v2588_v41  ;;  %v2330_v43 = vmax.f32 %v2322_v39, 0.0  ;;  %v2331_v44 = vmax.f32 %v2323_v42, 0.0  ;;  %v2332_v16 = vmax.f32 %v2324_v45, 0.0 }
 0x5f3   :  { %v2333_v60 = vmax.f32 %v2325_v46, 0.0  ;;  %v2334_v63 = vmax.f32 %v2326_v4, 0.0  ;;  %v2335_v6 = vmax.f32 %v2327_v3, 0.0 }
 0x5f4   :  { %v2336_v7 = vmax.f32 %v2328_v15, 0.0  ;;  %v2589_v10 = vpack.c.bf16 %v2330_v43, %v2329_v9  ;;  %v2590_v12 = vpack.c.bf16 %v2332_v16, %v2331_v44 }
 0x5f5   :  { %v2591_v17 = vpack.c.bf16 %v2334_v63, %v2333_v60 }
 0x5f6   :  { %v2592_v18 = vpack.c.bf16 %v2336_v7, %v2335_v6  ;;  %2361 = vst [vmem:[%s3288_s4 + $0x8] sm:$0xff] %v2589_v10  ;;  %2362 = vst [vmem:[%s3288_s4 + $0x18] sm:$0xff] %v2590_v12 }
 0x5f7   :  { %2363 = vst [vmem:[%s3288_s4 + $0x28] sm:$0xff] %v2591_v17 }
 0x5f8   :  { %2364 = vst [vmem:[%s3288_s4 + $0x38] sm:$0xff] %v2592_v18 }
 0x5f9   :  { %2369 = vsyncpa [#allocation3], 1 }
 0x5fa   :  { %2370 = vsyncpa [#allocation5], 1 }

// kernel: generator_forward.5
= control target key start
LH: loop header
LB: loop body
LE: loop exit
PB: predicated region body
PF: predicated region fallthrough
CT: control target
= control target key end

     0   :  { %9 = vsyncpa [#allocation3], 0  ;;  %s7863_s0 = inlined_call_operand.vmem [shape: bf16[2,16], index: 0, kind: input, shape index: {}]   ;;  %s7864_s1 = inlined_call_operand.hbm [shape: bf16[16,1024], index: 1, kind: input, shape index: {}]   ;;  %s7865_s2 = inlined_call_operand.hbm [shape: f32[1,1024], index: 2, kind: input, shape index: {}]   ;;  %s7866_s3 = inlined_call_operand.hbm [shape: f32[1,1024], index: 3, kind: input, shape index: {}]   ;;  %s7867_s4 = inlined_call_operand.vmem [shape: bf16[2,1024], index: 4, kind: output, shape index: {}]  }
   0x1   :  { %10 = vsyncpa [#allocation5], 0  ;;  %s5207_s15 = smov [#allocation4]   ;;  %s5208_s17 = smov [#allocation2]  }
   0x2   :  { %s31_s16 = sshll.u32 %s5207_s15, 4  ;;  %s18_s18 = sshll.u32 %s5208_s17, 4  ;;  %s32_s16 = int_to_ptr.vmem [resolvable:$true] %s31_s16  ;;  %s5241_s18 = int_to_ptr.vmem [resolvable:$true] %s18_s18 }
   0x3   :  { %s5137_s21 = scalar_lea.hbm %s7865_s2, 128 }
   0x4   :  { %p5138_p0 = scmp.ne.s32.totalorder %s7865_s2, %s5137_s21  ;;  %p5141_p1 = scmp.lt.u32.totalorder %s5137_s21, %s7865_s2 }
   0x6   :  { %p5143_p2 = pnand %p5141_p1, %p5138_p0 }
   0x8   :  { %5146 = shalt.err (!%p5143_p2)
}
   0x9   :  { %s5147_s26 = scalar_lea.vmem %s32_s16, 128  ;;  %p5152_p4 = scmp.lt.s32.totalorder %s32_s16, %s32_s16 }
   0xa   :  { %p5148_p3 = scmp.ne.s32.totalorder %s32_s16, %s5147_s26  ;;  %p5153_p5 = scmp.lt.s32.totalorder %s5147_s26, %s5147_s26 }
   0xc   :  { %p5154_p6 = por %p5153_p5, %p5152_p4 }
   0xe   :  { %p5155_p7 = pnand %p5154_p6, %p5148_p3 }
  0x10   :  { %5158 = shalt.err (!%p5155_p7)
}
  0x11   :  { %34 = dma.hbm_to_vmem [thread:$0]  %s7865_s2, 128, %s32_s16, [#allocation5]  }
  0x12   :  { %s5159_s5 = scalar_lea.hbm %s7864_s1, 1024 }
  0x13   :  { %p5160_p8 = scmp.ne.s32.totalorder %s7864_s1, %s5159_s5  ;;  %p5163_p9 = scmp.lt.u32.totalorder %s5159_s5, %s7864_s1 }
  0x15   :  { %p5165_p10 = pnand %p5163_p9, %p5160_p8 }
  0x17   :  { %5168 = shalt.err (!%p5165_p10)
}
  0x18   :  { %s5169_s10 = scalar_lea.vmem %s5241_s18, 1024  ;;  %p5174_p12 = scmp.lt.s32.totalorder %s5241_s18, %s5241_s18 }
  0x19   :  { %p5170_p11 = scmp.ne.s32.totalorder %s5241_s18, %s5169_s10  ;;  %p5175_p13 = scmp.lt.s32.totalorder %s5169_s10, %s5169_s10 }
  0x1b   :  { %p5176_p0 = por %p5175_p13, %p5174_p12 }
  0x1d   :  { %p5177_p1 = pnand %p5176_p0, %p5170_p11 }
  0x1f   :  { %5180 = shalt.err (!%p5177_p1)
}
  0x20   :  { %s5209_s2 = smov 512   ;;  %s5210_s11 = smov 32  }
  0x21   :  { %24 = dma.hbm_to_vmem [thread:$0]  %s7864_s1, 1024, %s5241_s18, [#allocation3], %s5209_s2, %s5209_s2, %s5210_s11  }
  0x22   :  { %s5211_s14 = smov [#allocation6]   ;;  %s5181_s19 = scalar_lea.hbm %s7866_s3, 128 }
  0x23   :  { %s41_s15 = sshll.u32 %s5211_s14, 4  ;;  %p5182_p2 = scmp.ne.s32.totalorder %s7866_s3, %s5181_s19  ;;  %s42_s15 = int_to_ptr.vmem [resolvable:$true] %s41_s15 }
  0x24   :  { %p5185_p3 = scmp.lt.u32.totalorder %s5181_s19, %s7866_s3 }
  0x26   :  { %p5187_p4 = pnand %p5185_p3, %p5182_p2 }
  0x28   :  { %5190 = shalt.err (!%p5187_p4)
}
  0x29   :  { %s5191_s24 = scalar_lea.vmem %s42_s15, 128  ;;  %p5196_p6 = scmp.lt.s32.totalorder %s42_s15, %s42_s15 }
  0x2a   :  { %p5192_p5 = scmp.ne.s32.totalorder %s42_s15, %s5191_s24  ;;  %p5197_p7 = scmp.lt.s32.totalorder %s5191_s24, %s5191_s24 }
  0x2c   :  { %p5198_p8 = por %p5197_p7, %p5196_p6 }
  0x2e   :  { %p5199_p9 = pnand %p5198_p8, %p5192_p5 }
  0x30   :  { %5202 = shalt.err (!%p5199_p9)
}
  0x31   :  { %44 = dma.hbm_to_vmem [thread:$0]  %s7866_s3, 128, %s42_s15, [#allocation5]  }
  0x32   :  { %5203 = dma.done.wait [#allocation3], 1024  }
  0x33   :  { %5204 = vsyncadd [#allocation3], 4294966272 }
  0x34   :  { %5205 = dma.done.wait [#allocation5], 256  }
  0x35   :  { %5206 = vsyncadd [#allocation5], 4294967040  ;;  %v274_v0 = vlaneseq  ;;  %v5212_v1 = vmov 0   ;;  %vm7868_vm0 = vcmask 130048   ;;  %v56_v16 = vld [vmem:[#allocation2] sm:$0xff]  ;;  %v57_v18 = vld [vmem:[#allocation2 + $0x8] sm:$0xff] }
  0x36   :  { %140 = vmatprep.mubr.bf16.mxu0 %v5212_v1  ;;  %181 = vmatprep.mubr.bf16.mxu1 %v5212_v1  ;;  %v60_v17 = vld [vmem:[#allocation2 + $0x20] sm:$0xff]  ;;  %v61_v23 = vld [vmem:[#allocation2 + $0x28] sm:$0xff]  ;;  %v58_v25 = vld [vmem:[#allocation2 + $0x10] sm:$0xff]  ;;  %v8238_v26 = vmov 0  ;;  %v8241_v27 = vmov 0  ;;  %v8244_v28 = vmov 0 }
  0x37   :  { %v5286_v2 = vshrl.u32 %v274_v0, 7  ;;  %v5288_v3 = vand.u32 127, %v274_v0  ;;  %v4041_v22 = vcombine.high %v56_v16, %v60_v17  ;;  %v4040_v24 = vcombine.low %v56_v16, %v60_v17  ;;  %v62_v31 = vld [vmem:[#allocation2 + $0x30] sm:$0xff]  ;;  %v59_v32 = vld [vmem:[#allocation2 + $0x18] sm:$0xff]  ;;  %v5329_v40 = vld [vmem:[%s7863_s0] sm:$0x1] }
  0x38   :  { %v4043_v29 = vcombine.high %v57_v18, %v61_v23  ;;  %v4042_v30 = vcombine.low %v57_v18, %v61_v23  ;;  %v63_v33 = vld [vmem:[#allocation2 + $0x38] sm:$0xff]  ;;  %v8247_v34 = vmov 0  ;;  %v8250_v35 = vmov 0 }
  0x39   :  { %8237 = vst [vmem:[#allocation9_spill] sm:$0xff] %v5286_v2  ;;  %v291_v4 = vadd.s32 128, %v5286_v2  ;;  %v292_v5 = vadd.s32 136, %v5286_v2  ;;  %v323_v6 = vadd.s32 384, %v5286_v2  ;;  %v324_v7 = vadd.s32 392, %v5286_v2  ;;  %108 = vmatprep.subr.bf16.mxu0 %v4041_v22 }
  0x3a   :  { %v5295_v8 = vadd.s32 8, %v5286_v2  ;;  %v409_v9 = vand.u32 63, %v5286_v2  ;;  %v307_v10 = vadd.s32 256, %v5286_v2  ;;  %v308_v11 = vadd.s32 264, %v5286_v2  ;;  %149 = vmatprep.subr.bf16.mxu1 %v4043_v29  ;;  %109 = vmatpush1.bf16.msra.mxu0 %v4040_v24 }
  0x3b   :  { %v521_v12 = vand.u32 63, %v291_v4  ;;  %v528_v13 = vand.u32 63, %v292_v5  ;;  %v745_v14 = vand.u32 63, %v323_v6  ;;  %v752_v15 = vand.u32 63, %v324_v7  ;;  %150 = vmatpush1.bf16.msra.mxu1 %v4042_v30 }
  0x3c   :  { %v416_v19 = vand.u32 63, %v5295_v8  ;;  %v633_v20 = vand.u32 63, %v307_v10  ;;  %v640_v21 = vand.u32 63, %v308_v11  ;;  %vm5312_vm3 = vcmp.eq.s32.totalorder %v409_v9, %v5288_v3 }
  0x3d   :  { %vm5302_vm1 = vcmp.eq.s32.totalorder %v521_v12, %v5288_v3  ;;  %vm5307_vm2 = vcmp.eq.s32.totalorder %v528_v13, %v5288_v3  ;;  %v8245_v28 = vsel %vm5312_vm3, 4294967295, %v8244_v28  ;;  %vm5317_vm4 = vcmp.eq.s32.totalorder %v745_v14, %v5288_v3  ;;  %4048 = vmatmul.mubr.msk.bf16.vlgmr.msra.gmra.mrb[0].mxu0 %vm7868_vm0, %v5329_v40 }
  0x3e   :  { %v8239_v26 = vsel %vm5302_vm1, 4294967295, %v8238_v26  ;;  %v8242_v27 = vsel %vm5307_vm2, 4294967295, %v8241_v27  ;;  %8246 = vst [vmem:[#allocation12_spill] sm:$0xff] %v8245_v28  ;;  %v8248_v34 = vsel %vm5317_vm4, 4294967295, %v8247_v34  ;;  %vm5322_vm5 = vcmp.eq.s32.totalorder %v752_v15, %v5288_v3  ;;  %vm7869_vm9 = vmpackc.low %vm5307_vm2, %vm5302_vm1  ;;  %4049 = vmatmul.mubr.msk.bf16.vlgmr.msra.gmra.mrb[0].mxu1 %vm7868_vm0, %v5329_v40  ;;  %222 = vmatprep.mubr.bf16.mxu0 %v5212_v1 }
  0x3f   :  { %8240 = vst [vmem:[#allocation10_spill] sm:$0xff] %v8239_v26  ;;  %8243 = vst [vmem:[#allocation11_spill] sm:$0xff] %v8242_v27  ;;  %v8251_v35 = vsel %vm5322_vm5, 4294967295, %v8250_v35  ;;  %v4044_v36 = vcombine.low %v58_v25, %v62_v31  ;;  %v4045_v37 = vcombine.high %v58_v25, %v62_v31  ;;  %v4046_v38 = vcombine.low %v59_v32, %v63_v33 }
  0x40   :  { %8249 = vst [vmem:[#allocation13_spill] sm:$0xff] %v8248_v34  ;;  %8252 = vst [vmem:[#allocation14_spill] sm:$0xff] %v8251_v35  ;;  %v4047_v39 = vcombine.high %v59_v32, %v63_v33  ;;  %vm5332_vm6 = vcmp.eq.s32.totalorder %v416_v19, %v5288_v3  ;;  %v8253_v41 = vmov 0  ;;  %vm5337_vm7 = vcmp.eq.s32.totalorder %v633_v20, %v5288_v3  ;;  %263 = vmatprep.mubr.bf16.mxu1 %v5212_v1 }
  0x41   :  { %v8254_v41 = vsel %vm5332_vm6, 4294967295, %v8253_v41  ;;  %v8256_v42 = vmov 0  ;;  %vm5342_vm8 = vcmp.eq.s32.totalorder %v640_v21, %v5288_v3  ;;  %v8259_v43 = vmov 0  ;;  %190 = vmatprep.subr.bf16.mxu0 %v4045_v37 }
  0x42   :  { %8255 = vst [vmem:[#allocation15_spill] sm:$0xff] %v8254_v41  ;;  %v8257_v42 = vsel %vm5337_vm7, 4294967295, %v8256_v42  ;;  %v8260_v43 = vsel %vm5342_vm8, 4294967295, %v8259_v43  ;;  %v293_v44 = vadd.s32 144, %v5286_v2  ;;  %v294_v45 = vadd.s32 152, %v5286_v2  ;;  %231 = vmatprep.subr.bf16.mxu1 %v4047_v39  ;;  %191 = vmatpush1.bf16.msra.mxu0 %v4044_v36 }
  0x43   :  { %8258 = vst [vmem:[#allocation16_spill] sm:$0xff] %v8257_v42  ;;  %8261 = vst [vmem:[#allocation17_spill] sm:$0xff] %v8260_v43  ;;  %v325_v46 = vadd.s32 400, %v5286_v2  ;;  %v326_v47 = vadd.s32 408, %v5286_v2  ;;  %v5351_v48 = vadd.s32 16, %v5286_v2  ;;  %v5354_v50 = vadd.s32 24, %v5286_v2  ;;  %232 = vmatpush1.bf16.msra.mxu1 %v4046_v38 }
  0x44   :  { %v535_v49 = vand.u32 63, %v293_v44  ;;  %v309_v51 = vadd.s32 272, %v5286_v2  ;;  %v310_v52 = vadd.s32 280, %v5286_v2  ;;  %v542_v53 = vand.u32 63, %v294_v45 }
  0x45   :  { %v759_v54 = vand.u32 63, %v325_v46  ;;  %v766_v55 = vand.u32 63, %v326_v47  ;;  %v423_v56 = vand.u32 63, %v5351_v48  ;;  %v8262_v57 = vmov 0 }
  0x46   :  { %vm5372_vm11 = vcmp.eq.s32.totalorder %v535_v49, %v5288_v3  ;;  %v430_v58 = vand.u32 63, %v5354_v50  ;;  %v647_v59 = vand.u32 63, %v309_v51  ;;  %v654_v60 = vand.u32 63, %v310_v52 }
  0x47   :  { %v8263_v57 = vsel %vm5372_vm11, 4294967295, %v8262_v57  ;;  %vm5379_vm12 = vcmp.eq.s32.totalorder %v542_v53, %v5288_v3  ;;  %v8265_v61 = vmov 0  ;;  %vm5384_vm13 = vcmp.eq.s32.totalorder %v759_v54, %v5288_v3 }
  0x48   :  { %8264 = vst [vmem:[#allocation18_spill] sm:$0xff] %v8263_v57  ;;  %v8266_v61 = vsel %vm5379_vm12, 4294967295, %v8265_v61  ;;  %v8268_v62 = vmov 0  ;;  %vm5389_vm14 = vcmp.eq.s32.totalorder %v766_v55, %v5288_v3  ;;  %v8271_v63 = vmov 0 }
  0x49   :  { %8267 = vst [vmem:[#allocation19_spill] sm:$0xff] %v8266_v61  ;;  %v8269_v62 = vsel %vm5384_vm13, 4294967295, %v8268_v62  ;;  %v8272_v63 = vsel %vm5389_vm14, 4294967295, %v8271_v63  ;;  %v295_v0 = vadd.s32 160, %v5286_v2  ;;  %v7914_v4 = vmov 1.0|1.0  }
  0x4a   :  { %8270 = vst [vmem:[#allocation20_spill] sm:$0xff] %v8269_v62  ;;  %8273 = vst [vmem:[#allocation21_spill] sm:$0xff] %v8272_v63  ;;  %4729 = vmatprep.subr.msk.bf16.mxu0 %vm7869_vm9, %v7914_v4  ;;  %vm5402_vm15 = vcmp.eq.s32.totalorder %v423_v56, %v5288_v3  ;;  %v8274_v5 = vmov 0  ;;  %vm5407_vm0 = vcmp.eq.s32.totalorder %v430_v58, %v5288_v3  ;;  %v8277_v6 = vmov 0 }
  0x4b   :  { %v8275_v5 = vsel %vm5402_vm15, 4294967295, %v8274_v5  ;;  %v8278_v6 = vsel %vm5407_vm0, 4294967295, %v8277_v6  ;;  %vm5412_vm10 = vcmp.eq.s32.totalorder %v647_v59, %v5288_v3  ;;  %v8280_v1 = vmov 0  ;;  %vm8283_vm9 = vmpackc.low %vm5322_vm5, %vm5317_vm4 }
  0x4c   :  { %8276 = vst [vmem:[#allocation22_spill] sm:$0xff] %v8275_v5  ;;  %8279 = vst [vmem:[#allocation23_spill] sm:$0xff] %v8278_v6  ;;  %v8281_v1 = vsel %vm5412_vm10, 4294967295, %v8280_v1  ;;  %v296_v7 = vadd.s32 168, %v5286_v2  ;;  %4761 = vmatprep.subr.msk.bf16.mxu1 %vm8283_vm9, %v7914_v4  ;;  %vm5424_vm1 = vcmp.eq.s32.totalorder %v654_v60, %v5288_v3  ;;  %v8284_v9 = vmov 0 }
  0x4d   :  { %8282 = vst [vmem:[#allocation24_spill] sm:$0xff] %v8281_v1  ;;  %v8285_v9 = vsel %vm5424_vm1, 4294967295, %v8284_v9  ;;  %v549_v10 = vand.u32 63, %v295_v0  ;;  %v327_v11 = vadd.s32 416, %v5286_v2  ;;  %v328_v12 = vadd.s32 424, %v5286_v2 }
  0x4e   :  { %8286 = vst [vmem:[#allocation25_spill] sm:$0xff] %v8285_v9  ;;  %v556_v13 = vand.u32 63, %v296_v7  ;;  %v5435_v14 = vadd.s32 32, %v5286_v2  ;;  %v5438_v15 = vadd.s32 40, %v5286_v2  ;;  %v311_v16 = vadd.s32 288, %v5286_v2 }
  0x4f   :  { %vm5446_vm4 = vcmp.eq.s32.totalorder %v549_v10, %v5288_v3  ;;  %v8288_v17 = vmov 0  ;;  %v773_v18 = vand.u32 63, %v327_v11  ;;  %v780_v19 = vand.u32 63, %v328_v12 }
  0x50   :  { %8287 = vst [vmem:[#allocation26_spill] sm:$0xff] %v5438_v15  ;;  %v8289_v17 = vsel %vm5446_vm4, 4294967295, %v8288_v17  ;;  %v312_v20 = vadd.s32 296, %v5286_v2  ;;  %vm5456_vm5 = vcmp.eq.s32.totalorder %v556_v13, %v5288_v3  ;;  %v8291_v21 = vmov 0  ;;  %vm8301_vm4 = vmpackc.low %vm5332_vm6, %vm5312_vm3 }
  0x51   :  { %8290 = vst [vmem:[#allocation27_spill] sm:$0xff] %v8289_v17  ;;  %v8292_v21 = vsel %vm5456_vm5, 4294967295, %v8291_v21  ;;  %v437_v22 = vand.u32 63, %v5435_v14  ;;  %v444_v23 = vand.u32 63, %v5438_v15  ;;  %v661_v24 = vand.u32 63, %v311_v16 }
  0x52   :  { %8293 = vst [vmem:[#allocation28_spill] sm:$0xff] %v8292_v21  ;;  %vm8294_vm9 = vcmask 130048   ;;  %vm5469_vm2 = vcmp.eq.s32.totalorder %v773_v18, %v5288_v3  ;;  %v8295_v25 = vmov 0  ;;  %vm5474_vm5 = vcmp.eq.s32.totalorder %v780_v19, %v5288_v3 }
  0x53   :  { %4050 = vmatmul.mubr.msk.bf16.vlgmr.msra.gmra.mrb[4].mxu0 %vm8294_vm9, %v5329_v40  ;;  %v8296_v25 = vsel %vm5469_vm2, 4294967295, %v8295_v25  ;;  %v8298_v29 = vmov 0  ;;  %v668_v30 = vand.u32 63, %v312_v20  ;;  %v297_v31 = vadd.s32 176, %v5286_v2  ;;  %4051 = vmatmul.mubr.msk.bf16.vlgmr.msra.gmra.mrb[4].mxu1 %vm8294_vm9, %v5329_v40  ;;  %vm8312_vm2 = vmpackc.low %vm5379_vm12, %vm5372_vm11 }
  0x54   :  { %8297 = vst [vmem:[#allocation29_spill] sm:$0xff] %v8296_v25  ;;  %v8299_v29 = vsel %vm5474_vm5, 4294967295, %v8298_v29  ;;  %4731 = vmatpush3.bf16.msk.msra.mxu0 %vm8301_vm4, %v7914_v4  ;;  %vm5492_vm5 = vcmp.eq.s32.totalorder %v437_v22, %v5288_v3  ;;  %v8302_v32 = vmov 0  ;;  %vm5497_vm13 = vcmp.eq.s32.totalorder %v444_v23, %v5288_v3  ;;  %vm8311_vm4 = vmpackc.low %vm5342_vm8, %vm5337_vm7 }
  0x55   :  { %8300 = vst [vmem:[#allocation30_spill] sm:$0xff] %v8299_v29  ;;  %v8303_v32 = vsel %vm5492_vm5, 4294967295, %v8302_v32  ;;  %v8305_v33 = vmov 0  ;;  %vm5502_vm9 = vcmp.eq.s32.totalorder %v661_v24, %v5288_v3  ;;  %v8308_v36 = vmov 0  ;;  %4763 = vmatpush3.bf16.msk.msra.mxu1 %vm8311_vm4, %v7914_v4  ;;  %4733 = vmatprep.subr.msk.bf16.mxu0 %vm8312_vm2, %v7914_v4  ;;  %vm8327_vm12 = vmpackc.low %vm5407_vm0, %vm5402_vm15 }
  0x56   :  { %8304 = vst [vmem:[#allocation31_spill] sm:$0xff] %v8303_v32  ;;  %v8306_v33 = vsel %vm5497_vm13, 4294967295, %v8305_v33  ;;  %v8309_v36 = vsel %vm5502_vm9, 4294967295, %v8308_v36  ;;  %v298_v37 = vadd.s32 184, %v5286_v2  ;;  %vm5524_vm6 = vcmp.eq.s32.totalorder %v668_v30, %v5288_v3 }
  0x57   :  { %8307 = vst [vmem:[#allocation32_spill] sm:$0xff] %v8306_v33  ;;  %8310 = vst [vmem:[#allocation33_spill] sm:$0xff] %v8309_v36  ;;  %v8313_v38 = vmov 0  ;;  %v563_v39 = vand.u32 63, %v297_v31  ;;  %v329_v40 = vadd.s32 432, %v5286_v2  ;;  %v330_v44 = vadd.s32 440, %v5286_v2 }
  0x58   :  { %v8314_v38 = vsel %vm5524_vm6, 4294967295, %v8313_v38  ;;  %vm8316_vm2 = vnez %v8269_v62  ;;  %vm8318_vm11 = vnez %v8289_v17  ;;  %vm8319_vm3 = vnez %v8292_v21  ;;  %4735 = vmatpush3.bf16.msk.msra.mxu0 %vm8327_vm12, %v7914_v4  ;;  %vm8331_vm12 = vmpackc.low %vm5424_vm1, %vm5412_vm10 }
  0x59   :  { %8315 = vst [vmem:[#allocation34_spill] sm:$0xff] %v8314_v38  ;;  %vm8317_vm4 = vmpackc.low %vm5389_vm14, %vm8316_vm2  ;;  %v570_v45 = vand.u32 63, %v298_v37  ;;  %v5541_v46 = vadd.s32 48, %v5286_v2  ;;  %v5544_v47 = vadd.s32 56, %v5286_v2  ;;  %v313_v49 = vadd.s32 304, %v5286_v2 }
  0x5a   :  { %4765 = vmatprep.subr.msk.bf16.mxu1 %vm8317_vm4, %v7914_v4  ;;  %vm8322_vm7 = vnez %v8296_v25  ;;  %vm8323_vm8 = vnez %v8299_v29  ;;  %vm5552_vm4 = vcmp.eq.s32.totalorder %v563_v39, %v5288_v3  ;;  %v8324_v51 = vmov 0  ;;  %vm8332_vm2 = vmpackc.low %vm8319_vm3, %vm8318_vm11 }
  0x5b   :  { %8320 = vst [vmem:[#allocation35_spill] sm:$0xff] %v5541_v46  ;;  %8321 = vst [vmem:[#allocation36_spill] sm:$0xff] %v5544_v47  ;;  %v8325_v51 = vsel %vm5552_vm4, 4294967295, %v8324_v51  ;;  %v787_v52 = vand.u32 63, %v329_v40  ;;  %v794_v53 = vand.u32 63, %v330_v44  ;;  %v314_v54 = vadd.s32 312, %v5286_v2  ;;  %4767 = vmatpush3.bf16.msk.msra.mxu1 %vm8331_vm12, %v7914_v4  ;;  %4737 = vmatprep.subr.msk.bf16.mxu0 %vm8332_vm2, %v7914_v4 }
  0x5c   :  { %8326 = vst [vmem:[#allocation37_spill] sm:$0xff] %v8325_v51  ;;  %vm5568_vm14 = vcmp.eq.s32.totalorder %v570_v45, %v5288_v3  ;;  %v8328_v55 = vmov 0  ;;  %v451_v56 = vand.u32 63, %v5541_v46  ;;  %v458_v58 = vand.u32 63, %v5544_v47  ;;  %vm8339_vm2 = vmpackc.low %vm8323_vm8, %vm8322_vm7 }
  0x5d   :  { %v8329_v55 = vsel %vm5568_vm14, 4294967295, %v8328_v55  ;;  %v675_v59 = vand.u32 63, %v313_v49  ;;  %vm5591_vm0 = vcmp.eq.s32.totalorder %v787_v52, %v5288_v3  ;;  %v8333_v60 = vmov 0  ;;  %4769 = vmatprep.subr.msk.bf16.mxu1 %vm8339_vm2, %v7914_v4  ;;  %vm8352_vm7 = vmpackc.low %vm5497_vm13, %vm5492_vm5 }
  0x5e   :  { %8330 = vst [vmem:[#allocation38_spill] sm:$0xff] %v8329_v55  ;;  %v8334_v60 = vsel %vm5591_vm0, 4294967295, %v8333_v60  ;;  %vm5596_vm10 = vcmp.eq.s32.totalorder %v794_v53, %v5288_v3  ;;  %v8336_v0 = vmov 0  ;;  %v682_v7 = vand.u32 63, %v314_v54  ;;  %4739 = vmatpush3.bf16.msk.msra.mxu0 %vm8352_vm7, %v7914_v4  ;;  %vm8353_vm2 = vmpackc.low %vm5524_vm6, %vm5502_vm9 }
  0x5f   :  { %8335 = vst [vmem:[#allocation39_spill] sm:$0xff] %v8334_v60  ;;  %v8337_v0 = vsel %vm5596_vm10, 4294967295, %v8336_v0  ;;  %v299_v10 = vadd.s32 192, %v5286_v2  ;;  %vm5612_vm15 = vcmp.eq.s32.totalorder %v451_v56, %v5288_v3  ;;  %v8340_v11 = vmov 0  ;;  %4771 = vmatpush3.bf16.msk.msra.mxu1 %vm8353_vm2, %v7914_v4  ;;  %vm8354_vm8 = vmpackc.low %vm5568_vm14, %vm5552_vm4 }
  0x60   :  { %8338 = vst [vmem:[#allocation40_spill] sm:$0xff] %v8337_v0  ;;  %v8341_v11 = vsel %vm5612_vm15, 4294967295, %v8340_v11  ;;  %vm5617_vm11 = vcmp.eq.s32.totalorder %v458_v58, %v5288_v3  ;;  %v8343_v12 = vmov 0  ;;  %vm5622_vm3 = vcmp.eq.s32.totalorder %v675_v59, %v5288_v3  ;;  %4741 = vmatprep.subr.msk.bf16.mxu0 %vm8354_vm8, %v7914_v4  ;;  %vm8358_vm2 = vmpackc.low %vm5596_vm10, %vm5591_vm0 }
  0x61   :  { %8342 = vst [vmem:[#allocation41_spill] sm:$0xff] %v8341_v11  ;;  %v8344_v12 = vsel %vm5617_vm11, 4294967295, %v8343_v12  ;;  %v8346_v13 = vmov 0  ;;  %v300_v16 = vadd.s32 200, %v5286_v2  ;;  %vm5632_vm12 = vcmp.eq.s32.totalorder %v682_v7, %v5288_v3  ;;  %4773 = vmatprep.subr.msk.bf16.mxu1 %vm8358_vm2, %v7914_v4  ;;  %vm8368_vm8 = vmpackc.low %vm5617_vm11, %vm5612_vm15 }
  0x62   :  { %8345 = vst [vmem:[#allocation42_spill] sm:$0xff] %v8344_v12  ;;  %v8347_v13 = vsel %vm5622_vm3, 4294967295, %v8346_v13  ;;  %v8349_v18 = vmov 0  ;;  %v577_v19 = vand.u32 63, %v299_v10  ;;  %v331_v20 = vadd.s32 448, %v5286_v2  ;;  %4743 = vmatpush3.bf16.msk.msra.mxu0 %vm8368_vm8, %v7914_v4  ;;  %vm8369_vm0 = vmpackc.low %vm5632_vm12, %vm5622_vm3 }
  0x63   :  { %8348 = vst [vmem:[#allocation43_spill] sm:$0xff] %v8347_v13  ;;  %v8350_v18 = vsel %vm5632_vm12, 4294967295, %v8349_v18  ;;  %v332_v22 = vadd.s32 456, %v5286_v2  ;;  %v584_v23 = vand.u32 63, %v300_v16  ;;  %v8355_v24 = vmov 0  ;;  %4775 = vmatpush3.bf16.msk.msra.mxu1 %vm8369_vm0, %v7914_v4 }
  0x64   :  { %8351 = vst [vmem:[#allocation44_spill] sm:$0xff] %v8350_v18  ;;  %vm5661_vm5 = vcmp.eq.s32.totalorder %v577_v19, %v5288_v3  ;;  %v801_v30 = vand.u32 63, %v331_v20  ;;  %v8359_v37 = vmov 0  ;;  %v8362_v39 = vmov 0 }
  0x65   :  { %v8356_v24 = vsel %vm5661_vm5, 4294967295, %v8355_v24  ;;  %v808_v31 = vand.u32 63, %v332_v22  ;;  %vm5676_vm7 = vcmp.eq.s32.totalorder %v584_v23, %v5288_v3  ;;  %v8365_v40 = vmov 0 }
  0x66   :  { %8357 = vst [vmem:[#allocation45_spill] sm:$0xff] %v8356_v24  ;;  %v8360_v37 = vsel %vm5676_vm7, 4294967295, %v8359_v37  ;;  %vm5685_vm14 = vcmp.eq.s32.totalorder %v801_v30, %v5288_v3  ;;  %vm8370_vm10 = vmpackc.low %vm5676_vm7, %vm5661_vm5  ;;  %v283_v44 = vadd.s32 64, %v5286_v2  ;;  %v284_v45 = vadd.s32 72, %v5286_v2 }
  0x67   :  { %8361 = vst [vmem:[#allocation46_spill] sm:$0xff] %v8360_v37  ;;  %v8363_v39 = vsel %vm5685_vm14, 4294967295, %v8362_v39  ;;  %vm5690_vm2 = vcmp.eq.s32.totalorder %v808_v31, %v5288_v3  ;;  %4745 = vmatprep.subr.msk.bf16.mxu0 %vm8370_vm10, %v7914_v4  ;;  %v315_v49 = vadd.s32 320, %v5286_v2  ;;  %v316_v52 = vadd.s32 328, %v5286_v2 }
  0x68   :  { %8364 = vst [vmem:[#allocation47_spill] sm:$0xff] %v8363_v39  ;;  %v8366_v40 = vsel %vm5690_vm2, 4294967295, %v8365_v40  ;;  %vm7899_vm4 = vmpackc.low %vm5690_vm2, %vm5685_vm14  ;;  %v465_v53 = vand.u32 63, %v283_v44  ;;  %v472_v54 = vand.u32 63, %v284_v45  ;;  %v301_v59 = vadd.s32 208, %v5286_v2 }
  0x69   :  { %8367 = vst [vmem:[#allocation48_spill] sm:$0xff] %v8366_v40  ;;  %4777 = vmatprep.subr.msk.bf16.mxu1 %vm7899_vm4, %v7914_v4  ;;  %v689_v56 = vand.u32 63, %v315_v49  ;;  %v696_v58 = vand.u32 63, %v316_v52  ;;  %v302_v7 = vadd.s32 216, %v5286_v2  ;;  %v333_v10 = vadd.s32 464, %v5286_v2 }
  0x6a   :  { %v334_v16 = vadd.s32 472, %v5286_v2  ;;  %vm5731_vm0 = vcmp.eq.s32.totalorder %v465_v53, %v5288_v3  ;;  %v8371_v19 = vmov 0  ;;  %vm5736_vm10 = vcmp.eq.s32.totalorder %v472_v54, %v5288_v3 }
  0x6b   :  { %v8372_v19 = vsel %vm5731_vm0, 4294967295, %v8371_v19  ;;  %v8374_v20 = vmov 0  ;;  %vm5741_vm8 = vcmp.eq.s32.totalorder %v689_v56, %v5288_v3  ;;  %v8377_v22 = vmov 0  ;;  %vm7902_vm14 = vmpackc.low %vm5736_vm10, %vm5731_vm0 }
  0x6c   :  { %8373 = vst [vmem:[#allocation49_spill] sm:$0xff] %v8372_v19  ;;  %v8375_v20 = vsel %vm5736_vm10, 4294967295, %v8374_v20  ;;  %v8378_v22 = vsel %vm5741_vm8, 4294967295, %v8377_v22  ;;  %vm5746_vm4 = vcmp.eq.s32.totalorder %v696_v58, %v5288_v3  ;;  %v8380_v23 = vmov 0  ;;  %4747 = vmatpush3.bf16.msk.msra.mxu0 %vm7902_vm14, %v7914_v4 }
  0x6d   :  { %8376 = vst [vmem:[#allocation50_spill] sm:$0xff] %v8375_v20  ;;  %8379 = vst [vmem:[#allocation51_spill] sm:$0xff] %v8378_v22  ;;  %v8381_v23 = vsel %vm5746_vm4, 4294967295, %v8380_v23  ;;  %v591_v30 = vand.u32 63, %v301_v59  ;;  %v598_v31 = vand.u32 63, %v302_v7  ;;  %v815_v44 = vand.u32 63, %v333_v10 }
  0x6e   :  { %8382 = vst [vmem:[#allocation52_spill] sm:$0xff] %v8381_v23  ;;  %vm7905_vm2 = vmpackc.low %vm5746_vm4, %vm5741_vm8  ;;  %v822_v45 = vand.u32 63, %v334_v16  ;;  %v285_v49 = vadd.s32 80, %v5286_v2  ;;  %v286_v52 = vadd.s32 88, %v5286_v2  ;;  %v317_v53 = vadd.s32 336, %v5286_v2 }
  0x6f   :  { %4779 = vmatpush3.bf16.msk.msra.mxu1 %vm7905_vm2, %v7914_v4  ;;  %vm5774_vm14 = vcmp.eq.s32.totalorder %v591_v30, %v5288_v3  ;;  %v8383_v54 = vmov 0  ;;  %vm5779_vm0 = vcmp.eq.s32.totalorder %v598_v31, %v5288_v3  ;;  %v8386_v56 = vmov 0 }
  0x70   :  { %v8384_v54 = vsel %vm5774_vm14, 4294967295, %v8383_v54  ;;  %v8387_v56 = vsel %vm5779_vm0, 4294967295, %v8386_v56  ;;  %vm5784_vm10 = vcmp.eq.s32.totalorder %v815_v44, %v5288_v3  ;;  %v8389_v58 = vmov 0  ;;  %vm7908_vm2 = vmpackc.low %vm5779_vm0, %vm5774_vm14 }
  0x71   :  { %8385 = vst [vmem:[#allocation53_spill] sm:$0xff] %v8384_v54  ;;  %8388 = vst [vmem:[#allocation54_spill] sm:$0xff] %v8387_v56  ;;  %v8390_v58 = vsel %vm5784_vm10, 4294967295, %v8389_v58  ;;  %v318_v59 = vadd.s32 344, %v5286_v2  ;;  %vm5794_vm8 = vcmp.eq.s32.totalorder %v822_v45, %v5288_v3  ;;  %v8392_v7 = vmov 0  ;;  %4749 = vmatprep.subr.msk.bf16.mxu0 %vm7908_vm2, %v7914_v4 }
  0x72   :  { %8391 = vst [vmem:[#allocation55_spill] sm:$0xff] %v8390_v58  ;;  %v8393_v7 = vsel %vm5794_vm8, 4294967295, %v8392_v7  ;;  %v479_v10 = vand.u32 63, %v285_v49  ;;  %v486_v16 = vand.u32 63, %v286_v52  ;;  %v703_v30 = vand.u32 63, %v317_v53  ;;  %vm7912_vm4 = vmpackc.low %vm5794_vm8, %vm5784_vm10 }
  0x73   :  { %8394 = vst [vmem:[#allocation56_spill] sm:$0xff] %v8393_v7  ;;  %v710_v31 = vand.u32 63, %v318_v59  ;;  %v303_v44 = vadd.s32 224, %v5286_v2  ;;  %v304_v45 = vadd.s32 232, %v5286_v2  ;;  %v335_v49 = vadd.s32 480, %v5286_v2  ;;  %4781 = vmatprep.subr.msk.bf16.mxu1 %vm7912_vm4, %v7914_v4 }
  0x74   :  { %vm5818_vm2 = vcmp.eq.s32.totalorder %v479_v10, %v5288_v3  ;;  %v8395_v52 = vmov 0  ;;  %vm5823_vm14 = vcmp.eq.s32.totalorder %v486_v16, %v5288_v3  ;;  %v8398_v53 = vmov 0 }
  0x75   :  { %v8396_v52 = vsel %vm5818_vm2, 4294967295, %v8395_v52  ;;  %v8399_v53 = vsel %vm5823_vm14, 4294967295, %v8398_v53  ;;  %vm5828_vm0 = vcmp.eq.s32.totalorder %v703_v30, %v5288_v3  ;;  %v8401_v59 = vmov 0  ;;  %vm7920_vm4 = vmpackc.low %vm5823_vm14, %vm5818_vm2 }
  0x76   :  { %8397 = vst [vmem:[#allocation57_spill] sm:$0xff] %v8396_v52  ;;  %8400 = vst [vmem:[#allocation58_spill] sm:$0xff] %v8399_v53  ;;  %v8402_v59 = vsel %vm5828_vm0, 4294967295, %v8401_v59  ;;  %v336_v7 = vadd.s32 488, %v5286_v2  ;;  %vm5838_vm10 = vcmp.eq.s32.totalorder %v710_v31, %v5288_v3  ;;  %v8404_v10 = vmov 0 }
  0x77   :  { %8403 = vst [vmem:[#allocation59_spill] sm:$0xff] %v8402_v59  ;;  %v8405_v10 = vsel %vm5838_vm10, 4294967295, %v8404_v10  ;;  %v605_v16 = vand.u32 63, %v303_v44  ;;  %v612_v4 = vand.u32 63, %v304_v45  ;;  %v829_v58 = vand.u32 63, %v335_v49  ;;  %vm7924_vm8 = vmpackc.low %vm5838_vm10, %vm5828_vm0 }
  0x78   :  { %8406 = vst [vmem:[#allocation60_spill] sm:$0xff] %v8405_v10  ;;  %v8407_v54 = vmov 1.0|1.0   ;;  %v836_v30 = vand.u32 63, %v336_v7  ;;  %v287_v31 = vadd.s32 96, %v5286_v2  ;;  %v288_v56 = vadd.s32 104, %v5286_v2 }
  0x79   :  { %4751 = vmatpush3.bf16.msk.msra.mxu0 %vm7920_vm4, %v8407_v54  ;;  %v319_v44 = vadd.s32 352, %v5286_v2  ;;  %4783 = vmatpush3.bf16.msk.msra.mxu1 %vm7924_vm8, %v8407_v54  ;;  %vm5862_vm4 = vcmp.eq.s32.totalorder %v605_v16, %v5288_v3  ;;  %v8408_v45 = vmov 0  ;;  %vm5867_vm2 = vcmp.eq.s32.totalorder %v612_v4, %v5288_v3 }
  0x7a   :  { %v8409_v45 = vsel %vm5862_vm4, 4294967295, %v8408_v45  ;;  %v8411_v7 = vmov 0  ;;  %vm5872_vm14 = vcmp.eq.s32.totalorder %v829_v58, %v5288_v3  ;;  %v8414_v49 = vmov 0  ;;  %vm7930_vm8 = vmpackc.low %vm5867_vm2, %vm5862_vm4 }
  0x7b   :  { %8410 = vst [vmem:[#allocation61_spill] sm:$0xff] %v8409_v45  ;;  %v8412_v7 = vsel %vm5867_vm2, 4294967295, %v8411_v7  ;;  %v8415_v49 = vsel %vm5872_vm14, 4294967295, %v8414_v49  ;;  %v320_v10 = vadd.s32 360, %v5286_v2  ;;  %vm5882_vm0 = vcmp.eq.s32.totalorder %v836_v30, %v5288_v3  ;;  %4753 = vmatprep.subr.msk.bf16.mxu0 %vm7930_vm8, %v8407_v54 }
  0x7c   :  { %8413 = vst [vmem:[#allocation62_spill] sm:$0xff] %v8412_v7  ;;  %8416 = vst [vmem:[#allocation63_spill] sm:$0xff] %v8415_v49  ;;  %v8417_v16 = vmov 0  ;;  %v493_v4 = vand.u32 63, %v287_v31  ;;  %v500_v59 = vand.u32 63, %v288_v56  ;;  %v717_v52 = vand.u32 63, %v319_v44 }
  0x7d   :  { %v8418_v16 = vsel %vm5882_vm0, 4294967295, %v8417_v16  ;;  %vm7934_vm10 = vmpackc.low %vm5882_vm0, %vm5872_vm14  ;;  %v724_v58 = vand.u32 63, %v320_v10  ;;  %v305_v30 = vadd.s32 240, %v5286_v2  ;;  %v306_v53 = vadd.s32 248, %v5286_v2 }
  0x7e   :  { %8419 = vst [vmem:[#allocation64_spill] sm:$0xff] %v8418_v16  ;;  %v337_v56 = vadd.s32 496, %v5286_v2  ;;  %4785 = vmatprep.subr.msk.bf16.mxu1 %vm7934_vm10, %v8407_v54  ;;  %vm5906_vm8 = vcmp.eq.s32.totalorder %v493_v4, %v5288_v3  ;;  %v8420_v31 = vmov 0  ;;  %vm5911_vm4 = vcmp.eq.s32.totalorder %v500_v59, %v5288_v3 }
  0x7f   :  { %v8421_v31 = vsel %vm5906_vm8, 4294967295, %v8420_v31  ;;  %v8423_v10 = vmov 0  ;;  %vm5916_vm2 = vcmp.eq.s32.totalorder %v717_v52, %v5288_v3  ;;  %v8426_v44 = vmov 0  ;;  %vm7940_vm10 = vmpackc.low %vm5911_vm4, %vm5906_vm8 }
  0x80   :  { %8422 = vst [vmem:[#allocation65_spill] sm:$0xff] %v8421_v31  ;;  %v8424_v10 = vsel %vm5911_vm4, 4294967295, %v8423_v10  ;;  %v8427_v44 = vsel %vm5916_vm2, 4294967295, %v8426_v44  ;;  %v338_v16 = vadd.s32 504, %v5286_v2  ;;  %vm5926_vm14 = vcmp.eq.s32.totalorder %v724_v58, %v5288_v3  ;;  %4755 = vmatpush3.bf16.msk.msra.mxu0 %vm7940_vm10, %v8407_v54 }
  0x81   :  { %8425 = vst [vmem:[#allocation66_spill] sm:$0xff] %v8424_v10  ;;  %8428 = vst [vmem:[#allocation67_spill] sm:$0xff] %v8427_v44  ;;  %v8429_v4 = vmov 0  ;;  %v619_v59 = vand.u32 63, %v305_v30  ;;  %v626_v49 = vand.u32 63, %v306_v53  ;;  %v843_v45 = vand.u32 63, %v337_v56 }
  0x82   :  { %v8430_v4 = vsel %vm5926_vm14, 4294967295, %v8429_v4  ;;  %vm7944_vm0 = vmpackc.low %vm5926_vm14, %vm5916_vm2  ;;  %v850_v52 = vand.u32 63, %v338_v16  ;;  %v289_v58 = vadd.s32 112, %v5286_v2  ;;  %v290_v7 = vadd.s32 120, %v5286_v2 }
  0x83   :  { %8431 = vst [vmem:[#allocation68_spill] sm:$0xff] %v8430_v4  ;;  %v321_v53 = vadd.s32 368, %v5286_v2  ;;  %4787 = vmatpush3.bf16.msk.msra.mxu1 %vm7944_vm0, %v8407_v54  ;;  %vm5950_vm10 = vcmp.eq.s32.totalorder %v619_v59, %v5288_v3  ;;  %v8432_v30 = vmov 0  ;;  %vm5955_vm8 = vcmp.eq.s32.totalorder %v626_v49, %v5288_v3 }
  0x84   :  { %v8433_v30 = vsel %vm5950_vm10, 4294967295, %v8432_v30  ;;  %v8435_v16 = vmov 0  ;;  %vm5960_vm4 = vcmp.eq.s32.totalorder %v843_v45, %v5288_v3  ;;  %v8438_v56 = vmov 0  ;;  %vm7950_vm0 = vmpackc.low %vm5955_vm8, %vm5950_vm10 }
  0x85   :  { %8434 = vst [vmem:[#allocation69_spill] sm:$0xff] %v8433_v30  ;;  %v8436_v16 = vsel %vm5955_vm8, 4294967295, %v8435_v16  ;;  %v8439_v56 = vsel %vm5960_vm4, 4294967295, %v8438_v56  ;;  %v322_v4 = vadd.s32 376, %v5286_v2  ;;  %vm5970_vm2 = vcmp.eq.s32.totalorder %v850_v52, %v5288_v3  ;;  %4757 = vmatprep.subr.msk.bf16.mxu0 %vm7950_vm0, %v8407_v54 }
  0x86   :  { %8437 = vst [vmem:[#allocation70_spill] sm:$0xff] %v8436_v16  ;;  %8440 = vst [vmem:[#allocation71_spill] sm:$0xff] %v8439_v56  ;;  %v8441_v59 = vmov 0  ;;  %v507_v49 = vand.u32 63, %v289_v58  ;;  %v514_v44 = vand.u32 63, %v290_v7  ;;  %v731_v31 = vand.u32 63, %v321_v53 }
  0x87   :  { %v8442_v59 = vsel %vm5970_vm2, 4294967295, %v8441_v59  ;;  %vm7954_vm14 = vmpackc.low %vm5970_vm2, %vm5960_vm4  ;;  %v738_v45 = vand.u32 63, %v322_v4  ;;  %v355_v52 = vadd.s32 640, %v5286_v2  ;;  %v356_v10 = vadd.s32 648, %v5286_v2 }
  0x88   :  { %8443 = vst [vmem:[#allocation72_spill] sm:$0xff] %v8442_v59  ;;  %v387_v7 = vadd.s32 896, %v5286_v2  ;;  %4789 = vmatprep.subr.msk.bf16.mxu1 %vm7954_vm14, %v8407_v54  ;;  %vm5994_vm0 = vcmp.eq.s32.totalorder %v507_v49, %v5288_v3  ;;  %v8444_v58 = vmov 0  ;;  %vm5999_vm10 = vcmp.eq.s32.totalorder %v514_v44, %v5288_v3 }
  0x89   :  { %v8445_v58 = vsel %vm5994_vm0, 4294967295, %v8444_v58  ;;  %v8447_v4 = vmov 0  ;;  %vm6004_vm8 = vcmp.eq.s32.totalorder %v731_v31, %v5288_v3  ;;  %v8450_v53 = vmov 0  ;;  %vm7960_vm14 = vmpackc.low %vm5999_vm10, %vm5994_vm0 }
  0x8a   :  { %8446 = vst [vmem:[#allocation73_spill] sm:$0xff] %v8445_v58  ;;  %v8448_v4 = vsel %vm5999_vm10, 4294967295, %v8447_v4  ;;  %v8451_v53 = vsel %vm6004_vm8, 4294967295, %v8450_v53  ;;  %v388_v59 = vadd.s32 904, %v5286_v2  ;;  %vm6014_vm4 = vcmp.eq.s32.totalorder %v738_v45, %v5288_v3  ;;  %4759 = vmatpush3.bf16.msk.msra.mxu0 %vm7960_vm14, %v8407_v54 }
  0x8b   :  { %8449 = vst [vmem:[#allocation74_spill] sm:$0xff] %v8448_v4  ;;  %8452 = vst [vmem:[#allocation75_spill] sm:$0xff] %v8451_v53  ;;  %v8453_v49 = vmov 0  ;;  %v969_v44 = vand.u32 63, %v355_v52  ;;  %v976_v56 = vand.u32 63, %v356_v10  ;;  %v1193_v30 = vand.u32 63, %v387_v7 }
  0x8c   :  { %v8454_v49 = vsel %vm6014_vm4, 4294967295, %v8453_v49  ;;  %vm7962_vm2 = vmpackc.low %vm6014_vm4, %vm6004_vm8  ;;  %v1200_v31 = vand.u32 63, %v388_v59  ;;  %v8456_v10 = vmov 0  ;;  %v8459_v45 = vmov 0 }
  0x8d   :  { %8455 = vst [vmem:[#allocation76_spill] sm:$0xff] %v8454_v49  ;;  %4791 = vmatpush3.bf16.msk.msra.mxu1 %vm7962_vm2, %v8407_v54  ;;  %vm6035_vm5 = vcmp.eq.s32.totalorder %v969_v44, %v5288_v3  ;;  %vm6040_vm14 = vcmp.eq.s32.totalorder %v976_v56, %v5288_v3  ;;  %vm6045_vm0 = vcmp.eq.s32.totalorder %v1193_v30, %v5288_v3  ;;  %v8462_v59 = vmov 0 }
  0x8e   :  { %v8457_v10 = vsel %vm6035_vm5, 4294967295, %v8456_v10  ;;  %v8460_v45 = vsel %vm6040_vm14, 4294967295, %v8459_v45  ;;  %v8463_v59 = vsel %vm6045_vm0, 4294967295, %v8462_v59  ;;  %vm8000_vm2 = vmpackc.low %vm6040_vm14, %vm6035_vm5  ;;  %vm6054_vm8 = vcmp.eq.s32.totalorder %v1200_v31, %v5288_v3 }
  0x8f   :  { %8458 = vst [vmem:[#allocation77_spill] sm:$0xff] %v8457_v10  ;;  %8461 = vst [vmem:[#allocation78_spill] sm:$0xff] %v8460_v45  ;;  %v8465_v52 = vmov 0  ;;  %4793 = vmatprep.subr.msk.bf16.mxu0 %vm8000_vm2, %v8407_v54  ;;  %v6075_v30 = vadd.s32 512, %v5286_v2  ;;  %v6078_v56 = vadd.s32 520, %v5286_v2  ;;  %v6081_v7 = vadd.s32 768, %v5286_v2 }
  0x90   :  { %8464 = vst [vmem:[#allocation79_spill] sm:$0xff] %v8463_v59  ;;  %v8466_v52 = vsel %vm6054_vm8, 4294967295, %v8465_v52  ;;  %vm7968_vm4 = vmpackc.low %vm6054_vm8, %vm6045_vm0  ;;  %v6084_v44 = vadd.s32 776, %v5286_v2  ;;  %v6087_v31 = vadd.s32 656, %v5286_v2  ;;  %v6093_v59 = vadd.s32 912, %v5286_v2 }
  0x91   :  { %8467 = vst [vmem:[#allocation80_spill] sm:$0xff] %v8466_v52  ;;  %4825 = vmatprep.subr.msk.bf16.mxu1 %vm7968_vm4, %v8407_v54  ;;  %v6090_v52 = vadd.s32 664, %v5286_v2  ;;  %v6096_v10 = vadd.s32 920, %v5286_v2  ;;  %vm8016_vm4 = vcmask 1041408   ;;  %v857_v45 = vand.u32 63, %v6075_v30 }
  0x92   :  { %v864_v53 = vand.u32 63, %v6078_v56  ;;  %v1081_v49 = vand.u32 63, %v6081_v7  ;;  %v1088_v58 = vand.u32 63, %v6084_v44  ;;  %v6106_v23 = vadd.s32 528, %v5286_v2 }
  0x93   :  { %v6109_v19 = vadd.s32 536, %v5286_v2  ;;  %v6113_v56 = vadd.s32 784, %v5286_v2  ;;  %v6116_v7 = vadd.s32 792, %v5286_v2  ;;  %v6119_v44 = vadd.s32 672, %v5286_v2 }
  0x94   :  { %v6122_v16 = vadd.s32 680, %v5286_v2  ;;  %v6125_v22 = vadd.s32 928, %v5286_v2  ;;  %v6128_v4 = vadd.s32 936, %v5286_v2  ;;  %v6131_v30 = vadd.s32 544, %v5286_v2 }
  0x95   :  { %v6134_v20 = vadd.s32 552, %v5286_v2  ;;  %v6137_v39 = vadd.s32 800, %v5286_v2  ;;  %v6140_v40 = vadd.s32 808, %v5286_v2  ;;  %v6143_v24 = vadd.s32 688, %v5286_v2 }
  0x96   :  { %v871_v37 = vand.u32 63, %v6106_v23  ;;  %v878_v13 = vand.u32 63, %v6109_v19  ;;  %v6148_v18 = vadd.s32 696, %v5286_v2  ;;  %v6151_v11 = vadd.s32 944, %v5286_v2 }
  0x97   :  { %v1095_v12 = vand.u32 63, %v6113_v56  ;;  %v1102_v60 = vand.u32 63, %v6116_v7  ;;  %v6157_v51 = vadd.s32 952, %v5286_v2  ;;  %v6172_v23 = vadd.s32 560, %v5286_v2 }
  0x98   :  { %v6175_v19 = vadd.s32 568, %v5286_v2  ;;  %v6185_v36 = vadd.s32 816, %v5286_v2  ;;  %v6188_v55 = vadd.s32 824, %v5286_v2  ;;  %vm6197_vm2 = vcmp.eq.s32.totalorder %v857_v45, %v5288_v3 }
  0x99   :  { %v8472_v21 = vmov 0  ;;  %vm6202_vm0 = vcmp.eq.s32.totalorder %v864_v53, %v5288_v3  ;;  %v8474_v7 = vmov 0  ;;  %v6207_v1 = vadd.s32 704, %v5286_v2 }
  0x9a   :  { %v8473_v21 = vsel %vm6197_vm2, 4294967295, %v8472_v21  ;;  %v8475_v7 = vsel %vm6202_vm0, 4294967295, %v8474_v7  ;;  %vm6212_vm8 = vcmp.eq.s32.totalorder %v1081_v49, %v5288_v3  ;;  %v8476_v45 = vmov 0 }
  0x9b   :  { %v8477_v45 = vsel %vm6212_vm8, 4294967295, %v8476_v45  ;;  %vm6217_vm5 = vcmp.eq.s32.totalorder %v1088_v58, %v5288_v3  ;;  %v8478_v53 = vmov 0  ;;  %v6222_v6 = vadd.s32 712, %v5286_v2 }
  0x9c   :  { %v8479_v53 = vsel %vm6217_vm5, 4294967295, %v8478_v53  ;;  %v8483_v49 = vand.u32 63, %v6090_v52  ;;  %v8484_v58 = vmov 0  ;;  %v8489_v52 = vand.u32 63, %v6096_v10 }
  0x9d   :  { %vm6261_vm3 = vcmp.eq.s32.totalorder %v871_v37, %v5288_v3  ;;  %vm6266_vm12 = vcmp.eq.s32.totalorder %v878_v13, %v5288_v3  ;;  %v8494_v10 = vmov 0  ;;  %vm6273_vm15 = vcmp.eq.s32.totalorder %v1095_v12, %v5288_v3 }
  0x9e   :  { %vm6234_vm14 = vcmp.eq.s32.totalorder %v8483_v49, %v5288_v3  ;;  %vm6250_vm7 = vcmp.eq.s32.totalorder %v8489_v52, %v5288_v3  ;;  %v8490_v49 = vmov 0  ;;  %v8495_v10 = vsel %vm6266_vm12, 4294967295, %v8494_v10 }
  0x9f   :  { %v8485_v58 = vsel %vm6234_vm14, 4294967295, %v8484_v58  ;;  %v8491_v49 = vsel %vm6250_vm7, 4294967295, %v8490_v49  ;;  %v8496_v61 = vmov 0  ;;  %vm6278_vm11 = vcmp.eq.s32.totalorder %v1102_v60, %v5288_v3 }
  0xa0   :  { %v8497_v61 = vsel %vm6273_vm15, 4294967295, %v8496_v61  ;;  %v8501_v42 = vmov 0  ;;  %v8504_v12 = vand.u32 63, %v6122_v16  ;;  %v8505_v60 = vmov 0 }
  0xa1   :  { %v6301_v37 = vadd.s32 576, %v5286_v2  ;;  %v8508_v13 = vmov 0  ;;  %v8511_v16 = vand.u32 63, %v6128_v4  ;;  %v8519_v4 = vand.u32 63, %v6134_v20 }
  0xa2   :  { %vm6294_vm6 = vcmp.eq.s32.totalorder %v8504_v12, %v5288_v3  ;;  %v8512_v12 = vmov 0  ;;  %v8523_v34 = vand.u32 63, %v6137_v39  ;;  %v8524_v20 = vmov 0 }
  0xa3   :  { %v8506_v60 = vsel %vm6294_vm6, 4294967295, %v8505_v60  ;;  %vm6316_vm1 = vcmp.eq.s32.totalorder %v8511_v16, %v5288_v3  ;;  %v8520_v16 = vmov 0  ;;  %vm8522_vm6 = vcmask 1041408  }
  0xa4   :  { %v8513_v12 = vsel %vm6316_vm1, 4294967295, %v8512_v12  ;;  %vm6336_vm1 = vcmp.eq.s32.totalorder %v8519_v4, %v5288_v3  ;;  %v8527_v4 = vand.u32 63, %v6140_v40  ;;  %v6362_v27 = vadd.s32 840, %v5286_v2 }
  0xa5   :  { %8514 = vst [vmem:[#allocation87_spill] sm:$0xff] %v8513_v12  ;;  %v8521_v16 = vsel %vm6336_vm1, 4294967295, %v8520_v16  ;;  %v8531_v39 = vmov 0  ;;  %v8534_v40 = vand.u32 63, %v6148_v18  ;;  %v6381_v15 = vadd.s32 720, %v5286_v2 }
  0xa6   :  { %vm6357_vm1 = vcmp.eq.s32.totalorder %v8527_v4, %v5288_v3  ;;  %v8535_v4 = vmov 0 }
 0x110   :  { %v6167_v0 = vpop.f32.mrb[0].mxu0 }
 0x111   :  { %8468 = vst [vmem:[#allocation81_spill] sm:$0xff] %v6167_v0  ;;  %v2429_v38 = vsel %vm8016_vm4, %v6167_v0, 0.0  ;;  %v6179_v32 = vpop.f32.mrb[0].mxu1  ;;  %v6181_v56 = vpop.f32.mrb[1].mxu0 }
 0x112   :  { %8469 = vst [vmem:[#allocation82_spill] sm:$0xff] %v6179_v32  ;;  %8470 = vst [vmem:[#allocation83_spill] sm:$0xff] %v6181_v56  ;;  %v2430_v33 = vrot.slane %v2429_v38, 4  ;;  %v2443_v25 = vsel %vm8016_vm4, %v6179_v32, 0.0  ;;  %v2436_v29 = vsel %vm8016_vm4, %v6181_v56, 0.0  ;;  %v6194_v0 = vpop.f32.mrb[1].mxu1 }
 0x113   :  { %8471 = vst [vmem:[#allocation84_spill] sm:$0xff] %v6194_v0  ;;  %v146_v17 = vpop.f32.mrb[2].mxu0  ;;  %v2444_v32 = vrot.slane %v2443_v25, 4  ;;  %v2437_v9 = vrot.slane %v2436_v29, 4  ;;  %v2450_v56 = vsel %vm8016_vm4, %v6194_v0, 0.0  ;;  %v187_v5 = vpop.f32.mrb[2].mxu1 }
 0x114   :  { %v147_v17 = vpop.f32.mrb[3].mxu0  ;;  %v2431_v62 = vadd.f32 %v2430_v33, %v2429_v38  ;;  %v2451_v63 = vrot.slane %v2450_v56, 4  ;;  %v188_v57 = vpop.f32.mrb[3].mxu1  ;;  %v8480_v5 = vand.u32 63, %v6087_v31  ;;  %v8486_v31 = vand.u32 63, %v6093_v59 }
 0x115   :  { %v8481_v17 = vmov 0  ;;  %v2445_v38 = vadd.f32 %v2444_v32, %v2443_v25  ;;  %v2438_v57 = vadd.f32 %v2437_v9, %v2436_v29  ;;  %v6255_v0 = vadd.s32 960, %v5286_v2 }
 0x116   :  { %vm6227_vm4 = vcmp.eq.s32.totalorder %v8480_v5, %v5288_v3  ;;  %vm6243_vm10 = vcmp.eq.s32.totalorder %v8486_v31, %v5288_v3  ;;  %v8487_v5 = vmov 0  ;;  %v6258_v25 = vadd.s32 968, %v5286_v2 }
 0x117   :  { %v8482_v17 = vsel %vm6227_vm4, 4294967295, %v8481_v17  ;;  %v8488_v5 = vsel %vm6243_vm10, 4294967295, %v8487_v5  ;;  %v2432_v9 = vrot.slane %v2431_v62, 2  ;;  %v2452_v29 = vadd.f32 %v2451_v63, %v2450_v56 }
 0x118   :  { %v8492_v32 = vmov 0  ;;  %v2446_v52 = vrot.slane %v2445_v38, 2  ;;  %v2439_v33 = vrot.slane %v2438_v57, 2  ;;  %v8498_v63 = vmov 0 }
 0x119   :  { %v8493_v32 = vsel %vm6261_vm3, 4294967295, %v8492_v32  ;;  %v8499_v63 = vsel %vm6278_vm11, 4294967295, %v8498_v63  ;;  %v2433_v56 = vadd.f32 %v2432_v9, %v2431_v62  ;;  %v2453_v59 = vrot.slane %v2452_v29, 2 }
 0x11a   :  { %v8500_v31 = vand.u32 63, %v6119_v44  ;;  %v6304_v62 = vadd.s32 584, %v5286_v2  ;;  %v2447_v44 = vadd.f32 %v2446_v52, %v2445_v38  ;;  %v2440_v9 = vadd.f32 %v2439_v33, %v2438_v57 }
 0x11b   :  { %v1249_v33 = vand.u32 63, %v6255_v0  ;;  %v1256_v38 = vand.u32 63, %v6258_v25  ;;  %v2454_v57 = vadd.f32 %v2453_v59, %v2452_v29  ;;  %v8516_v52 = vand.u32 63, %v6131_v30 }
 0x11c   :  { %vm6287_vm9 = vcmp.eq.s32.totalorder %v8500_v31, %v5288_v3  ;;  %v8507_v31 = vand.u32 63, %v6125_v22  ;;  %v2434_v22 = vrot.slane %v2433_v56, 1  ;;  %v6345_v59 = vadd.s32 832, %v5286_v2 }
 0x11d   :  { %v8502_v42 = vsel %vm6287_vm9, 4294967295, %v8501_v42  ;;  %v2448_v30 = vrot.slane %v2447_v44, 1  ;;  %v2455_v47 = vrot.slane %v2454_v57, 1 }
 0x11e   :  { %8503 = vst [vmem:[#allocation85_spill] sm:$0xff] %v8502_v42  ;;  %vm6309_vm13 = vcmp.eq.s32.totalorder %v8507_v31, %v5288_v3  ;;  %v8517_v31 = vmov 0 }
 0x11f   :  { %v8509_v13 = vsel %vm6309_vm13, 4294967295, %v8508_v13  ;;  %vm6329_vm13 = vcmp.eq.s32.totalorder %v8516_v52, %v5288_v3  ;;  %v2441_v52 = vrot.slane %v2440_v9, 1 }
 0x120   :  { %8510 = vst [vmem:[#allocation86_spill] sm:$0xff] %v8509_v13  ;;  %v8518_v31 = vsel %vm6329_vm13, 4294967295, %v8517_v31  ;;  %vm6350_vm13 = vcmp.eq.s32.totalorder %v8523_v34, %v5288_v3  ;;  %v8530_v34 = vand.u32 63, %v6143_v24 }
 0x121   :  { %v8525_v20 = vsel %vm6350_vm13, 4294967295, %v8524_v20  ;;  %vm6374_vm13 = vcmp.eq.s32.totalorder %v8534_v40, %v5288_v3  ;;  %v2442_v24 = vadd.f32 %v2441_v52, %v2440_v9  ;;  %v8539_v40 = vand.u32 63, %v6151_v11 }
 0x122   :  { %8526 = vst [vmem:[#allocation89_spill] sm:$0xff] %v8525_v20  ;;  %v8536_v4 = vsel %vm6374_vm13, 4294967295, %v8535_v4  ;;  %v366_v9 = vadd.s32 728, %v5286_v2  ;;  %v2435_v52 = vadd.f32 %v2434_v22, %v2433_v56  ;;  %v2449_v56 = vadd.f32 %v2448_v30, %v2447_v44 }
 0x123   :  { %8537 = vst [vmem:[#allocation91_spill] sm:$0xff] %v8536_v4  ;;  %vm6392_vm13 = vcmp.eq.s32.totalorder %v8539_v40, %v5288_v3  ;;  %v8548_v40 = vmov 0  ;;  %2549 = vmatprep.mubr.f32.mxu0 %v2442_v24  ;;  %v8554_v22 = vand.u32 63, %v6185_v36  ;;  %v398_v44 = vadd.s32 984, %v5286_v2 }
 0x124   :  { %2550 = vmatmul.mubr.f32.vlgmr.msra.gmra.mrb[8].mxu0 %v2435_v52  ;;  %v8560_v30 = vand.u32 63, %v6207_v1  ;;  %v8561_v24 = vmov 0  ;;  %v1144_v52 = vand.u32 63, %v6362_v27  ;;  %v8571_v27 = vmov 0 }
 0x125   :  { %v350_v1 = vadd.s32 600, %v5286_v2 }
 0x126   :  { %v6298_v43 = vpop.f32.mrb[4].mxu0  ;;  %v6322_v41 = vpop.f32.mrb[4].mxu1 }
 0x127   :  { %v6320_v28 = vpop.f32.mrb[5].mxu0  ;;  %v6342_v25 = vpop.f32.mrb[5].mxu1 }
 0x128   :  { %8515 = vst [vmem:[#allocation88_spill] sm:$0xff] %v6320_v28  ;;  %v2464_v0 = vsel %vm8522_vm6, %v6320_v28, 0.0  ;;  %v228_v29 = vpop.f32.mrb[6].mxu0  ;;  %v8528_v28 = vmov 0  ;;  %v269_v26 = vpop.f32.mrb[6].mxu1  ;;  %vm6367_vm6 = vcmp.eq.s32.totalorder %v8530_v34, %v5288_v3 }
 0x129   :  { %v8529_v28 = vsel %vm6357_vm1, 4294967295, %v8528_v28  ;;  %v2465_v29 = vrot.slane %v2464_v0, 4  ;;  %v229_v35 = vpop.f32.mrb[7].mxu0  ;;  %v8532_v39 = vsel %vm6367_vm6, 4294967295, %v8531_v39  ;;  %v913_v26 = vand.u32 63, %v6301_v37  ;;  %v270_v46 = vpop.f32.mrb[7].mxu1 }
 0x12a   :  { %8533 = vst [vmem:[#allocation90_spill] sm:$0xff] %v8532_v39  ;;  %v920_v35 = vand.u32 63, %v6304_v62  ;;  %vm8538_vm1 = vcmask 1041408   ;;  %v8540_v37 = vmov 0  ;;  %v8543_v46 = vand.u32 63, %v6157_v51 }
 0x12b   :  { %v2466_v34 = vadd.f32 %v2465_v29, %v2464_v0  ;;  %v2478_v18 = vsel %vm8538_vm1, %v6342_v25, 0.0  ;;  %v8541_v37 = vsel %vm6392_vm13, 4294967295, %v8540_v37  ;;  %v8544_v62 = vmov 0  ;;  %vm8568_vm1 = vmpackc.low %vm6202_vm0, %vm6197_vm2 }
 0x12c   :  { %8542 = vst [vmem:[#allocation92_spill] sm:$0xff] %v8541_v37  ;;  %vm6399_vm9 = vcmp.eq.s32.totalorder %v8543_v46, %v5288_v3  ;;  %v2456_v0 = vadd.f32 %v2455_v47, %v2454_v57  ;;  %v2479_v11 = vrot.slane %v2478_v18, 4  ;;  %v8547_v29 = vand.u32 63, %v6172_v23  ;;  %4795 = vmatpush3.bf16.msk.msra.mxu0 %vm8568_vm1, %v8407_v54  ;;  %vm8573_vm1 = vmpackc.low %vm6217_vm5, %vm6212_vm8 }
 0x12d   :  { %v8545_v62 = vsel %vm6399_vm9, 4294967295, %v8544_v62  ;;  %v8551_v51 = vand.u32 63, %v6175_v19  ;;  %v8552_v46 = vmov 0  ;;  %v397_v47 = vadd.s32 976, %v5286_v2 }
 0x12e   :  { %8546 = vst [vmem:[#allocation93_spill] sm:$0xff] %v8545_v62  ;;  %vm6411_vm6 = vcmp.eq.s32.totalorder %v8547_v29, %v5288_v3  ;;  %v2467_v23 = vrot.slane %v2466_v34, 2  ;;  %v8555_v57 = vmov 0  ;;  %v8557_v19 = vand.u32 63, %v6188_v55  ;;  %2619 = vmatprep.mubr.f32.mxu1 %v2456_v0 }
 0x12f   :  { %v8549_v40 = vsel %vm6411_vm6, 4294967295, %v8548_v40  ;;  %vm6418_vm9 = vcmp.eq.s32.totalorder %v8551_v51, %v5288_v3  ;;  %vm6430_vm6 = vcmp.eq.s32.totalorder %v8554_v22, %v5288_v3  ;;  %v8558_v29 = vmov 0  ;;  %2620 = vmatmul.mubr.f32.vlgmr.msra.gmra.mrb[8].mxu1 %v2449_v56 }
 0x130   :  { %8550 = vst [vmem:[#allocation94_spill] sm:$0xff] %v8549_v40  ;;  %v8553_v46 = vsel %vm6418_vm9, 4294967295, %v8552_v46  ;;  %v8556_v57 = vsel %vm6430_vm6, 4294967295, %v8555_v57  ;;  %vm6437_vm9 = vcmp.eq.s32.totalorder %v8557_v19, %v5288_v3  ;;  %v2480_v36 = vadd.f32 %v2479_v11, %v2478_v18  ;;  %4827 = vmatpush3.bf16.msk.msra.mxu1 %vm8573_vm1, %v8407_v54 }
 0x131   :  { %v8559_v29 = vsel %vm6437_vm9, 4294967295, %v8558_v29  ;;  %vm6449_vm6 = vcmp.eq.s32.totalorder %v8560_v30, %v5288_v3  ;;  %v8564_v55 = vand.u32 63, %v6222_v6  ;;  %v8565_v51 = vmov 0 }
 0x132   :  { %v8562_v24 = vsel %vm6449_vm6, 4294967295, %v8561_v24  ;;  %v1137_v0 = vand.u32 63, %v6345_v59  ;;  %v349_v18 = vadd.s32 592, %v5286_v2  ;;  %v8569_v6 = vmov 0  ;;  %vm8574_vm6 = vmpackc.low %vm6234_vm14, %vm6227_vm4 }
 0x133   :  { %8563 = vst [vmem:[#allocation95_spill] sm:$0xff] %v8562_v24  ;;  %vm6456_vm9 = vcmp.eq.s32.totalorder %v8564_v55, %v5288_v3  ;;  %vm6479_vm13 = vcmp.eq.s32.totalorder %v1256_v38, %v5288_v3  ;;  %v2468_v59 = vadd.f32 %v2467_v23, %v2466_v34  ;;  %4797 = vmatprep.subr.msk.bf16.mxu0 %vm8574_vm6, %v8407_v54  ;;  %v8575_v38 = vmov 0  ;;  %vm8581_vm6 = vmpackc.low %vm6250_vm7, %vm6243_vm10 }
 0x134   :  { %v8566_v51 = vsel %vm6456_vm9, 4294967295, %v8565_v51  ;;  %vm6474_vm9 = vcmp.eq.s32.totalorder %v1249_v33, %v5288_v3  ;;  %v8572_v27 = vsel %vm6479_vm13, 4294967295, %v8571_v27  ;;  %v2481_v33 = vrot.slane %v2480_v36, 2  ;;  %4829 = vmatprep.subr.msk.bf16.mxu1 %vm8581_vm6, %v8407_v54  ;;  %vm8590_vm14 = vmpackc.low %vm6266_vm12, %vm6261_vm3 }
 0x135   :  { %8567 = vst [vmem:[#allocation96_spill] sm:$0xff] %v8566_v51  ;;  %v8570_v6 = vsel %vm6474_vm9, 4294967295, %v8569_v6  ;;  %vm6501_vm0 = vcmp.eq.s32.totalorder %v913_v26, %v5288_v3  ;;  %vm6506_vm1 = vcmp.eq.s32.totalorder %v920_v35, %v5288_v3  ;;  %v8578_v34 = vmov 0  ;;  %4799 = vmatpush3.bf16.msk.msra.mxu0 %vm8590_vm14, %v8407_v54 }
 0x136   :  { %v8576_v38 = vsel %vm6501_vm0, 4294967295, %v8575_v38  ;;  %v8579_v34 = vsel %vm6506_vm1, 4294967295, %v8578_v34  ;;  %v1039_v11 = vand.u32 63, %v6381_v15  ;;  %v1046_v56 = vand.u32 63, %v366_v9 }
 0x137   :  { %8577 = vst [vmem:[#allocation97_spill] sm:$0xff] %v8576_v38  ;;  %8580 = vst [vmem:[#allocation98_spill] sm:$0xff] %v8579_v34  ;;  %v1263_v23 = vand.u32 63, %v397_v47  ;;  %vm8582_vm2 = vnez %v8502_v42  ;;  %vm8583_vm4 = vnez %v8506_v60  ;;  %v1270_v26 = vand.u32 63, %v398_v44 }
 0x138   :  { %v381_v35 = vadd.s32 848, %v5286_v2  ;;  %v382_v22 = vadd.s32 856, %v5286_v2  ;;  %v2469_v15 = vrot.slane %v2468_v59, 1  ;;  %vm8584_vm8 = vnez %v8509_v13  ;;  %vm8594_vm14 = vmpackc.low %vm8583_vm4, %vm8582_vm2 }
 0x139   :  { %vm8585_vm5 = vnez %v8513_v12  ;;  %vm6528_vm0 = vcmp.eq.s32.totalorder %v1137_v0, %v5288_v3  ;;  %v8586_v9 = vmov 0  ;;  %vm6533_vm6 = vcmp.eq.s32.totalorder %v1144_v52, %v5288_v3  ;;  %4801 = vmatprep.subr.msk.bf16.mxu0 %vm8594_vm14, %v8407_v54 }
 0x13a   :  { %v8587_v9 = vsel %vm6528_vm0, 4294967295, %v8586_v9  ;;  %v8588_v47 = vmov 0  ;;  %v927_v19 = vand.u32 63, %v349_v18  ;;  %v2482_v44 = vadd.f32 %v2481_v33, %v2480_v36  ;;  %vm8605_vm14 = vmpackc.low %vm8585_vm5, %vm8584_vm8 }
 0x13b   :  { %v8589_v47 = vsel %vm6533_vm6, 4294967295, %v8588_v47  ;;  %vm8591_vm1 = vnez %v8518_v31  ;;  %vm8592_vm10 = vnez %v8521_v16  ;;  %v934_v30 = vand.u32 63, %v350_v1  ;;  %vm8593_vm6 = vmpackc.low %vm6278_vm11, %vm6273_vm15 }
 0x13c   :  { %v367_v55 = vadd.s32 736, %v5286_v2  ;;  %v368_v0 = vadd.s32 744, %v5286_v2  ;;  %v2470_v52 = vadd.f32 %v2469_v15, %v2468_v59  ;;  %4831 = vmatpush3.bf16.msk.msra.mxu1 %vm8593_vm6, %v8407_v54  ;;  %vm8595_vm7 = vnez %v8525_v20  ;;  %vm8615_vm11 = vmpackc.low %vm8592_vm10, %vm8591_vm1 }
 0x13d   :  { %vm8596_vm3 = vnez %v8529_v28  ;;  %vm6566_vm0 = vcmp.eq.s32.totalorder %v1039_v11, %v5288_v3  ;;  %v8597_v36 = vmov 0  ;;  %vm6571_vm15 = vcmp.eq.s32.totalorder %v1046_v56, %v5288_v3  ;;  %4833 = vmatprep.subr.msk.bf16.mxu1 %vm8605_vm14, %v8407_v54  ;;  %4803 = vmatpush3.bf16.msk.msra.mxu0 %vm8615_vm11, %v8407_v54 }
 0x13e   :  { %v8598_v36 = vsel %vm6566_vm0, 4294967295, %v8597_v36  ;;  %v8600_v18 = vmov 0  ;;  %vm6576_vm6 = vcmp.eq.s32.totalorder %v1263_v23, %v5288_v3  ;;  %v8602_v1 = vmov 0  ;;  %2689 = vmatprep.mubr.f32.mxu0 %v2470_v52  ;;  %vm8622_vm11 = vmpackc.low %vm8596_vm3, %vm8595_vm7 }
 0x13f   :  { %8599 = vst [vmem:[#allocation99_spill] sm:$0xff] %v8598_v36  ;;  %v8601_v18 = vsel %vm6571_vm15, 4294967295, %v8600_v18  ;;  %v8603_v1 = vsel %vm6576_vm6, 4294967295, %v8602_v1  ;;  %v2483_v59 = vrot.slane %v2482_v44, 1  ;;  %vm8606_vm12 = vcmask 1041408  }
 0x140   :  { %8604 = vst [vmem:[#allocation100_spill] sm:$0xff] %v8603_v1  ;;  %v2457_v33 = vsel %vm8606_vm12, %v6298_v43, 0.0  ;;  %vm8607_vm2 = vnez %v8532_v39  ;;  %vm8608_vm4 = vnez %v8536_v4  ;;  %vm6593_vm15 = vcmp.eq.s32.totalorder %v1270_v26, %v5288_v3  ;;  %vm8612_vm6 = vmmov %vm8606_vm12  ;;  %4835 = vmatpush3.bf16.msk.msra.mxu1 %vm8622_vm11, %v8407_v54 }
 0x141   :  { %v8609_v11 = vmov 0  ;;  %v1151_v56 = vand.u32 63, %v381_v35  ;;  %v1158_v23 = vand.u32 63, %v382_v22  ;;  %v2471_v15 = vsel %vm8612_vm6, %v6322_v41, 0.0 }
 0x142   :  { %v8610_v11 = vsel %vm6593_vm15, 4294967295, %v8609_v11  ;;  %vm8613_vm14 = vnez %v8541_v37  ;;  %vm8614_vm12 = vnez %v8545_v62  ;;  %v399_v13 = vadd.s32 992, %v5286_v2  ;;  %vm8623_vm15 = vmpackc.low %vm8608_vm4, %vm8607_vm2 }
 0x143   :  { %8611 = vst [vmem:[#allocation101_spill] sm:$0xff] %v8610_v11  ;;  %v400_v12 = vadd.s32 1000, %v5286_v2  ;;  %v2484_v42 = vadd.f32 %v2483_v59, %v2482_v44  ;;  %vm8616_vm5 = vnez %v8549_v40  ;;  %vm8617_vm6 = vnez %v8553_v46  ;;  %4805 = vmatprep.subr.msk.bf16.mxu0 %vm8623_vm15, %v8407_v54  ;;  %vm8626_vm11 = vmpackc.low %vm8614_vm12, %vm8613_vm14 }
 0x144   :  { %vm6616_vm0 = vcmp.eq.s32.totalorder %v927_v19, %v5288_v3  ;;  %v8618_v26 = vmov 0  ;;  %vm6621_vm8 = vcmp.eq.s32.totalorder %v934_v30, %v5288_v3  ;;  %v8620_v35 = vmov 0  ;;  %4837 = vmatprep.subr.msk.bf16.mxu1 %vm8626_vm11, %v8407_v54  ;;  %vm8633_vm4 = vmpackc.low %vm8617_vm6, %vm8616_vm5 }
 0x145   :  { %v8619_v26 = vsel %vm6616_vm0, 4294967295, %v8618_v26  ;;  %v8621_v35 = vsel %vm6621_vm8, 4294967295, %v8620_v35  ;;  %v1053_v22 = vand.u32 63, %v367_v55  ;;  %v1060_v44 = vand.u32 63, %v368_v0  ;;  %2759 = vmatprep.mubr.f32.mxu1 %v2484_v42  ;;  %4807 = vmatpush3.bf16.msk.msra.mxu0 %vm8633_vm4, %v8407_v54 }
 0x146   :  { %v2458_v52 = vrot.slane %v2457_v33, 4  ;;  %vm8624_vm1 = vnez %v8556_v57  ;;  %vm8625_vm10 = vnez %v8559_v29  ;;  %v351_v19 = vadd.s32 608, %v5286_v2 }
 0x147   :  { %v352_v30 = vadd.s32 616, %v5286_v2  ;;  %v383_v55 = vadd.s32 864, %v5286_v2  ;;  %v2472_v0 = vrot.slane %v2471_v15, 4  ;;  %vm8627_vm15 = vnez %v8562_v24  ;;  %vm8640_vm4 = vmpackc.low %vm8625_vm10, %vm8624_vm1 }
 0x148   :  { %vm8628_vm2 = vnez %v8566_v51  ;;  %vm6655_vm8 = vcmp.eq.s32.totalorder %v1151_v56, %v5288_v3  ;;  %v8629_v59 = vmov 0  ;;  %vm6660_vm7 = vcmp.eq.s32.totalorder %v1158_v23, %v5288_v3  ;;  %4839 = vmatpush3.bf16.msk.msra.mxu1 %vm8640_vm4, %v8407_v54  ;;  %vm8644_vm4 = vmpackc.low %vm6479_vm13, %vm6474_vm9 }
 0x149   :  { %v8630_v59 = vsel %vm6655_vm8, 4294967295, %v8629_v59  ;;  %v8631_v39 = vmov 0  ;;  %v384_v62 = vadd.s32 872, %v5286_v2  ;;  %v1277_v37 = vand.u32 63, %v399_v13  ;;  %vm8641_vm3 = vmpackc.low %vm8628_vm2, %vm8627_vm15  ;;  %4841 = vmatprep.subr.msk.bf16.mxu1 %vm8644_vm4, %v8407_v54 }
 0x14a   :  { %v8632_v39 = vsel %vm6660_vm7, 4294967295, %v8631_v39  ;;  %v1284_v4 = vand.u32 63, %v400_v12  ;;  %v369_v56 = vadd.s32 752, %v5286_v2  ;;  %v370_v20 = vadd.s32 760, %v5286_v2  ;;  %4809 = vmatprep.subr.msk.bf16.mxu0 %vm8641_vm3, %v8407_v54 }
 0x14b   :  { %vm8634_vm14 = vnez %v8576_v38  ;;  %vm8635_vm12 = vnez %v8579_v34  ;;  %vm6682_vm11 = vcmp.eq.s32.totalorder %v1053_v22, %v5288_v3  ;;  %v8636_v42 = vmov 0 }
 0x14c   :  { %v8637_v42 = vsel %vm6682_vm11, 4294967295, %v8636_v42  ;;  %vm6687_vm7 = vcmp.eq.s32.totalorder %v1060_v44, %v5288_v3  ;;  %v8638_v13 = vmov 0  ;;  %v401_v12 = vadd.s32 1008, %v5286_v2  ;;  %vm8649_vm4 = vmpackc.low %vm8635_vm12, %vm8634_vm14 }
 0x14d   :  { %v8639_v13 = vsel %vm6687_vm7, 4294967295, %v8638_v13  ;;  %v402_v23 = vadd.s32 1016, %v5286_v2  ;;  %v2459_v40 = vadd.f32 %v2458_v52, %v2457_v33  ;;  %vm8642_vm5 = vnez %v8587_v9  ;;  %4811 = vmatpush3.bf16.msk.msra.mxu0 %vm8649_vm4, %v8407_v54 }
 0x14e   :  { %vm8643_vm6 = vnez %v8589_v47  ;;  %v941_v33 = vand.u32 63, %v351_v19  ;;  %v948_v22 = vand.u32 63, %v352_v30  ;;  %v1165_v44 = vand.u32 63, %v383_v55 }
 0x14f   :  { %v2473_v52 = vadd.f32 %v2472_v0, %v2471_v15  ;;  %vm8645_vm1 = vnez %v8598_v36  ;;  %vm8646_vm3 = vnez %v8601_v18  ;;  %v1172_v24 = vand.u32 63, %v384_v62  ;;  %vm8655_vm4 = vmpackc.low %vm8643_vm6, %vm8642_vm5 }
 0x150   :  { %v353_v51 = vadd.s32 624, %v5286_v2  ;;  %v354_v19 = vadd.s32 632, %v5286_v2  ;;  %vm8647_vm7 = vnez %v8603_v1  ;;  %vm8648_vm2 = vnez %v8610_v11  ;;  %4843 = vmatpush3.bf16.msk.msra.mxu1 %vm8655_vm4, %v8407_v54  ;;  %vm8656_vm9 = vmpackc.low %vm8646_vm3, %vm8645_vm1 }
 0x151   :  { %v1067_v15 = vand.u32 63, %v369_v56  ;;  %v1074_v30 = vand.u32 63, %v370_v20  ;;  %v385_v55 = vadd.s32 880, %v5286_v2  ;;  %v386_v0 = vadd.s32 888, %v5286_v2  ;;  %4813 = vmatprep.subr.msk.bf16.mxu0 %vm8656_vm9, %v8407_v54  ;;  %vm8667_vm9 = vmpackc.low %vm8648_vm2, %vm8647_vm7 }
 0x152   :  { %vm8650_vm15 = vnez %v8621_v35  ;;  %vm6738_vm10 = vcmp.eq.s32.totalorder %v1277_v37, %v5288_v3  ;;  %v8651_v62 = vmov 0  ;;  %vm6743_vm13 = vcmp.eq.s32.totalorder %v1284_v4, %v5288_v3  ;;  %4845 = vmatprep.subr.msk.bf16.mxu1 %vm8667_vm9, %v8407_v54 }
 0x153   :  { %v8652_v62 = vsel %vm6738_vm10, 4294967295, %v8651_v62  ;;  %v8653_v20 = vmov 0  ;;  %v1291_v56 = vand.u32 63, %v401_v12  ;;  %v1298_v34 = vand.u32 63, %v402_v23 }
 0x154   :  { %v8654_v20 = vsel %vm6743_vm13, 4294967295, %v8653_v20  ;;  %v2460_v38 = vrot.slane %v2459_v40, 2  ;;  %vm8657_vm14 = vnez %v8632_v39  ;;  %vm6764_vm0 = vcmp.eq.s32.totalorder %v941_v33, %v5288_v3 }
 0x155   :  { %v8658_v4 = vmov 0  ;;  %vm6769_vm5 = vcmp.eq.s32.totalorder %v948_v22, %v5288_v3  ;;  %v8661_v37 = vmov 0  ;;  %vm6774_vm4 = vcmp.eq.s32.totalorder %v1165_v44, %v5288_v3 }
 0x156   :  { %v8659_v4 = vsel %vm6764_vm0, 4294967295, %v8658_v4  ;;  %v8662_v37 = vsel %vm6769_vm5, 4294967295, %v8661_v37  ;;  %v8664_v12 = vmov 0  ;;  %v2474_v23 = vrot.slane %v2473_v52, 2 }
 0x157   :  { %8660 = vst [vmem:[#allocation102_spill] sm:$0xff] %v8659_v4  ;;  %8663 = vst [vmem:[#allocation103_spill] sm:$0xff] %v8662_v37  ;;  %v8665_v12 = vsel %vm6774_vm4, 4294967295, %v8664_v12  ;;  %vm8668_vm12 = vnez %v8639_v13  ;;  %vm6789_vm3 = vcmp.eq.s32.totalorder %v1172_v24, %v5288_v3  ;;  %v8669_v33 = vmov 0 }
 0x158   :  { %8666 = vst [vmem:[#allocation104_spill] sm:$0xff] %v8665_v12  ;;  %v8670_v33 = vsel %vm6789_vm3, 4294967295, %v8669_v33  ;;  %v955_v22 = vand.u32 63, %v353_v51  ;;  %v962_v44 = vand.u32 63, %v354_v19  ;;  %vm6798_vm7 = vcmp.eq.s32.totalorder %v1067_v15, %v5288_v3  ;;  %vm8687_vm6 = vmpackc.low %vm8668_vm12, %vm6682_vm11 }
 0x159   :  { %8671 = vst [vmem:[#allocation105_spill] sm:$0xff] %v8670_v33  ;;  %v8672_v1 = vmov 0  ;;  %vm6803_vm9 = vcmp.eq.s32.totalorder %v1074_v30, %v5288_v3  ;;  %v8675_v11 = vmov 0  ;;  %v1179_v24 = vand.u32 63, %v385_v55 }
 0x15a   :  { %v8673_v1 = vsel %vm6798_vm7, 4294967295, %v8672_v1  ;;  %v8676_v11 = vsel %vm6803_vm9, 4294967295, %v8675_v11  ;;  %v1186_v36 = vand.u32 63, %v386_v0  ;;  %vm8678_vm1 = vnez %v8619_v26 }
 0x15b   :  { %8674 = vst [vmem:[#allocation106_spill] sm:$0xff] %v8673_v1  ;;  %8677 = vst [vmem:[#allocation107_spill] sm:$0xff] %v8676_v11  ;;  %vm6818_vm7 = vcmp.eq.s32.totalorder %v1291_v56, %v5288_v3  ;;  %v8680_v51 = vmov 0  ;;  %vm6823_vm9 = vcmp.eq.s32.totalorder %v1298_v34, %v5288_v3  ;;  %v8683_v19 = vmov 0 }
 0x15c   :  { %vm8679_vm2 = vmpackc.low %vm8650_vm15, %vm8678_vm1  ;;  %v8681_v51 = vsel %vm6818_vm7, 4294967295, %v8680_v51  ;;  %v8684_v19 = vsel %vm6823_vm9, 4294967295, %v8683_v19  ;;  %v2461_v15 = vadd.f32 %v2460_v38, %v2459_v40  ;;  %v2475_v40 = vadd.f32 %v2474_v23, %v2473_v52 }
 0x15d   :  { %4815 = vmatpush3.bf16.msk.msra.mxu0 %vm8679_vm2, %v8407_v54  ;;  %8682 = vst [vmem:[#allocation108_spill] sm:$0xff] %v8681_v51  ;;  %8685 = vst [vmem:[#allocation109_spill] sm:$0xff] %v8684_v19  ;;  %v8691_v38 = vmov 0  ;;  %vm6859_vm1 = vcmp.eq.s32.totalorder %v962_v44, %v5288_v3  ;;  %v8694_v34 = vmov 0  ;;  %v8697_v52 = vmov 0 }
 0x15e   :  { %vm8686_vm2 = vmpackc.low %vm8657_vm14, %vm6655_vm8  ;;  %4817 = vmatprep.subr.msk.bf16.mxu0 %vm8687_vm6, %v8407_v54  ;;  %vm8690_vm14 = vnez %v8676_v11  ;;  %vm6854_vm6 = vcmp.eq.s32.totalorder %v955_v22, %v5288_v3  ;;  %v8695_v34 = vsel %vm6859_vm1, 4294967295, %v8694_v34  ;;  %vm6873_vm15 = vcmp.eq.s32.totalorder %v1186_v36, %v5288_v3 }
 0x15f   :  { %4847 = vmatpush3.bf16.msk.msra.mxu1 %vm8686_vm2, %v8407_v54  ;;  %vm8688_vm8 = vmpackc.low %vm6743_vm13, %vm6738_vm10  ;;  %vm8689_vm2 = vnez %v8673_v1  ;;  %v8692_v38 = vsel %vm6854_vm6, 4294967295, %v8691_v38  ;;  %8696 = vst [vmem:[#allocation111_spill] sm:$0xff] %v8695_v34  ;;  %vm6868_vm10 = vcmp.eq.s32.totalorder %v1179_v24, %v5288_v3  ;;  %v8700_v30 = vmov 0 }
 0x160   :  { %4849 = vmatprep.subr.msk.bf16.mxu1 %vm8688_vm8, %v8407_v54  ;;  %8693 = vst [vmem:[#allocation110_spill] sm:$0xff] %v8692_v38  ;;  %v8698_v52 = vsel %vm6868_vm10, 4294967295, %v8697_v52  ;;  %v8701_v30 = vsel %vm6873_vm15, 4294967295, %v8700_v30  ;;  %vm8703_vm13 = vmpackc.low %vm6769_vm5, %vm6764_vm0  ;;  %v2462_v55 = vrot.slane %v2461_v15, 1  ;;  %v2476_v36 = vrot.slane %v2475_v40, 1 }
 0x161   :  { %8699 = vst [vmem:[#allocation112_spill] sm:$0xff] %v8698_v52  ;;  %8702 = vst [vmem:[#allocation113_spill] sm:$0xff] %v8701_v30  ;;  %4819 = vmatpush3.bf16.msk.msra.mxu0 %vm8703_vm13, %v8407_v54  ;;  %v2197_v23 = vadd.s32 128, %v5288_v3  ;;  %v2199_v22 = vadd.s32 384, %v5288_v3  ;;  %v6924_v44 = vand.u32 63, %v5288_v3  ;;  %v2198_v24 = vadd.s32 256, %v5288_v3 }
 0x162   :  { %vm8704_vm8 = vmpackc.low %vm6789_vm3, %vm6774_vm4  ;;  %v2463_v0 = vadd.f32 %v2462_v55, %v2461_v15  ;;  %v2477_v56 = vadd.f32 %v2476_v36, %v2475_v40  ;;  %v8707_v15 = vmov 0  ;;  %v8710_v55 = vmov 0 }
 0x163   :  { %4851 = vmatpush3.bf16.msk.msra.mxu1 %vm8704_vm8, %v8407_v54  ;;  %vm8705_vm11 = vmpackc.low %vm8690_vm14, %vm8689_vm2  ;;  %v2215_v38 = vand.u32 63, %v2197_v23  ;;  %v2229_v34 = vand.u32 63, %v2199_v22  ;;  %v2222_v40 = vand.u32 63, %v2198_v24  ;;  %v8713_v36 = vmov 0 }
 0x164   :  { %4821 = vmatprep.subr.msk.bf16.mxu0 %vm8705_vm11, %v8407_v54  ;;  %vm8146_vm13 = vmpackc.low %vm6859_vm1, %vm6854_vm6  ;;  %vm2300_vm11 = vcmp.eq.s32.totalorder %v6924_v44, %v5286_v2  ;;  %v8722_v23 = vmov 0  ;;  %v8725_v22 = vmov 0  ;;  %v8728_v24 = vmov 0  ;;  %v9101_v13 = vld [vmem:[#allocation109_spill] sm:$0xff] }
 0x165   :  { %vm8706_vm4 = vmpackc.low %vm6823_vm9, %vm6818_vm7  ;;  %4823 = vmatpush3.bf16.msk.msra.mxu0 %vm8146_vm13, %v8407_v54  ;;  %vm2316_vm13 = vcmp.eq.s32.totalorder %v6924_v44, %v5351_v48  ;;  %vm2309_vm6 = vcmp.eq.s32.totalorder %v2215_v38, %v5295_v8  ;;  %vm2303_vm1 = vcmp.eq.s32.totalorder %v2229_v34, %v5286_v2  ;;  %vm2311_vm7 = vcmp.eq.s32.totalorder %v2229_v34, %v5295_v8 }
 0x166   :  { %4853 = vmatprep.subr.msk.bf16.mxu1 %vm8706_vm4, %v8407_v54  ;;  %vm8145_vm8 = vmpackc.low %vm6873_vm15, %vm6868_vm10  ;;  %vm2308_vm4 = vcmp.eq.s32.totalorder %v6924_v44, %v5295_v8  ;;  %vm2324_vm10 = vcmp.eq.s32.totalorder %v6924_v44, %v5354_v50  ;;  %vm2301_vm15 = vcmp.eq.s32.totalorder %v2215_v38, %v5286_v2  ;;  %vm2310_vm2 = vcmp.eq.s32.totalorder %v2222_v40, %v5295_v8 }
 0x167   :  { %4855 = vmatpush3.bf16.msk.msra.mxu1 %vm8145_vm8, %v8407_v54  ;;  %vm6931_vm8 = vmpackc.low %vm2308_vm4, %vm2300_vm11  ;;  %vm2302_vm4 = vcmp.eq.s32.totalorder %v2222_v40, %v5286_v2  ;;  %vm2317_vm14 = vcmp.eq.s32.totalorder %v2215_v38, %v5351_v48  ;;  %vm2325_vm3 = vcmp.eq.s32.totalorder %v2215_v38, %v5354_v50  ;;  %v2200_v51 = vadd.s32 512, %v5288_v3 }
 0x168   :  { %2690 = vmatmul.mubr.f32.vlgmr.msra.gmra.mrb[10].mxu0 %v2463_v0  ;;  %v8708_v15 = vsel %vm6931_vm8, 4294967295, %v8707_v15  ;;  %vm6943_vm9 = vmpackc.low %vm2324_vm10, %vm2316_vm13  ;;  %v8716_v0 = vmov 0 }
 0x169   :  { %8709 = vst [vmem:[#allocation114_spill] sm:$0xff] %v8708_v15  ;;  %v8711_v55 = vsel %vm6943_vm9, 4294967295, %v8710_v55  ;;  %vm6947_vm11 = vmpackc.low %vm2309_vm6, %vm2301_vm15  ;;  %vm2319_vm15 = vcmp.eq.s32.totalorder %v2229_v34, %v5351_v48  ;;  %vm2327_vm6 = vcmp.eq.s32.totalorder %v2229_v34, %v5354_v50  ;;  %v8745_v15 = vld [vmem:[#allocation36_spill] sm:$0xff]  ;;  %v7111_v19 = vand.u32 63, %v2200_v51 }
 0x16a   :  { %2760 = vmatmul.mubr.f32.vlgmr.msra.gmra.mrb[10].mxu1 %v2477_v56  ;;  %8712 = vst [vmem:[#allocation115_spill] sm:$0xff] %v8711_v55  ;;  %v8714_v36 = vsel %vm6947_vm11, 4294967295, %v8713_v36  ;;  %4857 = vmatprep.subr.msk.bf16.mxu0 %vm6947_vm11, %v8407_v54  ;;  %vm6958_vm10 = vmpackc.low %vm2311_vm7, %vm2303_vm1  ;;  %v8719_v56 = vmov 0  ;;  %vm2318_vm7 = vcmp.eq.s32.totalorder %v2222_v40, %v5351_v48  ;;  %vm2326_vm1 = vcmp.eq.s32.totalorder %v2222_v40, %v5354_v50 }
 0x16b   :  { %8715 = vst [vmem:[#allocation116_spill] sm:$0xff] %v8714_v36  ;;  %v8717_v0 = vsel %vm6958_vm10, 4294967295, %v8716_v0  ;;  %4873 = vmatprep.subr.msk.bf16.mxu1 %vm6958_vm10, %v8407_v54  ;;  %4859 = vmatpush1.bf16.msk.msra.mxu0 %vm6931_vm8, %v8407_v54  ;;  %vm6970_vm13 = vmpackc.low %vm2310_vm2, %vm2302_vm4  ;;  %v8738_v55 = vmov 0  ;;  %vm2320_vm8 = vcmp.eq.s32.totalorder %v7111_v19, %v5351_v48  ;;  %v8786_v51 = vmov 0 }
 0x16c   :  { %8718 = vst [vmem:[#allocation117_spill] sm:$0xff] %v8717_v0  ;;  %v8720_v56 = vsel %vm6970_vm13, 4294967295, %v8719_v56  ;;  %4875 = vmatpush1.bf16.msk.msra.mxu1 %vm6970_vm13, %v8407_v54  ;;  %vm6979_vm11 = vmpackc.low %vm2325_vm3, %vm2317_vm14  ;;  %vm2333_vm14 = vcmp.eq.s32.totalorder %v2215_v38, %v5435_v14 }
 0x16d   :  { %8721 = vst [vmem:[#allocation118_spill] sm:$0xff] %v8720_v56  ;;  %v8723_v23 = vsel %vm6979_vm11, 4294967295, %v8722_v23  ;;  %4861 = vmatprep.subr.msk.bf16.mxu0 %vm6979_vm11, %v8407_v54  ;;  %vm6986_vm2 = vmpackc.low %vm2327_vm6, %vm2319_vm15  ;;  %vm2335_vm15 = vcmp.eq.s32.totalorder %v2229_v34, %v5435_v14  ;;  %v8741_v56 = vmov 0 }
 0x16e   :  { %8724 = vst [vmem:[#allocation119_spill] sm:$0xff] %v8723_v23  ;;  %v8726_v22 = vsel %vm6986_vm2, 4294967295, %v8725_v22  ;;  %4877 = vmatprep.subr.msk.bf16.mxu1 %vm6986_vm2, %v8407_v54  ;;  %vm6993_vm4 = vmpackc.low %vm2326_vm1, %vm2318_vm7  ;;  %v8731_v23 = vld [vmem:[#allocation26_spill] sm:$0xff]  ;;  %vm2332_vm1 = vcmp.eq.s32.totalorder %v6924_v44, %v5435_v14 }
 0x16f   :  { %8727 = vst [vmem:[#allocation120_spill] sm:$0xff] %v8726_v22  ;;  %v8729_v24 = vsel %vm6993_vm4, 4294967295, %v8728_v24  ;;  %4863 = vmatpush1.bf16.msk.msra.mxu0 %vm6943_vm9, %v8407_v54  ;;  %vm2341_vm3 = vcmp.eq.s32.totalorder %v2215_v38, %v8731_v23  ;;  %vm2343_vm6 = vcmp.eq.s32.totalorder %v2229_v34, %v8731_v23  ;;  %v8732_v22 = vmov 0 }
 0x170   :  { %8730 = vst [vmem:[#allocation121_spill] sm:$0xff] %v8729_v24  ;;  %4879 = vmatpush1.bf16.msk.msra.mxu1 %vm6993_vm4, %v8407_v54  ;;  %vm7007_vm7 = vmpackc.low %vm2341_vm3, %vm2333_vm14  ;;  %vm2340_vm9 = vcmp.eq.s32.totalorder %v6924_v44, %v8731_v23  ;;  %vm2334_vm4 = vcmp.eq.s32.totalorder %v2222_v40, %v5435_v14  ;;  %vm2342_vm2 = vcmp.eq.s32.totalorder %v2222_v40, %v8731_v23  ;;  %v8735_v24 = vmov 0 }
 0x171   :  { %v8733_v22 = vsel %vm7007_vm7, 4294967295, %v8732_v22  ;;  %4865 = vmatprep.subr.msk.bf16.mxu0 %vm7007_vm7, %v8407_v54  ;;  %vm7020_vm11 = vmpackc.low %vm2343_vm6, %vm2335_vm15  ;;  %vm2357_vm6 = vcmp.eq.s32.totalorder %v2215_v38, %v8745_v15 }
 0x172   :  { %8734 = vst [vmem:[#allocation26_spill] sm:$0xff] %v8733_v22  ;;  %v8736_v24 = vsel %vm7020_vm11, 4294967295, %v8735_v24  ;;  %4881 = vmatprep.subr.msk.bf16.mxu1 %vm7020_vm11, %v8407_v54  ;;  %vm7027_vm14 = vmpackc.low %vm2340_vm9, %vm2332_vm1  ;;  %v8744_v22 = vld [vmem:[#allocation35_spill] sm:$0xff]  ;;  %vm2359_vm11 = vcmp.eq.s32.totalorder %v2229_v34, %v8745_v15 }
 0x173   :  { %8737 = vst [vmem:[#allocation122_spill] sm:$0xff] %v8736_v24  ;;  %v8739_v55 = vsel %vm7027_vm14, 4294967295, %v8738_v55  ;;  %4867 = vmatpush1.bf16.msk.msra.mxu0 %vm7027_vm14, %v8407_v54  ;;  %vm7034_vm3 = vmpackc.low %vm2342_vm2, %vm2334_vm4  ;;  %vm2349_vm15 = vcmp.eq.s32.totalorder %v2215_v38, %v8744_v22  ;;  %vm2351_vm7 = vcmp.eq.s32.totalorder %v2229_v34, %v8744_v22  ;;  %v8746_v24 = vmov 0 }
 0x174   :  { %8740 = vst [vmem:[#allocation123_spill] sm:$0xff] %v8739_v55  ;;  %v8742_v56 = vsel %vm7034_vm3, 4294967295, %v8741_v56  ;;  %4883 = vmatpush1.bf16.msk.msra.mxu1 %vm7034_vm3, %v8407_v54  ;;  %vm7045_vm9 = vmpackc.low %vm2357_vm6, %vm2349_vm15  ;;  %vm2348_vm2 = vcmp.eq.s32.totalorder %v6924_v44, %v8744_v22  ;;  %vm2356_vm4 = vcmp.eq.s32.totalorder %v6924_v44, %v8745_v15  ;;  %vm2350_vm1 = vcmp.eq.s32.totalorder %v2222_v40, %v8744_v22 }
 0x175   :  { %8743 = vst [vmem:[#allocation124_spill] sm:$0xff] %v8742_v56  ;;  %v8747_v24 = vsel %vm7045_vm9, 4294967295, %v8746_v24  ;;  %vm2358_vm14 = vcmp.eq.s32.totalorder %v2222_v40, %v8745_v15  ;;  %4869 = vmatprep.subr.msk.bf16.mxu0 %vm7045_vm9, %v8407_v54  ;;  %vm7058_vm13 = vmpackc.low %vm2359_vm11, %vm2351_vm7  ;;  %v8749_v38 = vmov 0  ;;  %v2201_v34 = vadd.s32 640, %v5288_v3 }
 0x176   :  { %8748 = vst [vmem:[#allocation35_spill] sm:$0xff] %v8747_v24  ;;  %v8750_v38 = vsel %vm7058_vm13, 4294967295, %v8749_v38  ;;  %v2203_v56 = vadd.s32 896, %v5288_v3  ;;  %4885 = vmatprep.subr.msk.bf16.mxu1 %vm7058_vm13, %v8407_v54  ;;  %vm7067_vm15 = vmpackc.low %vm2356_vm4, %vm2348_vm2  ;;  %v8752_v44 = vmov 0  ;;  %v8755_v40 = vmov 0 }
 0x177   :  { %8751 = vst [vmem:[#allocation36_spill] sm:$0xff] %v8750_v38  ;;  %v8753_v44 = vsel %vm7067_vm15, 4294967295, %v8752_v44  ;;  %4871 = vmatpush1.bf16.msk.msra.mxu0 %vm7067_vm15, %v8407_v54  ;;  %vm7074_vm11 = vmpackc.low %vm2358_vm14, %vm2350_vm1  ;;  %v7078_v24 = vand.u32 63, %v2201_v34  ;;  %v8177_v38 = vmov 0.0   ;;  %v8761_v34 = vmov 0 }
 0x178   :  { %8754 = vst [vmem:[#allocation125_spill] sm:$0xff] %v8753_v44  ;;  %v8756_v40 = vsel %vm7074_vm11, 4294967295, %v8755_v40  ;;  %v7080_v55 = vand.u32 63, %v2203_v56  ;;  %4887 = vmatpush1.bf16.msk.msra.mxu1 %vm7074_vm11, %v8407_v54  ;;  %2835 = vmatprep.mubr.f32.mxu0 %v8177_v38  ;;  %v8758_v56 = vmov 0 }
 0x179   :  { %8757 = vst [vmem:[#allocation126_spill] sm:$0xff] %v8756_v40  ;;  %2906 = vmatprep.mubr.f32.mxu1 %v8177_v38  ;;  %vm2305_vm7 = vcmp.eq.s32.totalorder %v7078_v24, %v5286_v2  ;;  %vm2313_vm14 = vcmp.eq.s32.totalorder %v7078_v24, %v5295_v8  ;;  %vm2337_vm9 = vcmp.eq.s32.totalorder %v7078_v24, %v5435_v14 }
 0x17a   :  { %vm2307_vm6 = vcmp.eq.s32.totalorder %v7080_v55, %v5286_v2  ;;  %vm2315_vm2 = vcmp.eq.s32.totalorder %v7080_v55, %v5295_v8  ;;  %vm7095_vm4 = vmpackc.low %vm2313_vm14, %vm2305_vm7  ;;  %vm2304_vm7 = vcmp.eq.s32.totalorder %v7111_v19, %v5286_v2  ;;  %vm2312_vm14 = vcmp.eq.s32.totalorder %v7111_v19, %v5295_v8 }
 0x17b   :  { %v8759_v56 = vsel %vm7095_vm4, 4294967295, %v8758_v56  ;;  %4889 = vmatprep.subr.msk.bf16.mxu0 %vm7095_vm4, %v8407_v54  ;;  %vm7102_vm1 = vmpackc.low %vm2315_vm2, %vm2307_vm6  ;;  %vm2329_vm4 = vcmp.eq.s32.totalorder %v7078_v24, %v5354_v50  ;;  %vm2323_vm15 = vcmp.eq.s32.totalorder %v7080_v55, %v5351_v48  ;;  %vm2331_vm13 = vcmp.eq.s32.totalorder %v7080_v55, %v5354_v50 }
 0x17c   :  { %8760 = vst [vmem:[#allocation127_spill] sm:$0xff] %v8759_v56  ;;  %v8762_v34 = vsel %vm7102_vm1, 4294967295, %v8761_v34  ;;  %4905 = vmatprep.subr.msk.bf16.mxu1 %vm7102_vm1, %v8407_v54  ;;  %v2202_v56 = vadd.s32 768, %v5288_v3  ;;  %vm2321_vm1 = vcmp.eq.s32.totalorder %v7078_v24, %v5351_v48  ;;  %vm7127_vm11 = vmpackc.low %vm2312_vm14, %vm2304_vm7  ;;  %vm2328_vm7 = vcmp.eq.s32.totalorder %v7111_v19, %v5354_v50 }
 0x17d   :  { %8763 = vst [vmem:[#allocation128_spill] sm:$0xff] %v8762_v34  ;;  %vm7143_vm14 = vmpackc.low %vm2329_vm4, %vm2321_vm1  ;;  %vm2345_vm0 = vcmp.eq.s32.totalorder %v7078_v24, %v8731_v23  ;;  %vm8775_vm4 = vcmask 523264  }
 0x17e   :  { %v7113_v11 = vand.u32 63, %v2202_v56  ;;  %vm8776_vm1 = vmmov %vm8775_vm4  ;;  %v8827_v56 = vld [vmem:[#allocation16_spill] sm:$0xff] }
 0x17f   :  { %vm7161_vm5 = vmpackc.low %vm2328_vm7, %vm2320_vm8  ;;  %vm2336_vm8 = vcmp.eq.s32.totalorder %v7111_v19, %v5435_v14  ;;  %vm2344_vm7 = vcmp.eq.s32.totalorder %v7111_v19, %v8731_v23 }
 0x180   :  { %vm2306_vm6 = vcmp.eq.s32.totalorder %v7113_v11, %v5286_v2  ;;  %vm2314_vm2 = vcmp.eq.s32.totalorder %v7113_v11, %v5295_v8  ;;  %v8766_v8 = vmov 0  ;;  %vm2322_vm10 = vcmp.eq.s32.totalorder %v7113_v11, %v5351_v48 }
 0x181   :  { %vm7135_vm3 = vmpackc.low %vm2314_vm2, %vm2306_vm6  ;;  %vm2330_vm6 = vcmp.eq.s32.totalorder %v7113_v11, %v5354_v50  ;;  %v8780_v48 = vmov 0  ;;  %v8783_v50 = vmov 0 }
 0x182   :  { %v8767_v8 = vsel %vm7135_vm3, 4294967295, %v8766_v8  ;;  %vm7151_vm2 = vmpackc.low %vm2331_vm13, %vm2323_vm15  ;;  %vm2339_vm13 = vcmp.eq.s32.totalorder %v7080_v55, %v5435_v14  ;;  %vm2347_vm15 = vcmp.eq.s32.totalorder %v7080_v55, %v8731_v23 }
 0x183   :  { %8768 = vst [vmem:[#allocation129_spill] sm:$0xff] %v8767_v8 }
 0x1f7   :  { %v4480_v38 = vpop.f32.mrb[8].mxu0 }
 0x1f8   :  { %v4481_v44 = vpop.f32.mrb[9].mxu0 }
 0x1f9   :  { %v4482_v0 = vadd.f32 %v4481_v44, %v4480_v38  ;;  %v8820_v38 = vld [vmem:[#allocation15_spill] sm:$0xff]  ;;  %v8822_v44 = vld [vmem:[#allocation12_spill] sm:$0xff] }
 0x202   :  { %v4515_v40 = vpop.f32.mrb[8].mxu1 }
 0x203   :  { %v4516_v36 = vpop.f32.mrb[9].mxu1 }
 0x204   :  { %v4517_v52 = vadd.f32 %v4516_v36, %v4515_v40  ;;  %v8790_v36 = vmov 0  ;;  %v8825_v40 = vld [vmem:[#allocation17_spill] sm:$0xff] }
 0x206   :  { %v2622_v30 = vadd.f32 %v4517_v52, %v4482_v0  ;;  %v8799_v0 = vmov 0 }
 0x23b   :  { %v4550_v1 = vpop.f32.mrb[10].mxu0 }
 0x23c   :  { %v4551_v33 = vpop.f32.mrb[11].mxu0 }
 0x23d   :  { %v4585_v12 = vpop.f32.mrb[10].mxu1  ;;  %v4552_v34 = vadd.f32 %v4551_v33, %v4550_v1  ;;  %v8777_v33 = vmov 0 }
 0x23e   :  { %v4586_v4 = vpop.f32.mrb[11].mxu1  ;;  %v8778_v33 = vsel %vm7161_vm5, 4294967295, %v8777_v33 }
 0x23f   :  { %v4587_v37 = vadd.f32 %v4586_v4, %v4585_v12  ;;  %v2692_v52 = vadd.f32 %v4552_v34, %v2622_v30  ;;  %v8772_v12 = vmov 0  ;;  %8779 = vst [vmem:[#allocation132_spill] sm:$0xff] %v8778_v33  ;;  %v8789_v30 = vmov 0.0   ;;  %v8830_v34 = vld [vmem:[#allocation19_spill] sm:$0xff] }
 0x240   :  { %v8773_v12 = vsel %vm7151_vm2, 4294967295, %v8772_v12 }
 0x241   :  { %v2762_v3 = vadd.f32 %v4587_v37, %v2692_v52  ;;  %v8769_v37 = vmov 0  ;;  %8774 = vst [vmem:[#allocation131_spill] sm:$0xff] %v8773_v12  ;;  %v8832_v52 = vld [vmem:[#allocation18_spill] sm:$0xff] }
 0x242   :  { %v8770_v37 = vsel %vm7143_vm14, 4294967295, %v8769_v37 }
 0x243   :  { %v2766_v4 = vmul.f32 0.03125, %v2762_v3  ;;  %8771 = vst [vmem:[#allocation130_spill] sm:$0xff] %v8770_v37  ;;  %v8835_v3 = vld [vmem:[#allocation21_spill] sm:$0xff] }
 0x245   :  { %4196 = vmatmul.mubr.msk.f32.vlgmr.msra.gmra.mrb[12].mxu0 %vm8775_vm4, %v2766_v4  ;;  %4213 = vmatmul.mubr.msk.f32.vlgmr.msra.gmra.mrb[12].mxu1 %vm8776_vm1, %v2766_v4  ;;  %vm7175_vm4 = vmpackc.low %vm2330_vm6, %vm2322_vm10  ;;  %vm2338_vm10 = vcmp.eq.s32.totalorder %v7113_v11, %v5435_v14  ;;  %vm2346_vm6 = vcmp.eq.s32.totalorder %v7113_v11, %v8731_v23  ;;  %v8793_v14 = vmov 0  ;;  %v8810_v23 = vld [vmem:[#allocation10_spill] sm:$0xff] }
 0x246   :  { %4891 = vmatpush1.bf16.msk.msra.mxu0 %vm7127_vm11, %v8407_v54  ;;  %4907 = vmatpush1.bf16.msk.msra.mxu1 %vm7135_vm3, %v8407_v54  ;;  %v8781_v48 = vsel %vm7175_vm4, 4294967295, %v8780_v48  ;;  %vm7189_vm1 = vmpackc.low %vm2345_vm0, %vm2337_vm9  ;;  %vm2355_vm9 = vcmp.eq.s32.totalorder %v7080_v55, %v8744_v22 }
 0x247   :  { %8782 = vst [vmem:[#allocation133_spill] sm:$0xff] %v8781_v48  ;;  %4893 = vmatprep.subr.msk.bf16.mxu0 %vm7143_vm14, %v8407_v54  ;;  %4909 = vmatprep.subr.msk.bf16.mxu1 %vm7151_vm2, %v8407_v54  ;;  %v8784_v50 = vsel %vm7189_vm1, 4294967295, %v8783_v50  ;;  %vm7197_vm3 = vmpackc.low %vm2347_vm15, %vm2339_vm13  ;;  %vm2353_vm14 = vcmp.eq.s32.totalorder %v7078_v24, %v8744_v22  ;;  %vm2361_vm2 = vcmp.eq.s32.totalorder %v7078_v24, %v8745_v15  ;;  %v8815_v24 = vld [vmem:[#allocation13_spill] sm:$0xff] }
 0x248   :  { %8785 = vst [vmem:[#allocation134_spill] sm:$0xff] %v8784_v50  ;;  %v8787_v51 = vsel %vm7197_vm3, 4294967295, %v8786_v51  ;;  %2977 = vmatprep.mubr.f32.mxu0 %v8789_v30  ;;  %3048 = vmatprep.mubr.f32.mxu1 %v8789_v30  ;;  %vm7207_vm0 = vmpackc.low %vm2344_vm7, %vm2336_vm8  ;;  %vm2363_vm13 = vcmp.eq.s32.totalorder %v7080_v55, %v8745_v15  ;;  %v8796_v55 = vmov 0  ;;  %vm2352_vm7 = vcmp.eq.s32.totalorder %v7111_v19, %v8744_v22 }
 0x249   :  { %8788 = vst [vmem:[#allocation135_spill] sm:$0xff] %v8787_v51  ;;  %v8791_v36 = vsel %vm7207_vm0, 4294967295, %v8790_v36  ;;  %vm7221_vm15 = vmpackc.low %vm2346_vm6, %vm2338_vm10  ;;  %vm2360_vm10 = vcmp.eq.s32.totalorder %v7111_v19, %v8745_v15  ;;  %v8802_v19 = vmov 0 }
 0x24a   :  { %8792 = vst [vmem:[#allocation136_spill] sm:$0xff] %v8791_v36  ;;  %4895 = vmatpush1.bf16.msk.msra.mxu0 %vm7161_vm5, %v8407_v54  ;;  %4911 = vmatpush1.bf16.msk.msra.mxu1 %vm7175_vm4, %v8407_v54  ;;  %v8794_v14 = vsel %vm7221_vm15, 4294967295, %v8793_v14  ;;  %vm7231_vm8 = vmpackc.low %vm2361_vm2, %vm2353_vm14 }
 0x24b   :  { %8795 = vst [vmem:[#allocation137_spill] sm:$0xff] %v8794_v14  ;;  %4897 = vmatprep.subr.msk.bf16.mxu0 %vm7189_vm1, %v8407_v54  ;;  %4913 = vmatprep.subr.msk.bf16.mxu1 %vm7197_vm3, %v8407_v54  ;;  %v8797_v55 = vsel %vm7231_vm8, 4294967295, %v8796_v55  ;;  %vm7239_vm6 = vmpackc.low %vm2363_vm13, %vm2355_vm9  ;;  %vm2354_vm1 = vcmp.eq.s32.totalorder %v7113_v11, %v8744_v22  ;;  %vm2362_vm3 = vcmp.eq.s32.totalorder %v7113_v11, %v8745_v15  ;;  %v8805_v11 = vmov 0  ;;  %v8808_v15 = vld [vmem:[#allocation11_spill] sm:$0xff]  ;;  %v8813_v22 = vld [vmem:[#allocation14_spill] sm:$0xff] }
 0x24c   :  { %8798 = vst [vmem:[#allocation138_spill] sm:$0xff] %v8797_v55  ;;  %v8800_v0 = vsel %vm7239_vm6, 4294967295, %v8799_v0  ;;  %vm7253_vm14 = vmpackc.low %vm2360_vm10, %vm2352_vm7  ;;  %vm8809_vm9 = vnez %v8808_v15  ;;  %vm8811_vm13 = vnez %v8810_v23  ;;  %v8840_v15 = vld [vmem:[#allocation23_spill] sm:$0xff]  ;;  %v8842_v23 = vld [vmem:[#allocation22_spill] sm:$0xff] }
 0x24d   :  { %8801 = vst [vmem:[#allocation139_spill] sm:$0xff] %v8800_v0  ;;  %v8803_v19 = vsel %vm7253_vm14, 4294967295, %v8802_v19  ;;  %vm7263_vm2 = vmpackc.low %vm2362_vm3, %vm2354_vm1  ;;  %vm8814_vm3 = vnez %v8813_v22  ;;  %vm8816_vm1 = vnez %v8815_v24  ;;  %v8845_v22 = vld [vmem:[#allocation25_spill] sm:$0xff]  ;;  %v8847_v24 = vld [vmem:[#allocation24_spill] sm:$0xff] }
 0x24e   :  { %4899 = vmatpush1.bf16.msk.msra.mxu0 %vm7207_vm0, %v8407_v54  ;;  %4915 = vmatpush1.bf16.msk.msra.mxu1 %vm7221_vm15, %v8407_v54  ;;  %8804 = vst [vmem:[#allocation140_spill] sm:$0xff] %v8803_v19  ;;  %v8806_v11 = vsel %vm7263_vm2, 4294967295, %v8805_v11  ;;  %vm8812_vm7 = vmpackc.low %vm8809_vm9, %vm8811_vm13  ;;  %vm8826_vm9 = vnez %v8825_v40  ;;  %vm8828_vm13 = vnez %v8827_v56  ;;  %v8855_v40 = vld [vmem:[#allocation30_spill] sm:$0xff]  ;;  %v8857_v56 = vld [vmem:[#allocation29_spill] sm:$0xff] }
 0x24f   :  { %4901 = vmatprep.subr.msk.bf16.mxu0 %vm7231_vm8, %v8407_v54  ;;  %4917 = vmatprep.subr.msk.bf16.mxu1 %vm7239_vm6, %v8407_v54  ;;  %8807 = vst [vmem:[#allocation141_spill] sm:$0xff] %v8806_v11  ;;  %vm8817_vm10 = vmpackc.low %vm8814_vm3, %vm8816_vm1  ;;  %vm8818_vm6 = vcmask 523264   ;;  %vm8823_vm8 = vnez %v8822_v44  ;;  %vm8831_vm3 = vnez %v8830_v34  ;;  %vm8836_vm1 = vnez %v8835_v3  ;;  %v8852_v44 = vld [vmem:[#allocation27_spill] sm:$0xff]  ;;  %v8860_v34 = vld [vmem:[#allocation32_spill] sm:$0xff] }
 0x250   :  { %v8865_v3 = vld [vmem:[#allocation34_spill] sm:$0xff]  ;;  %v8986_v11 = vld [vmem:[#allocation83_spill] sm:$0xff] }
 0x252   :  { %4903 = vmatpush1.bf16.msk.msra.mxu0 %vm7253_vm14, %v8407_v54  ;;  %4919 = vmatpush1.bf16.msk.msra.mxu1 %vm7263_vm2, %v8407_v54  ;;  %vm8819_vm14 = vmmov %vm8818_vm6  ;;  %vm8821_vm2 = vnez %v8820_v38  ;;  %v8850_v38 = vld [vmem:[#allocation28_spill] sm:$0xff] }
 0x253   :  { %4921 = vmatprep.subr.msk.bf16.mxu0 %vm8812_vm7, %v8407_v54  ;;  %4953 = vmatprep.subr.msk.bf16.mxu1 %vm8817_vm10, %v8407_v54  ;;  %vm8824_vm15 = vmpackc.low %vm8821_vm2, %vm8823_vm8  ;;  %vm8841_vm2 = vnez %v8840_v15  ;;  %vm8843_vm10 = vnez %v8842_v23  ;;  %v8870_v15 = vld [vmem:[#allocation38_spill] sm:$0xff]  ;;  %v8872_v23 = vld [vmem:[#allocation37_spill] sm:$0xff] }
 0x254   :  { %vm8829_vm7 = vmpackc.low %vm8826_vm9, %vm8828_vm13  ;;  %vm8846_vm13 = vnez %v8845_v22  ;;  %v8875_v22 = vld [vmem:[#allocation40_spill] sm:$0xff] }
 0x255   :  { %4230 = vmatmul.mubr.msk.f32.vlgmr.msra.gmra.mrb[14].mxu0 %vm8818_vm6, %v2766_v4  ;;  %4247 = vmatmul.mubr.msk.f32.vlgmr.msra.gmra.mrb[14].mxu1 %vm8819_vm14, %v2766_v4  ;;  %vm8833_vm6 = vnez %v8832_v52  ;;  %v8837_v4 = vld [vmem:[#allocation20_spill] sm:$0xff]  ;;  %vm8844_vm9 = vmpackc.low %vm8841_vm2, %vm8843_vm10  ;;  %vm8861_vm10 = vnez %v8860_v34  ;;  %v8862_v52 = vld [vmem:[#allocation31_spill] sm:$0xff] }
 0x256   :  { %4923 = vmatpush3.bf16.msk.msra.mxu0 %vm8824_vm15, %v8407_v54  ;;  %4955 = vmatpush3.bf16.msk.msra.mxu1 %vm8829_vm7, %v8407_v54  ;;  %vm8834_vm14 = vmpackc.low %vm8831_vm3, %vm8833_vm6  ;;  %vm8838_vm8 = vnez %v8837_v4  ;;  %vm8848_vm7 = vnez %v8847_v24  ;;  %vm8851_vm6 = vnez %v8850_v38  ;;  %v8867_v4 = vld [vmem:[#allocation33_spill] sm:$0xff]  ;;  %v8877_v24 = vld [vmem:[#allocation39_spill] sm:$0xff] }
 0x257   :  { %4925 = vmatprep.subr.msk.bf16.mxu0 %vm8834_vm14, %v8407_v54  ;;  %vm8839_vm15 = vmpackc.low %vm8836_vm1, %vm8838_vm8  ;;  %vm8853_vm14 = vnez %v8852_v44  ;;  %vm8856_vm8 = vnez %v8855_v40  ;;  %v8880_v38 = vld [vmem:[#allocation42_spill] sm:$0xff]  ;;  %v8882_v44 = vld [vmem:[#allocation41_spill] sm:$0xff] }
 0x258   :  { %4957 = vmatprep.subr.msk.bf16.mxu1 %vm8839_vm15, %v8407_v54  ;;  %vm8849_vm3 = vmpackc.low %vm8846_vm13, %vm8848_vm7  ;;  %vm8858_vm15 = vnez %v8857_v56  ;;  %vm8866_vm7 = vnez %v8865_v3  ;;  %v8885_v40 = vld [vmem:[#allocation44_spill] sm:$0xff]  ;;  %v8887_v56 = vld [vmem:[#allocation43_spill] sm:$0xff] }
 0x259   :  { %vm8854_vm1 = vmpackc.low %vm8851_vm6, %vm8853_vm14  ;;  %vm8871_vm14 = vnez %v8870_v15  ;;  %v8890_v34 = vld [vmem:[#allocation46_spill] sm:$0xff]  ;;  %v8895_v3 = vld [vmem:[#allocation48_spill] sm:$0xff] }
 0x25a   :  { %4927 = vmatpush3.bf16.msk.msra.mxu0 %vm8844_vm9, %v8407_v54  ;;  %4959 = vmatpush3.bf16.msk.msra.mxu1 %vm8849_vm3, %v8407_v54  ;;  %vm8859_vm2 = vmpackc.low %vm8856_vm8, %vm8858_vm15  ;;  %vm8863_vm9 = vnez %v8862_v52  ;;  %vm8868_vm3 = vnez %v8867_v4  ;;  %vm8876_vm15 = vnez %v8875_v22  ;;  %v8892_v52 = vld [vmem:[#allocation45_spill] sm:$0xff]  ;;  %v8897_v4 = vld [vmem:[#allocation47_spill] sm:$0xff] }
 0x25b   :  { %4929 = vmatprep.subr.msk.bf16.mxu0 %vm8854_vm1, %v8407_v54  ;;  %4961 = vmatprep.subr.msk.bf16.mxu1 %vm8859_vm2, %v8407_v54  ;;  %vm8864_vm13 = vmpackc.low %vm8861_vm10, %vm8863_vm9  ;;  %vm8873_vm1 = vnez %v8872_v23  ;;  %vm8878_vm2 = vnez %v8877_v24  ;;  %vm8881_vm9 = vnez %v8880_v38  ;;  %v8900_v15 = vld [vmem:[#allocation50_spill] sm:$0xff]  ;;  %v8902_v23 = vld [vmem:[#allocation49_spill] sm:$0xff] }
 0x25c   :  { %vm8869_vm6 = vmpackc.low %vm8866_vm7, %vm8868_vm3  ;;  %vm8886_vm3 = vnez %v8885_v40  ;;  %v8905_v22 = vld [vmem:[#allocation52_spill] sm:$0xff]  ;;  %v8907_v24 = vld [vmem:[#allocation51_spill] sm:$0xff] }
 0x25d   :  { %vm8874_vm8 = vmpackc.low %vm8871_vm14, %vm8873_vm1  ;;  %vm8891_vm1 = vnez %v8890_v34  ;;  %v8910_v38 = vld [vmem:[#allocation54_spill] sm:$0xff]  ;;  %v8915_v40 = vld [vmem:[#allocation56_spill] sm:$0xff] }
 0x25e   :  { %4931 = vmatpush3.bf16.msk.msra.mxu0 %vm8864_vm13, %v8407_v54  ;;  %4963 = vmatpush3.bf16.msk.msra.mxu1 %vm8869_vm6, %v8407_v54  ;;  %vm8879_vm10 = vmpackc.low %vm8876_vm15, %vm8878_vm2  ;;  %vm8883_vm13 = vnez %v8882_v44  ;;  %vm8888_vm6 = vnez %v8887_v56  ;;  %vm8896_vm2 = vnez %v8895_v3  ;;  %v8912_v44 = vld [vmem:[#allocation53_spill] sm:$0xff]  ;;  %v8917_v56 = vld [vmem:[#allocation55_spill] sm:$0xff] }
 0x25f   :  { %4933 = vmatprep.subr.msk.bf16.mxu0 %vm8874_vm8, %v8407_v54  ;;  %4965 = vmatprep.subr.msk.bf16.mxu1 %vm8879_vm10, %v8407_v54  ;;  %vm8884_vm7 = vmpackc.low %vm8881_vm9, %vm8883_vm13  ;;  %vm8893_vm8 = vnez %v8892_v52  ;;  %vm8898_vm10 = vnez %v8897_v4  ;;  %vm8901_vm13 = vnez %v8900_v15  ;;  %v8920_v34 = vld [vmem:[#allocation58_spill] sm:$0xff]  ;;  %v8922_v52 = vld [vmem:[#allocation57_spill] sm:$0xff] }
 0x260   :  { %vm8889_vm14 = vmpackc.low %vm8886_vm3, %vm8888_vm6  ;;  %vm8906_vm6 = vnez %v8905_v22  ;;  %v8925_v3 = vld [vmem:[#allocation60_spill] sm:$0xff]  ;;  %v8927_v4 = vld [vmem:[#allocation59_spill] sm:$0xff] }
 0x261   :  { %vm8894_vm15 = vmpackc.low %vm8891_vm1, %vm8893_vm8  ;;  %vm8911_vm8 = vnez %v8910_v38  ;;  %v8930_v15 = vld [vmem:[#allocation62_spill] sm:$0xff]  ;;  %v8935_v22 = vld [vmem:[#allocation64_spill] sm:$0xff] }
 0x262   :  { %4935 = vmatpush3.bf16.msk.msra.mxu0 %vm8884_vm7, %v8407_v54  ;;  %4967 = vmatpush3.bf16.msk.msra.mxu1 %vm8889_vm14, %v8407_v54  ;;  %vm8899_vm9 = vmpackc.low %vm8896_vm2, %vm8898_vm10  ;;  %vm8903_vm7 = vnez %v8902_v23  ;;  %vm8908_vm14 = vnez %v8907_v24  ;;  %vm8916_vm10 = vnez %v8915_v40  ;;  %v8932_v23 = vld [vmem:[#allocation61_spill] sm:$0xff]  ;;  %v8937_v24 = vld [vmem:[#allocation63_spill] sm:$0xff] }
 0x263   :  { %4937 = vmatprep.subr.msk.bf16.mxu0 %vm8894_vm15, %v8407_v54  ;;  %4969 = vmatprep.subr.msk.bf16.mxu1 %vm8899_vm9, %v8407_v54  ;;  %vm8904_vm3 = vmpackc.low %vm8901_vm13, %vm8903_vm7  ;;  %vm8913_vm15 = vnez %v8912_v44  ;;  %vm8918_vm9 = vnez %v8917_v56  ;;  %vm8921_vm7 = vnez %v8920_v34  ;;  %v8940_v38 = vld [vmem:[#allocation66_spill] sm:$0xff]  ;;  %v8942_v44 = vld [vmem:[#allocation65_spill] sm:$0xff] }
 0x264   :  { %vm8909_vm1 = vmpackc.low %vm8906_vm6, %vm8908_vm14  ;;  %vm8926_vm14 = vnez %v8925_v3  ;;  %v8945_v40 = vld [vmem:[#allocation68_spill] sm:$0xff]  ;;  %v8947_v56 = vld [vmem:[#allocation67_spill] sm:$0xff] }
 0x265   :  { %vm8914_vm2 = vmpackc.low %vm8911_vm8, %vm8913_vm15  ;;  %vm8931_vm15 = vnez %v8930_v15  ;;  %v8950_v34 = vld [vmem:[#allocation70_spill] sm:$0xff]  ;;  %v8955_v3 = vld [vmem:[#allocation72_spill] sm:$0xff] }
 0x266   :  { %4939 = vmatpush3.bf16.msk.msra.mxu0 %vm8904_vm3, %v8407_v54  ;;  %4971 = vmatpush3.bf16.msk.msra.mxu1 %vm8909_vm1, %v8407_v54  ;;  %vm8919_vm13 = vmpackc.low %vm8916_vm10, %vm8918_vm9  ;;  %vm8923_vm3 = vnez %v8922_v52  ;;  %vm8928_vm1 = vnez %v8927_v4  ;;  %vm8936_vm9 = vnez %v8935_v22  ;;  %v8952_v52 = vld [vmem:[#allocation69_spill] sm:$0xff]  ;;  %v8957_v4 = vld [vmem:[#allocation71_spill] sm:$0xff] }
 0x267   :  { %4941 = vmatprep.subr.msk.bf16.mxu0 %vm8914_vm2, %v8407_v54  ;;  %4973 = vmatprep.subr.msk.bf16.mxu1 %vm8919_vm13, %v8407_v54  ;;  %vm8924_vm6 = vmpackc.low %vm8921_vm7, %vm8923_vm3  ;;  %vm8933_vm2 = vnez %v8932_v23  ;;  %vm8938_vm13 = vnez %v8937_v24  ;;  %vm8941_vm3 = vnez %v8940_v38  ;;  %v8960_v15 = vld [vmem:[#allocation74_spill] sm:$0xff]  ;;  %v8962_v23 = vld [vmem:[#allocation73_spill] sm:$0xff] }
 0x268   :  { %vm8929_vm8 = vmpackc.low %vm8926_vm14, %vm8928_vm1  ;;  %vm8946_vm1 = vnez %v8945_v40  ;;  %v8965_v22 = vld [vmem:[#allocation76_spill] sm:$0xff]  ;;  %v8967_v24 = vld [vmem:[#allocation75_spill] sm:$0xff] }
 0x269   :  { %vm8934_vm10 = vmpackc.low %vm8931_vm15, %vm8933_vm2  ;;  %vm8951_vm2 = vnez %v8950_v34  ;;  %v8970_v38 = vld [vmem:[#allocation78_spill] sm:$0xff]  ;;  %v8975_v40 = vld [vmem:[#allocation80_spill] sm:$0xff]  ;;  %v7480_v34 = vsub.s32 0, %v5286_v2 }
 0x26a   :  { %4943 = vmatpush3.bf16.msk.msra.mxu0 %vm8924_vm6, %v8407_v54  ;;  %4975 = vmatpush3.bf16.msk.msra.mxu1 %vm8929_vm8, %v8407_v54  ;;  %vm8939_vm7 = vmpackc.low %vm8936_vm9, %vm8938_vm13  ;;  %vm8943_vm6 = vnez %v8942_v44  ;;  %vm8948_vm8 = vnez %v8947_v56  ;;  %vm8956_vm13 = vnez %v8955_v3  ;;  %v8972_v44 = vld [vmem:[#allocation77_spill] sm:$0xff]  ;;  %v8977_v56 = vld [vmem:[#allocation79_spill] sm:$0xff] }
 0x26b   :  { %4945 = vmatprep.subr.msk.bf16.mxu0 %vm8934_vm10, %v8407_v54  ;;  %4977 = vmatprep.subr.msk.bf16.mxu1 %vm8939_vm7, %v8407_v54  ;;  %vm8944_vm14 = vmpackc.low %vm8941_vm3, %vm8943_vm6  ;;  %vm8953_vm10 = vnez %v8952_v52  ;;  %vm8958_vm7 = vnez %v8957_v4  ;;  %vm8961_vm6 = vnez %v8960_v15 }
 0x26c   :  { %vm8949_vm15 = vmpackc.low %vm8946_vm1, %vm8948_vm8  ;;  %vm8966_vm8 = vnez %v8965_v22 }
 0x26d   :  { %vm8954_vm9 = vmpackc.low %vm8951_vm2, %vm8953_vm10  ;;  %vm8971_vm10 = vnez %v8970_v38 }
 0x26e   :  { %4947 = vmatpush3.bf16.msk.msra.mxu0 %vm8944_vm14, %v8407_v54  ;;  %4979 = vmatpush3.bf16.msk.msra.mxu1 %vm8949_vm15, %v8407_v54  ;;  %vm8959_vm3 = vmpackc.low %vm8956_vm13, %vm8958_vm7  ;;  %vm8963_vm14 = vnez %v8962_v23  ;;  %vm8968_vm15 = vnez %v8967_v24  ;;  %vm8976_vm7 = vnez %v8975_v40 }
 0x26f   :  { %4949 = vmatprep.subr.msk.bf16.mxu0 %vm8954_vm9, %v8407_v54  ;;  %4981 = vmatprep.subr.msk.bf16.mxu1 %vm8959_vm3, %v8407_v54  ;;  %vm8964_vm1 = vmpackc.low %vm8961_vm6, %vm8963_vm14  ;;  %vm8973_vm9 = vnez %v8972_v44  ;;  %vm8978_vm3 = vnez %v8977_v56  ;;  %v8984_v44 = vld [vmem:[#allocation81_spill] sm:$0xff]  ;;  %v8985_v56 = vld [vmem:[#allocation82_spill] sm:$0xff]  ;;  %vm8988_vm14 = vcmask 1041408  }
 0x270   :  { %vm8969_vm2 = vmpackc.low %vm8966_vm8, %vm8968_vm15 }
 0x271   :  { %vm8974_vm13 = vmpackc.low %vm8971_vm10, %vm8973_vm9  ;;  %vm8996_vm10 = vnez %v8473_v21 }
 0x272   :  { %4951 = vmatpush3.bf16.msk.msra.mxu0 %vm8964_vm1, %v8407_v54  ;;  %4983 = vmatpush3.bf16.msk.msra.mxu1 %vm8969_vm2, %v8407_v54  ;;  %vm8979_vm6 = vmpackc.low %vm8976_vm7, %vm8978_vm3  ;;  %vm8995_vm2 = vnez %v8475_v7  ;;  %vm8999_vm7 = vnez %v8477_v45 }
 0x273   :  { %4985 = vmatprep.subr.msk.bf16.mxu0 %vm8974_vm13, %v8407_v54  ;;  %5017 = vmatprep.subr.msk.bf16.mxu1 %vm8979_vm6, %v8407_v54  ;;  %vm8989_vm1 = vmmov %vm8988_vm14  ;;  %vm8998_vm13 = vnez %v8479_v53 }
 0x274   :  { %vm8990_vm8 = vmmov %vm8989_vm1 }
 0x275   :  { %vm8991_vm15 = vmmov %vm8989_vm1 }
 0x276   :  { %vm8997_vm9 = vmpackc.low %vm8995_vm2, %vm8996_vm10  ;;  %vm9006_vm2 = vnez %v8491_v49  ;;  %vm9007_vm10 = vnez %v8488_v5  ;;  %v9021_v5 = vld [vmem:[#allocation86_spill] sm:$0xff] }
 0x277   :  { %vm9000_vm3 = vmpackc.low %vm8998_vm13, %vm8999_vm7  ;;  %vm9009_vm13 = vnez %v8495_v10  ;;  %vm9010_vm7 = vnez %v8493_v32 }
 0x278   :  { %vm9001_vm6 = vmmov %vm8989_vm1 }
 0x318   :  { %v7482_v52 = vpop.f32.mrb[12].mxu0  ;;  %v7484_v3 = vpop.f32.mrb[12].mxu1 }
 0x319   :  { %8980 = vst [vmem:[#allocation11_spill] sm:$0xff] %v7482_v52  ;;  %8981 = vst [vmem:[#allocation10_spill] sm:$0xff] %v7484_v3  ;;  %v3058_v4 = vrot.slane %v7482_v52, %v7480_v34  ;;  %v3066_v15 = vrot.slane %v7484_v3, %v7480_v34  ;;  %v7490_v23 = vpop.f32.mrb[13].mxu0  ;;  %v7492_v22 = vpop.f32.mrb[13].mxu1  ;;  %v8987_v52 = vld [vmem:[#allocation84_spill] sm:$0xff] }
 0x31a   :  { %8982 = vst [vmem:[#allocation14_spill] sm:$0xff] %v7490_v23  ;;  %8983 = vst [vmem:[#allocation13_spill] sm:$0xff] %v7492_v22  ;;  %v3062_v24 = vrot.slane %v7490_v23, %v7480_v34  ;;  %v3070_v38 = vrot.slane %v7492_v22, %v7480_v34 }
 0x31b   :  { %v3087_v40 = vsub.f32 %v8984_v44, %v3058_v4  ;;  %v3089_v2 = vsub.f32 %v8985_v56, %v3066_v15 }
 0x31c   :  { %v3088_v19 = vsub.f32 %v8986_v11, %v3062_v24  ;;  %v3090_v0 = vsub.f32 %v8987_v52, %v3070_v38 }
 0x31d   :  { %v3095_v55 = vmul.f32 %v3087_v40, %v3087_v40  ;;  %v3097_v3 = vmul.f32 %v3089_v2, %v3089_v2 }
 0x31e   :  { %v3096_v14 = vmul.f32 %v3088_v19, %v3088_v19  ;;  %v3098_v36 = vmul.f32 %v3090_v0, %v3090_v0 }
 0x31f   :  { %v3103_v51 = vsel %vm8988_vm14, %v3095_v55, 0.0  ;;  %v3117_v50 = vsel %vm8989_vm1, %v3097_v3, 0.0  ;;  %vm9002_vm14 = vmmov %vm8989_vm1  ;;  %vm9003_vm1 = vnez %v8485_v58  ;;  %v9019_v58 = vld [vmem:[#allocation87_spill] sm:$0xff] }
 0x320   :  { %v3104_v23 = vrot.slane %v3103_v51, 4  ;;  %v3118_v48 = vrot.slane %v3117_v50, 4  ;;  %v3110_v22 = vsel %vm8990_vm8, %v3096_v14, 0.0  ;;  %v3124_v4 = vsel %vm8991_vm15, %v3098_v36, 0.0 }
 0x321   :  { %v3111_v44 = vrot.slane %v3110_v22, 4  ;;  %v3125_v15 = vrot.slane %v3124_v4, 4  ;;  %vm9004_vm8 = vnez %v8482_v17  ;;  %v9016_v17 = vld [vmem:[#allocation85_spill] sm:$0xff] }
 0x322   :  { %v3105_v56 = vadd.f32 %v3104_v23, %v3103_v51  ;;  %v3119_v24 = vadd.f32 %v3118_v48, %v3117_v50  ;;  %vm9005_vm15 = vmpackc.low %vm9003_vm1, %vm9004_vm8  ;;  %vm9015_vm8 = vnez %v8506_v60 }
 0x323   :  { %v3112_v11 = vadd.f32 %v3111_v44, %v3110_v22  ;;  %v3126_v38 = vadd.f32 %v3125_v15, %v3124_v4 }
 0x324   :  { %v3106_v40 = vrot.slane %v3105_v56, 2  ;;  %v3120_v2 = vrot.slane %v3119_v24, 2 }
 0x325   :  { %v3113_v19 = vrot.slane %v3112_v11, 2  ;;  %v3127_v0 = vrot.slane %v3126_v38, 2 }
 0x326   :  { %v3107_v52 = vadd.f32 %v3106_v40, %v3105_v56  ;;  %v3121_v55 = vadd.f32 %v3120_v2, %v3119_v24  ;;  %v8994_v40 = vld [vmem:[#allocation88_spill] sm:$0xff] }
 0x327   :  { %v3114_v33 = vadd.f32 %v3113_v19, %v3112_v11  ;;  %v3128_v3 = vadd.f32 %v3127_v0, %v3126_v38 }
 0x328   :  { %v7506_v12 = vpop.f32.mrb[14].mxu0  ;;  %v7508_v37 = vpop.f32.mrb[14].mxu1  ;;  %v3108_v14 = vrot.slane %v3107_v52, 1  ;;  %v3122_v36 = vrot.slane %v3121_v55, 1 }
 0x329   :  { %8992 = vst [vmem:[#allocation15_spill] sm:$0xff] %v7506_v12  ;;  %8993 = vst [vmem:[#allocation12_spill] sm:$0xff] %v7508_v37  ;;  %v3074_v51 = vrot.slane %v7506_v12, %v7480_v34  ;;  %v3082_v48 = vrot.slane %v7508_v37, %v7480_v34  ;;  %v7514_v50 = vpop.f32.mrb[15].mxu0  ;;  %v7516_v23 = vpop.f32.mrb[15].mxu1  ;;  %v3115_v22 = vrot.slane %v3114_v33, 1  ;;  %v3129_v44 = vrot.slane %v3128_v3, 1 }
 0x32a   :  { %v3078_v11 = vrot.slane %v7514_v50, %v7480_v34  ;;  %v3086_v56 = vrot.slane %v7516_v23, %v7480_v34  ;;  %v3109_v0 = vadd.f32 %v3108_v14, %v3107_v52  ;;  %v3123_v37 = vadd.f32 %v3122_v36, %v3121_v55  ;;  %v9033_v14 = vld [vmem:[#allocation91_spill] sm:$0xff]  ;;  %v9035_v36 = vld [vmem:[#allocation90_spill] sm:$0xff] }
 0x32b   :  { %v3091_v4 = vsub.f32 %v6298_v43, %v3074_v51  ;;  %v3093_v15 = vsub.f32 %v6322_v41, %v3082_v48  ;;  %v3116_v24 = vadd.f32 %v3115_v22, %v3114_v33  ;;  %v3130_v38 = vadd.f32 %v3129_v44, %v3128_v3  ;;  %v9044_v48 = vld [vmem:[#allocation94_spill] sm:$0xff] }
 0x32c   :  { %v3092_v2 = vsub.f32 %v8994_v40, %v3078_v11  ;;  %v3094_v19 = vsub.f32 %v6342_v25, %v3086_v56 }
 0x32d   :  { %3223 = vmatprep.mubr.f32.mxu0 %v3116_v24  ;;  %3293 = vmatprep.mubr.f32.mxu1 %v3130_v38  ;;  %v3099_v21 = vmul.f32 %v3091_v4, %v3091_v4  ;;  %v3101_v7 = vmul.f32 %v3093_v15, %v3093_v15  ;;  %v9050_v4 = vld [vmem:[#allocation96_spill] sm:$0xff]  ;;  %v9052_v15 = vld [vmem:[#allocation95_spill] sm:$0xff]  ;;  %v9070_v24 = vld [vmem:[#allocation101_spill] sm:$0xff] }
 0x32e   :  { %v3100_v12 = vmul.f32 %v3092_v2, %v3092_v2  ;;  %v3102_v8 = vmul.f32 %v3094_v19, %v3094_v19  ;;  %3224 = vmatmul.mubr.f32.vlgmr.msra.gmra.mrb[16].mxu0 %v3109_v0  ;;  %3294 = vmatmul.mubr.f32.vlgmr.msra.gmra.mrb[16].mxu1 %v3123_v37  ;;  %v9072_v38 = vld [vmem:[#allocation100_spill] sm:$0xff]  ;;  %v9106_v19 = vld [vmem:[#allocation111_spill] sm:$0xff]  ;;  %v9108_v0 = vld [vmem:[#allocation110_spill] sm:$0xff] }
 0x32f   :  { %4987 = vmatpush3.bf16.msk.msra.mxu0 %vm8997_vm9, %v8407_v54  ;;  %5019 = vmatpush3.bf16.msk.msra.mxu1 %vm9000_vm3, %v8407_v54  ;;  %vm9008_vm9 = vmpackc.low %vm9006_vm2, %vm9007_vm10  ;;  %vm9020_vm10 = vnez %v9019_v58  ;;  %v9126_v58 = vld [vmem:[#allocation120_spill] sm:$0xff] }
 0x330   :  { %v3138_v33 = vsel %vm9001_vm6, %v3100_v12, 0.0  ;;  %v3152_v52 = vsel %vm9002_vm14, %v3102_v8, 0.0  ;;  %4989 = vmatprep.subr.msk.bf16.mxu0 %vm9005_vm15, %v8407_v54  ;;  %5021 = vmatprep.subr.msk.bf16.mxu1 %vm9008_vm9, %v8407_v54  ;;  %vm9011_vm3 = vmpackc.low %vm9009_vm13, %vm9010_vm7  ;;  %vm9012_vm6 = vnez %v8499_v63  ;;  %vm9013_vm14 = vnez %v8497_v61  ;;  %v9030_v63 = vld [vmem:[#allocation89_spill] sm:$0xff] }
 0x331   :  { %v3139_v45 = vrot.slane %v3138_v33, 4  ;;  %v3153_v53 = vrot.slane %v3152_v52, 4  ;;  %vm9014_vm1 = vmpackc.low %vm9012_vm6, %vm9013_vm14  ;;  %vm9017_vm15 = vnez %v9016_v17  ;;  %vm9022_vm9 = vnez %v9021_v5  ;;  %v9124_v17 = vld [vmem:[#allocation119_spill] sm:$0xff] }
 0x332   :  { %vm9018_vm2 = vmpackc.low %vm9015_vm8, %vm9017_vm15  ;;  %vm9024_vm7 = vcmask 1041408   ;;  %vm9026_vm6 = vnez %v8521_v16  ;;  %vm9027_vm14 = vnez %v8518_v31  ;;  %vm9029_vm8 = vnez %v8529_v28  ;;  %v9038_v31 = vld [vmem:[#allocation93_spill] sm:$0xff]  ;;  %v9040_v16 = vld [vmem:[#allocation92_spill] sm:$0xff] }
 0x333   :  { %v3140_v37 = vadd.f32 %v3139_v45, %v3138_v33  ;;  %v3154_v8 = vadd.f32 %v3153_v53, %v3152_v52  ;;  %4991 = vmatpush3.bf16.msk.msra.mxu0 %vm9011_vm3, %v8407_v54  ;;  %5023 = vmatpush3.bf16.msk.msra.mxu1 %vm9014_vm1, %v8407_v54  ;;  %vm9023_vm13 = vmpackc.low %vm9020_vm10, %vm9022_vm9  ;;  %v3131_v49 = vsel %vm9024_vm7, %v3099_v21, 0.0  ;;  %vm9031_vm15 = vnez %v9030_v63  ;;  %v9111_v33 = vld [vmem:[#allocation113_spill] sm:$0xff]  ;;  %v9113_v52 = vld [vmem:[#allocation112_spill] sm:$0xff] }
 0x334   :  { %4993 = vmatprep.subr.msk.bf16.mxu0 %vm9018_vm2, %v8407_v54  ;;  %5025 = vmatprep.subr.msk.bf16.mxu1 %vm9023_vm13, %v8407_v54  ;;  %vm9025_vm3 = vmmov %vm9024_vm7  ;;  %v3132_v55 = vrot.slane %v3131_v49, 4  ;;  %vm9034_vm10 = vnez %v9033_v14  ;;  %vm9036_vm9 = vnez %v9035_v36  ;;  %vm9039_vm7 = vnez %v9038_v31  ;;  %v9116_v45 = vld [vmem:[#allocation116_spill] sm:$0xff]  ;;  %v9118_v53 = vld [vmem:[#allocation117_spill] sm:$0xff] }
 0x335   :  { %v3145_v61 = vsel %vm9025_vm3, %v3101_v7, 0.0  ;;  %v3141_v32 = vrot.slane %v3140_v37, 2  ;;  %v3155_v10 = vrot.slane %v3154_v8, 2  ;;  %vm9028_vm1 = vmpackc.low %vm9026_vm6, %vm9027_vm14  ;;  %vm9041_vm3 = vnez %v9040_v16  ;;  %v9128_v5 = vld [vmem:[#allocation115_spill] sm:$0xff]  ;;  %v9138_v63 = vld [vmem:[#allocation124_spill] sm:$0xff] }
 0x336   :  { %vm9032_vm2 = vmpackc.low %vm9029_vm8, %vm9031_vm15  ;;  %v3146_v3 = vrot.slane %v3145_v61, 4  ;;  %vm9043_vm14 = vnez %v8553_v46  ;;  %vm9047_vm15 = vnez %v8559_v29  ;;  %v3133_v11 = vadd.f32 %v3132_v55, %v3131_v49  ;;  %v9058_v46 = vld [vmem:[#allocation98_spill] sm:$0xff]  ;;  %v9130_v49 = vld [vmem:[#allocation121_spill] sm:$0xff] }
 0x337   :  { %4995 = vmatpush3.bf16.msk.msra.mxu0 %vm9028_vm1, %v8407_v54  ;;  %5027 = vmatpush3.bf16.msk.msra.mxu1 %vm9032_vm2, %v8407_v54  ;;  %v3142_v60 = vadd.f32 %v3141_v32, %v3140_v37  ;;  %v3156_v12 = vadd.f32 %v3155_v10, %v3154_v8  ;;  %vm9037_vm13 = vmpackc.low %vm9034_vm10, %vm9036_vm9  ;;  %vm9045_vm1 = vnez %v9044_v48  ;;  %vm9048_vm2 = vnez %v8556_v57  ;;  %v9060_v57 = vld [vmem:[#allocation97_spill] sm:$0xff]  ;;  %v9120_v37 = vld [vmem:[#allocation114_spill] sm:$0xff] }
 0x338   :  { %4997 = vmatprep.subr.msk.bf16.mxu0 %vm9037_vm13, %v8407_v54  ;;  %vm9042_vm6 = vmpackc.low %vm9039_vm7, %vm9041_vm3  ;;  %v3147_v56 = vadd.f32 %v3146_v3, %v3145_v61  ;;  %vm9051_vm9 = vnez %v9050_v4  ;;  %vm9053_vm13 = vnez %v9052_v15  ;;  %vm9055_vm3 = vnez %v8572_v27  ;;  %v9067_v27 = vld [vmem:[#allocation99_spill] sm:$0xff]  ;;  %v9122_v8 = vld [vmem:[#allocation118_spill] sm:$0xff] }
 0x339   :  { %5029 = vmatprep.subr.msk.bf16.mxu1 %vm9042_vm6, %v8407_v54  ;;  %v3143_v28 = vrot.slane %v3142_v60, 1  ;;  %v3157_v51 = vrot.slane %v3156_v12, 1  ;;  %vm9046_vm8 = vmpackc.low %vm9043_vm14, %vm9045_vm1  ;;  %vm9056_vm6 = vnez %v8570_v6  ;;  %vm9059_vm1 = vnez %v9058_v46  ;;  %v9132_v61 = vld [vmem:[#allocation26_spill] sm:$0xff]  ;;  %v9136_v10 = vld [vmem:[#allocation123_spill] sm:$0xff] }
 0x33a   :  { %vm9049_vm10 = vmpackc.low %vm9047_vm15, %vm9048_vm2  ;;  %vm9063_vm2 = vnez %v8589_v47  ;;  %v3134_v29 = vrot.slane %v3133_v11, 2  ;;  %v3148_v6 = vrot.slane %v3147_v56, 2  ;;  %v9134_v32 = vld [vmem:[#allocation122_spill] sm:$0xff]  ;;  %v9144_v55 = vld [vmem:[#allocation125_spill] sm:$0xff] }
 0x33b   :  { %4999 = vmatpush3.bf16.msk.msra.mxu0 %vm9046_vm8, %v8407_v54  ;;  %5031 = vmatpush3.bf16.msk.msra.mxu1 %vm9049_vm10, %v8407_v54  ;;  %v3144_v22 = vadd.f32 %v3143_v28, %v3142_v60  ;;  %v3158_v44 = vadd.f32 %v3157_v51, %v3156_v12  ;;  %vm9054_vm7 = vmpackc.low %vm9051_vm9, %vm9053_vm13  ;;  %vm9061_vm8 = vnez %v9060_v57  ;;  %vm9064_vm10 = vnez %v8587_v9  ;;  %v9140_v60 = vld [vmem:[#allocation35_spill] sm:$0xff]  ;;  %v9142_v12 = vld [vmem:[#allocation36_spill] sm:$0xff] }
 0x33c   :  { %5001 = vmatprep.subr.msk.bf16.mxu0 %vm9054_vm7, %v8407_v54  ;;  %vm9057_vm14 = vmpackc.low %vm9055_vm3, %vm9056_vm6  ;;  %vm9066_vm13 = vnez %v8601_v18  ;;  %vm9068_vm7 = vnez %v9067_v27  ;;  %vm9071_vm6 = vnez %v9070_v24  ;;  %v3135_v9 = vadd.f32 %v3134_v29, %v3133_v11  ;;  %v9088_v18 = vld [vmem:[#allocation102_spill] sm:$0xff]  ;;  %v9148_v14 = vld [vmem:[#allocation127_spill] sm:$0xff] }
 0x33d   :  { %5033 = vmatprep.subr.msk.bf16.mxu1 %vm9057_vm14, %v8407_v54  ;;  %3363 = vmatprep.mubr.f32.mxu0 %v3144_v22  ;;  %vm9062_vm15 = vmpackc.low %vm9059_vm1, %vm9061_vm8  ;;  %vm9073_vm14 = vnez %v9072_v38  ;;  %vm9075_vm8 = vnez %v8621_v35  ;;  %v3149_v47 = vadd.f32 %v3148_v6, %v3147_v56  ;;  %v9093_v35 = vld [vmem:[#allocation104_spill] sm:$0xff]  ;;  %v9146_v3 = vld [vmem:[#allocation126_spill] sm:$0xff] }
 0x33e   :  { %3433 = vmatprep.mubr.f32.mxu1 %v3158_v44  ;;  %vm9065_vm9 = vmpackc.low %vm9063_vm2, %vm9064_vm10  ;;  %vm9078_vm10 = vnez %v8632_v39  ;;  %v9086_v39 = vld [vmem:[#allocation103_spill] sm:$0xff]  ;;  %v9150_v36 = vld [vmem:[#allocation128_spill] sm:$0xff] }
 0x33f   :  { %5003 = vmatpush3.bf16.msk.msra.mxu0 %vm9062_vm15, %v8407_v54  ;;  %5035 = vmatpush3.bf16.msk.msra.mxu1 %vm9065_vm9, %v8407_v54  ;;  %vm9069_vm3 = vmpackc.low %vm9066_vm13, %vm9068_vm7  ;;  %vm9076_vm15 = vnez %v8619_v26  ;;  %vm9079_vm9 = vnez %v8630_v59  ;;  %vm9081_vm7 = vnez %v8637_v42  ;;  %v9091_v26 = vld [vmem:[#allocation105_spill] sm:$0xff]  ;;  %v9096_v59 = vld [vmem:[#allocation107_spill] sm:$0xff]  ;;  %v3150_v2 = vrot.slane %v3149_v47, 1 }
 0x340   :  { %5005 = vmatprep.subr.msk.bf16.mxu0 %vm9069_vm3, %v8407_v54  ;;  %vm9074_vm1 = vmpackc.low %vm9071_vm6, %vm9073_vm14  ;;  %vm9083_vm6 = vnez %v8654_v20  ;;  %vm9084_vm14 = vnez %v8652_v62  ;;  %v9098_v42 = vld [vmem:[#allocation106_spill] sm:$0xff]  ;;  %v9103_v62 = vld [vmem:[#allocation108_spill] sm:$0xff]  ;;  %v3136_v20 = vrot.slane %v3135_v9, 1 }
 0x341   :  { %5037 = vmatprep.subr.msk.bf16.mxu1 %vm9074_vm1, %v8407_v54  ;;  %vm9077_vm2 = vmpackc.low %vm9075_vm8, %vm9076_vm15  ;;  %vm9087_vm8 = vnez %v9086_v39  ;;  %vm9089_vm15 = vnez %v9088_v18  ;;  %v3151_v7 = vadd.f32 %v3150_v2, %v3149_v47  ;;  %v9154_v24 = vld [vmem:[#allocation129_spill] sm:$0xff]  ;;  %v9156_v38 = vld [vmem:[#allocation130_spill] sm:$0xff] }
 0x342   :  { %vm9080_vm13 = vmpackc.low %vm9078_vm10, %vm9079_vm9  ;;  %vm9092_vm10 = vnez %v9091_v26  ;;  %v3137_v21 = vadd.f32 %v3136_v20, %v3135_v9  ;;  %v9158_v9 = vld [vmem:[#allocation131_spill] sm:$0xff]  ;;  %v9162_v39 = vld [vmem:[#allocation134_spill] sm:$0xff] }
 0x343   :  { %5007 = vmatpush3.bf16.msk.msra.mxu0 %vm9077_vm2, %v8407_v54  ;;  %5039 = vmatpush3.bf16.msk.msra.mxu1 %vm9080_vm13, %v8407_v54  ;;  %vm9082_vm3 = vmpackc.low %vm8668_vm12, %vm9081_vm7  ;;  %vm9094_vm12 = vnez %v9093_v35  ;;  %vm9097_vm13 = vnez %v9096_v59  ;;  %vm9099_vm7 = vnez %v9098_v42  ;;  %v9164_v18 = vld [vmem:[#allocation135_spill] sm:$0xff]  ;;  %v9169_v35 = vld [vmem:[#allocation138_spill] sm:$0xff] }
 0x344   :  { %5009 = vmatprep.subr.msk.bf16.mxu0 %vm9082_vm3, %v8407_v54  ;;  %vm9085_vm1 = vmpackc.low %vm9083_vm6, %vm9084_vm14  ;;  %vm9102_vm6 = vnez %v9101_v13  ;;  %vm9104_vm14 = vnez %v9103_v62  ;;  %v9171_v59 = vld [vmem:[#allocation139_spill] sm:$0xff]  ;;  %v9173_v42 = vld [vmem:[#allocation140_spill] sm:$0xff] }
 0x345   :  { %5041 = vmatprep.subr.msk.bf16.mxu1 %vm9085_vm1, %v8407_v54  ;;  %vm9090_vm2 = vmpackc.low %vm9087_vm8, %vm9089_vm15  ;;  %vm9107_vm8 = vnez %v9106_v19  ;;  %vm9109_vm15 = vnez %v9108_v0  ;;  %v9175_v13 = vld [vmem:[#allocation141_spill] sm:$0xff] }
 0x346   :  { %vm9095_vm9 = vmpackc.low %vm9092_vm10, %vm9094_vm12  ;;  %vm9112_vm10 = vnez %v9111_v33  ;;  %vm9114_vm12 = vnez %v9113_v52 }
 0x347   :  { %5011 = vmatpush3.bf16.msk.msra.mxu0 %vm9090_vm2, %v8407_v54  ;;  %5043 = vmatpush3.bf16.msk.msra.mxu1 %vm9095_vm9, %v8407_v54  ;;  %vm9100_vm3 = vmpackc.low %vm9097_vm13, %vm9099_vm7  ;;  %vm9117_vm13 = vnez %v9116_v45  ;;  %vm9119_vm7 = vnez %v9118_v53 }
 0x348   :  { %5013 = vmatprep.subr.msk.bf16.mxu0 %vm9100_vm3, %v8407_v54  ;;  %vm9105_vm1 = vmpackc.low %vm9102_vm6, %vm9104_vm14  ;;  %vm9121_vm3 = vnez %v9120_v37  ;;  %vm9123_vm6 = vnez %v9122_v8  ;;  %vm9125_vm14 = vnez %v9124_v17  ;;  %v9179_v8 = vld [vmem:[#allocation9_spill] sm:$0xff] }
 0x349   :  { %5045 = vmatprep.subr.msk.bf16.mxu1 %vm9105_vm1, %v8407_v54  ;;  %vm9110_vm2 = vmpackc.low %vm9107_vm8, %vm9109_vm15  ;;  %vm9127_vm1 = vnez %v9126_v58  ;;  %vm9129_vm8 = vnez %v9128_v5  ;;  %vm9131_vm15 = vnez %v9130_v49  ;;  %v3817_v47 = vsub.s32 5, %v9179_v8 }
 0x34a   :  { %vm9115_vm9 = vmpackc.low %vm9112_vm10, %vm9114_vm12  ;;  %vm9135_vm10 = vnez %v9134_v32  ;;  %vm9137_vm12 = vnez %v9136_v10  ;;  %v3821_v1 = vsub.s32 6, %v9179_v8 }
 0x34b   :  { %5015 = vmatpush3.bf16.msk.msra.mxu0 %vm9110_vm2, %v8407_v54  ;;  %5047 = vmatpush3.bf16.msk.msra.mxu1 %vm9115_vm9, %v8407_v54  ;;  %vm9133_vm2 = vnez %v9132_v61  ;;  %vm9139_vm9 = vnez %v9138_v63 }
 0x34c   :  { %5049 = vmatprep.subr.msk.bf16.mxu0 %vm9117_vm13, %v8407_v54  ;;  %5065 = vmatprep.subr.msk.bf16.mxu1 %vm9119_vm7, %v8407_v54  ;;  %vm9141_vm13 = vnez %v9140_v60  ;;  %vm9143_vm7 = vnez %v9142_v12 }
 0x34e   :  { %3364 = vmatmul.mubr.f32.vlgmr.msra.gmra.mrb[18].mxu0 %v3137_v21  ;;  %3434 = vmatmul.mubr.f32.vlgmr.msra.gmra.mrb[18].mxu1 %v3151_v7  ;;  %v5215_v7 = vmov 1966171168  }
 0x34f   :  { %5051 = vmatpush1.bf16.msk.msra.mxu0 %vm9121_vm3, %v8407_v54  ;;  %5067 = vmatpush1.bf16.msk.msra.mxu1 %vm9123_vm6, %v8407_v54  ;;  %vm9145_vm3 = vnez %v9144_v55  ;;  %vm9147_vm6 = vnez %v9146_v3  ;;  %v3748_v45 = vunpack.c.l.s4 %v5215_v7  ;;  %v9183_v7 = vld [vmem:[#allocation13_spill] sm:$0xff] }
 0x350   :  { %5053 = vmatprep.subr.msk.bf16.mxu0 %vm9125_vm14, %v8407_v54  ;;  %5069 = vmatprep.subr.msk.bf16.mxu1 %vm9127_vm1, %v8407_v54  ;;  %vm9149_vm14 = vnez %v9148_v14  ;;  %vm9151_vm1 = vnez %v9150_v36 }
 0x351   :  { %3507 = vmatprep.mubr.f32.mxu0 %v8789_v30  ;;  %3578 = vmatprep.mubr.f32.mxu1 %v8789_v30  ;;  %v3749_v53 = vunpack.c.0.s8 %v3748_v45 }
 0x353   :  { %5055 = vmatpush1.bf16.msk.msra.mxu0 %vm9129_vm8, %v8407_v54  ;;  %5071 = vmatpush1.bf16.msk.msra.mxu1 %vm9131_vm15, %v8407_v54  ;;  %vm9152_vm8 = vcmask 523264   ;;  %v7815_v17 = vsub.s32 %v3749_v53, %v9179_v8  ;;  %v9184_v53 = vld [vmem:[#allocation15_spill] sm:$0xff] }
 0x354   :  { %5057 = vmatprep.subr.msk.bf16.mxu0 %vm9133_vm2, %v8407_v54  ;;  %5073 = vmatprep.subr.msk.bf16.mxu1 %vm9135_vm10, %v8407_v54  ;;  %vm9153_vm15 = vmmov %vm9152_vm8  ;;  %vm9155_vm2 = vnez %v9154_v24  ;;  %vm9157_vm10 = vnez %v9156_v38  ;;  %v3805_v24 = vsub.s32 2, %v9179_v8  ;;  %v3809_v38 = vsub.s32 3, %v9179_v8 }
 0x357   :  { %5059 = vmatpush1.bf16.msk.msra.mxu0 %vm9137_vm12, %v8407_v54  ;;  %5075 = vmatpush1.bf16.msk.msra.mxu1 %vm9139_vm9, %v8407_v54  ;;  %vm9159_vm12 = vnez %v9158_v9  ;;  %vm9165_vm9 = vnez %v9164_v18  ;;  %v3813_v9 = vsub.s32 4, %v9179_v8 }
 0x358   :  { %5061 = vmatprep.subr.msk.bf16.mxu0 %vm9141_vm13, %v8407_v54  ;;  %5077 = vmatprep.subr.msk.bf16.mxu1 %vm9143_vm7, %v8407_v54  ;;  %vm9174_vm7 = vnez %v9173_v42 }
 0x35b   :  { %5063 = vmatpush1.bf16.msk.msra.mxu0 %vm9145_vm3, %v8407_v54  ;;  %5079 = vmatpush1.bf16.msk.msra.mxu1 %vm9147_vm6, %v8407_v54  ;;  %vm9176_vm3 = vnez %v9175_v13 }
 0x35c   :  { %5081 = vmatprep.subr.msk.bf16.mxu0 %vm9149_vm14, %v8407_v54  ;;  %5097 = vmatprep.subr.msk.bf16.mxu1 %vm9151_vm1, %v8407_v54 }
 0x401   :  { %v4620_v31 = vpop.f32.mrb[16].mxu0  ;;  %v4655_v16 = vpop.f32.mrb[16].mxu1 }
 0x402   :  { %v4621_v28 = vpop.f32.mrb[17].mxu0  ;;  %v4656_v51 = vpop.f32.mrb[17].mxu1 }
 0x403   :  { %v4622_v48 = vadd.f32 %v4621_v28, %v4620_v31  ;;  %v4657_v22 = vadd.f32 %v4656_v51, %v4655_v16 }
 0x405   :  { %v3296_v44 = vadd.f32 %v4657_v22, %v4622_v48 }
 0x421   :  { %v4690_v11 = vpop.f32.mrb[18].mxu0  ;;  %v4725_v56 = vpop.f32.mrb[18].mxu1 }
 0x422   :  { %v4691_v4 = vpop.f32.mrb[19].mxu0  ;;  %v4726_v15 = vpop.f32.mrb[19].mxu1 }
 0x423   :  { %v4692_v46 = vadd.f32 %v4691_v4, %v4690_v11  ;;  %v4727_v57 = vadd.f32 %v4726_v15, %v4725_v56 }
 0x425   :  { %v3366_v29 = vadd.f32 %v4692_v46, %v3296_v44 }
 0x427   :  { %v3436_v6 = vadd.f32 %v4727_v57, %v3366_v29  ;;  %v272_v29 = vld [vmem:[#allocation4] sm:$0xff] }
 0x429   :  { %v3439_v27 = vmul.f32 0.03125, %v3436_v6 }
 0x42b   :  { %4392 = vmatmul.mubr.msk.f32.vlgmr.msra.gmra.mrb[20].mxu0 %vm9152_vm8, %v3439_v27  ;;  %4409 = vmatmul.mubr.msk.f32.vlgmr.msra.gmra.mrb[20].mxu1 %vm9153_vm15, %v3439_v27 }
 0x42c   :  { %5083 = vmatpush1.bf16.msk.msra.mxu0 %vm7127_vm11, %v8407_v54  ;;  %5099 = vmatpush1.bf16.msk.msra.mxu1 %vm9155_vm2, %v8407_v54  ;;  %vm9163_vm11 = vnez %v9162_v39  ;;  %v3825_v39 = vsub.s32 7, %v9179_v8 }
 0x42d   :  { %5085 = vmatprep.subr.msk.bf16.mxu0 %vm9157_vm10, %v8407_v54  ;;  %5101 = vmatprep.subr.msk.bf16.mxu1 %vm9159_vm12, %v8407_v54 }
 0x42e   :  { %3649 = vmatprep.mubr.f32.mxu0 %v8789_v30  ;;  %3720 = vmatprep.mubr.f32.mxu1 %v8789_v30  ;;  %v9167_v30 = vld [vmem:[#allocation137_spill] sm:$0xff] }
 0x42f   :  { %vm9168_vm13 = vnez %v9167_v30 }
 0x430   :  { %5087 = vmatpush1.bf16.msk.msra.mxu0 %vm7161_vm5, %v8407_v54  ;;  %5103 = vmatpush1.bf16.msk.msra.mxu1 %vm7175_vm4, %v8407_v54  ;;  %vm9170_vm5 = vnez %v9169_v35  ;;  %vm9172_vm4 = vnez %v9171_v59 }
 0x431   :  { %5089 = vmatprep.subr.msk.bf16.mxu0 %vm9163_vm11, %v8407_v54  ;;  %5105 = vmatprep.subr.msk.bf16.mxu1 %vm9165_vm9, %v8407_v54 }
 0x434   :  { %5091 = vmatpush1.bf16.msk.msra.mxu0 %vm7207_vm0, %v8407_v54  ;;  %5107 = vmatpush1.bf16.msk.msra.mxu1 %vm9168_vm13, %v8407_v54  ;;  %vm9177_vm0 = vmmov %vm9152_vm8 }
 0x435   :  { %5093 = vmatprep.subr.msk.bf16.mxu0 %vm9170_vm5, %v8407_v54  ;;  %5109 = vmatprep.subr.msk.bf16.mxu1 %vm9172_vm4, %v8407_v54  ;;  %vm9178_vm6 = vmmov %vm9177_vm0 }
 0x438   :  { %5095 = vmatpush1.bf16.msk.msra.mxu0 %vm9174_vm7, %v8407_v54  ;;  %5111 = vmatpush1.bf16.msk.msra.mxu1 %vm9176_vm3, %v8407_v54 }
 0x43b   :  { %4426 = vmatmul.mubr.msk.f32.vlgmr.msra.gmra.mrb[22].mxu0 %vm9177_vm0, %v3439_v27  ;;  %4443 = vmatmul.mubr.msk.f32.vlgmr.msra.gmra.mrb[22].mxu1 %vm9178_vm6, %v3439_v27  ;;  %v3801_v27 = vsub.s32 1, %v9179_v8  ;;  %v9185_v8 = vld [vmem:[#allocation12_spill] sm:$0xff] }
 0x4fe   :  { %v3509_v62 = vpop.f32.mrb[20].mxu0  ;;  %v3580_v20 = vpop.f32.mrb[20].mxu1 }
 0x4ff   :  { %v3510_v2 = vadd.f32 1e-05, %v3509_v62  ;;  %v3581_v19 = vadd.f32 1e-05, %v3580_v20  ;;  %v3511_v0 = vpop.f32.mrb[21].mxu0  ;;  %v3582_v33 = vpop.f32.mrb[21].mxu1 }
 0x500   :  { %v3512_v52 = vadd.f32 1e-05, %v3511_v0  ;;  %v3583_v21 = vadd.f32 1e-05, %v3582_v33  ;;  %v9181_v0 = vld [vmem:[#allocation14_spill] sm:$0xff] }
 0x501   :  { %5121 = vrsqrt.f32 %v3510_v2  ;;  %v9180_v2 = vld [vmem:[#allocation11_spill] sm:$0xff] }
 0x502   :  { %5123 = vrsqrt.f32 %v3581_v19 }
 0x503   :  { %5125 = vrsqrt.f32 %v3512_v52  ;;  %v9182_v52 = vld [vmem:[#allocation10_spill] sm:$0xff] }
 0x504   :  { %5127 = vrsqrt.f32 %v3583_v21 }
 0x50b   :  { %v5122_v54 = vpop.eup %5121 }
 0x50c   :  { %v5124_v37 = vpop.eup %5123 }
 0x50d   :  { %v5126_v58 = vpop.eup %5125 }
 0x50e   :  { %v5128_v5 = vpop.eup %5127  ;;  %v3743_v49 = vcombine.low %v5122_v54, %v5126_v58  ;;  %v3651_v61 = vpop.f32.mrb[22].mxu0 }
 0x50f   :  { %v3722_v32 = vpop.f32.mrb[22].mxu1  ;;  %v3744_v10 = vcombine.low %v5124_v37, %v5128_v5  ;;  %v3652_v63 = vadd.f32 1e-05, %v3651_v61  ;;  %v3653_v12 = vpop.f32.mrb[23].mxu0 }
 0x510   :  { %v3723_v60 = vadd.f32 1e-05, %v3722_v32  ;;  %v3724_v55 = vpop.f32.mrb[23].mxu1  ;;  %v3753_v3 = vrot.slane %v3743_v49, %v7815_v17  ;;  %v3654_v14 = vadd.f32 1e-05, %v3653_v12  ;;  %v9186_v32 = vld [vmem:[#allocation81_spill] sm:$0xff] }
 0x511   :  { %v3725_v36 = vadd.f32 1e-05, %v3724_v55  ;;  %v3760_v31 = vrot.slane %v3744_v10, %v7815_v17  ;;  %5129 = vrsqrt.f32 %v3652_v63  ;;  %v9187_v63 = vld [vmem:[#allocation83_spill] sm:$0xff] }
 0x512   :  { %5131 = vrsqrt.f32 %v3723_v60 }
 0x513   :  { %v3775_v16 = vcombine.low %v3753_v3, %v3760_v31  ;;  %5133 = vrsqrt.f32 %v3654_v14  ;;  %v9188_v3 = vld [vmem:[#allocation82_spill] sm:$0xff] }
 0x514   :  { %5135 = vrsqrt.f32 %v3725_v36  ;;  %v9189_v36 = vld [vmem:[#allocation84_spill] sm:$0xff] }
 0x515   :  { %v3783_v46 = vrot.slane %v3775_v16, %v7815_v17 }
 0x51b   :  { %v5130_v28 = vpop.eup %5129 }
 0x51c   :  { %v5132_v51 = vpop.eup %5131 }
 0x51d   :  { %v5134_v48 = vpop.eup %5133 }
 0x51e   :  { %v5136_v22 = vpop.eup %5135  ;;  %v3745_v44 = vcombine.low %v5130_v28, %v5134_v48 }
 0x51f   :  { %v3746_v11 = vcombine.low %v5132_v51, %v5136_v22 }
 0x520   :  { %v3767_v56 = vrot.slane %v3745_v44, %v7815_v17 }
 0x521   :  { %v3774_v4 = vrot.slane %v3746_v11, %v7815_v17 }
 0x523   :  { %v3776_v15 = vcombine.low %v3767_v56, %v3774_v4 }
 0x525   :  { %v3790_v57 = vrot.slane %v3776_v15, %v7815_v17 }
 0x527   :  { %v3791_v6 = vcombine.low %v3783_v46, %v3790_v57  ;;  %v273_v46 = vld [vmem:[#allocation6] sm:$0xff] }
 0x529   :  { %v3793_v18 = vmul.f32 %v3791_v6, %v272_v29 }
 0x52b   :  { %v3798_v26 = vrot.slane %v3793_v18, %v7480_v34  ;;  %v3802_v30 = vrot.slane %v3793_v18, %v3801_v27  ;;  %v3806_v35 = vrot.slane %v3793_v18, %v3805_v24  ;;  %v3810_v59 = vrot.slane %v3793_v18, %v3809_v38 }
 0x52c   :  { %v3814_v42 = vrot.slane %v3793_v18, %v3813_v9  ;;  %v3818_v13 = vrot.slane %v3793_v18, %v3817_v47  ;;  %v3822_v62 = vrot.slane %v3793_v18, %v3821_v1  ;;  %v3826_v20 = vrot.slane %v3793_v18, %v3825_v39 }
 0x52d   :  { %v3835_v19 = vmul.f32 %v3798_v26, %v9180_v2  ;;  %v3836_v33 = vmul.f32 %v3802_v30, %v9181_v0  ;;  %v3837_v21 = vmul.f32 %v3806_v35, %v9182_v52  ;;  %v3838_v45 = vmul.f32 %v3810_v59, %v9183_v7 }
 0x52e   :  { %v3839_v54 = vmul.f32 %v3814_v42, %v9184_v53  ;;  %v3840_v37 = vmul.f32 %v3818_v13, %v7514_v50  ;;  %v3841_v58 = vmul.f32 %v3822_v62, %v9185_v8  ;;  %v3842_v5 = vmul.f32 %v3826_v20, %v7516_v23 }
 0x52f   :  { %v3851_v49 = vcombine.low %v3835_v19, %v3836_v33  ;;  %v3852_v61 = vcombine.low %v3837_v21, %v3838_v45  ;;  %v3902_v10 = vmul.f32 %v3798_v26, %v9186_v32  ;;  %v3903_v60 = vmul.f32 %v3802_v30, %v9187_v63 }
 0x530   :  { %v3853_v12 = vcombine.low %v3839_v54, %v3840_v37  ;;  %v3854_v55 = vcombine.low %v3841_v58, %v3842_v5  ;;  %v3904_v14 = vmul.f32 %v3806_v35, %v9188_v3  ;;  %v3905_v31 = vmul.f32 %v3810_v59, %v9189_v36 }
 0x531   :  { %v3861_v16 = vrot.slane %v3851_v49, %v7815_v17  ;;  %v3868_v50 = vrot.slane %v3852_v61, %v7815_v17  ;;  %v3906_v28 = vmul.f32 %v3814_v42, %v6298_v43  ;;  %v3907_v23 = vmul.f32 %v3818_v13, %v8994_v40 }
 0x532   :  { %v3875_v51 = vrot.slane %v3853_v12, %v7815_v17  ;;  %v3882_v48 = vrot.slane %v3854_v55, %v7815_v17  ;;  %v3908_v22 = vmul.f32 %v3822_v62, %v6322_v41  ;;  %v3909_v44 = vmul.f32 %v3826_v20, %v6342_v25 }
 0x533   :  { %v3883_v11 = vcombine.low %v3861_v16, %v3868_v50 }
 0x534   :  { %v3884_v56 = vcombine.low %v3875_v51, %v3882_v48 }
 0x535   :  { %v3891_v4 = vrot.slane %v3883_v11, %v7815_v17 }
 0x536   :  { %v3898_v15 = vrot.slane %v3884_v56, %v7815_v17 }
 0x538   :  { %v3899_v57 = vcombine.low %v3891_v4, %v3898_v15 }
 0x53a   :  { %v3901_v29 = vsub.f32 %v273_v46, %v3899_v57 }
 0x53c   :  { %v3914_v43 = vrot.slane %v3901_v29, %v7480_v34  ;;  %v3918_v40 = vrot.slane %v3901_v29, %v3801_v27  ;;  %v3922_v6 = vrot.slane %v3901_v29, %v3805_v24  ;;  %v3926_v18 = vrot.slane %v3901_v29, %v3809_v38 }
 0x53d   :  { %v3930_v26 = vrot.slane %v3901_v29, %v3813_v9  ;;  %v3934_v30 = vrot.slane %v3901_v29, %v3817_v47  ;;  %v3938_v35 = vrot.slane %v3901_v29, %v3821_v1  ;;  %v3942_v41 = vrot.slane %v3901_v29, %v3825_v39 }
 0x53e   :  { %v3951_v59 = vadd.f32 %v3914_v43, %v3902_v10  ;;  %v3952_v25 = vadd.f32 %v3918_v40, %v3903_v60  ;;  %v3953_v42 = vadd.f32 %v3922_v6, %v3904_v14  ;;  %v3954_v13 = vadd.f32 %v3926_v18, %v3905_v31 }
 0x53f   :  { %v3955_v62 = vadd.f32 %v3930_v26, %v3906_v28  ;;  %v3956_v20 = vadd.f32 %v3934_v30, %v3907_v23  ;;  %v3957_v2 = vadd.f32 %v3938_v35, %v3908_v22  ;;  %v3958_v19 = vadd.f32 %v3942_v41, %v3909_v44 }
 0x540   :  { %v3959_v0 = vmax.f32 %v3951_v59, 0.0  ;;  %v3960_v33 = vmax.f32 %v3952_v25, 0.0  ;;  %v3961_v52 = vmax.f32 %v3953_v42, 0.0  ;;  %v3962_v21 = vmax.f32 %v3954_v13, 0.0 }
 0x541   :  { %v3963_v34 = vmax.f32 %v3955_v62, 0.0  ;;  %v3964_v27 = vmax.f32 %v3956_v20, 0.0  ;;  %v3965_v24 = vmax.f32 %v3957_v2, 0.0  ;;  %v3966_v38 = vmax.f32 %v3958_v19, 0.0 }
 0x542   :  { %v4444_v9 = vpack.c.bf16 %v3960_v33, %v3959_v0  ;;  %v4445_v47 = vpack.c.bf16 %v3962_v21, %v3961_v52 }
 0x543   :  { %v4446_v1 = vpack.c.bf16 %v3964_v27, %v3963_v34  ;;  %v4447_v39 = vpack.c.bf16 %v3966_v38, %v3965_v24 }
 0x544   :  { %v3993_v7 = vrot.slane %v4444_v9, %v7815_v17  ;;  %v4000_v45 = vrot.slane %v4445_v47, %v7815_v17 }
 0x545   :  { %v4007_v53 = vrot.slane %v4446_v1, %v7815_v17  ;;  %v4014_v54 = vrot.slane %v4447_v39, %v7815_v17 }
 0x546   :  { %v4015_v37 = vcombine.low %v3993_v7, %v4000_v45 }
 0x547   :  { %v4016_v8 = vcombine.low %v4007_v53, %v4014_v54 }
 0x548   :  { %v4023_v58 = vrot.slane %v4015_v37, %v7815_v17 }
 0x549   :  { %v4030_v5 = vrot.slane %v4016_v8, %v7815_v17 }
 0x54b   :  { %v4031_v49 = vcombine.low %v4023_v58, %v4030_v5 }
 0x54d   :  { %4033 = vst [vmem:[%s7867_s4] sm:$0xff] %v4031_v49 }
 0x54e   :  { %4038 = vsyncpa [#allocation3], 1 }
 0x54f   :  { %4039 = vsyncpa [#allocation5], 1 }

// kernel: generator_forward.7
= control target key start
LH: loop header
LB: loop body
LE: loop exit
PB: predicated region body
PF: predicated region fallthrough
CT: control target
= control target key end

     0   :  { %9 = vsyncpa [#allocation3], 0  ;;  %s3298_s0 = inlined_call_operand.vmem [shape: bf16[16,256], index: 0, kind: input, shape index: {}]   ;;  %s3299_s1 = inlined_call_operand.hbm [shape: bf16[256,1024], index: 1, kind: input, shape index: {}]   ;;  %s3300_s2 = inlined_call_operand.hbm [shape: f32[1,256], index: 2, kind: input, shape index: {}]   ;;  %s3301_s3 = inlined_call_operand.hbm [shape: f32[1,256], index: 3, kind: input, shape index: {}]   ;;  %s3302_s4 = inlined_call_operand.vmem [shape: bf16[16,512], index: 4, kind: output, shape index: {}]  }
   0x1   :  { %10 = vsyncpa [#allocation5], 0  ;;  %s2614_s15 = smov [#allocation4]   ;;  %s2615_s17 = smov [#allocation2]  }
   0x2   :  { %s31_s16 = sshll.u32 %s2614_s15, 4  ;;  %s18_s18 = sshll.u32 %s2615_s17, 4  ;;  %s32_s16 = int_to_ptr.vmem [resolvable:$true] %s31_s16  ;;  %s2648_s18 = int_to_ptr.vmem [resolvable:$true] %s18_s18 }
   0x3   :  { %s2544_s21 = scalar_lea.hbm %s3300_s2, 32 }
   0x4   :  { %p2545_p0 = scmp.ne.s32.totalorder %s3300_s2, %s2544_s21  ;;  %p2548_p1 = scmp.lt.u32.totalorder %s2544_s21, %s3300_s2 }
   0x6   :  { %p2550_p2 = pnand %p2548_p1, %p2545_p0 }
   0x8   :  { %2553 = shalt.err (!%p2550_p2)
}
   0x9   :  { %s2554_s26 = scalar_lea.vmem %s32_s16, 32  ;;  %p2559_p4 = scmp.lt.s32.totalorder %s32_s16, %s32_s16 }
   0xa   :  { %p2555_p3 = scmp.ne.s32.totalorder %s32_s16, %s2554_s26  ;;  %p2560_p5 = scmp.lt.s32.totalorder %s2554_s26, %s2554_s26 }
   0xc   :  { %p2561_p6 = por %p2560_p5, %p2559_p4 }
   0xe   :  { %p2562_p7 = pnand %p2561_p6, %p2555_p3 }
  0x10   :  { %2565 = shalt.err (!%p2562_p7)
}
  0x11   :  { %34 = dma.hbm_to_vmem [thread:$0]  %s3300_s2, 32, %s32_s16, [#allocation5]  }
  0x12   :  { %s2566_s5 = scalar_lea.hbm %s3299_s1, 16384 }
  0x13   :  { %p2567_p8 = scmp.ne.s32.totalorder %s3299_s1, %s2566_s5  ;;  %p2570_p9 = scmp.lt.u32.totalorder %s2566_s5, %s3299_s1 }
  0x15   :  { %p2572_p10 = pnand %p2570_p9, %p2567_p8 }
  0x17   :  { %2575 = shalt.err (!%p2572_p10)
}
  0x18   :  { %s2576_s10 = scalar_lea.vmem %s2648_s18, 16384  ;;  %p2581_p12 = scmp.lt.s32.totalorder %s2648_s18, %s2648_s18 }
  0x19   :  { %p2577_p11 = scmp.ne.s32.totalorder %s2648_s18, %s2576_s10  ;;  %p2582_p13 = scmp.lt.s32.totalorder %s2576_s10, %s2576_s10 }
  0x1b   :  { %p2583_p0 = por %p2582_p13, %p2581_p12 }
  0x1d   :  { %p2584_p1 = pnand %p2583_p0, %p2577_p11 }
  0x1f   :  { %2587 = shalt.err (!%p2584_p1)
}
  0x20   :  { %s2616_s2 = smov 512   ;;  %s2617_s11 = smov 32  }
  0x21   :  { %24 = dma.hbm_to_vmem [thread:$0]  %s3299_s1, 16384, %s2648_s18, [#allocation3], %s2616_s2, %s2616_s2, %s2617_s11  }
  0x22   :  { %s2618_s14 = smov [#allocation6]   ;;  %s2588_s19 = scalar_lea.hbm %s3301_s3, 32 }
  0x23   :  { %s41_s15 = sshll.u32 %s2618_s14, 4  ;;  %p2589_p2 = scmp.ne.s32.totalorder %s3301_s3, %s2588_s19  ;;  %s42_s15 = int_to_ptr.vmem [resolvable:$true] %s41_s15 }
  0x24   :  { %p2592_p3 = scmp.lt.u32.totalorder %s2588_s19, %s3301_s3 }
  0x26   :  { %p2594_p4 = pnand %p2592_p3, %p2589_p2 }
  0x28   :  { %2597 = shalt.err (!%p2594_p4)
}
  0x29   :  { %s2598_s24 = scalar_lea.vmem %s42_s15, 32  ;;  %p2603_p6 = scmp.lt.s32.totalorder %s42_s15, %s42_s15 }
  0x2a   :  { %p2599_p5 = scmp.ne.s32.totalorder %s42_s15, %s2598_s24  ;;  %p2604_p7 = scmp.lt.s32.totalorder %s2598_s24, %s2598_s24 }
  0x2c   :  { %p2605_p8 = por %p2604_p7, %p2603_p6 }
  0x2e   :  { %p2606_p9 = pnand %p2605_p8, %p2599_p5 }
  0x30   :  { %2609 = shalt.err (!%p2606_p9)
}
  0x31   :  { %44 = dma.hbm_to_vmem [thread:$0]  %s3301_s3, 32, %s42_s15, [#allocation5]  }
  0x32   :  { %2610 = dma.done.wait [#allocation3], 16384  }
  0x33   :  { %2611 = vsyncadd [#allocation3], 4294950912 }
  0x34   :  { %2612 = dma.done.wait [#allocation5], 64  }
  0x35   :  { %2613 = vsyncadd [#allocation5], 4294967232  ;;  %v185_v0 = vlaneseq  ;;  %v2619_v1 = vmov 0   ;;  %v2707_v9 = vld [vmem:[%s3298_s0 + $0x4] ss:$8 sps:$4 sm:$0xff]   ;;  %v60_v14 = vld [vmem:[#allocation2 + $0x18] sm:$0xff] }
  0x36   :  { %281 = vmatprep.mubr.bf16.mxu0 %v2619_v1  ;;  %329 = vmatprep.mubr.bf16.mxu1 %v2619_v1  ;;  %v2718_v12 = vld [vmem:[%s3298_s0] ss:$8 sps:$4 sm:$0xff]   ;;  %v3343_v15 = vmov 0.0   ;;  %v64_v17 = vld [vmem:[#allocation2 + $0x38] sm:$0xff]  ;;  %vm3304_vm10 = vcmask 130048  }
  0x37   :  { %v2691_v2 = vshrl.u32 %v185_v0, 7  ;;  %v2693_v3 = vand.u32 127, %v185_v0  ;;  %249 = vmatprep.subr.bf16.mxu0 %v2707_v9  ;;  %297 = vmatprep.subr.bf16.mxu1 %v2707_v9  ;;  %v57_v18 = vld [vmem:[#allocation2] sm:$0xff]  ;;  %v2168_v20 = vcombine.low %v60_v14, %v64_v17  ;;  %v2169_v21 = vcombine.high %v60_v14, %v64_v17  ;;  %v68_v23 = vld [vmem:[#allocation2 + $0x58] sm:$0xff] }
  0x38   :  { %250 = vmatpush1.bf16.msra.mxu0 %v2718_v12  ;;  %298 = vmatpush1.bf16.msra.mxu1 %v2718_v12  ;;  %v61_v22 = vld [vmem:[#allocation2 + $0x20] sm:$0xff]  ;;  %v72_v27 = vld [vmem:[#allocation2 + $0x78] sm:$0xff] }
  0x39   :  { %v2696_v4 = vadd.s32 8, %v2691_v2  ;;  %v194_v5 = vand.u32 7, %v2691_v2  ;;  %v214_v6 = vadd.s32 1, %v2693_v3  ;;  %v224_v7 = vadd.s32 1, %v2691_v2  ;;  %v65_v28 = vld [vmem:[#allocation2 + $0x40] sm:$0xff]  ;;  %502 = vmatprep.subr.bf16.mxu0 %v2169_v21  ;;  %v76_v33 = vld [vmem:[#allocation2 + $0x98] sm:$0xff] }
  0x3a   :  { %v2233_v26 = vcombine.high %v57_v18, %v61_v22  ;;  %v2232_v30 = vcombine.low %v57_v18, %v61_v22  ;;  %v2171_v31 = vcombine.high %v68_v23, %v72_v27  ;;  %v69_v32 = vld [vmem:[#allocation2 + $0x60] sm:$0xff]  ;;  %v80_v34 = vld [vmem:[#allocation2 + $0xb8] sm:$0xff]  ;;  %v2170_v37 = vcombine.low %v68_v23, %v72_v27 }
  0x3b   :  { %v201_v8 = vand.u32 7, %v2696_v4  ;;  %vm215_vm0 = vcmp.eq.s32.totalorder %v2691_v2, %v214_v6  ;;  %vm216_vm1 = vcmp.eq.s32.totalorder %v2696_v4, %v214_v6  ;;  %vm217_vm2 = vcmp.ne.s32.totalorder %v194_v5, 0  ;;  %v73_v38 = vld [vmem:[#allocation2 + $0x80] sm:$0xff]  ;;  %v84_v42 = vld [vmem:[#allocation2 + $0xd8] sm:$0xff] }
  0x3c   :  { %v225_v10 = vadd.s32 1, %v2696_v4  ;;  %vm226_vm3 = vcmp.eq.s32.totalorder %v2693_v3, %v224_v7  ;;  %vm2711_vm4 = vcmp.ne.s32.totalorder %v194_v5, 7  ;;  %vm219_vm6 = vmand %vm215_vm0, %vm217_vm2  ;;  %908 = vmatprep.subr.bf16.mxu1 %v2233_v26  ;;  %v2235_v36 = vcombine.high %v65_v28, %v69_v32  ;;  %v77_v39 = vld [vmem:[#allocation2 + $0xa0] sm:$0xff]  ;;  %v88_v43 = vld [vmem:[#allocation2 + $0xf8] sm:$0xff] }
  0x3d   :  { %vm218_vm5 = vcmp.ne.s32.totalorder %v201_v8, 0  ;;  %vm2720_vm7 = vcmp.ne.s32.totalorder %v201_v8, 7  ;;  %v221_v16 = vsel %vm219_vm6, 1.0, %v3343_v15  ;;  %vm230_vm11 = vmand %vm226_vm3, %vm2711_vm4  ;;  %v2173_v40 = vcombine.high %v76_v33, %v80_v34  ;;  %v81_v46 = vld [vmem:[#allocation2 + $0xc0] sm:$0xff]  ;;  %v92_v50 = vld [vmem:[#allocation2 + $0x118] sm:$0xff] }
  0x3e   :  { %vm220_vm8 = vmand %vm216_vm1, %vm218_vm5  ;;  %vm227_vm9 = vcmp.eq.s32.totalorder %v2693_v3, %v225_v10  ;;  %v232_v25 = vsel %vm230_vm11, 1.0, %v3343_v15  ;;  %v2234_v41 = vcombine.low %v65_v28, %v69_v32  ;;  %v2237_v44 = vcombine.high %v73_v38, %v77_v39  ;;  %v85_v47 = vld [vmem:[#allocation2 + $0xe0] sm:$0xff]  ;;  %v96_v51 = vld [vmem:[#allocation2 + $0x138] sm:$0xff] }
  0x3f   :  { %v222_v19 = vsel %vm220_vm8, 1.0, %v3343_v15  ;;  %vm231_vm12 = vmand %vm227_vm9, %vm2720_vm7  ;;  %v2172_v45 = vcombine.low %v76_v33, %v80_v34  ;;  %v2175_v48 = vcombine.high %v84_v42, %v88_v43  ;;  %v2236_v49 = vcombine.low %v73_v38, %v77_v39  ;;  %v89_v54 = vld [vmem:[#allocation2 + $0x100] sm:$0xff]  ;;  %v100_v58 = vld [vmem:[#allocation2 + $0x158] sm:$0xff] }
  0x40   :  { %v223_v24 = vpack.c.bf16 %v222_v19, %v221_v16  ;;  %v233_v29 = vsel %vm231_vm12, 1.0, %v3343_v15  ;;  %v2239_v52 = vcombine.high %v81_v46, %v85_v47  ;;  %v2174_v53 = vcombine.low %v84_v42, %v88_v43  ;;  %v93_v55 = vld [vmem:[#allocation2 + $0x120] sm:$0xff]  ;;  %v104_v59 = vld [vmem:[#allocation2 + $0x178] sm:$0xff] }
  0x41   :  { %v234_v35 = vpack.c.bf16 %v233_v29, %v232_v25  ;;  %v2177_v56 = vcombine.high %v92_v50, %v96_v51  ;;  %v2238_v57 = vcombine.low %v81_v46, %v85_v47  ;;  %v2241_v60 = vcombine.high %v89_v54, %v93_v55  ;;  %v97_v62 = vld [vmem:[#allocation2 + $0x140] sm:$0xff]  ;;  %v108_v5 = vld [vmem:[#allocation2 + $0x198] sm:$0xff] }
  0x42   :  { %2166 = vmatmul.mubr.msk.bf16.vlgmr.msra.gmra.mrb[0].mxu0 %vm3304_vm10, %v223_v24  ;;  %v2176_v61 = vcombine.low %v92_v50, %v96_v51  ;;  %v101_v63 = vld [vmem:[#allocation2 + $0x160] sm:$0xff]  ;;  %v2179_v0 = vcombine.high %v100_v58, %v104_v59  ;;  %v2240_v1 = vcombine.low %v89_v54, %v93_v55  ;;  %v112_v6 = vld [vmem:[#allocation2 + $0x1b8] sm:$0xff]  ;;  %v2178_v8 = vcombine.low %v100_v58, %v104_v59 }
  0x43   :  { %503 = vmatpush1.bf16.msra.mxu0 %v2168_v20  ;;  %2167 = vmatmul.mubr.msk.bf16.vlgmr.msra.gmra.mrb[0].mxu1 %vm3304_vm10, %v234_v35  ;;  %v2243_v7 = vcombine.high %v97_v62, %v101_v63  ;;  %v105_v10 = vld [vmem:[#allocation2 + $0x180] sm:$0xff]  ;;  %v2181_v13 = vcombine.high %v108_v5, %v112_v6  ;;  %v2242_v14 = vcombine.low %v97_v62, %v101_v63  ;;  %v116_v16 = vld [vmem:[#allocation2 + $0x1d8] sm:$0xff] }
  0x44   :  { %504 = vmatprep.subr.bf16.mxu0 %v2171_v31  ;;  %909 = vmatpush1.bf16.msra.mxu1 %v2232_v30  ;;  %v109_v11 = vld [vmem:[#allocation2 + $0x1a0] sm:$0xff]  ;;  %v120_v17 = vld [vmem:[#allocation2 + $0x1f8] sm:$0xff]  ;;  %v2180_v19 = vcombine.low %v108_v5, %v112_v6 }
  0x45   :  { %910 = vmatprep.subr.bf16.mxu1 %v2235_v36  ;;  %v2245_v18 = vcombine.high %v105_v10, %v109_v11  ;;  %v113_v20 = vld [vmem:[#allocation2 + $0x1c0] sm:$0xff]  ;;  %v2183_v22 = vcombine.high %v116_v16, %v120_v17  ;;  %v2244_v23 = vcombine.low %v105_v10, %v109_v11  ;;  %v124_v24 = vld [vmem:[#allocation2 + $0x218] sm:$0xff]  ;;  %v2182_v27 = vcombine.low %v116_v16, %v120_v17 }
  0x46   :  { %v117_v21 = vld [vmem:[#allocation2 + $0x1e0] sm:$0xff]  ;;  %v128_v25 = vld [vmem:[#allocation2 + $0x238] sm:$0xff] }
  0x47   :  { %505 = vmatpush1.bf16.msra.mxu0 %v2170_v37  ;;  %v2247_v26 = vcombine.high %v113_v20, %v117_v21  ;;  %v121_v28 = vld [vmem:[#allocation2 + $0x200] sm:$0xff]  ;;  %v2185_v30 = vcombine.high %v124_v24, %v128_v25  ;;  %v2246_v31 = vcombine.low %v113_v20, %v117_v21  ;;  %v132_v32 = vld [vmem:[#allocation2 + $0x258] sm:$0xff]  ;;  %v2184_v35 = vcombine.low %v124_v24, %v128_v25 }
  0x48   :  { %506 = vmatprep.subr.bf16.mxu0 %v2173_v40  ;;  %911 = vmatpush1.bf16.msra.mxu1 %v2234_v41  ;;  %v125_v29 = vld [vmem:[#allocation2 + $0x220] sm:$0xff]  ;;  %v136_v33 = vld [vmem:[#allocation2 + $0x278] sm:$0xff] }
  0x49   :  { %912 = vmatprep.subr.bf16.mxu1 %v2237_v44  ;;  %v2249_v34 = vcombine.high %v121_v28, %v125_v29  ;;  %v129_v36 = vld [vmem:[#allocation2 + $0x240] sm:$0xff]  ;;  %v2187_v38 = vcombine.high %v132_v32, %v136_v33  ;;  %v2248_v39 = vcombine.low %v121_v28, %v125_v29  ;;  %v140_v40 = vld [vmem:[#allocation2 + $0x298] sm:$0xff]  ;;  %v2186_v43 = vcombine.low %v132_v32, %v136_v33  ;;  %v58_v33 = vld [vmem:[#allocation2 + $0x8] sm:$0xff] }
  0x4a   :  { %v133_v37 = vld [vmem:[#allocation2 + $0x260] sm:$0xff]  ;;  %v144_v41 = vld [vmem:[#allocation2 + $0x2b8] sm:$0xff] }
  0x4b   :  { %507 = vmatpush1.bf16.msra.mxu0 %v2172_v45  ;;  %v2251_v42 = vcombine.high %v129_v36, %v133_v37  ;;  %v137_v44 = vld [vmem:[#allocation2 + $0x280] sm:$0xff]  ;;  %v2189_v46 = vcombine.high %v140_v40, %v144_v41  ;;  %v2250_v47 = vcombine.low %v129_v36, %v133_v37  ;;  %v2188_v51 = vcombine.low %v140_v40, %v144_v41  ;;  %v180_v25 = vld [vmem:[#allocation2 + $0x3d8] sm:$0xff] }
  0x4c   :  { %508 = vmatprep.subr.bf16.mxu0 %v2175_v48  ;;  %913 = vmatpush1.bf16.msra.mxu1 %v2236_v49  ;;  %v141_v45 = vld [vmem:[#allocation2 + $0x2a0] sm:$0xff]  ;;  %v148_v48 = vld [vmem:[#allocation2 + $0x2d8] sm:$0xff] }
  0x4d   :  { %914 = vmatprep.subr.bf16.mxu1 %v2239_v52  ;;  %v152_v49 = vld [vmem:[#allocation2 + $0x2f8] sm:$0xff]  ;;  %v2253_v50 = vcombine.high %v137_v44, %v141_v45  ;;  %v145_v52 = vld [vmem:[#allocation2 + $0x2c0] sm:$0xff]  ;;  %v2252_v55 = vcombine.low %v137_v44, %v141_v45  ;;  %v66_v45 = vld [vmem:[#allocation2 + $0x48] sm:$0xff] }
  0x4e   :  { %v2191_v54 = vcombine.high %v148_v48, %v152_v49  ;;  %v2190_v59 = vcombine.low %v148_v48, %v152_v49  ;;  %v181_v29 = vld [vmem:[#allocation2 + $0x3e0] sm:$0xff] }
  0x4f   :  { %509 = vmatpush1.bf16.msra.mxu0 %v2174_v53  ;;  %v149_v53 = vld [vmem:[#allocation2 + $0x2e0] sm:$0xff] }
  0x50   :  { %510 = vmatprep.subr.bf16.mxu0 %v2177_v56  ;;  %915 = vmatpush1.bf16.msra.mxu1 %v2238_v57  ;;  %v156_v56 = vld [vmem:[#allocation2 + $0x318] sm:$0xff]  ;;  %v2255_v58 = vcombine.high %v145_v52, %v149_v53  ;;  %v2254_v63 = vcombine.low %v145_v52, %v149_v53  ;;  %v67_v52 = vld [vmem:[#allocation2 + $0x50] sm:$0xff] }
  0x51   :  { %916 = vmatprep.subr.bf16.mxu1 %v2241_v60  ;;  %v160_v57 = vld [vmem:[#allocation2 + $0x338] sm:$0xff]  ;;  %v153_v60 = vld [vmem:[#allocation2 + $0x300] sm:$0xff]  ;;  %v71_v53 = vld [vmem:[#allocation2 + $0x70] sm:$0xff] }
  0x52   :  { %v2193_v62 = vcombine.high %v156_v56, %v160_v57  ;;  %v2192_v6 = vcombine.low %v156_v56, %v160_v57 }
  0x53   :  { %511 = vmatpush1.bf16.msra.mxu0 %v2176_v61  ;;  %v157_v61 = vld [vmem:[#allocation2 + $0x320] sm:$0xff] }
  0x54   :  { %512 = vmatprep.subr.bf16.mxu0 %v2179_v0  ;;  %917 = vmatpush1.bf16.msra.mxu1 %v2240_v1  ;;  %v164_v0 = vld [vmem:[#allocation2 + $0x358] sm:$0xff]  ;;  %v2257_v5 = vcombine.high %v153_v60, %v157_v61  ;;  %v2256_v11 = vcombine.low %v153_v60, %v157_v61  ;;  %v2267_v60 = vcombine.high %v67_v52, %v71_v53 }
  0x55   :  { %918 = vmatprep.subr.bf16.mxu1 %v2243_v7  ;;  %v168_v1 = vld [vmem:[#allocation2 + $0x378] sm:$0xff]  ;;  %v161_v7 = vld [vmem:[#allocation2 + $0x340] sm:$0xff] }
  0x56   :  { %v2195_v10 = vcombine.high %v164_v0, %v168_v1  ;;  %v2194_v17 = vcombine.low %v164_v0, %v168_v1  ;;  %v2266_v1 = vcombine.low %v67_v52, %v71_v53  ;;  %v127_v52 = vld [vmem:[#allocation2 + $0x230] sm:$0xff] }
  0x57   :  { %513 = vmatpush1.bf16.msra.mxu0 %v2178_v8  ;;  %v165_v8 = vld [vmem:[#allocation2 + $0x360] sm:$0xff] }
  0x58   :  { %514 = vmatprep.subr.bf16.mxu0 %v2181_v13  ;;  %919 = vmatpush1.bf16.msra.mxu1 %v2242_v14  ;;  %v172_v13 = vld [vmem:[#allocation2 + $0x398] sm:$0xff]  ;;  %v2259_v16 = vcombine.high %v161_v7, %v165_v8  ;;  %v2258_v21 = vcombine.low %v161_v7, %v165_v8 }
  0x59   :  { %920 = vmatprep.subr.bf16.mxu1 %v2245_v18  ;;  %v176_v14 = vld [vmem:[#allocation2 + $0x3b8] sm:$0xff]  ;;  %v169_v18 = vld [vmem:[#allocation2 + $0x380] sm:$0xff] }
  0x5a   :  { %v2197_v20 = vcombine.high %v172_v13, %v176_v14 }
  0x5b   :  { %515 = vmatpush1.bf16.msra.mxu0 %v2180_v19  ;;  %v173_v19 = vld [vmem:[#allocation2 + $0x3a0] sm:$0xff] }
  0x5c   :  { %516 = vmatprep.subr.bf16.mxu0 %v2183_v22  ;;  %921 = vmatpush1.bf16.msra.mxu1 %v2244_v23  ;;  %v2261_v22 = vcombine.high %v169_v18, %v173_v19  ;;  %v2196_v23 = vcombine.low %v172_v13, %v176_v14  ;;  %v2260_v24 = vcombine.low %v169_v18, %v173_v19 }
  0x5d   :  { %922 = vmatprep.subr.bf16.mxu1 %v2247_v26  ;;  %v184_v26 = vld [vmem:[#allocation2 + $0x3f8] sm:$0xff] }
  0x5e   :  { %v2199_v28 = vcombine.high %v180_v25, %v184_v26 }
  0x5f   :  { %517 = vmatpush1.bf16.msra.mxu0 %v2182_v27  ;;  %v177_v27 = vld [vmem:[#allocation2 + $0x3c0] sm:$0xff] }
  0x60   :  { %518 = vmatprep.subr.bf16.mxu0 %v2185_v30  ;;  %923 = vmatpush1.bf16.msra.mxu1 %v2246_v31  ;;  %v2198_v30 = vcombine.low %v180_v25, %v184_v26  ;;  %v2262_v31 = vcombine.low %v177_v27, %v181_v29  ;;  %v2263_v32 = vcombine.high %v177_v27, %v181_v29  ;;  %v99_v27 = vld [vmem:[#allocation2 + $0x150] sm:$0xff] }
  0x61   :  { %924 = vmatprep.subr.bf16.mxu1 %v2249_v34  ;;  %v62_v34 = vld [vmem:[#allocation2 + $0x28] sm:$0xff] }
  0x62   :  { %v2200_v36 = vcombine.low %v58_v33, %v62_v34  ;;  %v2201_v37 = vcombine.high %v58_v33, %v62_v34 }
  0x63   :  { %519 = vmatpush1.bf16.msra.mxu0 %v2184_v35  ;;  %v59_v35 = vld [vmem:[#allocation2 + $0x10] sm:$0xff] }
  0x64   :  { %520 = vmatprep.subr.bf16.mxu0 %v2187_v38  ;;  %925 = vmatpush1.bf16.msra.mxu1 %v2248_v39  ;;  %v63_v38 = vld [vmem:[#allocation2 + $0x30] sm:$0xff] }
  0x65   :  { %926 = vmatprep.subr.bf16.mxu1 %v2251_v42  ;;  %v2264_v39 = vcombine.low %v59_v35, %v63_v38  ;;  %v2265_v40 = vcombine.high %v59_v35, %v63_v38  ;;  %v107_v35 = vld [vmem:[#allocation2 + $0x190] sm:$0xff] }
  0x67   :  { %521 = vmatpush1.bf16.msra.mxu0 %v2186_v43 }
  0x68   :  { %522 = vmatprep.subr.bf16.mxu0 %v2189_v46  ;;  %927 = vmatpush1.bf16.msra.mxu1 %v2250_v47  ;;  %v70_v46 = vld [vmem:[#allocation2 + $0x68] sm:$0xff] }
  0x69   :  { %928 = vmatprep.subr.bf16.mxu1 %v2253_v50  ;;  %v2203_v56 = vcombine.high %v66_v45, %v70_v46  ;;  %v2202_v61 = vcombine.low %v66_v45, %v70_v46 }
  0x6b   :  { %523 = vmatpush1.bf16.msra.mxu0 %v2188_v51 }
  0x6c   :  { %524 = vmatprep.subr.bf16.mxu0 %v2191_v54  ;;  %929 = vmatpush1.bf16.msra.mxu1 %v2252_v55 }
  0x6d   :  { %930 = vmatprep.subr.bf16.mxu1 %v2255_v58  ;;  %v74_v58 = vld [vmem:[#allocation2 + $0x88] sm:$0xff] }
  0x6f   :  { %525 = vmatpush1.bf16.msra.mxu0 %v2190_v59  ;;  %v78_v59 = vld [vmem:[#allocation2 + $0xa8] sm:$0xff] }
  0x70   :  { %526 = vmatprep.subr.bf16.mxu0 %v2193_v62  ;;  %931 = vmatpush1.bf16.msra.mxu1 %v2254_v63  ;;  %v75_v62 = vld [vmem:[#allocation2 + $0x90] sm:$0xff]  ;;  %v2205_v0 = vcombine.high %v74_v58, %v78_v59  ;;  %v2204_v8 = vcombine.low %v74_v58, %v78_v59 }
  0x71   :  { %932 = vmatprep.subr.bf16.mxu1 %v2257_v5  ;;  %v79_v63 = vld [vmem:[#allocation2 + $0xb0] sm:$0xff]  ;;  %v82_v5 = vld [vmem:[#allocation2 + $0xc8] sm:$0xff] }
  0x72   :  { %v2269_v7 = vcombine.high %v75_v62, %v79_v63  ;;  %v2268_v14 = vcombine.low %v75_v62, %v79_v63  ;;  %v131_v59 = vld [vmem:[#allocation2 + $0x250] sm:$0xff]  ;;  %v138_v63 = vld [vmem:[#allocation2 + $0x288] sm:$0xff] }
  0x73   :  { %527 = vmatpush1.bf16.msra.mxu0 %v2192_v6  ;;  %v86_v6 = vld [vmem:[#allocation2 + $0xe8] sm:$0xff] }
  0x74   :  { %528 = vmatprep.subr.bf16.mxu0 %v2195_v10  ;;  %933 = vmatpush1.bf16.msra.mxu1 %v2256_v11  ;;  %v83_v10 = vld [vmem:[#allocation2 + $0xd0] sm:$0xff]  ;;  %v2207_v13 = vcombine.high %v82_v5, %v86_v6  ;;  %v2206_v19 = vcombine.low %v82_v5, %v86_v6 }
  0x75   :  { %934 = vmatprep.subr.bf16.mxu1 %v2259_v16  ;;  %v87_v11 = vld [vmem:[#allocation2 + $0xf0] sm:$0xff]  ;;  %v90_v16 = vld [vmem:[#allocation2 + $0x108] sm:$0xff] }
  0x76   :  { %v2271_v18 = vcombine.high %v83_v10, %v87_v11  ;;  %v139_v6 = vld [vmem:[#allocation2 + $0x290] sm:$0xff] }
  0x77   :  { %529 = vmatpush1.bf16.msra.mxu0 %v2194_v17  ;;  %v94_v17 = vld [vmem:[#allocation2 + $0x128] sm:$0xff] }
  0x78   :  { %530 = vmatprep.subr.bf16.mxu0 %v2197_v20  ;;  %935 = vmatpush1.bf16.msra.mxu1 %v2258_v21  ;;  %v91_v20 = vld [vmem:[#allocation2 + $0x110] sm:$0xff]  ;;  %v2208_v26 = vcombine.low %v90_v16, %v94_v17 }
  0x79   :  { %936 = vmatprep.subr.bf16.mxu1 %v2261_v22  ;;  %v95_v21 = vld [vmem:[#allocation2 + $0x130] sm:$0xff]  ;;  %v2209_v22 = vcombine.high %v90_v16, %v94_v17 }
  0x7a   :  { %v2273_v25 = vcombine.high %v91_v20, %v95_v21  ;;  %v147_v17 = vld [vmem:[#allocation2 + $0x2d0] sm:$0xff] }
  0x7b   :  { %531 = vmatpush1.bf16.msra.mxu0 %v2196_v23  ;;  %v98_v23 = vld [vmem:[#allocation2 + $0x148] sm:$0xff] }
  0x7c   :  { %937 = vmatpush1.bf16.msra.mxu1 %v2260_v24  ;;  %532 = vmatprep.subr.bf16.mxu0 %v2199_v28  ;;  %v102_v24 = vld [vmem:[#allocation2 + $0x168] sm:$0xff]  ;;  %v103_v28 = vld [vmem:[#allocation2 + $0x170] sm:$0xff] }
  0x7d   :  { %938 = vmatprep.subr.bf16.mxu1 %v2263_v32  ;;  %v2211_v29 = vcombine.high %v98_v23, %v102_v24  ;;  %v110_v32 = vld [vmem:[#allocation2 + $0x1a8] sm:$0xff]  ;;  %v2275_v33 = vcombine.high %v99_v27, %v103_v28  ;;  %v2210_v34 = vcombine.low %v98_v23, %v102_v24  ;;  %v2274_v38 = vcombine.low %v99_v27, %v103_v28  ;;  %v155_v24 = vld [vmem:[#allocation2 + $0x310] sm:$0xff] }
  0x7e   :  { %v162_v28 = vld [vmem:[#allocation2 + $0x348] sm:$0xff] }
  0x7f   :  { %533 = vmatpush1.bf16.msra.mxu0 %v2198_v30  ;;  %v2272_v30 = vcombine.low %v91_v20, %v95_v21  ;;  %v154_v21 = vld [vmem:[#allocation2 + $0x308] sm:$0xff] }
  0x80   :  { %939 = vmatpush1.bf16.msra.mxu1 %v2262_v31  ;;  %705 = vmatprep.subr.bf16.mxu0 %v2201_v37  ;;  %v106_v31 = vld [vmem:[#allocation2 + $0x188] sm:$0xff] }
  0x81   :  { %1111 = vmatprep.subr.bf16.mxu1 %v2265_v40  ;;  %v2213_v37 = vcombine.high %v106_v31, %v110_v32  ;;  %v118_v40 = vld [vmem:[#allocation2 + $0x1e8] sm:$0xff] }
 0x115   :  { %v283_v41 = vpop.f32.mrb[0].mxu0 }
 0x116   :  { %v285_v42 = vpop.f32.mrb[1].mxu0  ;;  %v331_v43 = vpop.f32.mrb[0].mxu1 }
 0x117   :  { %v287_v44 = vpop.f32.mrb[2].mxu0  ;;  %v333_v47 = vpop.f32.mrb[1].mxu1 }
 0x118   :  { %v292_v48 = vpack.c.bf16 %v287_v44, %v283_v41  ;;  %v289_v49 = vpop.f32.mrb[3].mxu0  ;;  %v335_v50 = vpop.f32.mrb[2].mxu1  ;;  %v119_v44 = vld [vmem:[#allocation2 + $0x1f0] sm:$0xff] }
 0x119   :  { %v293_v51 = vpack.c.bf16 %v289_v49, %v285_v42  ;;  %v340_v54 = vpack.c.bf16 %v335_v50, %v331_v43  ;;  %v337_v55 = vpop.f32.mrb[3].mxu1  ;;  %v2212_v42 = vcombine.low %v106_v31, %v110_v32  ;;  %v115_v43 = vld [vmem:[#allocation2 + $0x1d0] sm:$0xff] }
 0x11a   :  { %v341_v57 = vpack.c.bf16 %v337_v55, %v333_v47  ;;  %v122_v47 = vld [vmem:[#allocation2 + $0x208] sm:$0xff]  ;;  %v2279_v49 = vcombine.high %v115_v43, %v119_v44  ;;  %v163_v32 = vld [vmem:[#allocation2 + $0x350] sm:$0xff] }
 0x11b   :  { %534 = vmatprep.mubr.bf16.mxu0 %v293_v51  ;;  %v123_v51 = vld [vmem:[#allocation2 + $0x210] sm:$0xff]  ;;  %v130_v55 = vld [vmem:[#allocation2 + $0x248] sm:$0xff] }
 0x11c   :  { %535 = vmatmul.mubr.bf16.vlgmr.msra.gmra.mrb[4].mxu0 %v292_v48  ;;  %940 = vmatprep.mubr.bf16.mxu1 %v341_v57  ;;  %v126_v48 = vld [vmem:[#allocation2 + $0x228] sm:$0xff]  ;;  %v2281_v57 = vcombine.high %v123_v51, %v127_v52  ;;  %v2280_v62 = vcombine.low %v123_v51, %v127_v52  ;;  %v1173_v51 = vadd.s32 152, %v2691_v2 }
 0x11d   :  { %706 = vmatpush1.bf16.msra.mxu0 %v2200_v36  ;;  %941 = vmatmul.mubr.bf16.vlgmr.msra.gmra.mrb[4].mxu1 %v340_v54  ;;  %v111_v36 = vld [vmem:[#allocation2 + $0x1b0] sm:$0xff]  ;;  %v2217_v53 = vcombine.high %v122_v47, %v126_v48  ;;  %v2278_v54 = vcombine.low %v115_v43, %v119_v44  ;;  %v2216_v58 = vcombine.low %v122_v47, %v126_v48  ;;  %v182_v47 = vld [vmem:[#allocation2 + $0x3e8] sm:$0xff] }
 0x11e   :  { %707 = vmatprep.subr.bf16.mxu0 %v2203_v56  ;;  %1112 = vmatpush1.bf16.msra.mxu1 %v2264_v39  ;;  %v114_v39 = vld [vmem:[#allocation2 + $0x1c8] sm:$0xff]  ;;  %v2277_v41 = vcombine.high %v107_v35, %v111_v36  ;;  %v2276_v46 = vcombine.low %v107_v35, %v111_v36  ;;  %v175_v43 = vld [vmem:[#allocation2 + $0x3b0] sm:$0xff] }
 0x11f   :  { %737 = vmatprep.mubr.bf16.mxu0 %v2707_v9  ;;  %1113 = vmatprep.subr.bf16.mxu1 %v2267_v60  ;;  %v2215_v45 = vcombine.high %v114_v39, %v118_v40  ;;  %v2214_v50 = vcombine.low %v114_v39, %v118_v40  ;;  %v134_v56 = vld [vmem:[#allocation2 + $0x268] sm:$0xff]  ;;  %v135_v60 = vld [vmem:[#allocation2 + $0x270] sm:$0xff]  ;;  %v1170_v39 = vadd.s32 128, %v2691_v2  ;;  %v1171_v40 = vadd.s32 136, %v2691_v2 }
 0x120   :  { %1143 = vmatprep.mubr.bf16.mxu1 %v2707_v9  ;;  %v2270_v9 = vcombine.low %v83_v10, %v87_v11  ;;  %v2218_v5 = vcombine.low %v130_v55, %v134_v56  ;;  %v2282_v10 = vcombine.low %v131_v59, %v135_v60  ;;  %v146_v11 = vld [vmem:[#allocation2 + $0x2c8] sm:$0xff]  ;;  %v179_v48 = vld [vmem:[#allocation2 + $0x3d0] sm:$0xff] }
 0x121   :  { %708 = vmatpush1.bf16.msra.mxu0 %v2202_v61  ;;  %v2219_v61 = vcombine.high %v130_v55, %v134_v56  ;;  %v170_v36 = vld [vmem:[#allocation2 + $0x388] sm:$0xff] }
 0x122   :  { %709 = vmatprep.subr.bf16.mxu0 %v2205_v0  ;;  %1114 = vmatpush1.bf16.msra.mxu1 %v2266_v1  ;;  %v142_v0 = vld [vmem:[#allocation2 + $0x2a8] sm:$0xff]  ;;  %v2283_v1 = vcombine.high %v131_v59, %v135_v60  ;;  %v1190_v59 = vand.u32 15, %v2691_v2  ;;  %v1197_v60 = vand.u32 15, %v2696_v4 }
 0x123   :  { %1115 = vmatprep.subr.bf16.mxu1 %v2269_v7  ;;  %v143_v7 = vld [vmem:[#allocation2 + $0x2b0] sm:$0xff]  ;;  %v2220_v16 = vcombine.low %v138_v63, %v142_v0 }
 0x124   :  { %v2284_v20 = vcombine.low %v139_v6, %v143_v7  ;;  %vm2764_vm15 = vcmp.eq.s32.totalorder %v1190_v59, %v2693_v3  ;;  %vm2769_vm0 = vcmp.eq.s32.totalorder %v1197_v60, %v2693_v3 }
 0x125   :  { %710 = vmatpush1.bf16.msra.mxu0 %v2204_v8  ;;  %v2221_v8 = vcombine.high %v138_v63, %v142_v0  ;;  %v1156_v63 = vadd.s32 16, %v2691_v2  ;;  %v1157_v0 = vadd.s32 24, %v2691_v2  ;;  %vm3303_vm4 = vmpackc.low %vm2769_vm0, %vm2764_vm15 }
 0x126   :  { %711 = vmatprep.subr.bf16.mxu0 %v2207_v13  ;;  %1116 = vmatpush1.bf16.msra.mxu1 %v2268_v14  ;;  %v150_v13 = vld [vmem:[#allocation2 + $0x2e8] sm:$0xff]  ;;  %v2285_v14 = vcombine.high %v139_v6, %v143_v7  ;;  %v1174_v6 = vadd.s32 160, %v2691_v2  ;;  %v1175_v7 = vadd.s32 168, %v2691_v2 }
 0x127   :  { %1117 = vmatprep.subr.bf16.mxu1 %v2271_v18  ;;  %v151_v18 = vld [vmem:[#allocation2 + $0x2f0] sm:$0xff]  ;;  %v2222_v23 = vcombine.low %v146_v11, %v150_v13 }
 0x128   :  { %v2286_v27 = vcombine.low %v147_v17, %v151_v18 }
 0x129   :  { %712 = vmatpush1.bf16.msra.mxu0 %v2206_v19  ;;  %v2223_v19 = vcombine.high %v146_v11, %v150_v13  ;;  %v3253_v11 = vsub.s32 0, %v2691_v2 }
 0x12a   :  { %713 = vmatprep.subr.bf16.mxu0 %v2209_v22  ;;  %1118 = vmatpush1.bf16.msra.mxu1 %v2270_v9  ;;  %v158_v22 = vld [vmem:[#allocation2 + $0x328] sm:$0xff]  ;;  %v2287_v9 = vcombine.high %v147_v17, %v151_v18  ;;  %v1158_v17 = vadd.s32 32, %v2691_v2  ;;  %v1159_v18 = vadd.s32 40, %v2691_v2 }
 0x12b   :  { %1119 = vmatprep.subr.bf16.mxu1 %v2273_v25  ;;  %v159_v25 = vld [vmem:[#allocation2 + $0x330] sm:$0xff]  ;;  %v2224_v31 = vcombine.low %v154_v21, %v158_v22 }
 0x12c   :  { %v2288_v35 = vcombine.low %v155_v24, %v159_v25 }
 0x12d   :  { %714 = vmatpush1.bf16.msra.mxu0 %v2208_v26  ;;  %v2225_v26 = vcombine.high %v154_v21, %v158_v22  ;;  %v1330_v21 = vand.u32 15, %v1174_v6  ;;  %v1337_v22 = vand.u32 15, %v1175_v7  ;;  %v1183_v6 = vadd.s32 232, %v2691_v2 }
 0x12e   :  { %715 = vmatprep.subr.bf16.mxu0 %v2211_v29  ;;  %1120 = vmatpush1.bf16.msra.mxu1 %v2272_v30  ;;  %v166_v29 = vld [vmem:[#allocation2 + $0x368] sm:$0xff]  ;;  %v2289_v30 = vcombine.high %v155_v24, %v159_v25  ;;  %v1218_v25 = vand.u32 15, %v1158_v17  ;;  %v3400_v7 = vmov 0 }
 0x12f   :  { %1121 = vmatprep.subr.bf16.mxu1 %v2275_v33  ;;  %v167_v33 = vld [vmem:[#allocation2 + $0x370] sm:$0xff]  ;;  %vm2815_vm8 = vcmp.eq.s32.totalorder %v1330_v21, %v2693_v3  ;;  %vm2820_vm9 = vcmp.eq.s32.totalorder %v1337_v22, %v2693_v3  ;;  %v1393_v17 = vand.u32 15, %v1183_v6  ;;  %v3404_v22 = vmov 0 }
 0x130   :  { %vm3306_vm12 = vmpackc.low %vm2820_vm9, %vm2815_vm8 }
 0x131   :  { %716 = vmatpush1.bf16.msra.mxu0 %v2210_v34  ;;  %v2227_v34 = vcombine.high %v162_v28, %v166_v29 }
 0x132   :  { %717 = vmatprep.subr.bf16.mxu0 %v2213_v37  ;;  %1122 = vmatpush1.bf16.msra.mxu1 %v2274_v38  ;;  %v174_v37 = vld [vmem:[#allocation2 + $0x3a8] sm:$0xff]  ;;  %v2291_v38 = vcombine.high %v163_v32, %v167_v33 }
 0x133   :  { %1123 = vmatprep.subr.bf16.mxu1 %v2277_v41  ;;  %v2226_v41 = vcombine.low %v162_v28, %v166_v29  ;;  %v2229_v44 = vcombine.high %v170_v36, %v174_v37  ;;  %v2228_v55 = vcombine.low %v170_v36, %v174_v37  ;;  %v3378_v29 = vmov 0 }
 0x135   :  { %718 = vmatpush1.bf16.msra.mxu0 %v2212_v42  ;;  %v171_v42 = vld [vmem:[#allocation2 + $0x390] sm:$0xff] }
 0x136   :  { %719 = vmatprep.subr.bf16.mxu0 %v2215_v45  ;;  %1124 = vmatpush1.bf16.msra.mxu1 %v2276_v46  ;;  %v178_v45 = vld [vmem:[#allocation2 + $0x3c8] sm:$0xff]  ;;  %v2290_v46 = vcombine.low %v163_v32, %v167_v33  ;;  %v2293_v52 = vcombine.high %v171_v42, %v175_v43  ;;  %v2292_v56 = vcombine.low %v171_v42, %v175_v43  ;;  %v1160_v32 = vadd.s32 48, %v2691_v2 }
 0x137   :  { %1125 = vmatprep.subr.bf16.mxu1 %v2279_v49  ;;  %v183_v49 = vld [vmem:[#allocation2 + $0x3f0] sm:$0xff]  ;;  %v1161_v33 = vadd.s32 56, %v2691_v2  ;;  %v3384_v42 = vmov 0  ;;  %v3386_v43 = vmov 0 }
 0x138   :  { %v1232_v36 = vand.u32 15, %v1160_v32  ;;  %v3410_v32 = vmov 0 }
 0x139   :  { %720 = vmatpush1.bf16.msra.mxu0 %v2214_v50  ;;  %v1172_v50 = vadd.s32 144, %v2691_v2  ;;  %v1239_v37 = vand.u32 15, %v1161_v33  ;;  %v1168_v33 = vadd.s32 112, %v2691_v2 }
 0x13a   :  { %721 = vmatprep.subr.bf16.mxu0 %v2217_v53  ;;  %1126 = vmatpush1.bf16.msra.mxu1 %v2278_v54  ;;  %v1302_v53 = vand.u32 15, %v1170_v39  ;;  %v1309_v54 = vand.u32 15, %v1171_v40  ;;  %v3382_v39 = vmov 0  ;;  %v1178_v40 = vadd.s32 192, %v2691_v2 }
 0x13b   :  { %1127 = vmatprep.subr.bf16.mxu1 %v2281_v57  ;;  %v2231_v57 = vcombine.high %v178_v45, %v182_v47 }
 0x13c   :  { %vm2752_vm13 = vcmp.eq.s32.totalorder %v1302_v53, %v2693_v3  ;;  %vm2757_vm14 = vcmp.eq.s32.totalorder %v1309_v54, %v2693_v3  ;;  %v1181_v53 = vadd.s32 216, %v2691_v2  ;;  %v3392_v54 = vmov 0 }
 0x13d   :  { %722 = vmatpush1.bf16.msra.mxu0 %v2216_v58  ;;  %v2295_v58 = vcombine.high %v179_v48, %v183_v49  ;;  %vm3309_vm1 = vmpackc.low %vm2757_vm14, %vm2752_vm13 }
 0x13e   :  { %723 = vmatprep.subr.bf16.mxu0 %v2219_v61  ;;  %1128 = vmatpush1.bf16.msra.mxu1 %v2280_v62  ;;  %v1316_v61 = vand.u32 15, %v1172_v50  ;;  %v1323_v62 = vand.u32 15, %v1173_v51  ;;  %v3388_v50 = vmov 0  ;;  %v3390_v51 = vmov 0 }
 0x13f   :  { %1129 = vmatprep.subr.bf16.mxu1 %v2283_v1  ;;  %v1379_v59 = vand.u32 15, %v1181_v53 }
 0x140   :  { %vm2780_vm2 = vcmp.eq.s32.totalorder %v1316_v61, %v2693_v3  ;;  %vm2785_vm3 = vcmp.eq.s32.totalorder %v1323_v62, %v2693_v3  ;;  %v3396_v62 = vmov 0 }
 0x141   :  { %724 = vmatpush1.bf16.msra.mxu0 %v2218_v5  ;;  %vm3305_vm5 = vmpackc.low %vm2785_vm3, %vm2780_vm2 }
 0x142   :  { %725 = vmatprep.subr.bf16.mxu0 %v2221_v8  ;;  %1130 = vmatpush1.bf16.msra.mxu1 %v2282_v10  ;;  %v2230_v8 = vcombine.low %v178_v45, %v182_v47  ;;  %v2294_v10 = vcombine.low %v179_v48, %v183_v49  ;;  %v1163_v45 = vadd.s32 72, %v2691_v2 }
 0x143   :  { %1131 = vmatprep.subr.bf16.mxu1 %v2285_v14  ;;  %v1204_v14 = vand.u32 15, %v1156_v63  ;;  %v3398_v63 = vmov 0 }
 0x144   :  { %v1253_v49 = vand.u32 15, %v1163_v45  ;;  %v3416_v45 = vmov 0 }
 0x145   :  { %726 = vmatpush1.bf16.msra.mxu0 %v2220_v16  ;;  %v1211_v16 = vand.u32 15, %v1157_v0  ;;  %vm2804_vm6 = vcmp.eq.s32.totalorder %v1204_v14, %v2693_v3  ;;  %v1182_v0 = vadd.s32 224, %v2691_v2  ;;  %v1167_v14 = vadd.s32 104, %v2691_v2 }
 0x146   :  { %727 = vmatprep.subr.bf16.mxu0 %v2223_v19  ;;  %1132 = vmatpush1.bf16.msra.mxu1 %v2284_v20 }
 0x147   :  { %1133 = vmatprep.subr.bf16.mxu1 %v2287_v9  ;;  %v3344_v9 = vmov 1.0|1.0   ;;  %vm2809_vm7 = vcmp.eq.s32.totalorder %v1211_v16, %v2693_v3  ;;  %v1386_v16 = vand.u32 15, %v1182_v0  ;;  %v1281_v21 = vand.u32 15, %v1167_v14 }
 0x148   :  { %vm3307_vm11 = vmpackc.low %vm2809_vm7, %vm2804_vm6 }
 0x149   :  { %728 = vmatpush1.bf16.msra.mxu0 %v2222_v23 }
 0x14a   :  { %729 = vmatprep.subr.bf16.mxu0 %v2225_v26  ;;  %1134 = vmatpush1.bf16.msra.mxu1 %v2286_v27  ;;  %v1225_v26 = vand.u32 15, %v1159_v18  ;;  %v3372_v27 = vmov 0 }
 0x14b   :  { %1135 = vmatprep.subr.bf16.mxu1 %v2289_v30  ;;  %v3373_v27 = vsel %vm2815_vm8, 4294967295, %v3372_v27  ;;  %v1176_v30 = vadd.s32 176, %v2691_v2 }
 0x14c   :  { %vm2851_vm10 = vcmp.eq.s32.totalorder %v1225_v26, %v2693_v3  ;;  %v1184_v26 = vadd.s32 240, %v2691_v2 }
 0x14d   :  { %730 = vmatpush1.bf16.msra.mxu0 %v2224_v31  ;;  %v3379_v29 = vsel %vm2851_vm10, 4294967295, %v3378_v29  ;;  %v1177_v31 = vadd.s32 184, %v2691_v2 }
 0x14e   :  { %731 = vmatprep.subr.bf16.mxu0 %v2227_v34  ;;  %1136 = vmatpush1.bf16.msra.mxu1 %v2288_v35  ;;  %v1344_v34 = vand.u32 15, %v1176_v30  ;;  %v1185_v30 = vadd.s32 248, %v2691_v2 }
 0x14f   :  { %1137 = vmatprep.subr.bf16.mxu1 %v2291_v38  ;;  %v1351_v35 = vand.u32 15, %v1177_v31  ;;  %v3380_v38 = vmov 0  ;;  %v3408_v31 = vmov 0 }
 0x151   :  { %732 = vmatpush1.bf16.msra.mxu0 %v2226_v41  ;;  %v1179_v41 = vadd.s32 200, %v2691_v2 }
 0x152   :  { %733 = vmatprep.subr.bf16.mxu0 %v2229_v44  ;;  %1138 = vmatpush1.bf16.msra.mxu1 %v2290_v46  ;;  %v1162_v44 = vadd.s32 64, %v2691_v2  ;;  %v1358_v46 = vand.u32 15, %v1178_v40 }
 0x153   :  { %1139 = vmatprep.subr.bf16.mxu1 %v2293_v52  ;;  %v1365_v47 = vand.u32 15, %v1179_v41  ;;  %v1180_v52 = vadd.s32 208, %v2691_v2  ;;  %v3412_v41 = vmov 0 }
 0x154   :  { %v1246_v48 = vand.u32 15, %v1162_v44  ;;  %vm2927_vm8 = vcmp.eq.s32.totalorder %v1358_v46, %v2693_v3  ;;  %v3414_v44 = vmov 0  ;;  %v3418_v46 = vmov 0 }
 0x155   :  { %734 = vmatpush1.bf16.msra.mxu0 %v2228_v55  ;;  %v3389_v50 = vsel %vm2927_vm8, 4294967295, %v3388_v50  ;;  %v3394_v55 = vmov 0 }
 0x156   :  { %735 = vmatprep.subr.bf16.mxu0 %v2231_v57  ;;  %1140 = vmatpush1.bf16.msra.mxu1 %v2292_v56  ;;  %v1164_v56 = vadd.s32 80, %v2691_v2  ;;  %v1165_v57 = vadd.s32 88, %v2691_v2 }
 0x157   :  { %1141 = vmatprep.subr.bf16.mxu1 %v2295_v58  ;;  %v1372_v58 = vand.u32 15, %v1180_v52 }
 0x158   :  { %v1260_v60 = vand.u32 15, %v1164_v56  ;;  %v1267_v61 = vand.u32 15, %v1165_v57 }
 0x159   :  { %736 = vmatpush1.bf16.msra.mxu0 %v2230_v8  ;;  %v3402_v8 = vmov 0 }
 0x15a   :  { %2449 = vmatprep.subr.msk.bf16.mxu0 %vm3309_vm1, %v3344_v9  ;;  %1142 = vmatpush1.bf16.msra.mxu1 %v2294_v10  ;;  %vm2899_vm1 = vcmp.eq.s32.totalorder %v1232_v36, %v2693_v3  ;;  %v1166_v10 = vadd.s32 96, %v2691_v2  ;;  %v1407_v36 = vand.u32 15, %v1185_v30 }
 0x15b   :  { %v3385_v42 = vsel %vm2899_vm1, 4294967295, %v3384_v42 }
 0x15c   :  { %738 = vmatmul.mubr.bf16.vlgmr.msra.gmra.mrb[4].mxu0 %v2718_v12  ;;  %v1274_v18 = vand.u32 15, %v1166_v10 }
 0x15d   :  { %2451 = vmatpush3.bf16.msk.msra.mxu0 %vm3303_vm4, %v3344_v9  ;;  %1144 = vmatmul.mubr.bf16.vlgmr.msra.gmra.mrb[4].mxu1 %v2718_v12  ;;  %vm2846_vm4 = vcmp.eq.s32.totalorder %v1218_v25, %v2693_v3  ;;  %v3376_v12 = vmov 0  ;;  %v3406_v25 = vmov 0 }
 0x15e   :  { %2453 = vmatprep.subr.msk.bf16.mxu0 %vm3305_vm5, %v3344_v9  ;;  %v3377_v12 = vsel %vm2846_vm4, 4294967295, %v3376_v12  ;;  %1836 = vmatprep.mubr.f32.mxu1 %v3343_v15  ;;  %vm3308_vm5 = vmpackc.low %vm2851_vm10, %vm2846_vm4  ;;  %vm2904_vm4 = vcmp.eq.s32.totalorder %v1239_v37, %v2693_v3  ;;  %v1288_v37 = vand.u32 15, %v1168_v33 }
 0x15f   :  { %v3387_v43 = vsel %vm2904_vm4, 4294967295, %v3386_v43  ;;  %vm3314_vm10 = vmpackc.low %vm2904_vm4, %vm2899_vm1  ;;  %vm2943_vm1 = vcmp.eq.s32.totalorder %v1246_v48, %v2693_v3  ;;  %vm2948_vm4 = vcmp.eq.s32.totalorder %v1253_v49, %v2693_v3  ;;  %v1639_v48 = vand.u32 15, %v2693_v3 }
 0x160   :  { %v3393_v54 = vsel %vm2943_vm1, 4294967295, %v3392_v54  ;;  %v3395_v55 = vsel %vm2948_vm4, 4294967295, %v3394_v55 }
 0x161   :  { %2455 = vmatpush3.bf16.msk.msra.mxu0 %vm3307_vm11, %v3344_v9  ;;  %vm2888_vm11 = vcmp.eq.s32.totalorder %v1351_v35, %v2693_v3  ;;  %v1400_v35 = vand.u32 15, %v1184_v26 }
 0x162   :  { %2457 = vmatprep.subr.msk.bf16.mxu0 %vm3306_vm12, %v3344_v9  ;;  %vm2883_vm12 = vcmp.eq.s32.totalorder %v1344_v34, %v2693_v3  ;;  %v3383_v39 = vsel %vm2888_vm11, 4294967295, %v3382_v39  ;;  %v1169_v34 = vadd.s32 120, %v2691_v2 }
 0x163   :  { %v3381_v38 = vsel %vm2883_vm12, 4294967295, %v3380_v38 }
 0x164   :  { %v1295_v40 = vand.u32 15, %v1169_v34 }
 0x165   :  { %2459 = vmatpush3.bf16.msk.msra.mxu0 %vm3308_vm5, %v3344_v9  ;;  %vm3313_vm5 = vmpackc.low %vm2888_vm11, %vm2883_vm12  ;;  %vm2971_vm11 = vcmp.eq.s32.totalorder %v1372_v58, %v2693_v3 }
 0x166   :  { %2461 = vmatprep.subr.msk.bf16.mxu0 %vm3313_vm5, %v3344_v9  ;;  %vm2932_vm5 = vcmp.eq.s32.totalorder %v1365_v47, %v2693_v3  ;;  %vm3320_vm12 = vmpackc.low %vm2948_vm4, %vm2943_vm1  ;;  %v3397_v62 = vsel %vm2971_vm11, 4294967295, %v3396_v62  ;;  %vm2987_vm1 = vcmp.eq.s32.totalorder %v1260_v60, %v2693_v3  ;;  %vm2992_vm4 = vcmp.eq.s32.totalorder %v1267_v61, %v2693_v3 }
 0x167   :  { %v3391_v51 = vsel %vm2932_vm5, 4294967295, %v3390_v51  ;;  %v3401_v7 = vsel %vm2987_vm1, 4294967295, %v3400_v7  ;;  %v3403_v8 = vsel %vm2992_vm4, 4294967295, %v3402_v8  ;;  %v1634_v47 = vadd.s32 128, %v2693_v3 }
 0x169   :  { %2463 = vmatpush3.bf16.msk.msra.mxu0 %vm3314_vm10, %v3344_v9  ;;  %vm3319_vm10 = vmpackc.low %vm2932_vm5, %vm2927_vm8  ;;  %vm3015_vm5 = vcmp.eq.s32.totalorder %v1386_v16, %v2693_v3  ;;  %v1646_v49 = vand.u32 15, %v1634_v47 }
 0x16a   :  { %2465 = vmatprep.subr.msk.bf16.mxu0 %vm3319_vm10, %v3344_v9  ;;  %vm2976_vm10 = vcmp.eq.s32.totalorder %v1379_v59, %v2693_v3  ;;  %vm3326_vm8 = vmpackc.low %vm2992_vm4, %vm2987_vm1  ;;  %v3405_v22 = vsel %vm3015_vm5, 4294967295, %v3404_v22  ;;  %vm3031_vm1 = vcmp.eq.s32.totalorder %v1274_v18, %v2693_v3  ;;  %vm3036_vm4 = vcmp.eq.s32.totalorder %v1281_v21, %v2693_v3 }
 0x16b   :  { %v3399_v63 = vsel %vm2976_vm10, 4294967295, %v3398_v63  ;;  %v3409_v31 = vsel %vm3031_vm1, 4294967295, %v3408_v31  ;;  %v3411_v32 = vsel %vm3036_vm4, 4294967295, %v3410_v32 }
 0x16d   :  { %2467 = vmatpush3.bf16.msk.msra.mxu0 %vm3320_vm12, %v3344_v9  ;;  %vm3325_vm12 = vmpackc.low %vm2976_vm10, %vm2971_vm11  ;;  %vm3059_vm10 = vcmp.eq.s32.totalorder %v1400_v35, %v2693_v3 }
 0x16e   :  { %2469 = vmatprep.subr.msk.bf16.mxu0 %vm3325_vm12, %v3344_v9  ;;  %vm3020_vm12 = vcmp.eq.s32.totalorder %v1393_v17, %v2693_v3  ;;  %vm3334_vm11 = vmpackc.low %vm3036_vm4, %vm3031_vm1  ;;  %v3413_v41 = vsel %vm3059_vm10, 4294967295, %v3412_v41  ;;  %vm3073_vm1 = vcmp.eq.s32.totalorder %v1288_v37, %v2693_v3 }
 0x16f   :  { %v3407_v25 = vsel %vm3020_vm12, 4294967295, %v3406_v25  ;;  %v3417_v45 = vsel %vm3073_vm1, 4294967295, %v3416_v45 }
 0x171   :  { %2471 = vmatpush3.bf16.msk.msra.mxu0 %vm3326_vm8, %v3344_v9  ;;  %vm3331_vm8 = vmpackc.low %vm3020_vm12, %vm3015_vm5 }
 0x172   :  { %2473 = vmatprep.subr.msk.bf16.mxu0 %vm3331_vm8, %v3344_v9  ;;  %vm3064_vm8 = vcmp.eq.s32.totalorder %v1407_v36, %v2693_v3  ;;  %vm3424_vm12 = vmpackc.low %vm2757_vm14, %vm2752_vm13  ;;  %vm3430_vm13 = vcmask 130048  }
 0x173   :  { %v3415_v44 = vsel %vm3064_vm8, 4294967295, %v3414_v44  ;;  %vm3337_vm5 = vmpackc.low %vm3064_vm8, %vm3059_vm10  ;;  %vm3101_vm10 = vcmp.eq.s32.totalorder %v1639_v48, %v2691_v2  ;;  %vm1660_vm8 = vcmp.eq.s32.totalorder %v1646_v49, %v2691_v2 }
 0x174   :  { %vm3431_vm14 = vmpackc.low %vm2769_vm0, %vm2764_vm15  ;;  %vm3434_vm15 = vnez %v3373_v27 }
 0x175   :  { %2475 = vmatpush3.bf16.msk.msra.mxu0 %vm3334_vm11, %v3344_v9  ;;  %vm3078_vm11 = vcmp.eq.s32.totalorder %v1295_v40, %v2693_v3  ;;  %vm3435_vm0 = vmpackc.low %vm2820_vm9, %vm3434_vm15  ;;  %vm3443_vm9 = vnez %v3385_v42 }
 0x176   :  { %v3419_v46 = vsel %vm3078_vm11, 4294967295, %v3418_v46  ;;  %2477 = vmatprep.subr.msk.bf16.mxu0 %vm3337_vm5, %v3344_v9  ;;  %vm3340_vm4 = vmpackc.low %vm3078_vm11, %vm3073_vm1  ;;  %vm3106_vm5 = vcmp.eq.s32.totalorder %v1639_v48, %v2696_v4  ;;  %vm1662_vm1 = vcmp.eq.s32.totalorder %v1646_v49, %v2696_v4 }
 0x177   :  { %vm2480_vm11 = vmpackc.low %vm1662_vm1, %vm1660_vm8  ;;  %vm3442_vm8 = vnez %v3387_v43 }
 0x178   :  { %2481 = vmatprep.subr.msk.bf16.mxu1 %vm2480_vm11, %v3344_v9  ;;  %vm3433_vm1 = vmpackc.low %vm2809_vm7, %vm2804_vm6  ;;  %vm3440_vm6 = vnez %v3381_v38 }
 0x179   :  { %2479 = vmatpush3.bf16.msk.msra.mxu0 %vm3340_vm4, %v3344_v9  ;;  %vm2482_vm4 = vmpackc.low %vm3106_vm5, %vm3101_vm10  ;;  %vm3439_vm5 = vnez %v3383_v39 }
 0x17a   :  { %2517 = vmatprep.subr.msk.bf16.mxu0 %vm2480_vm11, %v3344_v9  ;;  %2483 = vmatpush1.bf16.msk.msra.mxu1 %vm2482_vm4, %v3344_v9  ;;  %vm3432_vm10 = vmpackc.low %vm2785_vm3, %vm2780_vm2  ;;  %vm3437_vm2 = vnez %v3377_v12 }
 0x17b   :  { %2485 = vmatprep.subr.msk.bf16.mxu1 %vm3424_vm12, %v3344_v9  ;;  %vm3441_vm7 = vmpackc.low %vm3439_vm5, %vm3440_vm6  ;;  %vm3445_vm12 = vnez %v3391_v51  ;;  %vm3455_vm5 = vnez %v3401_v7 }
 0x17c   :  { %vm3444_vm11 = vmpackc.low %vm3442_vm8, %vm3443_vm9  ;;  %vm3458_vm8 = vnez %v3405_v22 }
 0x22f   :  { %v3130_v3 = vpop.f32.mrb[4].mxu0 }
 0x230   :  { %v3132_v4 = vpop.f32.mrb[5].mxu0  ;;  %v3134_v56 = vpop.f32.mrb[4].mxu1 }
 0x231   :  { %3425 = vst [vmem:[#allocation9_spill] sm:$0xff] %v3132_v4  ;;  %v3136_v57 = vpop.f32.mrb[6].mxu0  ;;  %v3138_v58 = vpop.f32.mrb[5].mxu1 }
 0x232   :  { %v1667_v59 = vadd.f32 %v3136_v57, %v3130_v3  ;;  %v3142_v60 = vpop.f32.mrb[7].mxu0  ;;  %v3144_v5 = vpop.f32.mrb[6].mxu1 }
 0x233   :  { %3426 = vst [vmem:[#allocation10_spill] sm:$0xff] %v3142_v60  ;;  %v1674_v1 = vadd.f32 %v3142_v60, %v3132_v4  ;;  %v1681_v0 = vadd.f32 %v3144_v5, %v3134_v56  ;;  %v3150_v6 = vpop.f32.mrb[7].mxu1 }
 0x234   :  { %v1668_v61 = vrot.slane %v1667_v59, 4  ;;  %3427 = vst [vmem:[#allocation11_spill] sm:$0xff] %v3150_v6  ;;  %v1688_v14 = vadd.f32 %v3150_v6, %v3138_v58 }
 0x235   :  { %v1675_v10 = vrot.slane %v1674_v1, 4  ;;  %v1682_v17 = vrot.slane %v1681_v0, 4 }
 0x236   :  { %v1669_v16 = vadd.f32 %v1668_v61, %v1667_v59  ;;  %v1689_v21 = vrot.slane %v1688_v14, 4 }
 0x237   :  { %v1676_v18 = vadd.f32 %v1675_v10, %v1674_v1  ;;  %v1683_v30 = vadd.f32 %v1682_v17, %v1681_v0  ;;  %v3428_v0 = vmov 1.0|1.0  }
 0x238   :  { %v1670_v26 = vrot.slane %v1669_v16, 2  ;;  %v1690_v34 = vadd.f32 %v1689_v21, %v1688_v14  ;;  %v3429_v14 = vmov 0.0   ;;  %v3469_v12 = vld [vmem:[#allocation9_spill] sm:$0xff] }
 0x239   :  { %v1677_v33 = vrot.slane %v1676_v18, 2  ;;  %v1684_v36 = vrot.slane %v1683_v30, 2 }
 0x23a   :  { %v1671_v35 = vadd.f32 %v1670_v26, %v1669_v16  ;;  %v1691_v40 = vrot.slane %v1690_v34, 2  ;;  %v3470_v38 = vld [vmem:[#allocation10_spill] sm:$0xff] }
 0x23b   :  { %v1678_v37 = vadd.f32 %v1677_v33, %v1676_v18  ;;  %v1685_v48 = vadd.f32 %v1684_v36, %v1683_v30  ;;  %v3471_v43 = vld [vmem:[#allocation11_spill] sm:$0xff] }
 0x23c   :  { %v1672_v47 = vrot.slane %v1671_v35, 1  ;;  %v1692_v49 = vadd.f32 %v1691_v40, %v1690_v34 }
 0x23d   :  { %v1679_v15 = vrot.slane %v1678_v37, 1  ;;  %v1686_v9 = vrot.slane %v1685_v48, 1 }
 0x23e   :  { %v1673_v60 = vadd.f32 %v1672_v47, %v1671_v35  ;;  %v1693_v6 = vrot.slane %v1692_v49, 1 }
 0x23f   :  { %v1680_v4 = vadd.f32 %v1679_v15, %v1678_v37  ;;  %v1687_v59 = vadd.f32 %v1686_v9, %v1685_v48 }
 0x240   :  { %v1694_v61 = vadd.f32 %v1693_v6, %v1692_v49 }
 0x241   :  { %v1695_v1 = vadd.f32 %v1687_v59, %v1673_v60 }
 0x242   :  { %v1696_v10 = vadd.f32 %v1694_v61, %v1680_v4 }
 0x244   :  { %1761 = vmatprep.mubr.f32.mxu0 %v1696_v10 }
 0x245   :  { %1762 = vmatmul.mubr.f32.vlgmr.msra.gmra.mrb[8].mxu0 %v1695_v1 }
 0x246   :  { %2519 = vmatpush1.bf16.msk.msra.mxu0 %vm2482_vm4, %v3428_v0  ;;  %2035 = vmatprep.mubr.f32.mxu0 %v3429_v14  ;;  %vm3436_vm4 = vnez %v3379_v29 }
 0x247   :  { %vm3438_vm3 = vmpackc.low %vm3436_vm4, %vm3437_vm2  ;;  %vm3452_vm4 = vnez %v3397_v62 }
 0x318   :  { %v2410_v16 = vpop.f32.mrb[8].mxu0 }
 0x319   :  { %v2411_v17 = vpop.f32.mrb[9].mxu0 }
 0x31a   :  { %v2412_v18 = vadd.f32 %v2411_v17, %v2410_v16 }
 0x31c   :  { %v1768_v15 = vmul.f32 0.001953125, %v2412_v18 }
 0x31e   :  { %2332 = vmatmul.mubr.msk.f32.vlgmr.msra.gmra.mrb[8].mxu1 %vm3430_vm13, %v1768_v15  ;;  %vm3446_vm13 = vnez %v3389_v50 }
 0x31f   :  { %2487 = vmatpush3.bf16.msk.msra.mxu1 %vm3431_vm14, %v3428_v0  ;;  %vm3447_vm14 = vmpackc.low %vm3445_vm12, %vm3446_vm13  ;;  %vm3461_vm12 = vnez %v3409_v31 }
 0x320   :  { %2489 = vmatprep.subr.msk.bf16.mxu1 %vm3432_vm10, %v3428_v0  ;;  %vm3448_vm10 = vnez %v3395_v55 }
 0x323   :  { %2491 = vmatpush3.bf16.msk.msra.mxu1 %vm3433_vm1, %v3428_v0  ;;  %vm3449_vm1 = vnez %v3393_v54 }
 0x324   :  { %2493 = vmatprep.subr.msk.bf16.mxu1 %vm3435_vm0, %v3428_v0  ;;  %vm3450_vm15 = vmpackc.low %vm3448_vm10, %vm3449_vm1  ;;  %vm3451_vm0 = vnez %v3399_v63  ;;  %vm3464_vm10 = vnez %v3413_v41 }
 0x325   :  { %vm3453_vm2 = vmpackc.low %vm3451_vm0, %vm3452_vm4  ;;  %vm3467_vm0 = vnez %v3417_v45 }
 0x327   :  { %2495 = vmatpush3.bf16.msk.msra.mxu1 %vm3438_vm3, %v3428_v0  ;;  %vm3454_vm3 = vnez %v3403_v8 }
 0x328   :  { %2497 = vmatprep.subr.msk.bf16.mxu1 %vm3441_vm7, %v3428_v0  ;;  %vm3456_vm6 = vmpackc.low %vm3454_vm3, %vm3455_vm5  ;;  %vm3457_vm7 = vnez %v3407_v25 }
 0x329   :  { %vm3459_vm9 = vmpackc.low %vm3457_vm7, %vm3458_vm8 }
 0x32b   :  { %2499 = vmatpush3.bf16.msk.msra.mxu1 %vm3444_vm11, %v3428_v0  ;;  %vm3460_vm11 = vnez %v3411_v32 }
 0x32c   :  { %2501 = vmatprep.subr.msk.bf16.mxu1 %vm3447_vm14, %v3428_v0  ;;  %vm3462_vm13 = vmpackc.low %vm3460_vm11, %vm3461_vm12  ;;  %vm3463_vm14 = vnez %v3415_v44 }
 0x32d   :  { %vm3465_vm1 = vmpackc.low %vm3463_vm14, %vm3464_vm10 }
 0x32f   :  { %2503 = vmatpush3.bf16.msk.msra.mxu1 %vm3450_vm15, %v3428_v0  ;;  %vm3466_vm15 = vnez %v3419_v46 }
 0x330   :  { %2505 = vmatprep.subr.msk.bf16.mxu1 %vm3453_vm2, %v3428_v0  ;;  %vm3468_vm4 = vmpackc.low %vm3466_vm15, %vm3467_vm0  ;;  %vm3472_vm2 = vcmask 130048  }
 0x333   :  { %2507 = vmatpush3.bf16.msk.msra.mxu1 %vm3456_vm6, %v3428_v0 }
 0x334   :  { %2509 = vmatprep.subr.msk.bf16.mxu1 %vm3459_vm9, %v3428_v0 }
 0x337   :  { %2511 = vmatpush3.bf16.msk.msra.mxu1 %vm3462_vm13, %v3428_v0 }
 0x338   :  { %2513 = vmatprep.subr.msk.bf16.mxu1 %vm3465_vm1, %v3428_v0 }
 0x33b   :  { %2515 = vmatpush3.bf16.msk.msra.mxu1 %vm3468_vm4, %v3428_v0 }
 0x3f1   :  { %v3255_v13 = vpop.f32.mrb[8].mxu1 }
 0x3f2   :  { %v1846_v19 = vrot.slane %v3255_v13, %v3253_v11  ;;  %v3259_v20 = vpop.f32.mrb[9].mxu1 }
 0x3f3   :  { %v1850_v9 = vrot.slane %v3259_v20, %v3253_v11 }
 0x3f4   :  { %v1851_v23 = vsub.f32 %v3130_v3, %v1846_v19  ;;  %v1853_v24 = vsub.f32 %v3136_v57, %v1846_v19  ;;  %v1873_v27 = vsub.f32 %v3134_v56, %v1846_v19  ;;  %v1875_v28 = vsub.f32 %v3144_v5, %v1846_v19 }
 0x3f5   :  { %v1852_v29 = vsub.f32 %v3469_v12, %v1850_v9  ;;  %v1854_v39 = vsub.f32 %v3470_v38, %v1850_v9  ;;  %v1874_v42 = vsub.f32 %v3138_v58, %v1850_v9  ;;  %v1876_v50 = vsub.f32 %v3471_v43, %v1850_v9 }
 0x3f6   :  { %v1855_v51 = vmul.f32 %v1851_v23, %v1851_v23  ;;  %v1857_v54 = vmul.f32 %v1853_v24, %v1853_v24  ;;  %v1877_v55 = vmul.f32 %v1873_v27, %v1873_v27  ;;  %v1879_v62 = vmul.f32 %v1875_v28, %v1875_v28 }
 0x3f7   :  { %v1856_v63 = vmul.f32 %v1852_v29, %v1852_v29  ;;  %v1858_v7 = vmul.f32 %v1854_v39, %v1854_v39  ;;  %v1878_v8 = vmul.f32 %v1874_v42, %v1874_v42  ;;  %v1880_v22 = vmul.f32 %v1876_v50, %v1876_v50 }
 0x3f8   :  { %v1859_v25 = vadd.f32 %v1857_v54, %v1855_v51  ;;  %v1881_v31 = vadd.f32 %v1879_v62, %v1877_v55  ;;  %v2622_v27 = vmov 1966171168   ;;  %v1154_v55 = vld [vmem:[#allocation4] sm:$0x3] }
 0x3f9   :  { %v1866_v32 = vadd.f32 %v1858_v7, %v1856_v63  ;;  %v1888_v41 = vadd.f32 %v1880_v22, %v1878_v8  ;;  %v2048_v28 = vunpack.c.l.s4 %v2622_v27  ;;  %v2070_v63 = vsub.s32 1, %v2691_v2 }
 0x3fa   :  { %v1860_v44 = vrot.slane %v1859_v25, 4  ;;  %v1882_v45 = vrot.slane %v1881_v31, 4 }
 0x3fb   :  { %v1867_v46 = vrot.slane %v1866_v32, 4  ;;  %v1889_v52 = vrot.slane %v1888_v41, 4  ;;  %v2049_v29 = vunpack.c.0.s8 %v2048_v28 }
 0x3fc   :  { %v1861_v53 = vadd.f32 %v1860_v44, %v1859_v25  ;;  %v1883_v4 = vadd.f32 %v1882_v45, %v1881_v31 }
 0x3fd   :  { %v1868_v60 = vadd.f32 %v1867_v46, %v1866_v32  ;;  %v1890_v6 = vadd.f32 %v1889_v52, %v1888_v41  ;;  %v2052_v42 = vsub.s32 %v2049_v29, %v2691_v2 }
 0x3fe   :  { %v1862_v21 = vrot.slane %v1861_v53, 2  ;;  %v1884_v26 = vrot.slane %v1883_v4, 2 }
 0x3ff   :  { %v1869_v30 = vrot.slane %v1868_v60, 2  ;;  %v1891_v33 = vrot.slane %v1890_v6, 2 }
 0x400   :  { %v1863_v34 = vadd.f32 %v1862_v21, %v1861_v53  ;;  %v1885_v35 = vadd.f32 %v1884_v26, %v1883_v4 }
 0x401   :  { %v1870_v36 = vadd.f32 %v1869_v30, %v1868_v60  ;;  %v1892_v37 = vadd.f32 %v1891_v33, %v1890_v6  ;;  %v1155_v60 = vld [vmem:[#allocation6] sm:$0x3] }
 0x402   :  { %v1864_v40 = vrot.slane %v1863_v34, 1  ;;  %v1886_v47 = vrot.slane %v1885_v35, 1 }
 0x403   :  { %v1871_v48 = vrot.slane %v1870_v36, 1  ;;  %v1893_v49 = vrot.slane %v1892_v37, 1 }
 0x404   :  { %v1865_v59 = vadd.f32 %v1864_v40, %v1863_v34  ;;  %v1887_v61 = vadd.f32 %v1886_v47, %v1885_v35 }
 0x405   :  { %v1872_v1 = vadd.f32 %v1871_v48, %v1870_v36  ;;  %v1894_v10 = vadd.f32 %v1893_v49, %v1892_v37 }
 0x406   :  { %v1895_v0 = vadd.f32 %v1887_v61, %v1865_v59 }
 0x407   :  { %v1896_v14 = vadd.f32 %v1894_v10, %v1872_v1 }
 0x409   :  { %1961 = vmatprep.mubr.f32.mxu1 %v1896_v14 }
 0x40a   :  { %1962 = vmatmul.mubr.f32.vlgmr.msra.gmra.mrb[10].mxu1 %v1895_v0 }
 0x4dd   :  { %v2445_v16 = vpop.f32.mrb[10].mxu1 }
 0x4de   :  { %v2446_v17 = vpop.f32.mrb[11].mxu1 }
 0x4df   :  { %v2447_v18 = vadd.f32 %v2446_v17, %v2445_v16 }
 0x4e1   :  { %v1967_v15 = vmul.f32 0.001953125, %v2447_v18 }
 0x4e3   :  { %2369 = vmatmul.mubr.msk.f32.vlgmr.msra.gmra.mrb[10].mxu0 %vm3472_vm2, %v1967_v15 }
 0x5b6   :  { %v2037_v19 = vpop.f32.mrb[10].mxu0 }
 0x5b7   :  { %v2038_v9 = vadd.f32 1e-05, %v2037_v19  ;;  %v2039_v23 = vpop.f32.mrb[11].mxu0 }
 0x5b8   :  { %v2040_v24 = vadd.f32 1e-05, %v2039_v23 }
 0x5b9   :  { %2540 = vrsqrt.f32 %v2038_v9 }
 0x5ba   :  { %2542 = vrsqrt.f32 %v2040_v24 }
 0x5c3   :  { %v2541_v39 = vpop.eup %2540 }
 0x5c4   :  { %v2543_v50 = vpop.eup %2542 }
 0x5c5   :  { %v2046_v51 = vcombine.low %v2541_v39, %v2543_v50 }
 0x5c7   :  { %v2053_v54 = vrot.slane %v2046_v51, %v2052_v42 }
 0x5c9   :  { %v2060_v62 = vrot.slane %v2053_v54, %v2052_v42 }
 0x5cb   :  { %v2062_v7 = vmul.f32 %v2060_v62, %v1154_v55 }
 0x5cd   :  { %v2067_v8 = vrot.slane %v2062_v7, %v3253_v11  ;;  %v2071_v22 = vrot.slane %v2062_v7, %v2070_v63 }
 0x5cf   :  { %v2074_v25 = vmul.f32 %v2067_v8, %v3255_v13  ;;  %v2075_v31 = vmul.f32 %v2071_v22, %v3259_v20  ;;  %v2095_v32 = vmul.f32 %v2067_v8, %v3130_v3  ;;  %v2096_v41 = vmul.f32 %v2071_v22, %v3469_v12 }
 0x5d0   :  { %v2097_v44 = vmul.f32 %v2067_v8, %v3136_v57  ;;  %v2098_v45 = vmul.f32 %v2071_v22, %v3470_v38  ;;  %v2132_v46 = vmul.f32 %v2067_v8, %v3134_v56  ;;  %v2133_v2 = vmul.f32 %v2071_v22, %v3138_v58 }
 0x5d1   :  { %v2078_v52 = vcombine.low %v2074_v25, %v2075_v31  ;;  %v2134_v53 = vmul.f32 %v2067_v8, %v3144_v5  ;;  %v2135_v4 = vmul.f32 %v2071_v22, %v3471_v43 }
 0x5d3   :  { %v2085_v13 = vrot.slane %v2078_v52, %v2052_v42 }
 0x5d5   :  { %v2092_v20 = vrot.slane %v2085_v13, %v2052_v42 }
 0x5d7   :  { %v2094_v6 = vsub.f32 %v1155_v60, %v2092_v20 }
 0x5d9   :  { %v2103_v3 = vrot.slane %v2094_v6, %v3253_v11  ;;  %v2107_v12 = vrot.slane %v2094_v6, %v2070_v63 }
 0x5db   :  { %v2110_v21 = vadd.f32 %v2103_v3, %v2095_v32  ;;  %v2111_v57 = vadd.f32 %v2107_v12, %v2096_v41  ;;  %v2112_v26 = vadd.f32 %v2103_v3, %v2097_v44  ;;  %v2113_v38 = vadd.f32 %v2107_v12, %v2098_v45 }
 0x5dc   :  { %v2136_v30 = vadd.f32 %v2132_v46, %v2103_v3  ;;  %v2137_v56 = vadd.f32 %v2133_v2, %v2107_v12  ;;  %v2138_v33 = vadd.f32 %v2134_v53, %v2103_v3  ;;  %v2139_v58 = vadd.f32 %v2135_v4, %v2107_v12 }
 0x5dd   :  { %v2114_v34 = vmax.f32 %v2110_v21, 0.0  ;;  %v2115_v35 = vmax.f32 %v2111_v57, 0.0  ;;  %v2116_v5 = vmax.f32 %v2112_v26, 0.0  ;;  %v2117_v36 = vmax.f32 %v2113_v38, 0.0 }
 0x5de   :  { %v2140_v43 = vmax.f32 %v2136_v30, 0.0  ;;  %v2141_v37 = vmax.f32 %v2137_v56, 0.0  ;;  %v2142_v40 = vmax.f32 %v2138_v33, 0.0  ;;  %v2143_v47 = vmax.f32 %v2139_v58, 0.0 }
 0x5df   :  { %v2374_v48 = vpack.c.bf16 %v2115_v35, %v2114_v34  ;;  %v2375_v49 = vpack.c.bf16 %v2117_v36, %v2116_v5 }
 0x5e0   :  { %v2376_v11 = vpack.c.bf16 %v2141_v37, %v2140_v43  ;;  %v2377_v59 = vpack.c.bf16 %v2143_v47, %v2142_v40 }
 0x5e1   :  { %2130 = vst [vmem:[%s3302_s4] sm:$0xff] %v2374_v48  ;;  %2131 = vst [vmem:[%s3302_s4 + $0x10] sm:$0xff] %v2375_v49 }
 0x5e2   :  { %2156 = vst [vmem:[%s3302_s4 + $0x8] sm:$0xff] %v2376_v11  ;;  %2157 = vst [vmem:[%s3302_s4 + $0x18] sm:$0xff] %v2377_v59 }
 0x5e3   :  { %2162 = vsyncpa [#allocation3], 1 }
 0x5e4   :  { %2163 = vsyncpa [#allocation5], 1 }

// kernel: generator_forward.9
= control target key start
LH: loop header
LB: loop body
LE: loop exit
PB: predicated region body
PF: predicated region fallthrough
CT: control target
= control target key end

     0   :  { %7 = vsyncpa [#allocation3], 0  ;;  %s3215_s9 = smov [#allocation2]   ;;  %s3682_s0 = inlined_call_operand.vmem [shape: bf16[64,256], index: 0, kind: input, shape index: {}]   ;;  %s3683_s1 = inlined_call_operand.hbm [shape: bf16[256,2048], index: 1, kind: input, shape index: {}]   ;;  %s3684_s2 = inlined_call_operand.vmem [shape: f32[64,1024], index: 2, kind: output, shape index: {}]  }
   0x1   :  { %s15_s10 = sshll.u32 %s3215_s9, 4  ;;  %s3191_s13 = scalar_lea.hbm %s3683_s1, 32768  ;;  %s16_s10 = int_to_ptr.vmem [resolvable:$true] %s15_s10 }
   0x2   :  { %p3192_p0 = scmp.ne.s32.totalorder %s3683_s1, %s3191_s13  ;;  %p3195_p1 = scmp.lt.u32.totalorder %s3191_s13, %s3683_s1 }
   0x4   :  { %p3197_p2 = pnand %p3195_p1, %p3192_p0 }
   0x6   :  { %3200 = shalt.err (!%p3197_p2)
}
   0x7   :  { %s3201_s18 = scalar_lea.vmem %s16_s10, 32768  ;;  %p3206_p4 = scmp.lt.s32.totalorder %s16_s10, %s16_s10 }
   0x8   :  { %p3202_p3 = scmp.ne.s32.totalorder %s16_s10, %s3201_s18  ;;  %p3207_p5 = scmp.lt.s32.totalorder %s3201_s18, %s3201_s18 }
   0xa   :  { %p3208_p6 = por %p3207_p5, %p3206_p4 }
   0xc   :  { %p3209_p7 = pnand %p3208_p6, %p3202_p3 }
   0xe   :  { %3212 = shalt.err (!%p3209_p7)
}
   0xf   :  { %s3216_s19 = smov 1024   ;;  %s3217_s20 = smov 64  }
  0x10   :  { %21 = dma.hbm_to_vmem [thread:$0]  %s3683_s1, 32768, %s16_s10, [#allocation3], %s3216_s19, %s3216_s19, %s3217_s20  }
  0x11   :  { %3213 = dma.done.wait [#allocation3], 32768  }
  0x12   :  { %3214 = vsyncadd [#allocation3], 4294934528  ;;  %v290_v0 = vlaneseq  ;;  %v3218_v1 = vmov 0   ;;  %v3256_v4 = vld [vmem:[%s3682_s0 + $0x4] ss:$8 sps:$4 sm:$0xff]   ;;  %v40_v17 = vld [vmem:[#allocation2 + $0x30] sm:$0xff] }
  0x13   :  { %563 = vmatprep.mubr.bf16.mxu0 %v3218_v1  ;;  %656 = vmatprep.mubr.bf16.mxu1 %v3218_v1  ;;  %v3045_v5 = vld [vmem:[%s3682_s0] ss:$8 sps:$4 sm:$0xff]   ;;  %v3046_v8 = vld [vmem:[%s3682_s0 + $0x14] ss:$8 sps:$4 sm:$0xff]   ;;  %v3048_v9 = vld [vmem:[%s3682_s0 + $0x10] ss:$8 sps:$4 sm:$0xff]  }
  0x14   :  { %v3249_v2 = vshrl.u32 %v290_v0, 7  ;;  %v3251_v3 = vand.u32 127, %v290_v0  ;;  %531 = vmatprep.subr.bf16.mxu0 %v3256_v4  ;;  %624 = vmatprep.subr.bf16.mxu1 %v3256_v4  ;;  %v3049_v11 = vld [vmem:[%s3682_s0 + $0x24] ss:$8 sps:$4 sm:$0xff]   ;;  %v3051_v14 = vld [vmem:[%s3682_s0 + $0x20] ss:$8 sps:$4 sm:$0xff]  }
  0x15   :  { %532 = vmatpush1.bf16.msra.mxu0 %v3045_v5  ;;  %625 = vmatpush1.bf16.msra.mxu1 %v3045_v5  ;;  %v3052_v16 = vld [vmem:[%s3682_s0 + $0x34] ss:$8 sps:$4 sm:$0xff]   ;;  %v3054_v24 = vld [vmem:[%s3682_s0 + $0x30] ss:$8 sps:$4 sm:$0xff]   ;;  %v3219_v25 = vmov 0.0   ;;  %vm518_vm8 = vcmask 523264  }
  0x16   :  { %v305_v6 = vand.u32 31, %v3249_v2  ;;  %v3263_v7 = vadd.s32 1, %v3251_v3  ;;  %v292_v10 = vadd.s32 8, %v3249_v2  ;;  %533 = vmatprep.subr.bf16.mxu0 %v3046_v8  ;;  %626 = vmatprep.subr.bf16.mxu1 %v3046_v8  ;;  %v434_v12 = vadd.s32 1, %v3249_v2  ;;  %v48_v18 = vld [vmem:[#allocation2 + $0x70] sm:$0xff]  ;;  %v41_v19 = vld [vmem:[#allocation2 + $0x38] sm:$0xff] }
  0x17   :  { %v294_v15 = vadd.s32 24, %v3249_v2  ;;  %v49_v20 = vld [vmem:[#allocation2 + $0x78] sm:$0xff]  ;;  %v293_v23 = vadd.s32 16, %v3249_v2  ;;  %v2719_v30 = vcombine.high %v40_v17, %v48_v18  ;;  %v295_v33 = vadd.s32 32, %v3249_v2  ;;  %v56_v34 = vld [vmem:[#allocation2 + $0xb0] sm:$0xff] }
  0x18   :  { %vm398_vm0 = vcmp.eq.s32.totalorder %v3249_v2, %v3263_v7  ;;  %vm406_vm1 = vcmp.ne.s32.totalorder %v305_v6, 0  ;;  %v435_v13 = vadd.s32 1, %v292_v10  ;;  %vm399_vm2 = vcmp.eq.s32.totalorder %v292_v10, %v3263_v7  ;;  %v64_v35 = vld [vmem:[#allocation2 + $0xf0] sm:$0xff]  ;;  %v57_v39 = vld [vmem:[#allocation2 + $0xb8] sm:$0xff] }
  0x19   :  { %534 = vmatpush1.bf16.msra.mxu0 %v3048_v9  ;;  %627 = vmatpush1.bf16.msra.mxu1 %v3048_v9  ;;  %vm414_vm3 = vmand %vm398_vm0, %vm406_vm1  ;;  %vm442_vm4 = vcmp.eq.s32.totalorder %v3251_v3, %v434_v12  ;;  %v326_v21 = vand.u32 31, %v294_v15  ;;  %v437_v22 = vadd.s32 1, %v294_v15  ;;  %v423_v27 = vsel %vm399_vm2, 1.0, %v3219_v25  ;;  %v65_v40 = vld [vmem:[#allocation2 + $0xf8] sm:$0xff]  ;;  %v72_v47 = vld [vmem:[#allocation2 + $0x130] sm:$0xff] }
  0x1a   :  { %535 = vmatprep.subr.bf16.mxu0 %v3049_v11  ;;  %628 = vmatprep.subr.bf16.mxu1 %v3049_v11  ;;  %vm443_vm5 = vcmp.eq.s32.totalorder %v3251_v3, %v435_v13  ;;  %v422_v26 = vsel %vm414_vm3, 1.0, %v3219_v25  ;;  %v466_v28 = vsel %vm442_vm4, 1.0, %v3219_v25  ;;  %v2721_v31 = vcombine.high %v41_v19, %v49_v20  ;;  %v80_v48 = vld [vmem:[#allocation2 + $0x170] sm:$0xff]  ;;  %v73_v51 = vld [vmem:[#allocation2 + $0x138] sm:$0xff] }
  0x1b   :  { %v467_v29 = vsel %vm443_vm5, 1.0, %v3219_v25  ;;  %v436_v32 = vadd.s32 1, %v293_v23  ;;  %vm445_vm6 = vcmp.eq.s32.totalorder %v3251_v3, %v437_v22  ;;  %vm3302_vm7 = vcmp.ne.s32.totalorder %v326_v21, 31  ;;  %v81_v52 = vld [vmem:[#allocation2 + $0x178] sm:$0xff]  ;;  %v88_v63 = vld [vmem:[#allocation2 + $0x1b0] sm:$0xff] }
  0x1c   :  { %v430_v37 = vpack.c.bf16 %v423_v27, %v422_v26  ;;  %v474_v38 = vpack.c.bf16 %v467_v29, %v466_v28  ;;  %vm400_vm9 = vcmp.eq.s32.totalorder %v293_v23, %v3263_v7  ;;  %vm401_vm10 = vcmp.eq.s32.totalorder %v294_v15, %v3263_v7  ;;  %vm3313_vm12 = vmand %vm445_vm6, %vm3302_vm7  ;;  %v96_v0 = vld [vmem:[#allocation2 + $0x1f0] sm:$0xff]  ;;  %v89_v8 = vld [vmem:[#allocation2 + $0x1b8] sm:$0xff] }
  0x1d   :  { %536 = vmatpush1.bf16.msra.mxu0 %v3051_v14  ;;  %629 = vmatpush1.bf16.msra.mxu1 %v3051_v14  ;;  %v2718_v41 = vcombine.low %v40_v17, %v48_v18  ;;  %v2720_v42 = vcombine.low %v41_v19, %v49_v20  ;;  %v2723_v43 = vcombine.high %v56_v34, %v64_v35  ;;  %v333_v45 = vand.u32 31, %v295_v33  ;;  %v97_v9 = vld [vmem:[#allocation2 + $0x1f8] sm:$0xff]  ;;  %v112_v17 = vld [vmem:[#allocation2 + $0x270] sm:$0xff] }
  0x1e   :  { %537 = vmatprep.subr.bf16.mxu0 %v3052_v16  ;;  %630 = vmatprep.subr.bf16.mxu1 %v3052_v16  ;;  %vm444_vm11 = vcmp.eq.s32.totalorder %v3251_v3, %v436_v32  ;;  %v2725_v46 = vcombine.high %v57_v39, %v65_v40  ;;  %v424_v49 = vsel %vm400_vm9, 1.0, %v3219_v25  ;;  %v296_v50 = vadd.s32 40, %v3249_v2  ;;  %v104_v16 = vld [vmem:[#allocation2 + $0x230] sm:$0xff]  ;;  %v105_v22 = vld [vmem:[#allocation2 + $0x238] sm:$0xff] }
  0x1f   :  { %v425_v53 = vsel %vm401_vm10, 1.0, %v3219_v25  ;;  %v2722_v54 = vcombine.low %v56_v34, %v64_v35  ;;  %v468_v55 = vsel %vm444_vm11, 1.0, %v3219_v25  ;;  %v469_v56 = vsel %vm3313_vm12, 1.0, %v3219_v25  ;;  %v113_v23 = vld [vmem:[#allocation2 + $0x278] sm:$0xff]  ;;  %v120_v32 = vld [vmem:[#allocation2 + $0x2b0] sm:$0xff] }
  0x20   :  { %v2724_v57 = vcombine.low %v57_v39, %v65_v40  ;;  %v2727_v58 = vcombine.high %v72_v47, %v80_v48  ;;  %v438_v59 = vadd.s32 1, %v295_v33  ;;  %v439_v60 = vadd.s32 1, %v296_v50  ;;  %v121_v36 = vld [vmem:[#allocation2 + $0x2b8] sm:$0xff]  ;;  %v168_v61 = vld [vmem:[#allocation2 + $0x430] sm:$0xff] }
  0x21   :  { %538 = vmatpush1.bf16.msra.mxu0 %v3054_v24  ;;  %631 = vmatpush1.bf16.msra.mxu1 %v3054_v24  ;;  %vm402_vm13 = vcmp.eq.s32.totalorder %v295_v33, %v3263_v7  ;;  %vm3332_vm14 = vcmp.ne.s32.totalorder %v333_v45, 0  ;;  %v2729_v62 = vcombine.high %v73_v51, %v81_v52  ;;  %v431_v5 = vpack.c.bf16 %v425_v53, %v424_v49  ;;  %v128_v33 = vld [vmem:[#allocation2 + $0x2f0] sm:$0xff]  ;;  %v137_v45 = vld [vmem:[#allocation2 + $0x338] sm:$0xff] }
  0x22   :  { %1025 = vmatprep.subr.bf16.mxu0 %v2719_v30  ;;  %1098 = vmatprep.subr.bf16.mxu1 %v2721_v31  ;;  %v475_v6 = vpack.c.bf16 %v469_v56, %v468_v55  ;;  %vm403_vm15 = vcmp.eq.s32.totalorder %v296_v50, %v3263_v7  ;;  %v3339_v10 = vadd.s32 56, %v3249_v2  ;;  %v2726_v11 = vcombine.low %v72_v47, %v80_v48  ;;  %vm3345_vm0 = vmand %vm402_vm13, %vm3332_vm14  ;;  %v152_v53 = vld [vmem:[#allocation2 + $0x3b0] sm:$0xff] }
  0x23   :  { %v2728_v12 = vcombine.low %v73_v51, %v81_v52  ;;  %v2731_v14 = vcombine.high %v88_v63, %v96_v0  ;;  %vm446_vm1 = vcmp.eq.s32.totalorder %v3251_v3, %v438_v59  ;;  %vm447_vm2 = vcmp.eq.s32.totalorder %v3251_v3, %v439_v60 }
  0x24   :  { %2710 = vmatmul.mubr.msk.bf16.vlgmr.msra.gmra.mrb[0].mxu0 %vm518_vm8, %v430_v37  ;;  %2714 = vmatmul.mubr.msk.bf16.vlgmr.msra.gmra.mrb[0].mxu1 %vm518_vm8, %v474_v38  ;;  %v2733_v15 = vcombine.high %v89_v8, %v97_v9  ;;  %v354_v18 = vand.u32 31, %v3339_v10  ;;  %v441_v19 = vadd.s32 1, %v3339_v10  ;;  %v427_v20 = vsel %vm403_vm15, 1.0, %v3219_v25  ;;  %v129_v37 = vld [vmem:[#allocation2 + $0x2f8] sm:$0xff] }
  0x25   :  { %573 = vmatprep.mubr.bf16.mxu0 %v3218_v1  ;;  %1026 = vmatpush1.bf16.msra.mxu0 %v2718_v41  ;;  %v297_v21 = vadd.s32 48, %v3249_v2  ;;  %v426_v24 = vsel %vm3345_vm0, 1.0, %v3219_v25  ;;  %v2730_v26 = vcombine.low %v88_v63, %v96_v0  ;;  %v470_v27 = vsel %vm446_vm1, 1.0, %v3219_v25  ;;  %v177_v63 = vld [vmem:[#allocation2 + $0x478] sm:$0xff] }
  0x26   :  { %1099 = vmatpush1.bf16.msra.mxu1 %v2720_v42  ;;  %1027 = vmatprep.subr.bf16.mxu0 %v2723_v43  ;;  %v471_v2 = vsel %vm447_vm2, 1.0, %v3219_v25  ;;  %v2732_v28 = vcombine.low %v89_v8, %v97_v9  ;;  %v2735_v29 = vcombine.high %v104_v16, %v112_v17  ;;  %v2737_v31 = vcombine.high %v105_v22, %v113_v23  ;;  %v136_v42 = vld [vmem:[#allocation2 + $0x330] sm:$0xff] }
  0x27   :  { %1100 = vmatprep.subr.bf16.mxu1 %v2725_v46  ;;  %666 = vmatprep.mubr.bf16.mxu1 %v3218_v1  ;;  %v440_v30 = vadd.s32 1, %v297_v21  ;;  %vm449_vm3 = vcmp.eq.s32.totalorder %v3251_v3, %v441_v19  ;;  %vm457_vm4 = vcmp.ne.s32.totalorder %v354_v18, 31  ;;  %v432_v34 = vpack.c.bf16 %v427_v20, %v426_v24  ;;  %v144_v43 = vld [vmem:[#allocation2 + $0x370] sm:$0xff]  ;;  %v145_v46 = vld [vmem:[#allocation2 + $0x378] sm:$0xff] }
  0x28   :  { %v476_v35 = vpack.c.bf16 %v471_v2, %v470_v27  ;;  %vm404_vm5 = vcmp.eq.s32.totalorder %v297_v21, %v3263_v7  ;;  %vm405_vm6 = vcmp.eq.s32.totalorder %v3339_v10, %v3263_v7  ;;  %v2734_v38 = vcombine.low %v104_v16, %v112_v17  ;;  %vm465_vm9 = vmand %vm449_vm3, %vm457_vm4  ;;  %v153_v7 = vld [vmem:[#allocation2 + $0x3b8] sm:$0xff]  ;;  %v184_v9 = vld [vmem:[#allocation2 + $0x4b0] sm:$0xff] }
  0x29   :  { %1028 = vmatpush1.bf16.msra.mxu0 %v2722_v54  ;;  %v2736_v39 = vcombine.low %v105_v22, %v113_v23  ;;  %v2739_v40 = vcombine.high %v120_v32, %v128_v33  ;;  %vm448_vm7 = vcmp.eq.s32.totalorder %v3251_v3, %v440_v30  ;;  %v2741_v41 = vcombine.high %v121_v36, %v129_v37  ;;  %v160_v54 = vld [vmem:[#allocation2 + $0x3f0] sm:$0xff]  ;;  %v201_v19 = vld [vmem:[#allocation2 + $0x538] sm:$0xff] }
  0x2a   :  { %1101 = vmatpush1.bf16.msra.mxu1 %v2724_v57  ;;  %1029 = vmatprep.subr.bf16.mxu0 %v2727_v58  ;;  %v428_v44 = vsel %vm404_vm5, 1.0, %v3219_v25  ;;  %v429_v3 = vsel %vm405_vm6, 1.0, %v3219_v25  ;;  %v2738_v47 = vcombine.low %v120_v32, %v128_v33  ;;  %v472_v48 = vsel %vm448_vm7, 1.0, %v3219_v25  ;;  %v161_v57 = vld [vmem:[#allocation2 + $0x3f8] sm:$0xff]  ;;  %v192_v10 = vld [vmem:[#allocation2 + $0x4f0] sm:$0xff] }
  0x2b   :  { %1102 = vmatprep.subr.bf16.mxu1 %v2729_v62  ;;  %v473_v49 = vsel %vm465_vm9, 1.0, %v3219_v25  ;;  %v2740_v50 = vcombine.low %v121_v36, %v129_v37  ;;  %v2743_v51 = vcombine.high %v136_v42, %v144_v43  ;;  %v2745_v52 = vcombine.high %v137_v45, %v145_v46  ;;  %v176_v62 = vld [vmem:[#allocation2 + $0x470] sm:$0xff]  ;;  %v209_v20 = vld [vmem:[#allocation2 + $0x578] sm:$0xff] }
  0x2c   :  { %2711 = vmatmul.mubr.msk.bf16.gmra.mrb[4].mxu0 %vm518_vm8, %v431_v5  ;;  %2715 = vmatmul.mubr.msk.bf16.gmra.mrb[4].mxu1 %vm518_vm8, %v475_v6  ;;  %v433_v55 = vpack.c.bf16 %v429_v3, %v428_v44  ;;  %v477_v56 = vpack.c.bf16 %v473_v49, %v472_v48  ;;  %v2742_v58 = vcombine.low %v136_v42, %v144_v43  ;;  %v200_v17 = vld [vmem:[#allocation2 + $0x530] sm:$0xff]  ;;  %v217_v2 = vld [vmem:[#allocation2 + $0x5b8] sm:$0xff] }
  0x2d   :  { %583 = vmatprep.mubr.bf16.mxu0 %v3218_v1  ;;  %1030 = vmatpush1.bf16.msra.mxu0 %v2726_v11  ;;  %v2744_v59 = vcombine.low %v137_v45, %v145_v46  ;;  %v2747_v25 = vcombine.high %v152_v53, %v160_v54  ;;  %v2749_v60 = vcombine.high %v153_v7, %v161_v57  ;;  %v185_v11 = vld [vmem:[#allocation2 + $0x4b8] sm:$0xff]  ;;  %v208_v18 = vld [vmem:[#allocation2 + $0x570] sm:$0xff] }
  0x2e   :  { %1103 = vmatpush1.bf16.msra.mxu1 %v2728_v12  ;;  %1031 = vmatprep.subr.bf16.mxu0 %v2731_v14  ;;  %v2746_v0 = vcombine.low %v152_v53, %v160_v54  ;;  %v2748_v5 = vcombine.low %v153_v7, %v161_v57  ;;  %v2751_v6 = vcombine.high %v168_v61, %v176_v62  ;;  %v193_v12 = vld [vmem:[#allocation2 + $0x4f8] sm:$0xff]  ;;  %v224_v27 = vld [vmem:[#allocation2 + $0x5f0] sm:$0xff] }
  0x2f   :  { %1104 = vmatprep.subr.bf16.mxu1 %v2733_v15  ;;  %676 = vmatprep.mubr.bf16.mxu1 %v3218_v1  ;;  %v2750_v13 = vcombine.low %v168_v61, %v176_v62  ;;  %v2755_v15 = vcombine.high %v184_v9, %v192_v10  ;;  %v2757_v16 = vcombine.high %v185_v11, %v193_v12  ;;  %v232_v33 = vld [vmem:[#allocation2 + $0x630] sm:$0xff]  ;;  %v241_v36 = vld [vmem:[#allocation2 + $0x678] sm:$0xff] }
  0x30   :  { %v2754_v21 = vcombine.low %v184_v9, %v192_v10  ;;  %v2756_v22 = vcombine.low %v185_v11, %v193_v12  ;;  %v2759_v23 = vcombine.high %v200_v17, %v208_v18  ;;  %v2761_v24 = vcombine.high %v201_v19, %v209_v20  ;;  %v256_v42 = vld [vmem:[#allocation2 + $0x6f0] sm:$0xff]  ;;  %v249_v43 = vld [vmem:[#allocation2 + $0x6b8] sm:$0xff] }
  0x31   :  { %1032 = vmatpush1.bf16.msra.mxu0 %v2730_v26  ;;  %v216_v26 = vld [vmem:[#allocation2 + $0x5b0] sm:$0xff]  ;;  %v2760_v30 = vcombine.low %v201_v19, %v209_v20  ;;  %v257_v44 = vld [vmem:[#allocation2 + $0x6f8] sm:$0xff] }
  0x32   :  { %1105 = vmatpush1.bf16.msra.mxu1 %v2732_v28  ;;  %1033 = vmatprep.subr.bf16.mxu0 %v2735_v29  ;;  %v225_v28 = vld [vmem:[#allocation2 + $0x5f8] sm:$0xff]  ;;  %v2758_v29 = vcombine.low %v200_v17, %v208_v18  ;;  %v2762_v37 = vcombine.low %v216_v26, %v224_v27  ;;  %v264_v48 = vld [vmem:[#allocation2 + $0x730] sm:$0xff]  ;;  %v2772_v53 = vcombine.low %v249_v43, %v257_v44 }
  0x33   :  { %1106 = vmatprep.subr.bf16.mxu1 %v2737_v31  ;;  %v2763_v31 = vcombine.high %v216_v26, %v224_v27  ;;  %v2765_v32 = vcombine.high %v217_v2, %v225_v28  ;;  %v272_v49 = vld [vmem:[#allocation2 + $0x770] sm:$0xff]  ;;  %v53_v19 = vld [vmem:[#allocation2 + $0x98] sm:$0xff] }
  0x34   :  { %2712 = vmatmul.mubr.msk.bf16.gmra.mrb[8].mxu0 %vm518_vm8, %v432_v34  ;;  %2716 = vmatmul.mubr.msk.bf16.gmra.mrb[8].mxu1 %vm518_vm8, %v476_v35  ;;  %v240_v34 = vld [vmem:[#allocation2 + $0x670] sm:$0xff]  ;;  %v233_v35 = vld [vmem:[#allocation2 + $0x638] sm:$0xff]  ;;  %v2775_v54 = vcombine.high %v264_v48, %v272_v49 }
  0x35   :  { %593 = vmatprep.mubr.bf16.mxu0 %v3218_v1  ;;  %1034 = vmatpush1.bf16.msra.mxu0 %v2734_v38  ;;  %v2764_v38 = vcombine.low %v217_v2, %v225_v28  ;;  %v2766_v45 = vcombine.low %v232_v33, %v240_v34  ;;  %v2768_v46 = vcombine.low %v233_v35, %v241_v36  ;;  %v280_v57 = vld [vmem:[#allocation2 + $0x7b0] sm:$0xff]  ;;  %v61_v20 = vld [vmem:[#allocation2 + $0xd8] sm:$0xff] }
  0x36   :  { %1107 = vmatpush1.bf16.msra.mxu1 %v2736_v39  ;;  %1035 = vmatprep.subr.bf16.mxu0 %v2739_v40  ;;  %v2767_v39 = vcombine.high %v232_v33, %v240_v34  ;;  %v2769_v40 = vcombine.high %v233_v35, %v241_v36  ;;  %v60_v18 = vld [vmem:[#allocation2 + $0xd0] sm:$0xff]  ;;  %v77_v33 = vld [vmem:[#allocation2 + $0x158] sm:$0xff]  ;;  %v2788_v35 = vcombine.low %v53_v19, %v61_v20 }
  0x37   :  { %1108 = vmatprep.subr.bf16.mxu1 %v2741_v41  ;;  %686 = vmatprep.mubr.bf16.mxu1 %v3218_v1  ;;  %v169_v1 = vld [vmem:[#allocation2 + $0x438] sm:$0xff]  ;;  %v248_v41 = vld [vmem:[#allocation2 + $0x6b0] sm:$0xff] }
  0x38   :  { %v2753_v8 = vcombine.high %v169_v1, %v177_v63  ;;  %v2752_v14 = vcombine.low %v169_v1, %v177_v63  ;;  %v2771_v3 = vcombine.high %v248_v41, %v256_v42  ;;  %v36_v63 = vld [vmem:[#allocation2 + $0x10] sm:$0xff] }
  0x39   :  { %1036 = vmatpush1.bf16.msra.mxu0 %v2738_v47  ;;  %v2773_v47 = vcombine.high %v249_v43, %v257_v44  ;;  %v93_v43 = vld [vmem:[#allocation2 + $0x1d8] sm:$0xff] }
  0x3a   :  { %1109 = vmatpush1.bf16.msra.mxu1 %v2740_v50  ;;  %1037 = vmatprep.subr.bf16.mxu0 %v2743_v51  ;;  %v265_v50 = vld [vmem:[#allocation2 + $0x738] sm:$0xff] }
  0x3b   :  { %1110 = vmatprep.subr.bf16.mxu1 %v2745_v52  ;;  %v273_v51 = vld [vmem:[#allocation2 + $0x778] sm:$0xff]  ;;  %v2770_v52 = vcombine.low %v248_v41, %v256_v42  ;;  %v92_v41 = vld [vmem:[#allocation2 + $0x1d0] sm:$0xff] }
  0x3c   :  { %2713 = vmatmul.mubr.msk.bf16.gmra.mrb[12].mxu0 %vm518_vm8, %v433_v55  ;;  %2717 = vmatmul.mubr.msk.bf16.gmra.mrb[12].mxu1 %vm518_vm8, %v477_v56  ;;  %v2777_v55 = vcombine.high %v265_v50, %v273_v51  ;;  %v2774_v56 = vcombine.low %v264_v48, %v272_v49  ;;  %v2776_v7 = vcombine.low %v265_v50, %v273_v51  ;;  %v85_v42 = vld [vmem:[#allocation2 + $0x198] sm:$0xff]  ;;  %v100_v51 = vld [vmem:[#allocation2 + $0x210] sm:$0xff] }
  0x3d   :  { %1038 = vmatpush1.bf16.msra.mxu0 %v2742_v58  ;;  %v288_v58 = vld [vmem:[#allocation2 + $0x7f0] sm:$0xff]  ;;  %v2797_v50 = vcombine.high %v85_v42, %v93_v43 }
  0x3e   :  { %1111 = vmatpush1.bf16.msra.mxu1 %v2744_v59  ;;  %1039 = vmatprep.subr.bf16.mxu0 %v2747_v25  ;;  %v281_v59 = vld [vmem:[#allocation2 + $0x7b8] sm:$0xff]  ;;  %v2779_v25 = vcombine.high %v280_v57, %v288_v58  ;;  %v2778_v61 = vcombine.low %v280_v57, %v288_v58 }
  0x3f   :  { %1112 = vmatprep.subr.bf16.mxu1 %v2749_v60  ;;  %v289_v60 = vld [vmem:[#allocation2 + $0x7f8] sm:$0xff] }
  0x40   :  { %v2780_v62 = vcombine.low %v281_v59, %v289_v60  ;;  %v2781_v1 = vcombine.high %v281_v59, %v289_v60  ;;  %v116_v59 = vld [vmem:[#allocation2 + $0x290] sm:$0xff] }
  0x41   :  { %1040 = vmatpush1.bf16.msra.mxu0 %v2746_v0  ;;  %v44_v0 = vld [vmem:[#allocation2 + $0x50] sm:$0xff] }
  0x42   :  { %1113 = vmatpush1.bf16.msra.mxu1 %v2748_v5  ;;  %1041 = vmatprep.subr.bf16.mxu0 %v2751_v6  ;;  %v37_v5 = vld [vmem:[#allocation2 + $0x18] sm:$0xff]  ;;  %v2783_v6 = vcombine.high %v36_v63, %v44_v0  ;;  %v2782_v9 = vcombine.low %v36_v63, %v44_v0  ;;  %v124_v60 = vld [vmem:[#allocation2 + $0x2d0] sm:$0xff] }
  0x43   :  { %1114 = vmatprep.subr.bf16.mxu1 %v2753_v8  ;;  %v45_v8 = vld [vmem:[#allocation2 + $0x58] sm:$0xff] }
  0x44   :  { %v2784_v10 = vcombine.low %v37_v5, %v45_v8  ;;  %v2785_v11 = vcombine.high %v37_v5, %v45_v8 }
  0x45   :  { %1042 = vmatpush1.bf16.msra.mxu0 %v2750_v13 }
  0x46   :  { %1115 = vmatpush1.bf16.msra.mxu1 %v2752_v14  ;;  %1043 = vmatprep.subr.bf16.mxu0 %v2755_v15  ;;  %v52_v15 = vld [vmem:[#allocation2 + $0x90] sm:$0xff] }
  0x47   :  { %1116 = vmatprep.subr.bf16.mxu1 %v2757_v16  ;;  %v2787_v28 = vcombine.high %v52_v15, %v60_v18  ;;  %v2786_v34 = vcombine.low %v52_v15, %v60_v18  ;;  %v2802_v15 = vcombine.low %v116_v59, %v124_v60 }
  0x49   :  { %1044 = vmatpush1.bf16.msra.mxu0 %v2754_v21 }
  0x4a   :  { %1117 = vmatpush1.bf16.msra.mxu1 %v2756_v22  ;;  %1045 = vmatprep.subr.bf16.mxu0 %v2759_v23 }
  0x4b   :  { %1118 = vmatprep.subr.bf16.mxu1 %v2761_v24 }
  0x4d   :  { %1046 = vmatpush1.bf16.msra.mxu0 %v2758_v29  ;;  %v2789_v29 = vcombine.high %v53_v19, %v61_v20  ;;  %v148_v20 = vld [vmem:[#allocation2 + $0x390] sm:$0xff] }
  0x4e   :  { %1119 = vmatpush1.bf16.msra.mxu1 %v2760_v30  ;;  %1047 = vmatprep.subr.bf16.mxu0 %v2763_v31  ;;  %v68_v30 = vld [vmem:[#allocation2 + $0x110] sm:$0xff] }
  0x4f   :  { %1120 = vmatprep.subr.bf16.mxu1 %v2765_v32  ;;  %v76_v31 = vld [vmem:[#allocation2 + $0x150] sm:$0xff]  ;;  %v69_v32 = vld [vmem:[#allocation2 + $0x118] sm:$0xff] }
  0x51   :  { %1048 = vmatpush1.bf16.msra.mxu0 %v2762_v37  ;;  %v2791_v37 = vcombine.high %v68_v30, %v76_v31 }
  0x52   :  { %1121 = vmatpush1.bf16.msra.mxu1 %v2764_v38  ;;  %1049 = vmatprep.subr.bf16.mxu0 %v2767_v39  ;;  %v2793_v38 = vcombine.high %v69_v32, %v77_v33  ;;  %v84_v39 = vld [vmem:[#allocation2 + $0x190] sm:$0xff] }
  0x53   :  { %1122 = vmatprep.subr.bf16.mxu1 %v2769_v40  ;;  %v2795_v49 = vcombine.high %v84_v39, %v92_v41 }
  0x55   :  { %1050 = vmatpush1.bf16.msra.mxu0 %v2766_v45 }
  0x56   :  { %1123 = vmatpush1.bf16.msra.mxu1 %v2768_v46  ;;  %1051 = vmatprep.subr.bf16.mxu0 %v2771_v3  ;;  %v2790_v3 = vcombine.low %v68_v30, %v76_v31 }
  0x57   :  { %1124 = vmatprep.subr.bf16.mxu1 %v2773_v47  ;;  %v2792_v47 = vcombine.low %v69_v32, %v77_v33 }
  0x59   :  { %1052 = vmatpush1.bf16.msra.mxu0 %v2770_v52  ;;  %v108_v52 = vld [vmem:[#allocation2 + $0x250] sm:$0xff] }
  0x5a   :  { %1125 = vmatpush1.bf16.msra.mxu1 %v2772_v53  ;;  %1053 = vmatprep.subr.bf16.mxu0 %v2775_v54  ;;  %v101_v53 = vld [vmem:[#allocation2 + $0x218] sm:$0xff]  ;;  %v2799_v57 = vcombine.high %v100_v51, %v108_v52  ;;  %v2798_v5 = vcombine.low %v100_v51, %v108_v52  ;;  %v196_v52 = vld [vmem:[#allocation2 + $0x510] sm:$0xff] }
  0x5b   :  { %1126 = vmatprep.subr.bf16.mxu1 %v2777_v55  ;;  %v109_v54 = vld [vmem:[#allocation2 + $0x258] sm:$0xff]  ;;  %v2794_v55 = vcombine.low %v84_v39, %v92_v41 }
  0x5c   :  { %v2801_v58 = vcombine.high %v101_v53, %v109_v54 }
  0x5d   :  { %1054 = vmatpush1.bf16.msra.mxu0 %v2774_v56  ;;  %v2796_v56 = vcombine.low %v85_v42, %v93_v43  ;;  %v180_v43 = vld [vmem:[#allocation2 + $0x490] sm:$0xff] }
  0x5e   :  { %1127 = vmatpush1.bf16.msra.mxu1 %v2776_v7  ;;  %1055 = vmatprep.subr.bf16.mxu0 %v2779_v25 }
  0x5f   :  { %1128 = vmatprep.subr.bf16.mxu1 %v2781_v1 }
  0x61   :  { %1056 = vmatpush1.bf16.msra.mxu0 %v2778_v61  ;;  %v117_v61 = vld [vmem:[#allocation2 + $0x298] sm:$0xff] }
  0x62   :  { %1129 = vmatpush1.bf16.msra.mxu1 %v2780_v62  ;;  %1491 = vmatprep.subr.bf16.mxu0 %v2783_v6  ;;  %v125_v62 = vld [vmem:[#allocation2 + $0x2d8] sm:$0xff]  ;;  %v2800_v6 = vcombine.low %v101_v53, %v109_v54  ;;  %v204_v54 = vld [vmem:[#allocation2 + $0x550] sm:$0xff] }
  0x63   :  { %1564 = vmatprep.subr.bf16.mxu1 %v2785_v11  ;;  %v132_v11 = vld [vmem:[#allocation2 + $0x310] sm:$0xff] }
  0xf7   :  { %v565_v12 = vpop.f32.mrb[0].mxu0  ;;  %v658_v13 = vpop.f32.mrb[0].mxu1 }
  0xf8   :  { %v567_v14 = vpop.f32.mrb[1].mxu0  ;;  %v660_v16 = vpop.f32.mrb[1].mxu1 }
  0xf9   :  { %v569_v17 = vpop.f32.mrb[2].mxu0  ;;  %v662_v21 = vpop.f32.mrb[2].mxu1 }
  0xfa   :  { %v604_v22 = vpack.c.bf16 %v569_v17, %v565_v12  ;;  %v571_v23 = vpop.f32.mrb[3].mxu0  ;;  %v3390_v24 = vpack.c.bf16 %v662_v21, %v658_v13  ;;  %v664_v26 = vpop.f32.mrb[3].mxu1  ;;  %v140_v12 = vld [vmem:[#allocation2 + $0x350] sm:$0xff]  ;;  %v133_v13 = vld [vmem:[#allocation2 + $0x318] sm:$0xff] }
  0xfb   :  { %v605_v27 = vpack.c.bf16 %v571_v23, %v567_v14  ;;  %v3392_v2 = vpack.c.bf16 %v664_v26, %v660_v16  ;;  %v141_v14 = vld [vmem:[#allocation2 + $0x358] sm:$0xff]  ;;  %v2804_v16 = vcombine.low %v117_v61, %v125_v62  ;;  %v2807_v18 = vcombine.high %v132_v11, %v140_v12 }
  0xfc   :  { %v2809_v19 = vcombine.high %v133_v13, %v141_v14  ;;  %v149_v23 = vld [vmem:[#allocation2 + $0x398] sm:$0xff]  ;;  %v2806_v30 = vcombine.low %v132_v11, %v140_v12  ;;  %v2808_v31 = vcombine.low %v133_v13, %v141_v14  ;;  %v228_v11 = vld [vmem:[#allocation2 + $0x610] sm:$0xff] }
  0xfd   :  { %1057 = vmatprep.mubr.bf16.mxu0 %v605_v27  ;;  %1130 = vmatprep.mubr.bf16.mxu1 %v605_v27  ;;  %v157_v26 = vld [vmem:[#allocation2 + $0x3d8] sm:$0xff]  ;;  %v236_v13 = vld [vmem:[#allocation2 + $0x650] sm:$0xff] }
  0xfe   :  { %1058 = vmatmul.mubr.bf16.vlgmr.msra.gmra.mrb[16].mxu0 %v604_v22  ;;  %1131 = vmatmul.mubr.bf16.vlgmr.msra.gmra.mrb[16].mxu1 %v604_v22  ;;  %v156_v22 = vld [vmem:[#allocation2 + $0x3d0] sm:$0xff]  ;;  %v229_v14 = vld [vmem:[#allocation2 + $0x618] sm:$0xff] }
  0xff   :  { %1492 = vmatpush1.bf16.msra.mxu0 %v2782_v9  ;;  %1565 = vmatpush1.bf16.msra.mxu1 %v2784_v10  ;;  %v575_v36 = vpop.f32.mrb[4].mxu0  ;;  %v2803_v9 = vcombine.high %v116_v59, %v124_v60  ;;  %v2805_v10 = vcombine.high %v117_v61, %v125_v62  ;;  %v2811_v33 = vcombine.high %v148_v20, %v156_v22  ;;  %v212_v61 = vld [vmem:[#allocation2 + $0x590] sm:$0xff] }
 0x100   :  { %1493 = vmatprep.subr.bf16.mxu0 %v2787_v28  ;;  %1566 = vmatprep.subr.bf16.mxu1 %v2789_v29  ;;  %v577_v40 = vpop.f32.mrb[5].mxu0  ;;  %v2810_v39 = vcombine.low %v148_v20, %v156_v22 }
 0x101   :  { %v579_v44 = vpop.f32.mrb[6].mxu0 }
 0x102   :  { %v606_v45 = vpack.c.bf16 %v579_v44, %v575_v36  ;;  %v581_v46 = vpop.f32.mrb[7].mxu0  ;;  %v172_v36 = vld [vmem:[#allocation2 + $0x450] sm:$0xff]  ;;  %v668_v44 = vpop.f32.mrb[4].mxu1 }
 0x103   :  { %1494 = vmatpush1.bf16.msra.mxu0 %v2786_v34  ;;  %1567 = vmatpush1.bf16.msra.mxu1 %v2788_v35  ;;  %v607_v48 = vpack.c.bf16 %v581_v46, %v577_v40  ;;  %v2813_v34 = vcombine.high %v149_v23, %v157_v26  ;;  %v164_v35 = vld [vmem:[#allocation2 + $0x410] sm:$0xff]  ;;  %v2812_v40 = vcombine.low %v149_v23, %v157_v26  ;;  %v181_v46 = vld [vmem:[#allocation2 + $0x498] sm:$0xff] }
 0x104   :  { %1495 = vmatprep.subr.bf16.mxu0 %v2791_v37  ;;  %1568 = vmatprep.subr.bf16.mxu1 %v2793_v38  ;;  %v165_v37 = vld [vmem:[#allocation2 + $0x418] sm:$0xff]  ;;  %v2815_v41 = vcombine.high %v164_v35, %v172_v36  ;;  %v244_v23 = vld [vmem:[#allocation2 + $0x690] sm:$0xff] }
 0x105   :  { %1067 = vmatprep.mubr.bf16.mxu0 %v607_v48  ;;  %1140 = vmatprep.mubr.bf16.mxu1 %v607_v48  ;;  %v173_v38 = vld [vmem:[#allocation2 + $0x458] sm:$0xff] }
 0x106   :  { %1068 = vmatmul.mubr.bf16.gmra.mrb[20].mxu0 %v606_v45  ;;  %1141 = vmatmul.mubr.bf16.gmra.mrb[20].mxu1 %v606_v45  ;;  %v2817_v42 = vcombine.high %v165_v37, %v173_v38  ;;  %v188_v45 = vld [vmem:[#allocation2 + $0x4d0] sm:$0xff]  ;;  %v2816_v48 = vcombine.low %v165_v37, %v173_v38  ;;  %v261_v38 = vld [vmem:[#allocation2 + $0x718] sm:$0xff] }
 0x107   :  { %1496 = vmatpush1.bf16.msra.mxu0 %v2790_v3  ;;  %1569 = vmatpush1.bf16.msra.mxu1 %v2792_v47  ;;  %v585_v7 = vpop.f32.mrb[8].mxu0  ;;  %v189_v3 = vld [vmem:[#allocation2 + $0x4d8] sm:$0xff]  ;;  %v2814_v47 = vcombine.low %v164_v35, %v172_v36  ;;  %v260_v35 = vld [vmem:[#allocation2 + $0x710] sm:$0xff] }
 0x108   :  { %1497 = vmatprep.subr.bf16.mxu0 %v2795_v49  ;;  %1570 = vmatprep.subr.bf16.mxu1 %v2797_v50  ;;  %v587_v25 = vpop.f32.mrb[9].mxu0  ;;  %v670_v49 = vpop.f32.mrb[5].mxu1  ;;  %v2819_v50 = vcombine.high %v180_v43, %v188_v45  ;;  %v2821_v51 = vcombine.high %v181_v46, %v189_v3  ;;  %v2820_v59 = vcombine.low %v181_v46, %v189_v3  ;;  %v268_v37 = vld [vmem:[#allocation2 + $0x750] sm:$0xff] }
 0x109   :  { %v589_v1 = vpop.f32.mrb[10].mxu0  ;;  %v672_v53 = vpop.f32.mrb[6].mxu1  ;;  %v276_v3 = vld [vmem:[#allocation2 + $0x790] sm:$0xff] }
 0x10a   :  { %v608_v63 = vpack.c.bf16 %v589_v1, %v585_v7  ;;  %v591_v0 = vpop.f32.mrb[11].mxu0  ;;  %v3396_v7 = vpack.c.bf16 %v672_v53, %v668_v44  ;;  %v220_v1 = vld [vmem:[#allocation2 + $0x5d0] sm:$0xff] }
 0x10b   :  { %1498 = vmatpush1.bf16.msra.mxu0 %v2794_v55  ;;  %1571 = vmatpush1.bf16.msra.mxu1 %v2796_v56  ;;  %v609_v8 = vpack.c.bf16 %v591_v0, %v587_v25  ;;  %v197_v55 = vld [vmem:[#allocation2 + $0x518] sm:$0xff]  ;;  %v2823_v25 = vcombine.high %v196_v52, %v204_v54 }
 0x10c   :  { %1499 = vmatprep.subr.bf16.mxu0 %v2799_v57  ;;  %1572 = vmatprep.subr.bf16.mxu1 %v2801_v58  ;;  %v205_v56 = vld [vmem:[#allocation2 + $0x558] sm:$0xff]  ;;  %v674_v57 = vpop.f32.mrb[7].mxu1 }
 0x10d   :  { %1077 = vmatprep.mubr.bf16.mxu0 %v609_v8  ;;  %1150 = vmatprep.mubr.bf16.mxu1 %v609_v8  ;;  %v3398_v58 = vpack.c.bf16 %v674_v57, %v670_v49  ;;  %v2825_v60 = vcombine.high %v197_v55, %v205_v56  ;;  %v678_v62 = vpop.f32.mrb[8].mxu1  ;;  %v221_v0 = vld [vmem:[#allocation2 + $0x5d8] sm:$0xff]  ;;  %v43_v57 = vld [vmem:[#allocation2 + $0x48] sm:$0xff] }
 0x10e   :  { %1078 = vmatmul.mubr.bf16.gmra.mrb[24].mxu0 %v608_v63  ;;  %1151 = vmatmul.mubr.bf16.gmra.mrb[24].mxu1 %v608_v63  ;;  %v213_v63 = vld [vmem:[#allocation2 + $0x598] sm:$0xff]  ;;  %v680_v8 = vpop.f32.mrb[9].mxu1 }
 0x10f   :  { %1500 = vmatpush1.bf16.msra.mxu0 %v2798_v5  ;;  %1573 = vmatpush1.bf16.msra.mxu1 %v2800_v6  ;;  %v595_v17 = vpop.f32.mrb[12].mxu0  ;;  %v2822_v5 = vcombine.low %v196_v52, %v204_v54  ;;  %v2824_v6 = vcombine.low %v197_v55, %v205_v56  ;;  %v682_v12 = vpop.f32.mrb[10].mxu1  ;;  %v2828_v20 = vcombine.low %v213_v63, %v221_v0  ;;  %v285_v49 = vld [vmem:[#allocation2 + $0x7d8] sm:$0xff]  ;;  %v34_v54 = vld [vmem:[#allocation2] sm:$0xff]  ;;  %v35_v56 = vld [vmem:[#allocation2 + $0x8] sm:$0xff] }
 0x110   :  { %1501 = vmatprep.subr.bf16.mxu0 %v2803_v9  ;;  %1574 = vmatprep.subr.bf16.mxu1 %v2805_v10  ;;  %v597_v21 = vpop.f32.mrb[13].mxu0  ;;  %v2827_v9 = vcombine.high %v212_v61, %v220_v1  ;;  %v2829_v10 = vcombine.high %v213_v63, %v221_v0  ;;  %v42_v55 = vld [vmem:[#allocation2 + $0x40] sm:$0xff]  ;;  %v59_v63 = vld [vmem:[#allocation2 + $0xc8] sm:$0xff] }
 0x111   :  { %v599_v27 = vpop.f32.mrb[14].mxu0  ;;  %v2846_v0 = vcombine.low %v34_v54, %v42_v55 }
 0x112   :  { %v610_v28 = vpack.c.bf16 %v599_v27, %v595_v17  ;;  %v601_v29 = vpop.f32.mrb[15].mxu0  ;;  %v684_v17 = vpop.f32.mrb[11].mxu1  ;;  %v252_v27 = vld [vmem:[#allocation2 + $0x6d0] sm:$0xff] }
 0x113   :  { %1502 = vmatpush1.bf16.msra.mxu0 %v2802_v15  ;;  %1575 = vmatpush1.bf16.msra.mxu1 %v2804_v16  ;;  %v611_v32 = vpack.c.bf16 %v601_v29, %v597_v21  ;;  %v237_v15 = vld [vmem:[#allocation2 + $0x658] sm:$0xff]  ;;  %v3400_v16 = vpack.c.bf16 %v682_v12, %v678_v62  ;;  %v2831_v21 = vcombine.high %v228_v11, %v236_v13  ;;  %v688_v26 = vpop.f32.mrb[12].mxu1  ;;  %v58_v62 = vld [vmem:[#allocation2 + $0xc0] sm:$0xff]  ;;  %v75_v12 = vld [vmem:[#allocation2 + $0x148] sm:$0xff] }
 0x114   :  { %1503 = vmatprep.subr.bf16.mxu0 %v2807_v18  ;;  %1576 = vmatprep.subr.bf16.mxu1 %v2809_v19  ;;  %v3402_v18 = vpack.c.bf16 %v684_v17, %v680_v8  ;;  %v2826_v19 = vcombine.low %v212_v61, %v220_v1  ;;  %v2833_v22 = vcombine.high %v229_v14, %v237_v15  ;;  %v253_v29 = vld [vmem:[#allocation2 + $0x6d8] sm:$0xff]  ;;  %v50_v61 = vld [vmem:[#allocation2 + $0x80] sm:$0xff]  ;;  %v51_v1 = vld [vmem:[#allocation2 + $0x88] sm:$0xff] }
 0x115   :  { %1087 = vmatprep.mubr.bf16.mxu0 %v611_v32  ;;  %1160 = vmatprep.mubr.bf16.mxu1 %v611_v32  ;;  %v690_v32 = vpop.f32.mrb[13].mxu1  ;;  %v2853_v8 = vcombine.high %v51_v1, %v59_v63 }
 0x116   :  { %1088 = vmatmul.mubr.bf16.gmra.mrb[28].mxu0 %v610_v28  ;;  %1161 = vmatmul.mubr.bf16.gmra.mrb[28].mxu1 %v610_v28  ;;  %v245_v28 = vld [vmem:[#allocation2 + $0x698] sm:$0xff]  ;;  %v692_v36 = vpop.f32.mrb[14].mxu1 }
 0x117   :  { %1504 = vmatpush1.bf16.msra.mxu0 %v2806_v30  ;;  %1577 = vmatpush1.bf16.msra.mxu1 %v2808_v31  ;;  %v2830_v30 = vcombine.low %v228_v11, %v236_v13  ;;  %v2832_v31 = vcombine.low %v229_v14, %v237_v15  ;;  %v2836_v44 = vcombine.low %v245_v28, %v253_v29  ;;  %v67_v11 = vld [vmem:[#allocation2 + $0x108] sm:$0xff] }
 0x118   :  { %1505 = vmatprep.subr.bf16.mxu0 %v2811_v33  ;;  %1578 = vmatprep.subr.bf16.mxu1 %v2813_v34  ;;  %v2835_v33 = vcombine.high %v244_v23, %v252_v27  ;;  %v2837_v34 = vcombine.high %v245_v28, %v253_v29  ;;  %v3411_v13 = vld [vmem:[%s3682_s0] ss:$8 sps:$4 sm:$0xff]   ;;  %v2850_v14 = vcombine.low %v50_v61, %v58_v62 }
 0x119   :  { %1523 = vmatprep.mubr.bf16.mxu0 %v3256_v4  ;;  %1596 = vmatprep.mubr.bf16.mxu1 %v3256_v4  ;;  %v2818_v4 = vcombine.low %v180_v43, %v188_v45  ;;  %v2834_v43 = vcombine.low %v244_v23, %v252_v27  ;;  %v2839_v45 = vcombine.high %v260_v35, %v268_v37  ;;  %v83_v23 = vld [vmem:[#allocation2 + $0x188] sm:$0xff] }
 0x11a   :  { %v2852_v15 = vcombine.low %v51_v1, %v59_v63  ;;  %v2856_v28 = vcombine.low %v67_v11, %v75_v12 }
 0x11b   :  { %1506 = vmatpush1.bf16.msra.mxu0 %v2810_v39  ;;  %1579 = vmatpush1.bf16.msra.mxu1 %v2812_v40  ;;  %v269_v39 = vld [vmem:[#allocation2 + $0x758] sm:$0xff]  ;;  %v3404_v40 = vpack.c.bf16 %v692_v36, %v688_v26  ;;  %v91_v26 = vld [vmem:[#allocation2 + $0x1c8] sm:$0xff] }
 0x11c   :  { %1507 = vmatprep.subr.bf16.mxu0 %v2815_v41  ;;  %1580 = vmatprep.subr.bf16.mxu1 %v2817_v42  ;;  %v694_v41 = vpop.f32.mrb[15].mxu1  ;;  %v2841_v46 = vcombine.high %v261_v38, %v269_v39 }
 0x11d   :  { %v3406_v42 = vpack.c.bf16 %v694_v41, %v690_v32  ;;  %v106_v32 = vld [vmem:[#allocation2 + $0x240] sm:$0xff] }
 0x11e   :  { %v114_v41 = vld [vmem:[#allocation2 + $0x280] sm:$0xff] }
 0x11f   :  { %1508 = vmatpush1.bf16.msra.mxu0 %v2814_v47  ;;  %1581 = vmatpush1.bf16.msra.mxu1 %v2816_v48  ;;  %v284_v47 = vld [vmem:[#allocation2 + $0x7d0] sm:$0xff]  ;;  %v277_v48 = vld [vmem:[#allocation2 + $0x798] sm:$0xff] }
 0x120   :  { %1509 = vmatprep.subr.bf16.mxu0 %v2819_v50  ;;  %1582 = vmatprep.subr.bf16.mxu1 %v2821_v51  ;;  %v2838_v50 = vcombine.low %v260_v35, %v268_v37  ;;  %v2840_v51 = vcombine.low %v261_v38, %v269_v39  ;;  %v2843_v52 = vcombine.high %v276_v3, %v284_v47  ;;  %v3425_v35 = vld [vmem:[%s3682_s0 + $0x10] ss:$8 sps:$4 sm:$0xff]  }
 0x121   :  { %v2845_v53 = vcombine.high %v277_v48, %v285_v49  ;;  %v2860_v37 = vcombine.low %v83_v23, %v91_v26 }
 0x123   :  { %1510 = vmatpush1.bf16.msra.mxu0 %v2818_v4  ;;  %1583 = vmatpush1.bf16.msra.mxu1 %v2820_v59  ;;  %v2842_v4 = vcombine.low %v276_v3, %v284_v47  ;;  %v2844_v59 = vcombine.low %v277_v48, %v285_v49 }
 0x124   :  { %1511 = vmatprep.subr.bf16.mxu0 %v2823_v25  ;;  %1584 = vmatprep.subr.bf16.mxu1 %v2825_v60  ;;  %v2847_v25 = vcombine.high %v34_v54, %v42_v55  ;;  %v2849_v60 = vcombine.high %v35_v56, %v43_v57  ;;  %v3439_v54 = vld [vmem:[%s3682_s0 + $0x20] ss:$8 sps:$4 sm:$0xff]  }
 0x127   :  { %1512 = vmatpush1.bf16.msra.mxu0 %v2822_v5  ;;  %1585 = vmatpush1.bf16.msra.mxu1 %v2824_v6  ;;  %v2848_v5 = vcombine.low %v35_v56, %v43_v57  ;;  %v2851_v6 = vcombine.high %v50_v61, %v58_v62  ;;  %v147_v61 = vld [vmem:[#allocation2 + $0x388] sm:$0xff] }
 0x128   :  { %1513 = vmatprep.subr.bf16.mxu0 %v2827_v9  ;;  %1586 = vmatprep.subr.bf16.mxu1 %v2829_v10  ;;  %v66_v9 = vld [vmem:[#allocation2 + $0x100] sm:$0xff]  ;;  %v155_v62 = vld [vmem:[#allocation2 + $0x3c8] sm:$0xff] }
 0x129   :  { %v74_v10 = vld [vmem:[#allocation2 + $0x140] sm:$0xff] }
 0x12a   :  { %v2855_v17 = vcombine.high %v66_v9, %v74_v10  ;;  %v2854_v27 = vcombine.low %v66_v9, %v74_v10  ;;  %v163_v9 = vld [vmem:[#allocation2 + $0x408] sm:$0xff] }
 0x12b   :  { %1514 = vmatpush1.bf16.msra.mxu0 %v2826_v19  ;;  %1587 = vmatpush1.bf16.msra.mxu1 %v2828_v20  ;;  %v2857_v19 = vcombine.high %v67_v11, %v75_v12  ;;  %v82_v20 = vld [vmem:[#allocation2 + $0x180] sm:$0xff]  ;;  %v171_v10 = vld [vmem:[#allocation2 + $0x448] sm:$0xff]  ;;  %v3453_v11 = vld [vmem:[%s3682_s0 + $0x30] ss:$8 sps:$4 sm:$0xff]  }
 0x12c   :  { %1515 = vmatprep.subr.bf16.mxu0 %v2831_v21  ;;  %1588 = vmatprep.subr.bf16.mxu1 %v2833_v22  ;;  %v3418_v21 = vld [vmem:[%s3682_s0 + $0x14] ss:$8 sps:$4 sm:$0xff]   ;;  %v90_v22 = vld [vmem:[#allocation2 + $0x1c0] sm:$0xff] }
 0x12d   :  { %v2859_v29 = vcombine.high %v82_v20, %v90_v22  ;;  %v2858_v36 = vcombine.low %v82_v20, %v90_v22  ;;  %v186_v20 = vld [vmem:[#allocation2 + $0x4c0] sm:$0xff]  ;;  %v179_v22 = vld [vmem:[#allocation2 + $0x488] sm:$0xff] }
 0x12f   :  { %1516 = vmatpush1.bf16.msra.mxu0 %v2830_v30  ;;  %1589 = vmatpush1.bf16.msra.mxu1 %v2832_v31  ;;  %v2861_v30 = vcombine.high %v83_v23, %v91_v26  ;;  %v98_v31 = vld [vmem:[#allocation2 + $0x200] sm:$0xff]  ;;  %v187_v23 = vld [vmem:[#allocation2 + $0x4c8] sm:$0xff] }
 0x130   :  { %1517 = vmatprep.subr.bf16.mxu0 %v2835_v33  ;;  %1590 = vmatprep.subr.bf16.mxu1 %v2837_v34  ;;  %v99_v33 = vld [vmem:[#allocation2 + $0x208] sm:$0xff]  ;;  %v2863_v38 = vcombine.high %v98_v31, %v106_v32  ;;  %v2862_v3 = vcombine.low %v98_v31, %v106_v32  ;;  %v202_v31 = vld [vmem:[#allocation2 + $0x540] sm:$0xff] }
 0x131   :  { %v107_v34 = vld [vmem:[#allocation2 + $0x248] sm:$0xff] }
 0x132   :  { %v2865_v39 = vcombine.high %v99_v33, %v107_v34  ;;  %v2864_v47 = vcombine.low %v99_v33, %v107_v34  ;;  %v195_v32 = vld [vmem:[#allocation2 + $0x508] sm:$0xff] }
 0x133   :  { %1518 = vmatpush1.bf16.msra.mxu0 %v2834_v43  ;;  %1591 = vmatpush1.bf16.msra.mxu1 %v2836_v44  ;;  %v3432_v43 = vld [vmem:[%s3682_s0 + $0x24] ss:$8 sps:$4 sm:$0xff]  }
 0x134   :  { %1519 = vmatprep.subr.bf16.mxu0 %v2839_v45  ;;  %1592 = vmatprep.subr.bf16.mxu1 %v2841_v46  ;;  %v122_v44 = vld [vmem:[#allocation2 + $0x2c0] sm:$0xff]  ;;  %v115_v45 = vld [vmem:[#allocation2 + $0x288] sm:$0xff] }
 0x135   :  { %v123_v46 = vld [vmem:[#allocation2 + $0x2c8] sm:$0xff]  ;;  %v2867_v48 = vcombine.high %v114_v41, %v122_v44  ;;  %v2866_v55 = vcombine.low %v114_v41, %v122_v44 }
 0x136   :  { %v2869_v49 = vcombine.high %v115_v45, %v123_v46  ;;  %v2868_v56 = vcombine.low %v115_v45, %v123_v46  ;;  %v203_v33 = vld [vmem:[#allocation2 + $0x548] sm:$0xff] }
 0x137   :  { %1520 = vmatpush1.bf16.msra.mxu0 %v2838_v50  ;;  %1593 = vmatpush1.bf16.msra.mxu1 %v2840_v51  ;;  %v130_v50 = vld [vmem:[#allocation2 + $0x300] sm:$0xff]  ;;  %v211_v41 = vld [vmem:[#allocation2 + $0x588] sm:$0xff]  ;;  %v2888_v46 = vcombine.low %v195_v32, %v203_v33 }
 0x138   :  { %1521 = vmatprep.subr.bf16.mxu0 %v2843_v52  ;;  %1594 = vmatprep.subr.bf16.mxu1 %v2845_v53  ;;  %v138_v51 = vld [vmem:[#allocation2 + $0x340] sm:$0xff]  ;;  %v131_v52 = vld [vmem:[#allocation2 + $0x308] sm:$0xff] }
 0x139   :  { %v139_v53 = vld [vmem:[#allocation2 + $0x348] sm:$0xff]  ;;  %v2871_v57 = vcombine.high %v130_v50, %v138_v51  ;;  %v2870_v1 = vcombine.low %v130_v50, %v138_v51 }
 0x13a   :  { %v2872_v63 = vcombine.low %v131_v52, %v139_v53  ;;  %v219_v44 = vld [vmem:[#allocation2 + $0x5c8] sm:$0xff] }
 0x13b   :  { %1522 = vmatpush1.bf16.msra.mxu0 %v2842_v4  ;;  %1595 = vmatpush1.bf16.msra.mxu1 %v2844_v59  ;;  %v2873_v4 = vcombine.high %v131_v52, %v139_v53  ;;  %v146_v59 = vld [vmem:[#allocation2 + $0x380] sm:$0xff]  ;;  %v227_v50 = vld [vmem:[#allocation2 + $0x608] sm:$0xff]  ;;  %v2892_v53 = vcombine.low %v211_v41, %v219_v44 }
 0x13c   :  { %1957 = vmatprep.subr.bf16.mxu0 %v2847_v25  ;;  %2030 = vmatprep.subr.bf16.mxu1 %v2849_v60  ;;  %v3446_v25 = vld [vmem:[%s3682_s0 + $0x34] ss:$8 sps:$4 sm:$0xff]   ;;  %v154_v60 = vld [vmem:[#allocation2 + $0x3c0] sm:$0xff]  ;;  %v235_v51 = vld [vmem:[#allocation2 + $0x648] sm:$0xff] }
 0x13d   :  { %v2874_v12 = vcombine.low %v146_v59, %v154_v60 }
 0x13e   :  { %1524 = vmatmul.mubr.bf16.vlgmr.msra.gmra.mrb[16].mxu0 %v3411_v13  ;;  %1597 = vmatmul.mubr.bf16.vlgmr.msra.gmra.mrb[16].mxu1 %v3411_v13 }
 0x13f   :  { %1958 = vmatpush1.bf16.msra.mxu0 %v2846_v0  ;;  %2031 = vmatpush1.bf16.msra.mxu1 %v2848_v5  ;;  %v2875_v0 = vcombine.high %v146_v59, %v154_v60  ;;  %v2877_v5 = vcombine.high %v147_v61, %v155_v62  ;;  %v243_v59 = vld [vmem:[#allocation2 + $0x688] sm:$0xff] }
 0x140   :  { %1959 = vmatprep.subr.bf16.mxu0 %v2851_v6  ;;  %2032 = vmatprep.subr.bf16.mxu1 %v2853_v8  ;;  %v162_v6 = vld [vmem:[#allocation2 + $0x400] sm:$0xff]  ;;  %v251_v60 = vld [vmem:[#allocation2 + $0x6c8] sm:$0xff] }
 0x141   :  { %1533 = vmatprep.mubr.bf16.mxu0 %v3418_v21  ;;  %1606 = vmatprep.mubr.bf16.mxu1 %v3418_v21  ;;  %v170_v8 = vld [vmem:[#allocation2 + $0x440] sm:$0xff] }
 0x142   :  { %v2878_v26 = vcombine.low %v162_v6, %v170_v8 }
 0x143   :  { %1960 = vmatpush1.bf16.msra.mxu0 %v2850_v14  ;;  %2033 = vmatpush1.bf16.msra.mxu1 %v2852_v15  ;;  %v2876_v14 = vcombine.low %v147_v61, %v155_v62  ;;  %v2879_v15 = vcombine.high %v162_v6, %v170_v8  ;;  %v2896_v62 = vcombine.low %v227_v50, %v235_v51  ;;  %v259_v6 = vld [vmem:[#allocation2 + $0x708] sm:$0xff] }
 0x144   :  { %1961 = vmatprep.subr.bf16.mxu0 %v2855_v17  ;;  %2034 = vmatprep.subr.bf16.mxu1 %v2857_v19  ;;  %v2881_v17 = vcombine.high %v163_v9, %v171_v10  ;;  %v178_v19 = vld [vmem:[#allocation2 + $0x480] sm:$0xff]  ;;  %v267_v8 = vld [vmem:[#allocation2 + $0x748] sm:$0xff] }
 0x145   :  { %v2882_v34 = vcombine.low %v178_v19, %v186_v20 }
 0x146   :  { %1534 = vmatmul.mubr.bf16.gmra.mrb[20].mxu0 %v3425_v35  ;;  %1607 = vmatmul.mubr.bf16.gmra.mrb[20].mxu1 %v3425_v35 }
 0x147   :  { %1962 = vmatpush1.bf16.msra.mxu0 %v2854_v27  ;;  %2035 = vmatpush1.bf16.msra.mxu1 %v2856_v28  ;;  %v2880_v27 = vcombine.low %v163_v9, %v171_v10  ;;  %v2883_v28 = vcombine.high %v178_v19, %v186_v20  ;;  %v2900_v10 = vcombine.low %v243_v59, %v251_v60  ;;  %v275_v19 = vld [vmem:[#allocation2 + $0x788] sm:$0xff] }
 0x148   :  { %1963 = vmatprep.subr.bf16.mxu0 %v2859_v29  ;;  %2036 = vmatprep.subr.bf16.mxu1 %v2861_v30  ;;  %v2885_v29 = vcombine.high %v179_v22, %v187_v23  ;;  %v194_v30 = vld [vmem:[#allocation2 + $0x500] sm:$0xff]  ;;  %v283_v20 = vld [vmem:[#allocation2 + $0x7c8] sm:$0xff] }
 0x149   :  { %1543 = vmatprep.mubr.bf16.mxu0 %v3432_v43  ;;  %1616 = vmatprep.mubr.bf16.mxu1 %v3432_v43  ;;  %v2886_v45 = vcombine.low %v194_v30, %v202_v31 }
 0x14b   :  { %1964 = vmatpush1.bf16.msra.mxu0 %v2858_v36  ;;  %2037 = vmatpush1.bf16.msra.mxu1 %v2860_v37  ;;  %v2884_v36 = vcombine.low %v179_v22, %v187_v23  ;;  %v2887_v37 = vcombine.high %v194_v30, %v202_v31  ;;  %v2904_v23 = vcombine.low %v259_v6, %v267_v8  ;;  %v39_v30 = vld [vmem:[#allocation2 + $0x28] sm:$0xff] }
 0x14c   :  { %1965 = vmatprep.subr.bf16.mxu0 %v2863_v38  ;;  %2038 = vmatprep.subr.bf16.mxu1 %v2865_v39  ;;  %v210_v38 = vld [vmem:[#allocation2 + $0x580] sm:$0xff]  ;;  %v47_v31 = vld [vmem:[#allocation2 + $0x68] sm:$0xff] }
 0x14d   :  { %v218_v39 = vld [vmem:[#allocation2 + $0x5c0] sm:$0xff] }
 0x14e   :  { %1544 = vmatmul.mubr.bf16.gmra.mrb[24].mxu0 %v3439_v54  ;;  %1617 = vmatmul.mubr.bf16.gmra.mrb[24].mxu1 %v3439_v54  ;;  %v2890_v52 = vcombine.low %v210_v38, %v218_v39 }
 0x14f   :  { %1966 = vmatpush1.bf16.msra.mxu0 %v2862_v3  ;;  %2039 = vmatpush1.bf16.msra.mxu1 %v2864_v47  ;;  %v2891_v3 = vcombine.high %v210_v38, %v218_v39  ;;  %v2893_v47 = vcombine.high %v211_v41, %v219_v44  ;;  %v55_v38 = vld [vmem:[#allocation2 + $0xa8] sm:$0xff]  ;;  %v2912_v44 = vcombine.low %v39_v30, %v47_v31 }
 0x150   :  { %1967 = vmatprep.subr.bf16.mxu0 %v2867_v48  ;;  %2040 = vmatprep.subr.bf16.mxu1 %v2869_v49  ;;  %v226_v48 = vld [vmem:[#allocation2 + $0x600] sm:$0xff]  ;;  %v63_v39 = vld [vmem:[#allocation2 + $0xe8] sm:$0xff] }
 0x151   :  { %1553 = vmatprep.mubr.bf16.mxu0 %v3446_v25  ;;  %1626 = vmatprep.mubr.bf16.mxu1 %v3446_v25  ;;  %v234_v49 = vld [vmem:[#allocation2 + $0x640] sm:$0xff] }
 0x152   :  { %v2894_v61 = vcombine.low %v226_v48, %v234_v49 }
 0x153   :  { %1968 = vmatpush1.bf16.msra.mxu0 %v2866_v55  ;;  %2041 = vmatpush1.bf16.msra.mxu1 %v2868_v56  ;;  %v2895_v55 = vcombine.high %v226_v48, %v234_v49  ;;  %v2897_v56 = vcombine.high %v227_v50, %v235_v51  ;;  %v71_v48 = vld [vmem:[#allocation2 + $0x128] sm:$0xff]  ;;  %v2916_v51 = vcombine.low %v55_v38, %v63_v39 }
 0x154   :  { %1969 = vmatprep.subr.bf16.mxu0 %v2871_v57  ;;  %2042 = vmatprep.subr.bf16.mxu1 %v2873_v4  ;;  %v242_v57 = vld [vmem:[#allocation2 + $0x680] sm:$0xff]  ;;  %v79_v49 = vld [vmem:[#allocation2 + $0x168] sm:$0xff] }
 0x155   :  { %v250_v4 = vld [vmem:[#allocation2 + $0x6c0] sm:$0xff] }
 0x156   :  { %1554 = vmatmul.mubr.bf16.gmra.mrb[28].mxu0 %v3453_v11  ;;  %1627 = vmatmul.mubr.bf16.gmra.mrb[28].mxu1 %v3453_v11  ;;  %v2898_v9 = vcombine.low %v242_v57, %v250_v4 }
 0x157   :  { %1970 = vmatpush1.bf16.msra.mxu0 %v2870_v1  ;;  %2043 = vmatpush1.bf16.msra.mxu1 %v2872_v63  ;;  %v2899_v1 = vcombine.high %v242_v57, %v250_v4  ;;  %v2901_v63 = vcombine.high %v243_v59, %v251_v60  ;;  %v87_v57 = vld [vmem:[#allocation2 + $0x1a8] sm:$0xff] }
 0x158   :  { %1971 = vmatprep.subr.bf16.mxu0 %v2875_v0  ;;  %2044 = vmatprep.subr.bf16.mxu1 %v2877_v5  ;;  %v258_v0 = vld [vmem:[#allocation2 + $0x700] sm:$0xff]  ;;  %v95_v4 = vld [vmem:[#allocation2 + $0x1e8] sm:$0xff] }
 0x159   :  { %1989 = vmatprep.mubr.bf16.mxu0 %v3392_v2  ;;  %2062 = vmatprep.mubr.bf16.mxu1 %v3392_v2  ;;  %v2889_v2 = vcombine.high %v195_v32, %v203_v33  ;;  %v266_v5 = vld [vmem:[#allocation2 + $0x740] sm:$0xff]  ;;  %v2908_v33 = vcombine.low %v275_v19, %v283_v20 }
 0x15a   :  { %v2902_v22 = vcombine.low %v258_v0, %v266_v5 }
 0x15b   :  { %1972 = vmatpush1.bf16.msra.mxu0 %v2874_v12  ;;  %2045 = vmatpush1.bf16.msra.mxu1 %v2876_v14  ;;  %v2903_v12 = vcombine.high %v258_v0, %v266_v5  ;;  %v2905_v14 = vcombine.high %v259_v6, %v267_v8  ;;  %v111_v0 = vld [vmem:[#allocation2 + $0x268] sm:$0xff] }
 0x15c   :  { %1973 = vmatprep.subr.bf16.mxu0 %v2879_v15  ;;  %2046 = vmatprep.subr.bf16.mxu1 %v2881_v17  ;;  %v274_v15 = vld [vmem:[#allocation2 + $0x780] sm:$0xff] }
 0x15d   :  { %v282_v17 = vld [vmem:[#allocation2 + $0x7c0] sm:$0xff] }
 0x15e   :  { %v2906_v32 = vcombine.low %v274_v15, %v282_v17 }
 0x15f   :  { %1974 = vmatpush1.bf16.msra.mxu0 %v2878_v26  ;;  %2047 = vmatpush1.bf16.msra.mxu1 %v2880_v27  ;;  %v2907_v26 = vcombine.high %v274_v15, %v282_v17  ;;  %v2909_v27 = vcombine.high %v275_v19, %v283_v20  ;;  %v134_v20 = vld [vmem:[#allocation2 + $0x320] sm:$0xff] }
 0x160   :  { %1975 = vmatprep.subr.bf16.mxu0 %v2883_v28  ;;  %2048 = vmatprep.subr.bf16.mxu1 %v2885_v29  ;;  %v38_v28 = vld [vmem:[#allocation2 + $0x20] sm:$0xff] }
 0x161   :  { %v46_v29 = vld [vmem:[#allocation2 + $0x60] sm:$0xff] }
 0x162   :  { %v2910_v41 = vcombine.low %v38_v28, %v46_v29 }
 0x163   :  { %1976 = vmatpush1.bf16.msra.mxu0 %v2882_v34  ;;  %2049 = vmatpush1.bf16.msra.mxu1 %v2884_v36  ;;  %v2911_v34 = vcombine.high %v38_v28, %v46_v29  ;;  %v2913_v36 = vcombine.high %v39_v30, %v47_v31  ;;  %v150_v30 = vld [vmem:[#allocation2 + $0x3a0] sm:$0xff] }
 0x164   :  { %1977 = vmatprep.subr.bf16.mxu0 %v2887_v37  ;;  %2050 = vmatprep.subr.bf16.mxu1 %v2889_v2  ;;  %v54_v37 = vld [vmem:[#allocation2 + $0xa0] sm:$0xff] }
 0x165   :  { %v62_v2 = vld [vmem:[#allocation2 + $0xe0] sm:$0xff] }
 0x166   :  { %v2914_v50 = vcombine.low %v54_v37, %v62_v2  ;;  %v158_v31 = vld [vmem:[#allocation2 + $0x3e0] sm:$0xff] }
 0x167   :  { %1978 = vmatpush1.bf16.msra.mxu0 %v2886_v45  ;;  %2051 = vmatpush1.bf16.msra.mxu1 %v2888_v46  ;;  %v2915_v45 = vcombine.high %v54_v37, %v62_v2  ;;  %v2917_v46 = vcombine.high %v55_v38, %v63_v39  ;;  %v166_v2 = vld [vmem:[#allocation2 + $0x420] sm:$0xff]  ;;  %v167_v39 = vld [vmem:[#allocation2 + $0x428] sm:$0xff] }
 0x168   :  { %1979 = vmatprep.subr.bf16.mxu0 %v2891_v3  ;;  %2052 = vmatprep.subr.bf16.mxu1 %v2893_v47  ;;  %v70_v3 = vld [vmem:[#allocation2 + $0x120] sm:$0xff] }
 0x169   :  { %v78_v47 = vld [vmem:[#allocation2 + $0x160] sm:$0xff] }
 0x16a   :  { %v2918_v59 = vcombine.low %v70_v3, %v78_v47  ;;  %v174_v38 = vld [vmem:[#allocation2 + $0x460] sm:$0xff] }
 0x16b   :  { %1980 = vmatpush1.bf16.msra.mxu0 %v2890_v52  ;;  %2053 = vmatpush1.bf16.msra.mxu1 %v2892_v53  ;;  %v2919_v52 = vcombine.high %v70_v3, %v78_v47  ;;  %v2921_v53 = vcombine.high %v71_v48, %v79_v49  ;;  %v182_v3 = vld [vmem:[#allocation2 + $0x4a0] sm:$0xff] }
 0x16c   :  { %1981 = vmatprep.subr.bf16.mxu0 %v2895_v55  ;;  %2054 = vmatprep.subr.bf16.mxu1 %v2897_v56  ;;  %v86_v55 = vld [vmem:[#allocation2 + $0x1a0] sm:$0xff] }
 0x16d   :  { %v94_v56 = vld [vmem:[#allocation2 + $0x1e0] sm:$0xff] }
 0x16e   :  { %v2923_v60 = vcombine.high %v86_v55, %v94_v56  ;;  %v2922_v5 = vcombine.low %v86_v55, %v94_v56  ;;  %v190_v47 = vld [vmem:[#allocation2 + $0x4e0] sm:$0xff] }
 0x16f   :  { %1982 = vmatpush1.bf16.msra.mxu0 %v2894_v61  ;;  %2055 = vmatpush1.bf16.msra.mxu1 %v2896_v62  ;;  %v2925_v61 = vcombine.high %v87_v57, %v95_v4  ;;  %v102_v62 = vld [vmem:[#allocation2 + $0x220] sm:$0xff] }
 0x170   :  { %1983 = vmatprep.subr.bf16.mxu0 %v2899_v1  ;;  %2056 = vmatprep.subr.bf16.mxu1 %v2901_v63  ;;  %v110_v1 = vld [vmem:[#allocation2 + $0x260] sm:$0xff]  ;;  %v103_v63 = vld [vmem:[#allocation2 + $0x228] sm:$0xff] }
 0x171   :  { %v2927_v6 = vcombine.high %v102_v62, %v110_v1  ;;  %v2929_v8 = vcombine.high %v103_v63, %v111_v0  ;;  %v2926_v15 = vcombine.low %v102_v62, %v110_v1  ;;  %v198_v55 = vld [vmem:[#allocation2 + $0x520] sm:$0xff] }
 0x172   :  { %v206_v56 = vld [vmem:[#allocation2 + $0x560] sm:$0xff] }
 0x173   :  { %1984 = vmatpush1.bf16.msra.mxu0 %v2898_v9  ;;  %2057 = vmatpush1.bf16.msra.mxu1 %v2900_v10  ;;  %v118_v9 = vld [vmem:[#allocation2 + $0x2a0] sm:$0xff] }
 0x174   :  { %1985 = vmatprep.subr.bf16.mxu0 %v2903_v12  ;;  %2058 = vmatprep.subr.bf16.mxu1 %v2905_v14  ;;  %v126_v10 = vld [vmem:[#allocation2 + $0x2e0] sm:$0xff]  ;;  %v119_v12 = vld [vmem:[#allocation2 + $0x2a8] sm:$0xff] }
 0x175   :  { %v127_v14 = vld [vmem:[#allocation2 + $0x2e8] sm:$0xff]  ;;  %v2931_v17 = vcombine.high %v118_v9, %v126_v10  ;;  %v214_v62 = vld [vmem:[#allocation2 + $0x5a0] sm:$0xff] }
 0x176   :  { %v2933_v19 = vcombine.high %v119_v12, %v127_v14  ;;  %v222_v1 = vld [vmem:[#allocation2 + $0x5e0] sm:$0xff] }
 0x177   :  { %1986 = vmatpush1.bf16.msra.mxu0 %v2902_v22  ;;  %2059 = vmatpush1.bf16.msra.mxu1 %v2904_v23  ;;  %v142_v22 = vld [vmem:[#allocation2 + $0x360] sm:$0xff]  ;;  %v135_v23 = vld [vmem:[#allocation2 + $0x328] sm:$0xff] }
 0x178   :  { %1987 = vmatprep.subr.bf16.mxu0 %v2907_v26  ;;  %2060 = vmatprep.subr.bf16.mxu1 %v2909_v27  ;;  %v143_v26 = vld [vmem:[#allocation2 + $0x368] sm:$0xff]  ;;  %v2930_v27 = vcombine.low %v118_v9, %v126_v10  ;;  %v2935_v28 = vcombine.high %v134_v20, %v142_v22  ;;  %v230_v9 = vld [vmem:[#allocation2 + $0x620] sm:$0xff] }
 0x179   :  { %v2937_v29 = vcombine.high %v135_v23, %v143_v26  ;;  %v238_v10 = vld [vmem:[#allocation2 + $0x660] sm:$0xff] }
 0x17b   :  { %1988 = vmatpush1.bf16.msra.mxu0 %v2906_v32  ;;  %2061 = vmatpush1.bf16.msra.mxu1 %v2908_v33  ;;  %v151_v32 = vld [vmem:[#allocation2 + $0x3a8] sm:$0xff] }
 0x17c   :  { %2423 = vmatprep.subr.bf16.mxu0 %v2911_v34  ;;  %2496 = vmatprep.subr.bf16.mxu1 %v2913_v36  ;;  %v159_v33 = vld [vmem:[#allocation2 + $0x3e8] sm:$0xff]  ;;  %v2934_v34 = vcombine.low %v134_v20, %v142_v22  ;;  %v2939_v36 = vcombine.high %v150_v30, %v158_v31  ;;  %v246_v20 = vld [vmem:[#allocation2 + $0x6a0] sm:$0xff] }
 0x17d   :  { %v2941_v37 = vcombine.high %v151_v32, %v159_v33  ;;  %v254_v22 = vld [vmem:[#allocation2 + $0x6e0] sm:$0xff] }
 0x17e   :  { %1990 = vmatmul.mubr.bf16.vlgmr.msra.gmra.mrb[32].mxu0 %v3390_v24  ;;  %2063 = vmatmul.mubr.bf16.vlgmr.msra.gmra.mrb[32].mxu1 %v3390_v24  ;;  %v2920_v24 = vcombine.low %v71_v48, %v79_v49  ;;  %v183_v48 = vld [vmem:[#allocation2 + $0x4a8] sm:$0xff] }
 0x17f   :  { %2424 = vmatpush1.bf16.msra.mxu0 %v2910_v41  ;;  %2497 = vmatpush1.bf16.msra.mxu1 %v2912_v44  ;;  %v175_v41 = vld [vmem:[#allocation2 + $0x468] sm:$0xff]  ;;  %v2938_v44 = vcombine.low %v150_v30, %v158_v31  ;;  %v262_v30 = vld [vmem:[#allocation2 + $0x720] sm:$0xff] }
 0x180   :  { %2425 = vmatprep.subr.bf16.mxu0 %v2915_v45  ;;  %2498 = vmatprep.subr.bf16.mxu1 %v2917_v46  ;;  %v2943_v45 = vcombine.high %v166_v2, %v174_v38  ;;  %v2945_v46 = vcombine.high %v167_v39, %v175_v41  ;;  %v191_v49 = vld [vmem:[#allocation2 + $0x4e8] sm:$0xff]  ;;  %v270_v31 = vld [vmem:[#allocation2 + $0x760] sm:$0xff] }
 0x181   :  { %1999 = vmatprep.mubr.bf16.mxu0 %v3398_v58  ;;  %2072 = vmatprep.mubr.bf16.mxu1 %v3398_v58  ;;  %v2924_v58 = vcombine.low %v87_v57, %v95_v4  ;;  %v199_v57 = vld [vmem:[#allocation2 + $0x528] sm:$0xff] }
 0x182   :  { %v207_v4 = vld [vmem:[#allocation2 + $0x568] sm:$0xff] }
 0x183   :  { %2426 = vmatpush1.bf16.msra.mxu0 %v2914_v50  ;;  %2499 = vmatpush1.bf16.msra.mxu1 %v2916_v51  ;;  %v3190_v50 = vld [vmem:[%s3682_s0 + $0x4] ss:$8 sps:$4 sm:$0xff]   ;;  %v2944_v51 = vcombine.low %v167_v39, %v175_v41 }
 0x184   :  { %2427 = vmatprep.subr.bf16.mxu0 %v2919_v52  ;;  %2500 = vmatprep.subr.bf16.mxu1 %v2921_v53  ;;  %v2947_v52 = vcombine.high %v182_v3, %v190_v47  ;;  %v2949_v53 = vcombine.high %v183_v48, %v191_v49  ;;  %v279_v39 = vld [vmem:[#allocation2 + $0x7a8] sm:$0xff] }
 0x185   :  { %v287_v41 = vld [vmem:[#allocation2 + $0x7e8] sm:$0xff] }
 0x186   :  { %2000 = vmatmul.mubr.bf16.gmra.mrb[36].mxu0 %v3396_v7  ;;  %2073 = vmatmul.mubr.bf16.gmra.mrb[36].mxu1 %v3396_v7  ;;  %v2928_v7 = vcombine.low %v103_v63, %v111_v0  ;;  %v215_v63 = vld [vmem:[#allocation2 + $0x5a8] sm:$0xff] }
 0x187   :  { %2428 = vmatpush1.bf16.msra.mxu0 %v2918_v59  ;;  %2501 = vmatpush1.bf16.msra.mxu1 %v2920_v24  ;;  %v2946_v59 = vcombine.low %v182_v3, %v190_v47  ;;  %v2948_v24 = vcombine.low %v183_v48, %v191_v49  ;;  %v223_v0 = vld [vmem:[#allocation2 + $0x5e8] sm:$0xff]  ;;  %v2972_v47 = vcombine.low %v279_v39, %v287_v41 }
 0x188   :  { %2429 = vmatprep.subr.bf16.mxu0 %v2923_v60  ;;  %2502 = vmatprep.subr.bf16.mxu1 %v2925_v61  ;;  %v2951_v60 = vcombine.high %v198_v55, %v206_v56  ;;  %v2953_v61 = vcombine.high %v199_v57, %v207_v4 }
 0x189   :  { %2009 = vmatprep.mubr.bf16.mxu0 %v3402_v18  ;;  %2082 = vmatprep.mubr.bf16.mxu1 %v3402_v18  ;;  %v2932_v18 = vcombine.low %v119_v12, %v127_v14  ;;  %v231_v12 = vld [vmem:[#allocation2 + $0x628] sm:$0xff] }
 0x18a   :  { %v239_v14 = vld [vmem:[#allocation2 + $0x668] sm:$0xff] }
 0x18b   :  { %2430 = vmatpush1.bf16.msra.mxu0 %v2922_v5  ;;  %2503 = vmatpush1.bf16.msra.mxu1 %v2924_v58  ;;  %v2950_v5 = vcombine.low %v198_v55, %v206_v56  ;;  %v2952_v58 = vcombine.low %v199_v57, %v207_v4 }
 0x18c   :  { %2431 = vmatprep.subr.bf16.mxu0 %v2927_v6  ;;  %2504 = vmatprep.subr.bf16.mxu1 %v2929_v8  ;;  %v2955_v6 = vcombine.high %v214_v62, %v222_v1  ;;  %v2957_v8 = vcombine.high %v215_v63, %v223_v0 }
 0x18e   :  { %2010 = vmatmul.mubr.bf16.gmra.mrb[40].mxu0 %v3400_v16  ;;  %2083 = vmatmul.mubr.bf16.gmra.mrb[40].mxu1 %v3400_v16  ;;  %v2936_v16 = vcombine.low %v135_v23, %v143_v26  ;;  %v247_v23 = vld [vmem:[#allocation2 + $0x6a8] sm:$0xff] }
 0x18f   :  { %2432 = vmatpush1.bf16.msra.mxu0 %v2926_v15  ;;  %2505 = vmatpush1.bf16.msra.mxu1 %v2928_v7  ;;  %v2954_v15 = vcombine.low %v214_v62, %v222_v1  ;;  %v2956_v7 = vcombine.low %v215_v63, %v223_v0  ;;  %v255_v26 = vld [vmem:[#allocation2 + $0x6e8] sm:$0xff] }
 0x190   :  { %2433 = vmatprep.subr.bf16.mxu0 %v2931_v17  ;;  %2506 = vmatprep.subr.bf16.mxu1 %v2933_v19  ;;  %v2959_v17 = vcombine.high %v230_v9, %v238_v10  ;;  %v2961_v19 = vcombine.high %v231_v12, %v239_v14 }
 0x191   :  { %2019 = vmatprep.mubr.bf16.mxu0 %v3406_v42  ;;  %2092 = vmatprep.mubr.bf16.mxu1 %v3406_v42  ;;  %v2940_v42 = vcombine.low %v151_v32, %v159_v33  ;;  %v263_v32 = vld [vmem:[#allocation2 + $0x728] sm:$0xff] }
 0x192   :  { %v271_v33 = vld [vmem:[#allocation2 + $0x768] sm:$0xff] }
 0x193   :  { %2434 = vmatpush1.bf16.msra.mxu0 %v2930_v27  ;;  %2507 = vmatpush1.bf16.msra.mxu1 %v2932_v18  ;;  %v2958_v27 = vcombine.low %v230_v9, %v238_v10  ;;  %v2960_v18 = vcombine.low %v231_v12, %v239_v14 }
 0x194   :  { %2435 = vmatprep.subr.bf16.mxu0 %v2935_v28  ;;  %2508 = vmatprep.subr.bf16.mxu1 %v2937_v29  ;;  %v2963_v28 = vcombine.high %v246_v20, %v254_v22  ;;  %v2965_v29 = vcombine.high %v247_v23, %v255_v26 }
 0x196   :  { %2020 = vmatmul.mubr.bf16.gmra.mrb[44].mxu0 %v3404_v40  ;;  %2093 = vmatmul.mubr.bf16.gmra.mrb[44].mxu1 %v3404_v40  ;;  %v2942_v40 = vcombine.low %v166_v2, %v174_v38  ;;  %v278_v2 = vld [vmem:[#allocation2 + $0x7a0] sm:$0xff] }
 0x197   :  { %2436 = vmatpush1.bf16.msra.mxu0 %v2934_v34  ;;  %2509 = vmatpush1.bf16.msra.mxu1 %v2936_v16  ;;  %v2962_v34 = vcombine.low %v246_v20, %v254_v22  ;;  %v2964_v16 = vcombine.low %v247_v23, %v255_v26  ;;  %v286_v38 = vld [vmem:[#allocation2 + $0x7e0] sm:$0xff] }
 0x198   :  { %2437 = vmatprep.subr.bf16.mxu0 %v2939_v36  ;;  %2510 = vmatprep.subr.bf16.mxu1 %v2941_v37  ;;  %v2967_v36 = vcombine.high %v262_v30, %v270_v31  ;;  %v2969_v37 = vcombine.high %v263_v32, %v271_v33  ;;  %v2970_v3 = vcombine.low %v278_v2, %v286_v38 }
 0x199   :  { %2455 = vmatprep.mubr.bf16.mxu0 %v3190_v50  ;;  %2528 = vmatprep.mubr.bf16.mxu1 %v3190_v50 }
 0x19b   :  { %2438 = vmatpush1.bf16.msra.mxu0 %v2938_v44  ;;  %2511 = vmatpush1.bf16.msra.mxu1 %v2940_v42  ;;  %v2966_v44 = vcombine.low %v262_v30, %v270_v31  ;;  %v2968_v42 = vcombine.low %v263_v32, %v271_v33 }
 0x19c   :  { %2439 = vmatprep.subr.bf16.mxu0 %v2943_v45  ;;  %2512 = vmatprep.subr.bf16.mxu1 %v2945_v46  ;;  %v2971_v45 = vcombine.high %v278_v2, %v286_v38  ;;  %v2973_v46 = vcombine.high %v279_v39, %v287_v41 }
 0x19f   :  { %2440 = vmatpush1.bf16.msra.mxu0 %v2942_v40  ;;  %2513 = vmatpush1.bf16.msra.mxu1 %v2944_v51 }
 0x1a0   :  { %2441 = vmatprep.subr.bf16.mxu0 %v2947_v52  ;;  %2514 = vmatprep.subr.bf16.mxu1 %v2949_v53 }
 0x1a3   :  { %2442 = vmatpush1.bf16.msra.mxu0 %v2946_v59  ;;  %2515 = vmatpush1.bf16.msra.mxu1 %v2948_v24 }
 0x1a4   :  { %2443 = vmatprep.subr.bf16.mxu0 %v2951_v60  ;;  %2516 = vmatprep.subr.bf16.mxu1 %v2953_v61 }
 0x1a7   :  { %2444 = vmatpush1.bf16.msra.mxu0 %v2950_v5  ;;  %2517 = vmatpush1.bf16.msra.mxu1 %v2952_v58 }
 0x1a8   :  { %2445 = vmatprep.subr.bf16.mxu0 %v2955_v6  ;;  %2518 = vmatprep.subr.bf16.mxu1 %v2957_v8 }
 0x1ab   :  { %2446 = vmatpush1.bf16.msra.mxu0 %v2954_v15  ;;  %2519 = vmatpush1.bf16.msra.mxu1 %v2956_v7 }
 0x1ac   :  { %2447 = vmatprep.subr.bf16.mxu0 %v2959_v17  ;;  %2520 = vmatprep.subr.bf16.mxu1 %v2961_v19 }
 0x1af   :  { %2448 = vmatpush1.bf16.msra.mxu0 %v2958_v27  ;;  %2521 = vmatpush1.bf16.msra.mxu1 %v2960_v18 }
 0x1b0   :  { %2449 = vmatprep.subr.bf16.mxu0 %v2963_v28  ;;  %2522 = vmatprep.subr.bf16.mxu1 %v2965_v29 }
 0x1b3   :  { %2450 = vmatpush1.bf16.msra.mxu0 %v2962_v34  ;;  %2523 = vmatpush1.bf16.msra.mxu1 %v2964_v16 }
 0x1b4   :  { %2451 = vmatprep.subr.bf16.mxu0 %v2967_v36  ;;  %2524 = vmatprep.subr.bf16.mxu1 %v2969_v37 }
 0x1b7   :  { %2452 = vmatpush1.bf16.msra.mxu0 %v2966_v44  ;;  %2525 = vmatpush1.bf16.msra.mxu1 %v2968_v42 }
 0x1b8   :  { %2453 = vmatprep.subr.bf16.mxu0 %v2971_v45  ;;  %2526 = vmatprep.subr.bf16.mxu1 %v2973_v46 }
 0x1bb   :  { %2454 = vmatpush1.bf16.msra.mxu0 %v2970_v3  ;;  %2527 = vmatpush1.bf16.msra.mxu1 %v2972_v47 }
 0x1be   :  { %2456 = vmatmul.mubr.bf16.vlgmr.msra.gmra.mrb[32].mxu0 %v3411_v13  ;;  %2529 = vmatmul.mubr.bf16.vlgmr.msra.gmra.mrb[32].mxu1 %v3411_v13 }
 0x1bf   :  { %2465 = vmatprep.mubr.bf16.mxu0 %v3418_v21  ;;  %2538 = vmatprep.mubr.bf16.mxu1 %v3418_v21 }
 0x1c6   :  { %2466 = vmatmul.mubr.bf16.gmra.mrb[36].mxu0 %v3425_v35  ;;  %2539 = vmatmul.mubr.bf16.gmra.mrb[36].mxu1 %v3425_v35 }
 0x1c7   :  { %2475 = vmatprep.mubr.bf16.mxu0 %v3432_v43  ;;  %2548 = vmatprep.mubr.bf16.mxu1 %v3432_v43 }
 0x1ce   :  { %2476 = vmatmul.mubr.bf16.gmra.mrb[40].mxu0 %v3439_v54  ;;  %2549 = vmatmul.mubr.bf16.gmra.mrb[40].mxu1 %v3439_v54 }
 0x1cf   :  { %2485 = vmatprep.mubr.bf16.mxu0 %v3446_v25  ;;  %2558 = vmatprep.mubr.bf16.mxu1 %v3446_v25 }
 0x1d6   :  { %2486 = vmatmul.mubr.bf16.gmra.mrb[44].mxu0 %v3453_v11  ;;  %2559 = vmatmul.mubr.bf16.gmra.mrb[44].mxu1 %v3453_v11 }
 0x211   :  { %v1525_v13 = vpop.f32.mrb[16].mxu0  ;;  %v1598_v21 = vpop.f32.mrb[16].mxu1 }
 0x212   :  { %3055 = vtanh.f32 %v1525_v13  ;;  %v1527_v35 = vpop.f32.mrb[17].mxu0  ;;  %v1600_v48 = vpop.f32.mrb[17].mxu1 }
 0x213   :  { %3057 = vtanh.f32 %v1598_v21  ;;  %v1529_v49 = vpop.f32.mrb[18].mxu0  ;;  %v1602_v43 = vpop.f32.mrb[18].mxu1 }
 0x214   :  { %3059 = vtanh.f32 %v1527_v35  ;;  %v1531_v50 = vpop.f32.mrb[19].mxu0  ;;  %v1604_v40 = vpop.f32.mrb[19].mxu1 }
 0x215   :  { %3061 = vtanh.f32 %v1600_v48 }
 0x216   :  { %3063 = vtanh.f32 %v1529_v49 }
 0x217   :  { %3065 = vtanh.f32 %v1602_v43 }
 0x218   :  { %3067 = vtanh.f32 %v1531_v50 }
 0x219   :  { %3069 = vtanh.f32 %v1604_v40  ;;  %v1535_v54 = vpop.f32.mrb[20].mxu0  ;;  %v1608_v25 = vpop.f32.mrb[20].mxu1 }
 0x21a   :  { %3071 = vtanh.f32 %v1535_v54  ;;  %v1537_v11 = vpop.f32.mrb[21].mxu0  ;;  %v1610_v51 = vpop.f32.mrb[21].mxu1 }
 0x21b   :  { %3073 = vtanh.f32 %v1608_v25  ;;  %v1539_v52 = vpop.f32.mrb[22].mxu0  ;;  %v1612_v53 = vpop.f32.mrb[22].mxu1 }
 0x21c   :  { %v3056_v55 = vpop.eup %3055  ;;  %3075 = vtanh.f32 %v1537_v11  ;;  %v1541_v56 = vpop.f32.mrb[23].mxu0 }
 0x21d   :  { %v1614_v57 = vpop.f32.mrb[23].mxu1  ;;  %v3058_v4 = vpop.eup %3057  ;;  %2601 = vst [vmem:[%s3684_s2] sm:$0xff] %v3056_v55  ;;  %3077 = vtanh.f32 %v1610_v51 }
 0x21e   :  { %v3060_v59 = vpop.eup %3059  ;;  %2603 = vst [vmem:[%s3684_s2 + $0x10] sm:$0xff] %v3058_v4  ;;  %3079 = vtanh.f32 %v1539_v52 }
 0x21f   :  { %v3062_v24 = vpop.eup %3061  ;;  %2602 = vst [vmem:[%s3684_s2 + $0x8] sm:$0xff] %v3060_v59  ;;  %3081 = vtanh.f32 %v1612_v53 }
 0x220   :  { %v3064_v60 = vpop.eup %3063  ;;  %2604 = vst [vmem:[%s3684_s2 + $0x18] sm:$0xff] %v3062_v24  ;;  %3083 = vtanh.f32 %v1541_v56 }
 0x221   :  { %v3066_v61 = vpop.eup %3065  ;;  %2605 = vst [vmem:[%s3684_s2 + $0x40] sm:$0xff] %v3064_v60  ;;  %3085 = vtanh.f32 %v1614_v57  ;;  %v1545_v62 = vpop.f32.mrb[24].mxu0 }
 0x222   :  { %v1618_v1 = vpop.f32.mrb[24].mxu1  ;;  %v3068_v63 = vpop.eup %3067  ;;  %2607 = vst [vmem:[%s3684_s2 + $0x50] sm:$0xff] %v3066_v61  ;;  %3087 = vtanh.f32 %v1545_v62 }
 0x223   :  { %v1547_v0 = vpop.f32.mrb[25].mxu0  ;;  %v1620_v5 = vpop.f32.mrb[25].mxu1  ;;  %2606 = vst [vmem:[%s3684_s2 + $0x48] sm:$0xff] %v3068_v63  ;;  %3089 = vtanh.f32 %v1618_v1 }
 0x224   :  { %v3070_v58 = vpop.eup %3069  ;;  %v1549_v6 = vpop.f32.mrb[26].mxu0  ;;  %3091 = vtanh.f32 %v1547_v0 }
 0x225   :  { %v1622_v8 = vpop.f32.mrb[26].mxu1  ;;  %v3072_v9 = vpop.eup %3071  ;;  %2608 = vst [vmem:[%s3684_s2 + $0x58] sm:$0xff] %v3070_v58  ;;  %3093 = vtanh.f32 %v1620_v5 }
 0x226   :  { %v1551_v10 = vpop.f32.mrb[27].mxu0  ;;  %v1624_v12 = vpop.f32.mrb[27].mxu1  ;;  %2609 = vst [vmem:[%s3684_s2 + $0x80] sm:$0xff] %v3072_v9  ;;  %3095 = vtanh.f32 %v1549_v6 }
 0x227   :  { %v3074_v14 = vpop.eup %3073  ;;  %3097 = vtanh.f32 %v1622_v8 }
 0x228   :  { %v3076_v15 = vpop.eup %3075  ;;  %2611 = vst [vmem:[%s3684_s2 + $0x90] sm:$0xff] %v3074_v14  ;;  %3099 = vtanh.f32 %v1551_v10 }
 0x229   :  { %v3078_v7 = vpop.eup %3077  ;;  %2610 = vst [vmem:[%s3684_s2 + $0x88] sm:$0xff] %v3076_v15  ;;  %3101 = vtanh.f32 %v1624_v12  ;;  %v1555_v20 = vpop.f32.mrb[28].mxu0 }
 0x22a   :  { %v3080_v17 = vpop.eup %3079  ;;  %2612 = vst [vmem:[%s3684_s2 + $0x98] sm:$0xff] %v3078_v7  ;;  %v1628_v22 = vpop.f32.mrb[28].mxu1  ;;  %3103 = vtanh.f32 %v1555_v20 }
 0x22b   :  { %v3082_v19 = vpop.eup %3081  ;;  %2613 = vst [vmem:[%s3684_s2 + $0xc0] sm:$0xff] %v3080_v17  ;;  %v1557_v26 = vpop.f32.mrb[29].mxu0  ;;  %3105 = vtanh.f32 %v1628_v22 }
 0x22c   :  { %v3084_v23 = vpop.eup %3083  ;;  %2615 = vst [vmem:[%s3684_s2 + $0xd0] sm:$0xff] %v3082_v19  ;;  %v1630_v27 = vpop.f32.mrb[29].mxu1  ;;  %3107 = vtanh.f32 %v1557_v26 }
 0x22d   :  { %v3086_v18 = vpop.eup %3085  ;;  %2614 = vst [vmem:[%s3684_s2 + $0xc8] sm:$0xff] %v3084_v23  ;;  %v1559_v28 = vpop.f32.mrb[30].mxu0  ;;  %3109 = vtanh.f32 %v1630_v27 }
 0x22e   :  { %v1632_v29 = vpop.f32.mrb[30].mxu1  ;;  %v3088_v30 = vpop.eup %3087  ;;  %2616 = vst [vmem:[%s3684_s2 + $0xd8] sm:$0xff] %v3086_v18  ;;  %3111 = vtanh.f32 %v1559_v28 }
 0x22f   :  { %v1561_v31 = vpop.f32.mrb[31].mxu0  ;;  %v1634_v32 = vpop.f32.mrb[31].mxu1  ;;  %2617 = vst [vmem:[%s3684_s2 + $0x100] sm:$0xff] %v3088_v30  ;;  %3113 = vtanh.f32 %v1632_v29 }
 0x230   :  { %v3090_v33 = vpop.eup %3089  ;;  %3115 = vtanh.f32 %v1561_v31 }
 0x231   :  { %v3092_v34 = vpop.eup %3091  ;;  %2619 = vst [vmem:[%s3684_s2 + $0x110] sm:$0xff] %v3090_v33  ;;  %3117 = vtanh.f32 %v1634_v32 }
 0x232   :  { %v3094_v16 = vpop.eup %3093  ;;  %2618 = vst [vmem:[%s3684_s2 + $0x108] sm:$0xff] %v3092_v34 }
 0x233   :  { %v3096_v36 = vpop.eup %3095  ;;  %2620 = vst [vmem:[%s3684_s2 + $0x118] sm:$0xff] %v3094_v16 }
 0x234   :  { %v3098_v37 = vpop.eup %3097  ;;  %2621 = vst [vmem:[%s3684_s2 + $0x140] sm:$0xff] %v3096_v36 }
 0x235   :  { %v3100_v2 = vpop.eup %3099  ;;  %2623 = vst [vmem:[%s3684_s2 + $0x150] sm:$0xff] %v3098_v37 }
 0x236   :  { %v3102_v38 = vpop.eup %3101  ;;  %2622 = vst [vmem:[%s3684_s2 + $0x148] sm:$0xff] %v3100_v2 }
 0x237   :  { %v3104_v39 = vpop.eup %3103  ;;  %2624 = vst [vmem:[%s3684_s2 + $0x158] sm:$0xff] %v3102_v38 }
 0x238   :  { %v3106_v41 = vpop.eup %3105  ;;  %2625 = vst [vmem:[%s3684_s2 + $0x180] sm:$0xff] %v3104_v39 }
 0x239   :  { %v3108_v44 = vpop.eup %3107  ;;  %2627 = vst [vmem:[%s3684_s2 + $0x190] sm:$0xff] %v3106_v41 }
 0x23a   :  { %v3110_v42 = vpop.eup %3109  ;;  %2626 = vst [vmem:[%s3684_s2 + $0x188] sm:$0xff] %v3108_v44 }
 0x23b   :  { %v3112_v45 = vpop.eup %3111  ;;  %2628 = vst [vmem:[%s3684_s2 + $0x198] sm:$0xff] %v3110_v42 }
 0x23c   :  { %v3114_v46 = vpop.eup %3113  ;;  %2629 = vst [vmem:[%s3684_s2 + $0x1c0] sm:$0xff] %v3112_v45 }
 0x23d   :  { %v3116_v3 = vpop.eup %3115  ;;  %2631 = vst [vmem:[%s3684_s2 + $0x1d0] sm:$0xff] %v3114_v46 }
 0x23e   :  { %v3118_v47 = vpop.eup %3117  ;;  %2630 = vst [vmem:[%s3684_s2 + $0x1c8] sm:$0xff] %v3116_v3 }
 0x23f   :  { %2632 = vst [vmem:[%s3684_s2 + $0x1d8] sm:$0xff] %v3118_v47 }
 0x291   :  { %v2457_v13 = vpop.f32.mrb[32].mxu0  ;;  %v2530_v21 = vpop.f32.mrb[32].mxu1 }
 0x292   :  { %3119 = vtanh.f32 %v2457_v13  ;;  %v2459_v35 = vpop.f32.mrb[33].mxu0  ;;  %v2532_v48 = vpop.f32.mrb[33].mxu1 }
 0x293   :  { %3121 = vtanh.f32 %v2530_v21  ;;  %v2461_v49 = vpop.f32.mrb[34].mxu0  ;;  %v2534_v43 = vpop.f32.mrb[34].mxu1 }
 0x294   :  { %3123 = vtanh.f32 %v2459_v35  ;;  %v2463_v50 = vpop.f32.mrb[35].mxu0  ;;  %v2536_v40 = vpop.f32.mrb[35].mxu1 }
 0x295   :  { %3125 = vtanh.f32 %v2532_v48 }
 0x296   :  { %3127 = vtanh.f32 %v2461_v49 }
 0x297   :  { %3129 = vtanh.f32 %v2534_v43 }
 0x298   :  { %3131 = vtanh.f32 %v2463_v50 }
 0x299   :  { %3133 = vtanh.f32 %v2536_v40  ;;  %v2467_v54 = vpop.f32.mrb[36].mxu0  ;;  %v2540_v25 = vpop.f32.mrb[36].mxu1 }
 0x29a   :  { %3135 = vtanh.f32 %v2467_v54  ;;  %v2469_v11 = vpop.f32.mrb[37].mxu0  ;;  %v2542_v51 = vpop.f32.mrb[37].mxu1 }
 0x29b   :  { %3137 = vtanh.f32 %v2540_v25  ;;  %v2471_v52 = vpop.f32.mrb[38].mxu0  ;;  %v2544_v53 = vpop.f32.mrb[38].mxu1 }
 0x29c   :  { %v3120_v55 = vpop.eup %3119  ;;  %3139 = vtanh.f32 %v2469_v11  ;;  %v2473_v56 = vpop.f32.mrb[39].mxu0 }
 0x29d   :  { %v2546_v57 = vpop.f32.mrb[39].mxu1  ;;  %v3122_v4 = vpop.eup %3121  ;;  %2665 = vst [vmem:[%s3684_s2 + $0x20] sm:$0xff] %v3120_v55  ;;  %3141 = vtanh.f32 %v2542_v51 }
 0x29e   :  { %v3124_v59 = vpop.eup %3123  ;;  %2667 = vst [vmem:[%s3684_s2 + $0x30] sm:$0xff] %v3122_v4  ;;  %3143 = vtanh.f32 %v2471_v52 }
 0x29f   :  { %v3126_v24 = vpop.eup %3125  ;;  %2666 = vst [vmem:[%s3684_s2 + $0x28] sm:$0xff] %v3124_v59  ;;  %3145 = vtanh.f32 %v2544_v53 }
 0x2a0   :  { %v3128_v60 = vpop.eup %3127  ;;  %2668 = vst [vmem:[%s3684_s2 + $0x38] sm:$0xff] %v3126_v24  ;;  %3147 = vtanh.f32 %v2473_v56 }
 0x2a1   :  { %v3130_v61 = vpop.eup %3129  ;;  %2669 = vst [vmem:[%s3684_s2 + $0x60] sm:$0xff] %v3128_v60  ;;  %3149 = vtanh.f32 %v2546_v57  ;;  %v2477_v62 = vpop.f32.mrb[40].mxu0 }
 0x2a2   :  { %v2550_v1 = vpop.f32.mrb[40].mxu1  ;;  %v3132_v63 = vpop.eup %3131  ;;  %2671 = vst [vmem:[%s3684_s2 + $0x70] sm:$0xff] %v3130_v61  ;;  %3151 = vtanh.f32 %v2477_v62 }
 0x2a3   :  { %v2479_v0 = vpop.f32.mrb[41].mxu0  ;;  %v2552_v5 = vpop.f32.mrb[41].mxu1  ;;  %2670 = vst [vmem:[%s3684_s2 + $0x68] sm:$0xff] %v3132_v63  ;;  %3153 = vtanh.f32 %v2550_v1 }
 0x2a4   :  { %v3134_v58 = vpop.eup %3133  ;;  %v2481_v6 = vpop.f32.mrb[42].mxu0  ;;  %3155 = vtanh.f32 %v2479_v0 }
 0x2a5   :  { %v2554_v8 = vpop.f32.mrb[42].mxu1  ;;  %v3136_v9 = vpop.eup %3135  ;;  %2672 = vst [vmem:[%s3684_s2 + $0x78] sm:$0xff] %v3134_v58  ;;  %3157 = vtanh.f32 %v2552_v5 }
 0x2a6   :  { %v2483_v10 = vpop.f32.mrb[43].mxu0  ;;  %v2556_v12 = vpop.f32.mrb[43].mxu1  ;;  %2673 = vst [vmem:[%s3684_s2 + $0xa0] sm:$0xff] %v3136_v9  ;;  %3159 = vtanh.f32 %v2481_v6 }
 0x2a7   :  { %v3138_v14 = vpop.eup %3137  ;;  %3161 = vtanh.f32 %v2554_v8 }
 0x2a8   :  { %v3140_v15 = vpop.eup %3139  ;;  %2675 = vst [vmem:[%s3684_s2 + $0xb0] sm:$0xff] %v3138_v14  ;;  %3163 = vtanh.f32 %v2483_v10 }
 0x2a9   :  { %v3142_v7 = vpop.eup %3141  ;;  %2674 = vst [vmem:[%s3684_s2 + $0xa8] sm:$0xff] %v3140_v15  ;;  %3165 = vtanh.f32 %v2556_v12  ;;  %v2487_v20 = vpop.f32.mrb[44].mxu0 }
 0x2aa   :  { %v3144_v17 = vpop.eup %3143  ;;  %2676 = vst [vmem:[%s3684_s2 + $0xb8] sm:$0xff] %v3142_v7  ;;  %v2560_v22 = vpop.f32.mrb[44].mxu1  ;;  %3167 = vtanh.f32 %v2487_v20 }
 0x2ab   :  { %v3146_v19 = vpop.eup %3145  ;;  %2677 = vst [vmem:[%s3684_s2 + $0xe0] sm:$0xff] %v3144_v17  ;;  %v2489_v26 = vpop.f32.mrb[45].mxu0  ;;  %3169 = vtanh.f32 %v2560_v22 }
 0x2ac   :  { %v3148_v23 = vpop.eup %3147  ;;  %2679 = vst [vmem:[%s3684_s2 + $0xf0] sm:$0xff] %v3146_v19  ;;  %v2562_v27 = vpop.f32.mrb[45].mxu1  ;;  %3171 = vtanh.f32 %v2489_v26 }
 0x2ad   :  { %v3150_v18 = vpop.eup %3149  ;;  %2678 = vst [vmem:[%s3684_s2 + $0xe8] sm:$0xff] %v3148_v23  ;;  %v2491_v28 = vpop.f32.mrb[46].mxu0  ;;  %3173 = vtanh.f32 %v2562_v27 }
 0x2ae   :  { %v2564_v29 = vpop.f32.mrb[46].mxu1  ;;  %v3152_v30 = vpop.eup %3151  ;;  %2680 = vst [vmem:[%s3684_s2 + $0xf8] sm:$0xff] %v3150_v18  ;;  %3175 = vtanh.f32 %v2491_v28 }
 0x2af   :  { %v2493_v31 = vpop.f32.mrb[47].mxu0  ;;  %v2566_v32 = vpop.f32.mrb[47].mxu1  ;;  %2681 = vst [vmem:[%s3684_s2 + $0x120] sm:$0xff] %v3152_v30  ;;  %3177 = vtanh.f32 %v2564_v29 }
 0x2b0   :  { %v3154_v33 = vpop.eup %3153  ;;  %3179 = vtanh.f32 %v2493_v31 }
 0x2b1   :  { %v3156_v34 = vpop.eup %3155  ;;  %2683 = vst [vmem:[%s3684_s2 + $0x130] sm:$0xff] %v3154_v33  ;;  %3181 = vtanh.f32 %v2566_v32 }
 0x2b2   :  { %v3158_v16 = vpop.eup %3157  ;;  %2682 = vst [vmem:[%s3684_s2 + $0x128] sm:$0xff] %v3156_v34 }
 0x2b3   :  { %v3160_v36 = vpop.eup %3159  ;;  %2684 = vst [vmem:[%s3684_s2 + $0x138] sm:$0xff] %v3158_v16 }
 0x2b4   :  { %v3162_v37 = vpop.eup %3161  ;;  %2685 = vst [vmem:[%s3684_s2 + $0x160] sm:$0xff] %v3160_v36 }
 0x2b5   :  { %v3164_v2 = vpop.eup %3163  ;;  %2687 = vst [vmem:[%s3684_s2 + $0x170] sm:$0xff] %v3162_v37 }
 0x2b6   :  { %v3166_v38 = vpop.eup %3165  ;;  %2686 = vst [vmem:[%s3684_s2 + $0x168] sm:$0xff] %v3164_v2 }
 0x2b7   :  { %v3168_v39 = vpop.eup %3167  ;;  %2688 = vst [vmem:[%s3684_s2 + $0x178] sm:$0xff] %v3166_v38 }
 0x2b8   :  { %v3170_v41 = vpop.eup %3169  ;;  %2689 = vst [vmem:[%s3684_s2 + $0x1a0] sm:$0xff] %v3168_v39 }
 0x2b9   :  { %v3172_v44 = vpop.eup %3171  ;;  %2691 = vst [vmem:[%s3684_s2 + $0x1b0] sm:$0xff] %v3170_v41 }
 0x2ba   :  { %v3174_v42 = vpop.eup %3173  ;;  %2690 = vst [vmem:[%s3684_s2 + $0x1a8] sm:$0xff] %v3172_v44 }
 0x2bb   :  { %v3176_v45 = vpop.eup %3175  ;;  %2692 = vst [vmem:[%s3684_s2 + $0x1b8] sm:$0xff] %v3174_v42 }
 0x2bc   :  { %v3178_v46 = vpop.eup %3177  ;;  %2693 = vst [vmem:[%s3684_s2 + $0x1e0] sm:$0xff] %v3176_v45 }
 0x2bd   :  { %v3180_v3 = vpop.eup %3179  ;;  %2695 = vst [vmem:[%s3684_s2 + $0x1f0] sm:$0xff] %v3178_v46 }
 0x2be   :  { %v3182_v47 = vpop.eup %3181  ;;  %2694 = vst [vmem:[%s3684_s2 + $0x1e8] sm:$0xff] %v3180_v3 }
 0x2bf   :  { %2696 = vst [vmem:[%s3684_s2 + $0x1f8] sm:$0xff] %v3182_v47 }
 0x2c0   :  { %2701 = vsyncpa [#allocation3], 1 }

</bundles_post_ra>
